<compile_context>
chip_gen: v6e
topology: v6e:2x2x1
jax: 0.10.0
libtpu: 0.0.40
codegen_flags: <defaults>
</compile_context>

<pallas_src>
import jax
import jax.numpy as jnp
from jax.experimental import pallas as pl
from jax.experimental.pallas import tpu as pltpu

HIDDEN_DIM = 300
H2 = HIDDEN_DIM // 2          # 150 = LSTM hidden size / post_dense hidden size
HP = 256                      # lane-aligned (128-multiple) padded LSTM gate width
MXU_DTYPE = jnp.bfloat16      # set to jnp.float32 for bit-level parity with the f32 module


# ----------------------------------------------------------------------------
# Fused kernel: prev_dense -> bidirectional LSTM (over agents) -> post_dense
# Activations are agent-major: refs are (A, TB, feat); rows flatten to (A*TB, feat).
# ----------------------------------------------------------------------------
def critic_kernel(
    xn_ref, an_ref,
    # prev_dense (w1 split into x / a row blocks so cat(x_n, a_n) is never built)
    w1x_ref, w1a_ref, b1_ref, w2_ref, b2_ref, w3_ref, b3_ref, w4_ref, b4_ref,
    # bi-LSTM packed weights, gate blocks padded to HP lanes:
    #   wx (150, 8*HP) cols = [fwd i,f,g,o | bwd i,f,g,o], bx (1, 8*HP) = b_ih + b_hh,
    #   whf / whb (HP, 4*HP) cols = [i,f,g,o]
    wx_ref, bx_ref, whf_ref, whb_ref,
    # post_dense (w1 split into lstm-fwd / lstm-bwd / x_n row blocks)
    p1f_ref, p1b_ref, p1s_ref, pb1_ref, p2_ref, pb2_ref, p3_ref, pb3_ref,
    p4_ref, pb4_ref,
    o_ref,
):
    A, TB, S = xn_ref.shape
    a_dim = an_ref.shape[2]
    HPk = whf_ref.shape[0]                     # padded LSTM width (256)
    N = A * TB

    def mm(x, w_ref):
        # MXU matmul in the weight dtype (bf16 by default) with f32 accumulation.
        return jnp.dot(x.astype(w_ref.dtype), w_ref[...],
                       preferred_element_type=jnp.float32)

    # Agent-major flatten: free (tile-boundary preserving) when TB % 8 == 0.
    xs = xn_ref[...].reshape(N, S)             # row n = (agent t, batch b), agent-major
    aa = an_ref[...].reshape(N, a_dim)

    # ---------------- prev_dense ----------------
    h = jnp.maximum(mm(xs, w1x_ref) + mm(aa, w1a_ref) + b1_ref[...], 0.0)
    h = jnp.maximum(mm(h, w2_ref) + b2_ref[...], 0.0)
    h = jnp.maximum(mm(h, w3_ref) + b3_ref[...], 0.0)
    hp = mm(h, w4_ref) + b4_ref[...]           # (N, 150)

    # ---------------- bidirectional LSTM over the agent axis ----------------
    # Hoisted input->gate projection: one MXU matmul covering every timestep and both
    # directions (bias b_ih + b_hh folded in). Rows are agent-major -> per-timestep slices
    # below are aligned sublane slices, gate slices are lane-aligned (HP = 256).
    xg = mm(hp, wx_ref) + bx_ref[...]          # (N, 8*HP)

    whf = whf_ref[...]                         # loop-invariant loads
    whb = whb_ref[...]
    mxu_dt = whf.dtype

    def sig(x):                                # sigmoid via one EUP tanh + cheap VPU ops
        return 0.5 * (jnp.tanh(0.5 * x) + 1.0)

    def cell(gates, c):                        # gates (TB, 4*HP), PyTorch order (i, f, g, o)
        i = sig(gates[:, 0 * HPk:1 * HPk])
        f = sig(gates[:, 1 * HPk:2 * HPk])
        g = jnp.tanh(gates[:, 2 * HPk:3 * HPk])
        o = sig(gates[:, 3 * HPk:4 * HPk])
        c_new = f * c + i * g
        return o * jnp.tanh(c_new), c_new
    # Padded lanes (150:256) of each gate block are exactly 0 -> i=f=o=0.5, g=0, and with
    # c,h starting at 0 the padded hidden/cell lanes stay exactly 0 for all timesteps.

    zeros = jnp.zeros((TB, HPk), jnp.float32)
    h_f, c_f, h_b, c_b = zeros, zeros, zeros, zeros
    hf_seq = [None] * A                        # forward hidden state per timestep
    hb_seq = [None] * A                        # backward hidden state per timestep
    # Fully unrolled (A = n_agents is small & static); fwd and bwd recurrences advance
    # together so one direction's matmul latency hides the other's elementwise work.
    # TODO(synk): for large n_agents switch to lax.fori_loop(unroll=True) writing into an
    # (A, TB, HP) VMEM scratch to bound live ranges instead of Python lists.
    for t in range(A):
        tr = A - 1 - t
        gf = (xg[t * TB:(t + 1) * TB, :4 * HPk]
              + jnp.dot(h_f.astype(mxu_dt), whf, preferred_element_type=jnp.float32))
        gb = (xg[tr * TB:(tr + 1) * TB, 4 * HPk:]
              + jnp.dot(h_b.astype(mxu_dt), whb, preferred_element_type=jnp.float32))
        h_f, c_f = cell(gf, c_f)
        h_b, c_b = cell(gb, c_b)
        hf_seq[t] = h_f
        hb_seq[tr] = h_b                       # stored in timestep order directly

    # Agent-major (timestep-major) output rows -> aligned sublane concatenation, no transpose.
    yf = jnp.concatenate(hf_seq, axis=0)       # (N, HP)
    yb = jnp.concatenate(hb_seq, axis=0)       # (N, HP)

    # ---------------- post_dense ----------------
    # First layer consumes [lstm_fwd | lstm_bwd | x_n] via three row-blocks of W1, so neither
    # the (.., 300) concat nor the (.., +s_dim) concat is ever materialized.
    z = jnp.maximum(mm(yf, p1f_ref) + mm(yb, p1b_ref) + mm(xs, p1s_ref)
                    + pb1_ref[...], 0.0)
    z = jnp.maximum(mm(z, p2_ref) + pb2_ref[...], 0.0)
    z = jnp.maximum(mm(z, p3_ref) + pb3_ref[...], 0.0)
    out = mm(z, p4_ref) + pb4_ref[...]         # (N, 1)

    o_ref[...] = out.reshape(A, TB, 1)         # leading-dim split only: layout preserving


# ----------------------------------------------------------------------------
# Wrapper: agent-major inputs, batch-tiled grid, weights VMEM-resident via
# constant index maps, per-generation tile size / VMEM budget.
# ----------------------------------------------------------------------------
def _tpu_tuning():
    """(target batch-tile, vmem_limit_bytes, min grid steps) per TPU generation."""
    try:
        kind = jax.devices()[0].device_kind.lower()
    except Exception:
        kind = ""
    if "7" in kind:
        # v7x: 64 MiB VMEM per TC, 2 TensorCores -> smaller budget, want >=2 parallel steps.
        return 256, 48 * 1024 * 1024, 2
    # v5e / v6e: 128 MiB VMEM, single TC -> large resident tiles, bigger scoped limit.
    return 512, 80 * 1024 * 1024, 1


def critic_forward(params, x_n, a_n):
    B, A, S = x_n.shape
    a_dim = a_n.shape[-1]

    target_tb, vmem_limit, min_steps = _tpu_tuning()

    # Tile the batch axis; TB itself (not TB*A) is the MXU M dimension of the recurrence.
    tile_b = min(B, target_tb)
    if min_steps > 1 and B >= 16 and -(-B // tile_b) < min_steps:
        # keep >=2 grid steps so both v7x TensorCores get work (tile stays a multiple of 8)
        half = ((-(-B // 2)) + 7) // 8 * 8
        tile_b = min(tile_b, half)
    grid = (pl.cdiv(B, tile_b),)

    # Agent-major layout so per-timestep slicing inside the kernel is sublane-aligned.
    x_t = jnp.transpose(x_n, (1, 0, 2))        # (A, B, S)
    a_t = jnp.transpose(a_n, (1, 0, 2))        # (A, B, a_dim)

    def act_spec(feat):
        return pl.BlockSpec((A, tile_b, feat), lambda i: (0, i, 0))

    def w_spec(w):
        # Full-array block, constant index map -> fetched once, VMEM-resident across tiles.
        return pl.BlockSpec(w.shape, lambda i, nd=w.ndim: (0,) * nd)

    in_specs = [act_spec(S), act_spec(a_dim)] + [w_spec(w) for w in params]

    out = pl.pallas_call(
        critic_kernel,
        out_shape=jax.ShapeDtypeStruct((A, B, 1), jnp.float32),
        grid=grid,
        in_specs=in_specs,
        out_specs=pl.BlockSpec((A, tile_b, 1), lambda i: (0, i, 0)),
        compiler_params=pltpu.CompilerParams(
            dimension_semantics=("parallel",),   # batch tiles independent (2nd TC on v7x)
            vmem_limit_bytes=vmem_limit,
        ),
    )(x_t, a_t, *params)

    return jnp.transpose(out, (1, 0, 2))       # (B, A, 1)


# ----------------------------------------------------------------------------
# Deterministic synthetic parameters (not a checkpoint), packed for the kernel.
# Linear weights stored transposed vs torch.nn.Linear: (fan_in, fan_out).
# LSTM gate blocks are zero-padded from 150 to HP=256 lanes (numerics unchanged).
# ----------------------------------------------------------------------------
def init_params(key, s_dim, a_dim, mxu_dtype=MXU_DTYPE):
    def uni(k, shape, s):
        return jax.random.uniform(k, shape, jnp.float32, -s, s)

    def lin(k, fan_in, fan_out, w_scale=None):
        k1, k2 = jax.random.split(k)
        s = 1.0 / float(fan_in) ** 0.5
        w = uni(k1, (fan_in, fan_out), w_scale if w_scale is not None else s)
        b = uni(k2, (1, fan_out), s)
        return w, b

    keys = jax.random.split(key, 13)

    # prev_dense: DenseNet(s_dim + a_dim, 300, 150); dense3 gets the 0.003 init
    # (matches the reference: dense3.weight.uniform_(-0.003, 0.003)).
    w1, b1 = lin(keys[0], s_dim + a_dim, HIDDEN_DIM)
    w1x, w1a = w1[:s_dim], w1[s_dim:]
    w2, b2 = lin(keys[1], HIDDEN_DIM, HIDDEN_DIM)
    w3, b3 = lin(keys[2], HIDDEN_DIM, HIDDEN_DIM, w_scale=0.003)
    w4, b4 = lin(keys[3], HIDDEN_DIM, H2)

    # comm_net: bidirectional LSTM(150 -> 150), PyTorch gate order (i, f, g, o).
    s = 1.0 / float(H2) ** 0.5
    wx_raw = uni(keys[4], (H2, 8 * H2), s)        # cols = [fwd i,f,g,o | bwd i,f,g,o]
    whf_raw = uni(keys[5], (H2, 4 * H2), s)
    whb_raw = uni(keys[6], (H2, 4 * H2), s)
    bx_raw = uni(keys[7], (1, 8 * H2), s) + uni(keys[8], (1, 8 * H2), s)   # b_ih + b_hh

    def pad_gate_cols(w, n_blocks):
        # embed each H2-wide gate block into an HP-wide, zero-padded block
        out = jnp.zeros((w.shape[0], n_blocks * HP), jnp.float32)
        for blk in range(n_blocks):
            out = out.at[:, blk * HP: blk * HP + H2].set(w[:, blk * H2:(blk + 1) * H2])
        return out

    wx = pad_gate_cols(wx_raw, 8)                                   # (150, 8*HP)
    bx = pad_gate_cols(bx_raw, 8)                                   # (1,   8*HP)
    whf = jnp.zeros((HP, 4 * HP), jnp.float32).at[:H2].set(pad_gate_cols(whf_raw, 4))
    whb = jnp.zeros((HP, 4 * HP), jnp.float32).at[:H2].set(pad_gate_cols(whb_raw, 4))

    # post_dense: DenseNet(300 + s_dim, 150, 1); row blocks padded to HP where they consume
    # the (padded) LSTM outputs.
    p1, pb1 = lin(keys[9], HIDDEN_DIM + s_dim, H2)
    p1f = jnp.zeros((HP, H2), jnp.float32).at[:H2].set(p1[:H2])
    p1b = jnp.zeros((HP, H2), jnp.float32).at[:H2].set(p1[H2:HIDDEN_DIM])
    p1s = p1[HIDDEN_DIM:]
    p2, pb2 = lin(keys[10], H2, H2)
    p3, pb3 = lin(keys[11], H2, H2, w_scale=0.003)
    p4, pb4 = lin(keys[12], H2, 1)

    def c(w):   # matmul weights in MXU dtype; biases stay f32 (added to f32 accumulators)
        return w.astype(mxu_dtype)

    return (c(w1x), c(w1a), b1, c(w2), b2, c(w3), b3, c(w4), b4,
            c(wx), bx, c(whf), c(whb),
            c(p1f), c(p1b), c(p1s), pb1, c(p2), pb2, c(p3), pb3, c(p4), pb4)


if __name__ == "__main__":
    s_dim, a_dim, n_agents, batch = 10, 5, 4, 2

    key = jax.random.PRNGKey(0)
    k_par, k_x, k_a = jax.random.split(key, 3)
    params = init_params(k_par, s_dim, a_dim)

    x_n = jax.random.normal(k_x, (batch, n_agents, s_dim), jnp.float32)
    a_n = jax.random.normal(k_a, (batch, n_agents, a_dim), jnp.float32)

    out = jax.jit(critic_forward)(params, x_n, a_n)
    out = jax.block_until_ready(out)
    assert out.shape == (batch, n_agents, 1), out.shape
    assert out.dtype == jnp.float32
    assert bool(jnp.isfinite(out).all())
    print("KERNEL_OK")
</pallas_src>

<mosaic_0001>
module attributes {stable_mosaic.version = 11 : i64} {
  func.func @critic_kernel(%arg0: i32, %arg1: memref<4x2x10xf32, #tpu.memory_space<vmem>>, %arg2: memref<4x2x5xf32, #tpu.memory_space<vmem>>, %arg3: memref<10x300xbf16, #tpu.memory_space<vmem>>, %arg4: memref<5x300xbf16, #tpu.memory_space<vmem>>, %arg5: memref<1x300xf32, #tpu.memory_space<vmem>>, %arg6: memref<300x300xbf16, #tpu.memory_space<vmem>>, %arg7: memref<1x300xf32, #tpu.memory_space<vmem>>, %arg8: memref<300x300xbf16, #tpu.memory_space<vmem>>, %arg9: memref<1x300xf32, #tpu.memory_space<vmem>>, %arg10: memref<300x150xbf16, #tpu.memory_space<vmem>>, %arg11: memref<1x150xf32, #tpu.memory_space<vmem>>, %arg12: memref<150x2048xbf16, #tpu.memory_space<vmem>>, %arg13: memref<1x2048xf32, #tpu.memory_space<vmem>>, %arg14: memref<256x1024xbf16, #tpu.memory_space<vmem>>, %arg15: memref<256x1024xbf16, #tpu.memory_space<vmem>>, %arg16: memref<256x150xbf16, #tpu.memory_space<vmem>>, %arg17: memref<256x150xbf16, #tpu.memory_space<vmem>>, %arg18: memref<10x150xbf16, #tpu.memory_space<vmem>>, %arg19: memref<1x150xf32, #tpu.memory_space<vmem>>, %arg20: memref<150x150xbf16, #tpu.memory_space<vmem>>, %arg21: memref<1x150xf32, #tpu.memory_space<vmem>>, %arg22: memref<150x150xbf16, #tpu.memory_space<vmem>>, %arg23: memref<1x150xf32, #tpu.memory_space<vmem>>, %arg24: memref<150x1xbf16, #tpu.memory_space<vmem>>, %arg25: memref<1x1xf32, #tpu.memory_space<vmem>>, %arg26: memref<4x2x1xf32, #tpu.memory_space<vmem>>) attributes {dimension_semantics = [#tpu.dimension_semantics<parallel>], iteration_bounds = array<i64: 1>, scalar_prefetch = 0 : i64, scratch_operands = 0 : i64, tpu.core_type = #tpu.core_type<tc>, window_params = [{transform_indices = @transform_0, window_bounds = array<i64: 4, 2, 10>}, {transform_indices = @transform_1, window_bounds = array<i64: 4, 2, 5>}, {pipeline_mode = #tpu.pipeline_mode<synchronous>, transform_indices = @transform_2, window_bounds = array<i64: 10, 300>}, {pipeline_mode = #tpu.pipeline_mode<synchronous>, transform_indices = @transform_3, window_bounds = array<i64: 5, 300>}, {pipeline_mode = #tpu.pipeline_mode<synchronous>, transform_indices = @transform_4, window_bounds = array<i64: 1, 300>}, {pipeline_mode = #tpu.pipeline_mode<synchronous>, transform_indices = @transform_5, window_bounds = array<i64: 300, 300>}, {pipeline_mode = #tpu.pipeline_mode<synchronous>, transform_indices = @transform_6, window_bounds = array<i64: 1, 300>}, {pipeline_mode = #tpu.pipeline_mode<synchronous>, transform_indices = @transform_7, window_bounds = array<i64: 300, 300>}, {pipeline_mode = #tpu.pipeline_mode<synchronous>, transform_indices = @transform_8, window_bounds = array<i64: 1, 300>}, {pipeline_mode = #tpu.pipeline_mode<synchronous>, transform_indices = @transform_9, window_bounds = array<i64: 300, 150>}, {pipeline_mode = #tpu.pipeline_mode<synchronous>, transform_indices = @transform_10, window_bounds = array<i64: 1, 150>}, {pipeline_mode = #tpu.pipeline_mode<synchronous>, transform_indices = @transform_11, window_bounds = array<i64: 150, 2048>}, {pipeline_mode = #tpu.pipeline_mode<synchronous>, transform_indices = @transform_12, window_bounds = array<i64: 1, 2048>}, {pipeline_mode = #tpu.pipeline_mode<synchronous>, transform_indices = @transform_13, window_bounds = array<i64: 256, 1024>}, {pipeline_mode = #tpu.pipeline_mode<synchronous>, transform_indices = @transform_14, window_bounds = array<i64: 256, 1024>}, {pipeline_mode = #tpu.pipeline_mode<synchronous>, transform_indices = @transform_15, window_bounds = array<i64: 256, 150>}, {pipeline_mode = #tpu.pipeline_mode<synchronous>, transform_indices = @transform_16, window_bounds = array<i64: 256, 150>}, {pipeline_mode = #tpu.pipeline_mode<synchronous>, transform_indices = @transform_17, window_bounds = array<i64: 10, 150>}, {pipeline_mode = #tpu.pipeline_mode<synchronous>, transform_indices = @transform_18, window_bounds = array<i64: 1, 150>}, {pipeline_mode = #tpu.pipeline_mode<synchronous>, transform_indices = @transform_19, window_bounds = array<i64: 150, 150>}, {pipeline_mode = #tpu.pipeline_mode<synchronous>, transform_indices = @transform_20, window_bounds = array<i64: 1, 150>}, {pipeline_mode = #tpu.pipeline_mode<synchronous>, transform_indices = @transform_21, window_bounds = array<i64: 150, 150>}, {pipeline_mode = #tpu.pipeline_mode<synchronous>, transform_indices = @transform_22, window_bounds = array<i64: 1, 150>}, {pipeline_mode = #tpu.pipeline_mode<synchronous>, transform_indices = @transform_23, window_bounds = array<i64: 150, 1>}, {pipeline_mode = #tpu.pipeline_mode<synchronous>, transform_indices = @transform_24, window_bounds = array<i64: 1, 1>}, {transform_indices = @transform_25, window_bounds = array<i64: 4, 2, 1>}]} {
    %c0 = arith.constant 0 : index
    %c0_0 = arith.constant 0 : index
    %c0_1 = arith.constant 0 : index
    %0 = vector.load %arg1[%c0, %c0_0, %c0_1] : memref<4x2x10xf32, #tpu.memory_space<vmem>>, vector<4x2x10xf32>
    %1 = vector.shape_cast %0 : vector<4x2x10xf32> to vector<8x10xf32>
    %c0_2 = arith.constant 0 : index
    %c0_3 = arith.constant 0 : index
    %c0_4 = arith.constant 0 : index
    %2 = vector.load %arg2[%c0_2, %c0_3, %c0_4] : memref<4x2x5xf32, #tpu.memory_space<vmem>>, vector<4x2x5xf32>
    %3 = vector.shape_cast %2 : vector<4x2x5xf32> to vector<8x5xf32>
    %4 = arith.truncf %1 : vector<8x10xf32> to vector<8x10xbf16>
    %c0_5 = arith.constant 0 : index
    %c0_6 = arith.constant 0 : index
    %5 = vector.load %arg3[%c0_5, %c0_6] : memref<10x300xbf16, #tpu.memory_space<vmem>>, vector<10x300xbf16>
    %cst = arith.constant dense<0.000000e+00> : vector<8x300xf32>
    %6 = tpu.matmul %4, %5, %cst {dimension_numbers = #tpu.dot_dimension_numbers<[1], [0], [0], [1], [0, 0, 1, 1], [], []>} : vector<8x10xbf16>, vector<10x300xbf16>, vector<8x300xf32> -> vector<8x300xf32>
    %7 = arith.truncf %3 : vector<8x5xf32> to vector<8x5xbf16>
    %c0_7 = arith.constant 0 : index
    %c0_8 = arith.constant 0 : index
    %8 = vector.load %arg4[%c0_7, %c0_8] : memref<5x300xbf16, #tpu.memory_space<vmem>>, vector<5x300xbf16>
    %cst_9 = arith.constant dense<0.000000e+00> : vector<8x300xf32>
    %9 = tpu.matmul %7, %8, %cst_9 {dimension_numbers = #tpu.dot_dimension_numbers<[1], [0], [0], [1], [0, 0, 1, 1], [], []>} : vector<8x5xbf16>, vector<5x300xbf16>, vector<8x300xf32> -> vector<8x300xf32>
    %10 = arith.addf %6, %9 : vector<8x300xf32>
    %c0_10 = arith.constant 0 : index
    %c0_11 = arith.constant 0 : index
    %11 = vector.load %arg5[%c0_10, %c0_11] : memref<1x300xf32, #tpu.memory_space<vmem>>, vector<1x300xf32>
    %12 = vector.broadcast %11 : vector<1x300xf32> to vector<8x300xf32>
    %13 = arith.addf %10, %12 : vector<8x300xf32>
    %cst_12 = arith.constant 0.000000e+00 : f32
    %14 = vector.broadcast %cst_12 : f32 to vector<8x300xf32>
    %15 = arith.maximumf %13, %14 : vector<8x300xf32>
    %16 = arith.truncf %15 : vector<8x300xf32> to vector<8x300xbf16>
    %c0_13 = arith.constant 0 : index
    %c0_14 = arith.constant 0 : index
    %17 = vector.load %arg6[%c0_13, %c0_14] : memref<300x300xbf16, #tpu.memory_space<vmem>>, vector<300x300xbf16>
    %cst_15 = arith.constant dense<0.000000e+00> : vector<8x300xf32>
    %18 = tpu.matmul %16, %17, %cst_15 {dimension_numbers = #tpu.dot_dimension_numbers<[1], [0], [0], [1], [0, 0, 1, 1], [], []>} : vector<8x300xbf16>, vector<300x300xbf16>, vector<8x300xf32> -> vector<8x300xf32>
    %c0_16 = arith.constant 0 : index
    %c0_17 = arith.constant 0 : index
    %19 = vector.load %arg7[%c0_16, %c0_17] : memref<1x300xf32, #tpu.memory_space<vmem>>, vector<1x300xf32>
    %20 = vector.broadcast %19 : vector<1x300xf32> to vector<8x300xf32>
    %21 = arith.addf %18, %20 : vector<8x300xf32>
    %cst_18 = arith.constant 0.000000e+00 : f32
    %22 = vector.broadcast %cst_18 : f32 to vector<8x300xf32>
    %23 = arith.maximumf %21, %22 : vector<8x300xf32>
    %24 = arith.truncf %23 : vector<8x300xf32> to vector<8x300xbf16>
    %c0_19 = arith.constant 0 : index
    %c0_20 = arith.constant 0 : index
    %25 = vector.load %arg8[%c0_19, %c0_20] : memref<300x300xbf16, #tpu.memory_space<vmem>>, vector<300x300xbf16>
    %cst_21 = arith.constant dense<0.000000e+00> : vector<8x300xf32>
    %26 = tpu.matmul %24, %25, %cst_21 {dimension_numbers = #tpu.dot_dimension_numbers<[1], [0], [0], [1], [0, 0, 1, 1], [], []>} : vector<8x300xbf16>, vector<300x300xbf16>, vector<8x300xf32> -> vector<8x300xf32>
    %c0_22 = arith.constant 0 : index
    %c0_23 = arith.constant 0 : index
    %27 = vector.load %arg9[%c0_22, %c0_23] : memref<1x300xf32, #tpu.memory_space<vmem>>, vector<1x300xf32>
    %28 = vector.broadcast %27 : vector<1x300xf32> to vector<8x300xf32>
    %29 = arith.addf %26, %28 : vector<8x300xf32>
    %cst_24 = arith.constant 0.000000e+00 : f32
    %30 = vector.broadcast %cst_24 : f32 to vector<8x300xf32>
    %31 = arith.maximumf %29, %30 : vector<8x300xf32>
    %32 = arith.truncf %31 : vector<8x300xf32> to vector<8x300xbf16>
    %c0_25 = arith.constant 0 : index
    %c0_26 = arith.constant 0 : index
    %33 = vector.load %arg10[%c0_25, %c0_26] : memref<300x150xbf16, #tpu.memory_space<vmem>>, vector<300x150xbf16>
    %cst_27 = arith.constant dense<0.000000e+00> : vector<8x150xf32>
    %34 = tpu.matmul %32, %33, %cst_27 {dimension_numbers = #tpu.dot_dimension_numbers<[1], [0], [0], [1], [0, 0, 1, 1], [], []>} : vector<8x300xbf16>, vector<300x150xbf16>, vector<8x150xf32> -> vector<8x150xf32>
    %c0_28 = arith.constant 0 : index
    %c0_29 = arith.constant 0 : index
    %35 = vector.load %arg11[%c0_28, %c0_29] : memref<1x150xf32, #tpu.memory_space<vmem>>, vector<1x150xf32>
    %36 = vector.broadcast %35 : vector<1x150xf32> to vector<8x150xf32>
    %37 = arith.addf %34, %36 : vector<8x150xf32>
    %38 = arith.truncf %37 : vector<8x150xf32> to vector<8x150xbf16>
    %c0_30 = arith.constant 0 : index
    %c0_31 = arith.constant 0 : index
    %39 = vector.load %arg12[%c0_30, %c0_31] : memref<150x2048xbf16, #tpu.memory_space<vmem>>, vector<150x2048xbf16>
    %cst_32 = arith.constant dense<0.000000e+00> : vector<8x2048xf32>
    %40 = tpu.matmul %38, %39, %cst_32 {dimension_numbers = #tpu.dot_dimension_numbers<[1], [0], [0], [1], [0, 0, 1, 1], [], []>} : vector<8x150xbf16>, vector<150x2048xbf16>, vector<8x2048xf32> -> vector<8x2048xf32>
    %c0_33 = arith.constant 0 : index
    %c0_34 = arith.constant 0 : index
    %41 = vector.load %arg13[%c0_33, %c0_34] : memref<1x2048xf32, #tpu.memory_space<vmem>>, vector<1x2048xf32>
    %42 = vector.broadcast %41 : vector<1x2048xf32> to vector<8x2048xf32>
    %43 = arith.addf %40, %42 : vector<8x2048xf32>
    %c0_35 = arith.constant 0 : index
    %c0_36 = arith.constant 0 : index
    %44 = vector.load %arg14[%c0_35, %c0_36] : memref<256x1024xbf16, #tpu.memory_space<vmem>>, vector<256x1024xbf16>
    %c0_37 = arith.constant 0 : index
    %c0_38 = arith.constant 0 : index
    %45 = vector.load %arg15[%c0_37, %c0_38] : memref<256x1024xbf16, #tpu.memory_space<vmem>>, vector<256x1024xbf16>
    %cst_39 = arith.constant 0.000000e+00 : f32
    %46 = vector.broadcast %cst_39 : f32 to vector<2x256xf32>
    %47 = vector.extract_strided_slice %43 {offsets = [0, 0], sizes = [2, 1024], strides = [1, 1]} : vector<8x2048xf32> to vector<2x1024xf32>
    %48 = arith.truncf %46 : vector<2x256xf32> to vector<2x256xbf16>
    %cst_40 = arith.constant dense<0.000000e+00> : vector<2x1024xf32>
    %49 = tpu.matmul %48, %44, %cst_40 {dimension_numbers = #tpu.dot_dimension_numbers<[1], [0], [0], [1], [0, 0, 1, 1], [], []>} : vector<2x256xbf16>, vector<256x1024xbf16>, vector<2x1024xf32> -> vector<2x1024xf32>
    %50 = arith.addf %47, %49 : vector<2x1024xf32>
    %51 = vector.extract_strided_slice %43 {offsets = [6, 1024], sizes = [2, 1024], strides = [1, 1]} : vector<8x2048xf32> to vector<2x1024xf32>
    %52 = arith.truncf %46 : vector<2x256xf32> to vector<2x256xbf16>
    %cst_41 = arith.constant dense<0.000000e+00> : vector<2x1024xf32>
    %53 = tpu.matmul %52, %45, %cst_41 {dimension_numbers = #tpu.dot_dimension_numbers<[1], [0], [0], [1], [0, 0, 1, 1], [], []>} : vector<2x256xbf16>, vector<256x1024xbf16>, vector<2x1024xf32> -> vector<2x1024xf32>
    %54 = arith.addf %51, %53 : vector<2x1024xf32>
    %55 = vector.extract_strided_slice %50 {offsets = [0, 0], sizes = [2, 256], strides = [1, 1]} : vector<2x1024xf32> to vector<2x256xf32>
    %cst_42 = arith.constant 5.000000e-01 : f32
    %56 = vector.broadcast %cst_42 : f32 to vector<2x256xf32>
    %57 = arith.mulf %56, %55 : vector<2x256xf32>
    %58 = math.tanh %57 : vector<2x256xf32>
    %cst_43 = arith.constant 1.000000e+00 : f32
    %59 = vector.broadcast %cst_43 : f32 to vector<2x256xf32>
    %60 = arith.addf %58, %59 : vector<2x256xf32>
    %cst_44 = arith.constant 5.000000e-01 : f32
    %61 = vector.broadcast %cst_44 : f32 to vector<2x256xf32>
    %62 = arith.mulf %61, %60 : vector<2x256xf32>
    %63 = vector.extract_strided_slice %50 {offsets = [0, 256], sizes = [2, 256], strides = [1, 1]} : vector<2x1024xf32> to vector<2x256xf32>
    %cst_45 = arith.constant 5.000000e-01 : f32
    %64 = vector.broadcast %cst_45 : f32 to vector<2x256xf32>
    %65 = arith.mulf %64, %63 : vector<2x256xf32>
    %66 = math.tanh %65 : vector<2x256xf32>
    %cst_46 = arith.constant 1.000000e+00 : f32
    %67 = vector.broadcast %cst_46 : f32 to vector<2x256xf32>
    %68 = arith.addf %66, %67 : vector<2x256xf32>
    %cst_47 = arith.constant 5.000000e-01 : f32
    %69 = vector.broadcast %cst_47 : f32 to vector<2x256xf32>
    %70 = arith.mulf %69, %68 : vector<2x256xf32>
    %71 = vector.extract_strided_slice %50 {offsets = [0, 512], sizes = [2, 256], strides = [1, 1]} : vector<2x1024xf32> to vector<2x256xf32>
    %72 = math.tanh %71 : vector<2x256xf32>
    %73 = vector.extract_strided_slice %50 {offsets = [0, 768], sizes = [2, 256], strides = [1, 1]} : vector<2x1024xf32> to vector<2x256xf32>
    %cst_48 = arith.constant 5.000000e-01 : f32
    %74 = vector.broadcast %cst_48 : f32 to vector<2x256xf32>
    %75 = arith.mulf %74, %73 : vector<2x256xf32>
    %76 = math.tanh %75 : vector<2x256xf32>
    %cst_49 = arith.constant 1.000000e+00 : f32
    %77 = vector.broadcast %cst_49 : f32 to vector<2x256xf32>
    %78 = arith.addf %76, %77 : vector<2x256xf32>
    %cst_50 = arith.constant 5.000000e-01 : f32
    %79 = vector.broadcast %cst_50 : f32 to vector<2x256xf32>
    %80 = arith.mulf %79, %78 : vector<2x256xf32>
    %81 = arith.mulf %70, %46 : vector<2x256xf32>
    %82 = arith.mulf %62, %72 : vector<2x256xf32>
    %83 = arith.addf %81, %82 : vector<2x256xf32>
    %84 = math.tanh %83 : vector<2x256xf32>
    %85 = arith.mulf %80, %84 : vector<2x256xf32>
    %86 = vector.extract_strided_slice %54 {offsets = [0, 0], sizes = [2, 256], strides = [1, 1]} : vector<2x1024xf32> to vector<2x256xf32>
    %cst_51 = arith.constant 5.000000e-01 : f32
    %87 = vector.broadcast %cst_51 : f32 to vector<2x256xf32>
    %88 = arith.mulf %87, %86 : vector<2x256xf32>
    %89 = math.tanh %88 : vector<2x256xf32>
    %cst_52 = arith.constant 1.000000e+00 : f32
    %90 = vector.broadcast %cst_52 : f32 to vector<2x256xf32>
    %91 = arith.addf %89, %90 : vector<2x256xf32>
    %cst_53 = arith.constant 5.000000e-01 : f32
    %92 = vector.broadcast %cst_53 : f32 to vector<2x256xf32>
    %93 = arith.mulf %92, %91 : vector<2x256xf32>
    %94 = vector.extract_strided_slice %54 {offsets = [0, 256], sizes = [2, 256], strides = [1, 1]} : vector<2x1024xf32> to vector<2x256xf32>
    %cst_54 = arith.constant 5.000000e-01 : f32
    %95 = vector.broadcast %cst_54 : f32 to vector<2x256xf32>
    %96 = arith.mulf %95, %94 : vector<2x256xf32>
    %97 = math.tanh %96 : vector<2x256xf32>
    %cst_55 = arith.constant 1.000000e+00 : f32
    %98 = vector.broadcast %cst_55 : f32 to vector<2x256xf32>
    %99 = arith.addf %97, %98 : vector<2x256xf32>
    %cst_56 = arith.constant 5.000000e-01 : f32
    %100 = vector.broadcast %cst_56 : f32 to vector<2x256xf32>
    %101 = arith.mulf %100, %99 : vector<2x256xf32>
    %102 = vector.extract_strided_slice %54 {offsets = [0, 512], sizes = [2, 256], strides = [1, 1]} : vector<2x1024xf32> to vector<2x256xf32>
    %103 = math.tanh %102 : vector<2x256xf32>
    %104 = vector.extract_strided_slice %54 {offsets = [0, 768], sizes = [2, 256], strides = [1, 1]} : vector<2x1024xf32> to vector<2x256xf32>
    %cst_57 = arith.constant 5.000000e-01 : f32
    %105 = vector.broadcast %cst_57 : f32 to vector<2x256xf32>
    %106 = arith.mulf %105, %104 : vector<2x256xf32>
    %107 = math.tanh %106 : vector<2x256xf32>
    %cst_58 = arith.constant 1.000000e+00 : f32
    %108 = vector.broadcast %cst_58 : f32 to vector<2x256xf32>
    %109 = arith.addf %107, %108 : vector<2x256xf32>
    %cst_59 = arith.constant 5.000000e-01 : f32
    %110 = vector.broadcast %cst_59 : f32 to vector<2x256xf32>
    %111 = arith.mulf %110, %109 : vector<2x256xf32>
    %112 = arith.mulf %101, %46 : vector<2x256xf32>
    %113 = arith.mulf %93, %103 : vector<2x256xf32>
    %114 = arith.addf %112, %113 : vector<2x256xf32>
    %115 = math.tanh %114 : vector<2x256xf32>
    %116 = arith.mulf %111, %115 : vector<2x256xf32>
    %117 = vector.extract_strided_slice %43 {offsets = [2, 0], sizes = [2, 1024], strides = [1, 1]} : vector<8x2048xf32> to vector<2x1024xf32>
    %118 = arith.truncf %85 : vector<2x256xf32> to vector<2x256xbf16>
    %cst_60 = arith.constant dense<0.000000e+00> : vector<2x1024xf32>
    %119 = tpu.matmul %118, %44, %cst_60 {dimension_numbers = #tpu.dot_dimension_numbers<[1], [0], [0], [1], [0, 0, 1, 1], [], []>} : vector<2x256xbf16>, vector<256x1024xbf16>, vector<2x1024xf32> -> vector<2x1024xf32>
    %120 = arith.addf %117, %119 : vector<2x1024xf32>
    %121 = vector.extract_strided_slice %43 {offsets = [4, 1024], sizes = [2, 1024], strides = [1, 1]} : vector<8x2048xf32> to vector<2x1024xf32>
    %122 = arith.truncf %116 : vector<2x256xf32> to vector<2x256xbf16>
    %cst_61 = arith.constant dense<0.000000e+00> : vector<2x1024xf32>
    %123 = tpu.matmul %122, %45, %cst_61 {dimension_numbers = #tpu.dot_dimension_numbers<[1], [0], [0], [1], [0, 0, 1, 1], [], []>} : vector<2x256xbf16>, vector<256x1024xbf16>, vector<2x1024xf32> -> vector<2x1024xf32>
    %124 = arith.addf %121, %123 : vector<2x1024xf32>
    %125 = vector.extract_strided_slice %120 {offsets = [0, 0], sizes = [2, 256], strides = [1, 1]} : vector<2x1024xf32> to vector<2x256xf32>
    %cst_62 = arith.constant 5.000000e-01 : f32
    %126 = vector.broadcast %cst_62 : f32 to vector<2x256xf32>
    %127 = arith.mulf %126, %125 : vector<2x256xf32>
    %128 = math.tanh %127 : vector<2x256xf32>
    %cst_63 = arith.constant 1.000000e+00 : f32
    %129 = vector.broadcast %cst_63 : f32 to vector<2x256xf32>
    %130 = arith.addf %128, %129 : vector<2x256xf32>
    %cst_64 = arith.constant 5.000000e-01 : f32
    %131 = vector.broadcast %cst_64 : f32 to vector<2x256xf32>
    %132 = arith.mulf %131, %130 : vector<2x256xf32>
    %133 = vector.extract_strided_slice %120 {offsets = [0, 256], sizes = [2, 256], strides = [1, 1]} : vector<2x1024xf32> to vector<2x256xf32>
    %cst_65 = arith.constant 5.000000e-01 : f32
    %134 = vector.broadcast %cst_65 : f32 to vector<2x256xf32>
    %135 = arith.mulf %134, %133 : vector<2x256xf32>
    %136 = math.tanh %135 : vector<2x256xf32>
    %cst_66 = arith.constant 1.000000e+00 : f32
    %137 = vector.broadcast %cst_66 : f32 to vector<2x256xf32>
    %138 = arith.addf %136, %137 : vector<2x256xf32>
    %cst_67 = arith.constant 5.000000e-01 : f32
    %139 = vector.broadcast %cst_67 : f32 to vector<2x256xf32>
    %140 = arith.mulf %139, %138 : vector<2x256xf32>
    %141 = vector.extract_strided_slice %120 {offsets = [0, 512], sizes = [2, 256], strides = [1, 1]} : vector<2x1024xf32> to vector<2x256xf32>
    %142 = math.tanh %141 : vector<2x256xf32>
    %143 = vector.extract_strided_slice %120 {offsets = [0, 768], sizes = [2, 256], strides = [1, 1]} : vector<2x1024xf32> to vector<2x256xf32>
    %cst_68 = arith.constant 5.000000e-01 : f32
    %144 = vector.broadcast %cst_68 : f32 to vector<2x256xf32>
    %145 = arith.mulf %144, %143 : vector<2x256xf32>
    %146 = math.tanh %145 : vector<2x256xf32>
    %cst_69 = arith.constant 1.000000e+00 : f32
    %147 = vector.broadcast %cst_69 : f32 to vector<2x256xf32>
    %148 = arith.addf %146, %147 : vector<2x256xf32>
    %cst_70 = arith.constant 5.000000e-01 : f32
    %149 = vector.broadcast %cst_70 : f32 to vector<2x256xf32>
    %150 = arith.mulf %149, %148 : vector<2x256xf32>
    %151 = arith.mulf %140, %83 : vector<2x256xf32>
    %152 = arith.mulf %132, %142 : vector<2x256xf32>
    %153 = arith.addf %151, %152 : vector<2x256xf32>
    %154 = math.tanh %153 : vector<2x256xf32>
    %155 = arith.mulf %150, %154 : vector<2x256xf32>
    %156 = vector.extract_strided_slice %124 {offsets = [0, 0], sizes = [2, 256], strides = [1, 1]} : vector<2x1024xf32> to vector<2x256xf32>
    %cst_71 = arith.constant 5.000000e-01 : f32
    %157 = vector.broadcast %cst_71 : f32 to vector<2x256xf32>
    %158 = arith.mulf %157, %156 : vector<2x256xf32>
    %159 = math.tanh %158 : vector<2x256xf32>
    %cst_72 = arith.constant 1.000000e+00 : f32
    %160 = vector.broadcast %cst_72 : f32 to vector<2x256xf32>
    %161 = arith.addf %159, %160 : vector<2x256xf32>
    %cst_73 = arith.constant 5.000000e-01 : f32
    %162 = vector.broadcast %cst_73 : f32 to vector<2x256xf32>
    %163 = arith.mulf %162, %161 : vector<2x256xf32>
    %164 = vector.extract_strided_slice %124 {offsets = [0, 256], sizes = [2, 256], strides = [1, 1]} : vector<2x1024xf32> to vector<2x256xf32>
    %cst_74 = arith.constant 5.000000e-01 : f32
    %165 = vector.broadcast %cst_74 : f32 to vector<2x256xf32>
    %166 = arith.mulf %165, %164 : vector<2x256xf32>
    %167 = math.tanh %166 : vector<2x256xf32>
    %cst_75 = arith.constant 1.000000e+00 : f32
    %168 = vector.broadcast %cst_75 : f32 to vector<2x256xf32>
    %169 = arith.addf %167, %168 : vector<2x256xf32>
    %cst_76 = arith.constant 5.000000e-01 : f32
    %170 = vector.broadcast %cst_76 : f32 to vector<2x256xf32>
    %171 = arith.mulf %170, %169 : vector<2x256xf32>
    %172 = vector.extract_strided_slice %124 {offsets = [0, 512], sizes = [2, 256], strides = [1, 1]} : vector<2x1024xf32> to vector<2x256xf32>
    %173 = math.tanh %172 : vector<2x256xf32>
    %174 = vector.extract_strided_slice %124 {offsets = [0, 768], sizes = [2, 256], strides = [1, 1]} : vector<2x1024xf32> to vector<2x256xf32>
    %cst_77 = arith.constant 5.000000e-01 : f32
    %175 = vector.broadcast %cst_77 : f32 to vector<2x256xf32>
    %176 = arith.mulf %175, %174 : vector<2x256xf32>
    %177 = math.tanh %176 : vector<2x256xf32>
    %cst_78 = arith.constant 1.000000e+00 : f32
    %178 = vector.broadcast %cst_78 : f32 to vector<2x256xf32>
    %179 = arith.addf %177, %178 : vector<2x256xf32>
    %cst_79 = arith.constant 5.000000e-01 : f32
    %180 = vector.broadcast %cst_79 : f32 to vector<2x256xf32>
    %181 = arith.mulf %180, %179 : vector<2x256xf32>
    %182 = arith.mulf %171, %114 : vector<2x256xf32>
    %183 = arith.mulf %163, %173 : vector<2x256xf32>
    %184 = arith.addf %182, %183 : vector<2x256xf32>
    %185 = math.tanh %184 : vector<2x256xf32>
    %186 = arith.mulf %181, %185 : vector<2x256xf32>
    %187 = vector.extract_strided_slice %43 {offsets = [4, 0], sizes = [2, 1024], strides = [1, 1]} : vector<8x2048xf32> to vector<2x1024xf32>
    %188 = arith.truncf %155 : vector<2x256xf32> to vector<2x256xbf16>
    %cst_80 = arith.constant dense<0.000000e+00> : vector<2x1024xf32>
    %189 = tpu.matmul %188, %44, %cst_80 {dimension_numbers = #tpu.dot_dimension_numbers<[1], [0], [0], [1], [0, 0, 1, 1], [], []>} : vector<2x256xbf16>, vector<256x1024xbf16>, vector<2x1024xf32> -> vector<2x1024xf32>
    %190 = arith.addf %187, %189 : vector<2x1024xf32>
    %191 = vector.extract_strided_slice %43 {offsets = [2, 1024], sizes = [2, 1024], strides = [1, 1]} : vector<8x2048xf32> to vector<2x1024xf32>
    %192 = arith.truncf %186 : vector<2x256xf32> to vector<2x256xbf16>
    %cst_81 = arith.constant dense<0.000000e+00> : vector<2x1024xf32>
    %193 = tpu.matmul %192, %45, %cst_81 {dimension_numbers = #tpu.dot_dimension_numbers<[1], [0], [0], [1], [0, 0, 1, 1], [], []>} : vector<2x256xbf16>, vector<256x1024xbf16>, vector<2x1024xf32> -> vector<2x1024xf32>
    %194 = arith.addf %191, %193 : vector<2x1024xf32>
    %195 = vector.extract_strided_slice %190 {offsets = [0, 0], sizes = [2, 256], strides = [1, 1]} : vector<2x1024xf32> to vector<2x256xf32>
    %cst_82 = arith.constant 5.000000e-01 : f32
    %196 = vector.broadcast %cst_82 : f32 to vector<2x256xf32>
    %197 = arith.mulf %196, %195 : vector<2x256xf32>
    %198 = math.tanh %197 : vector<2x256xf32>
    %cst_83 = arith.constant 1.000000e+00 : f32
    %199 = vector.broadcast %cst_83 : f32 to vector<2x256xf32>
    %200 = arith.addf %198, %199 : vector<2x256xf32>
    %cst_84 = arith.constant 5.000000e-01 : f32
    %201 = vector.broadcast %cst_84 : f32 to vector<2x256xf32>
    %202 = arith.mulf %201, %200 : vector<2x256xf32>
    %203 = vector.extract_strided_slice %190 {offsets = [0, 256], sizes = [2, 256], strides = [1, 1]} : vector<2x1024xf32> to vector<2x256xf32>
    %cst_85 = arith.constant 5.000000e-01 : f32
    %204 = vector.broadcast %cst_85 : f32 to vector<2x256xf32>
    %205 = arith.mulf %204, %203 : vector<2x256xf32>
    %206 = math.tanh %205 : vector<2x256xf32>
    %cst_86 = arith.constant 1.000000e+00 : f32
    %207 = vector.broadcast %cst_86 : f32 to vector<2x256xf32>
    %208 = arith.addf %206, %207 : vector<2x256xf32>
    %cst_87 = arith.constant 5.000000e-01 : f32
    %209 = vector.broadcast %cst_87 : f32 to vector<2x256xf32>
    %210 = arith.mulf %209, %208 : vector<2x256xf32>
    %211 = vector.extract_strided_slice %190 {offsets = [0, 512], sizes = [2, 256], strides = [1, 1]} : vector<2x1024xf32> to vector<2x256xf32>
    %212 = math.tanh %211 : vector<2x256xf32>
    %213 = vector.extract_strided_slice %190 {offsets = [0, 768], sizes = [2, 256], strides = [1, 1]} : vector<2x1024xf32> to vector<2x256xf32>
    %cst_88 = arith.constant 5.000000e-01 : f32
    %214 = vector.broadcast %cst_88 : f32 to vector<2x256xf32>
    %215 = arith.mulf %214, %213 : vector<2x256xf32>
    %216 = math.tanh %215 : vector<2x256xf32>
    %cst_89 = arith.constant 1.000000e+00 : f32
    %217 = vector.broadcast %cst_89 : f32 to vector<2x256xf32>
    %218 = arith.addf %216, %217 : vector<2x256xf32>
    %cst_90 = arith.constant 5.000000e-01 : f32
    %219 = vector.broadcast %cst_90 : f32 to vector<2x256xf32>
    %220 = arith.mulf %219, %218 : vector<2x256xf32>
    %221 = arith.mulf %210, %153 : vector<2x256xf32>
    %222 = arith.mulf %202, %212 : vector<2x256xf32>
    %223 = arith.addf %221, %222 : vector<2x256xf32>
    %224 = math.tanh %223 : vector<2x256xf32>
    %225 = arith.mulf %220, %224 : vector<2x256xf32>
    %226 = vector.extract_strided_slice %194 {offsets = [0, 0], sizes = [2, 256], strides = [1, 1]} : vector<2x1024xf32> to vector<2x256xf32>
    %cst_91 = arith.constant 5.000000e-01 : f32
    %227 = vector.broadcast %cst_91 : f32 to vector<2x256xf32>
    %228 = arith.mulf %227, %226 : vector<2x256xf32>
    %229 = math.tanh %228 : vector<2x256xf32>
    %cst_92 = arith.constant 1.000000e+00 : f32
    %230 = vector.broadcast %cst_92 : f32 to vector<2x256xf32>
    %231 = arith.addf %229, %230 : vector<2x256xf32>
    %cst_93 = arith.constant 5.000000e-01 : f32
    %232 = vector.broadcast %cst_93 : f32 to vector<2x256xf32>
    %233 = arith.mulf %232, %231 : vector<2x256xf32>
    %234 = vector.extract_strided_slice %194 {offsets = [0, 256], sizes = [2, 256], strides = [1, 1]} : vector<2x1024xf32> to vector<2x256xf32>
    %cst_94 = arith.constant 5.000000e-01 : f32
    %235 = vector.broadcast %cst_94 : f32 to vector<2x256xf32>
    %236 = arith.mulf %235, %234 : vector<2x256xf32>
    %237 = math.tanh %236 : vector<2x256xf32>
    %cst_95 = arith.constant 1.000000e+00 : f32
    %238 = vector.broadcast %cst_95 : f32 to vector<2x256xf32>
    %239 = arith.addf %237, %238 : vector<2x256xf32>
    %cst_96 = arith.constant 5.000000e-01 : f32
    %240 = vector.broadcast %cst_96 : f32 to vector<2x256xf32>
    %241 = arith.mulf %240, %239 : vector<2x256xf32>
    %242 = vector.extract_strided_slice %194 {offsets = [0, 512], sizes = [2, 256], strides = [1, 1]} : vector<2x1024xf32> to vector<2x256xf32>
    %243 = math.tanh %242 : vector<2x256xf32>
    %244 = vector.extract_strided_slice %194 {offsets = [0, 768], sizes = [2, 256], strides = [1, 1]} : vector<2x1024xf32> to vector<2x256xf32>
    %cst_97 = arith.constant 5.000000e-01 : f32
    %245 = vector.broadcast %cst_97 : f32 to vector<2x256xf32>
    %246 = arith.mulf %245, %244 : vector<2x256xf32>
    %247 = math.tanh %246 : vector<2x256xf32>
    %cst_98 = arith.constant 1.000000e+00 : f32
    %248 = vector.broadcast %cst_98 : f32 to vector<2x256xf32>
    %249 = arith.addf %247, %248 : vector<2x256xf32>
    %cst_99 = arith.constant 5.000000e-01 : f32
    %250 = vector.broadcast %cst_99 : f32 to vector<2x256xf32>
    %251 = arith.mulf %250, %249 : vector<2x256xf32>
    %252 = arith.mulf %241, %184 : vector<2x256xf32>
    %253 = arith.mulf %233, %243 : vector<2x256xf32>
    %254 = arith.addf %252, %253 : vector<2x256xf32>
    %255 = math.tanh %254 : vector<2x256xf32>
    %256 = arith.mulf %251, %255 : vector<2x256xf32>
    %257 = vector.extract_strided_slice %43 {offsets = [6, 0], sizes = [2, 1024], strides = [1, 1]} : vector<8x2048xf32> to vector<2x1024xf32>
    %258 = arith.truncf %225 : vector<2x256xf32> to vector<2x256xbf16>
    %cst_100 = arith.constant dense<0.000000e+00> : vector<2x1024xf32>
    %259 = tpu.matmul %258, %44, %cst_100 {dimension_numbers = #tpu.dot_dimension_numbers<[1], [0], [0], [1], [0, 0, 1, 1], [], []>} : vector<2x256xbf16>, vector<256x1024xbf16>, vector<2x1024xf32> -> vector<2x1024xf32>
    %260 = arith.addf %257, %259 : vector<2x1024xf32>
    %261 = vector.extract_strided_slice %43 {offsets = [0, 1024], sizes = [2, 1024], strides = [1, 1]} : vector<8x2048xf32> to vector<2x1024xf32>
    %262 = arith.truncf %256 : vector<2x256xf32> to vector<2x256xbf16>
    %cst_101 = arith.constant dense<0.000000e+00> : vector<2x1024xf32>
    %263 = tpu.matmul %262, %45, %cst_101 {dimension_numbers = #tpu.dot_dimension_numbers<[1], [0], [0], [1], [0, 0, 1, 1], [], []>} : vector<2x256xbf16>, vector<256x1024xbf16>, vector<2x1024xf32> -> vector<2x1024xf32>
    %264 = arith.addf %261, %263 : vector<2x1024xf32>
    %265 = vector.extract_strided_slice %260 {offsets = [0, 0], sizes = [2, 256], strides = [1, 1]} : vector<2x1024xf32> to vector<2x256xf32>
    %cst_102 = arith.constant 5.000000e-01 : f32
    %266 = vector.broadcast %cst_102 : f32 to vector<2x256xf32>
    %267 = arith.mulf %266, %265 : vector<2x256xf32>
    %268 = math.tanh %267 : vector<2x256xf32>
    %cst_103 = arith.constant 1.000000e+00 : f32
    %269 = vector.broadcast %cst_103 : f32 to vector<2x256xf32>
    %270 = arith.addf %268, %269 : vector<2x256xf32>
    %cst_104 = arith.constant 5.000000e-01 : f32
    %271 = vector.broadcast %cst_104 : f32 to vector<2x256xf32>
    %272 = arith.mulf %271, %270 : vector<2x256xf32>
    %273 = vector.extract_strided_slice %260 {offsets = [0, 256], sizes = [2, 256], strides = [1, 1]} : vector<2x1024xf32> to vector<2x256xf32>
    %cst_105 = arith.constant 5.000000e-01 : f32
    %274 = vector.broadcast %cst_105 : f32 to vector<2x256xf32>
    %275 = arith.mulf %274, %273 : vector<2x256xf32>
    %276 = math.tanh %275 : vector<2x256xf32>
    %cst_106 = arith.constant 1.000000e+00 : f32
    %277 = vector.broadcast %cst_106 : f32 to vector<2x256xf32>
    %278 = arith.addf %276, %277 : vector<2x256xf32>
    %cst_107 = arith.constant 5.000000e-01 : f32
    %279 = vector.broadcast %cst_107 : f32 to vector<2x256xf32>
    %280 = arith.mulf %279, %278 : vector<2x256xf32>
    %281 = vector.extract_strided_slice %260 {offsets = [0, 512], sizes = [2, 256], strides = [1, 1]} : vector<2x1024xf32> to vector<2x256xf32>
    %282 = math.tanh %281 : vector<2x256xf32>
    %283 = vector.extract_strided_slice %260 {offsets = [0, 768], sizes = [2, 256], strides = [1, 1]} : vector<2x1024xf32> to vector<2x256xf32>
    %cst_108 = arith.constant 5.000000e-01 : f32
    %284 = vector.broadcast %cst_108 : f32 to vector<2x256xf32>
    %285 = arith.mulf %284, %283 : vector<2x256xf32>
    %286 = math.tanh %285 : vector<2x256xf32>
    %cst_109 = arith.constant 1.000000e+00 : f32
    %287 = vector.broadcast %cst_109 : f32 to vector<2x256xf32>
    %288 = arith.addf %286, %287 : vector<2x256xf32>
    %cst_110 = arith.constant 5.000000e-01 : f32
    %289 = vector.broadcast %cst_110 : f32 to vector<2x256xf32>
    %290 = arith.mulf %289, %288 : vector<2x256xf32>
    %291 = arith.mulf %280, %223 : vector<2x256xf32>
    %292 = arith.mulf %272, %282 : vector<2x256xf32>
    %293 = arith.addf %291, %292 : vector<2x256xf32>
    %294 = math.tanh %293 : vector<2x256xf32>
    %295 = arith.mulf %290, %294 : vector<2x256xf32>
    %296 = vector.extract_strided_slice %264 {offsets = [0, 0], sizes = [2, 256], strides = [1, 1]} : vector<2x1024xf32> to vector<2x256xf32>
    %cst_111 = arith.constant 5.000000e-01 : f32
    %297 = vector.broadcast %cst_111 : f32 to vector<2x256xf32>
    %298 = arith.mulf %297, %296 : vector<2x256xf32>
    %299 = math.tanh %298 : vector<2x256xf32>
    %cst_112 = arith.constant 1.000000e+00 : f32
    %300 = vector.broadcast %cst_112 : f32 to vector<2x256xf32>
    %301 = arith.addf %299, %300 : vector<2x256xf32>
    %cst_113 = arith.constant 5.000000e-01 : f32
    %302 = vector.broadcast %cst_113 : f32 to vector<2x256xf32>
    %303 = arith.mulf %302, %301 : vector<2x256xf32>
    %304 = vector.extract_strided_slice %264 {offsets = [0, 256], sizes = [2, 256], strides = [1, 1]} : vector<2x1024xf32> to vector<2x256xf32>
    %cst_114 = arith.constant 5.000000e-01 : f32
    %305 = vector.broadcast %cst_114 : f32 to vector<2x256xf32>
    %306 = arith.mulf %305, %304 : vector<2x256xf32>
    %307 = math.tanh %306 : vector<2x256xf32>
    %cst_115 = arith.constant 1.000000e+00 : f32
    %308 = vector.broadcast %cst_115 : f32 to vector<2x256xf32>
    %309 = arith.addf %307, %308 : vector<2x256xf32>
    %cst_116 = arith.constant 5.000000e-01 : f32
    %310 = vector.broadcast %cst_116 : f32 to vector<2x256xf32>
    %311 = arith.mulf %310, %309 : vector<2x256xf32>
    %312 = vector.extract_strided_slice %264 {offsets = [0, 512], sizes = [2, 256], strides = [1, 1]} : vector<2x1024xf32> to vector<2x256xf32>
    %313 = math.tanh %312 : vector<2x256xf32>
    %314 = vector.extract_strided_slice %264 {offsets = [0, 768], sizes = [2, 256], strides = [1, 1]} : vector<2x1024xf32> to vector<2x256xf32>
    %cst_117 = arith.constant 5.000000e-01 : f32
    %315 = vector.broadcast %cst_117 : f32 to vector<2x256xf32>
    %316 = arith.mulf %315, %314 : vector<2x256xf32>
    %317 = math.tanh %316 : vector<2x256xf32>
    %cst_118 = arith.constant 1.000000e+00 : f32
    %318 = vector.broadcast %cst_118 : f32 to vector<2x256xf32>
    %319 = arith.addf %317, %318 : vector<2x256xf32>
    %cst_119 = arith.constant 5.000000e-01 : f32
    %320 = vector.broadcast %cst_119 : f32 to vector<2x256xf32>
    %321 = arith.mulf %320, %319 : vector<2x256xf32>
    %322 = arith.mulf %311, %254 : vector<2x256xf32>
    %323 = arith.mulf %303, %313 : vector<2x256xf32>
    %324 = arith.addf %322, %323 : vector<2x256xf32>
    %325 = math.tanh %324 : vector<2x256xf32>
    %326 = arith.mulf %321, %325 : vector<2x256xf32>
    %327 = tpu.concatenate %85, %155, %225, %295 in 0 : vector<2x256xf32>, vector<2x256xf32>, vector<2x256xf32>, vector<2x256xf32> -> vector<8x256xf32>
    %328 = tpu.concatenate %326, %256, %186, %116 in 0 : vector<2x256xf32>, vector<2x256xf32>, vector<2x256xf32>, vector<2x256xf32> -> vector<8x256xf32>
    %329 = arith.truncf %327 : vector<8x256xf32> to vector<8x256xbf16>
    %c0_120 = arith.constant 0 : index
    %c0_121 = arith.constant 0 : index
    %330 = vector.load %arg16[%c0_120, %c0_121] : memref<256x150xbf16, #tpu.memory_space<vmem>>, vector<256x150xbf16>
    %cst_122 = arith.constant dense<0.000000e+00> : vector<8x150xf32>
    %331 = tpu.matmul %329, %330, %cst_122 {dimension_numbers = #tpu.dot_dimension_numbers<[1], [0], [0], [1], [0, 0, 1, 1], [], []>} : vector<8x256xbf16>, vector<256x150xbf16>, vector<8x150xf32> -> vector<8x150xf32>
    %332 = arith.truncf %328 : vector<8x256xf32> to vector<8x256xbf16>
    %c0_123 = arith.constant 0 : index
    %c0_124 = arith.constant 0 : index
    %333 = vector.load %arg17[%c0_123, %c0_124] : memref<256x150xbf16, #tpu.memory_space<vmem>>, vector<256x150xbf16>
    %cst_125 = arith.constant dense<0.000000e+00> : vector<8x150xf32>
    %334 = tpu.matmul %332, %333, %cst_125 {dimension_numbers = #tpu.dot_dimension_numbers<[1], [0], [0], [1], [0, 0, 1, 1], [], []>} : vector<8x256xbf16>, vector<256x150xbf16>, vector<8x150xf32> -> vector<8x150xf32>
    %335 = arith.addf %331, %334 : vector<8x150xf32>
    %336 = arith.truncf %1 : vector<8x10xf32> to vector<8x10xbf16>
    %c0_126 = arith.constant 0 : index
    %c0_127 = arith.constant 0 : index
    %337 = vector.load %arg18[%c0_126, %c0_127] : memref<10x150xbf16, #tpu.memory_space<vmem>>, vector<10x150xbf16>
    %cst_128 = arith.constant dense<0.000000e+00> : vector<8x150xf32>
    %338 = tpu.matmul %336, %337, %cst_128 {dimension_numbers = #tpu.dot_dimension_numbers<[1], [0], [0], [1], [0, 0, 1, 1], [], []>} : vector<8x10xbf16>, vector<10x150xbf16>, vector<8x150xf32> -> vector<8x150xf32>
    %339 = arith.addf %335, %338 : vector<8x150xf32>
    %c0_129 = arith.constant 0 : index
    %c0_130 = arith.constant 0 : index
    %340 = vector.load %arg19[%c0_129, %c0_130] : memref<1x150xf32, #tpu.memory_space<vmem>>, vector<1x150xf32>
    %341 = vector.broadcast %340 : vector<1x150xf32> to vector<8x150xf32>
    %342 = arith.addf %339, %341 : vector<8x150xf32>
    %cst_131 = arith.constant 0.000000e+00 : f32
    %343 = vector.broadcast %cst_131 : f32 to vector<8x150xf32>
    %344 = arith.maximumf %342, %343 : vector<8x150xf32>
    %345 = arith.truncf %344 : vector<8x150xf32> to vector<8x150xbf16>
    %c0_132 = arith.constant 0 : index
    %c0_133 = arith.constant 0 : index
    %346 = vector.load %arg20[%c0_132, %c0_133] : memref<150x150xbf16, #tpu.memory_space<vmem>>, vector<150x150xbf16>
    %cst_134 = arith.constant dense<0.000000e+00> : vector<8x150xf32>
    %347 = tpu.matmul %345, %346, %cst_134 {dimension_numbers = #tpu.dot_dimension_numbers<[1], [0], [0], [1], [0, 0, 1, 1], [], []>} : vector<8x150xbf16>, vector<150x150xbf16>, vector<8x150xf32> -> vector<8x150xf32>
    %c0_135 = arith.constant 0 : index
    %c0_136 = arith.constant 0 : index
    %348 = vector.load %arg21[%c0_135, %c0_136] : memref<1x150xf32, #tpu.memory_space<vmem>>, vector<1x150xf32>
    %349 = vector.broadcast %348 : vector<1x150xf32> to vector<8x150xf32>
    %350 = arith.addf %347, %349 : vector<8x150xf32>
    %cst_137 = arith.constant 0.000000e+00 : f32
    %351 = vector.broadcast %cst_137 : f32 to vector<8x150xf32>
    %352 = arith.maximumf %350, %351 : vector<8x150xf32>
    %353 = arith.truncf %352 : vector<8x150xf32> to vector<8x150xbf16>
    %c0_138 = arith.constant 0 : index
    %c0_139 = arith.constant 0 : index
    %354 = vector.load %arg22[%c0_138, %c0_139] : memref<150x150xbf16, #tpu.memory_space<vmem>>, vector<150x150xbf16>
    %cst_140 = arith.constant dense<0.000000e+00> : vector<8x150xf32>
    %355 = tpu.matmul %353, %354, %cst_140 {dimension_numbers = #tpu.dot_dimension_numbers<[1], [0], [0], [1], [0, 0, 1, 1], [], []>} : vector<8x150xbf16>, vector<150x150xbf16>, vector<8x150xf32> -> vector<8x150xf32>
    %c0_141 = arith.constant 0 : index
    %c0_142 = arith.constant 0 : index
    %356 = vector.load %arg23[%c0_141, %c0_142] : memref<1x150xf32, #tpu.memory_space<vmem>>, vector<1x150xf32>
    %357 = vector.broadcast %356 : vector<1x150xf32> to vector<8x150xf32>
    %358 = arith.addf %355, %357 : vector<8x150xf32>
    %cst_143 = arith.constant 0.000000e+00 : f32
    %359 = vector.broadcast %cst_143 : f32 to vector<8x150xf32>
    %360 = arith.maximumf %358, %359 : vector<8x150xf32>
    %361 = arith.truncf %360 : vector<8x150xf32> to vector<8x150xbf16>
    %c0_144 = arith.constant 0 : index
    %c0_145 = arith.constant 0 : index
    %362 = vector.load %arg24[%c0_144, %c0_145] : memref<150x1xbf16, #tpu.memory_space<vmem>>, vector<150x1xbf16>
    %cst_146 = arith.constant dense<0.000000e+00> : vector<8x1xf32>
    %363 = tpu.matmul %361, %362, %cst_146 {dimension_numbers = #tpu.dot_dimension_numbers<[1], [0], [0], [1], [0, 0, 1, 1], [], []>} : vector<8x150xbf16>, vector<150x1xbf16>, vector<8x1xf32> -> vector<8x1xf32>
    %c0_147 = arith.constant 0 : index
    %c0_148 = arith.constant 0 : index
    %364 = vector.load %arg25[%c0_147, %c0_148] : memref<1x1xf32, #tpu.memory_space<vmem>>, vector<1x1xf32>
    %365 = vector.broadcast %364 : vector<1x1xf32> to vector<8x1xf32>
    %366 = arith.addf %363, %365 : vector<8x1xf32>
    %367 = vector.shape_cast %366 : vector<8x1xf32> to vector<4x2x1xf32>
    %c0_149 = arith.constant 0 : index
    %c0_150 = arith.constant 0 : index
    %c0_151 = arith.constant 0 : index
    %368 = vector.load %arg26[%c0_149, %c0_150, %c0_151] : memref<4x2x1xf32, #tpu.memory_space<vmem>>, vector<4x2x1xf32>
    tpu.vector_store %arg26[%c0_149, %c0_150, %c0_151], %367 {strides = array<i32>} : memref<4x2x1xf32, #tpu.memory_space<vmem>>, vector<4x2x1xf32>,
    return
  }
  func.func @transform_0(%arg0: i32) -> (i32, i32, i32) {
    %c0_i32 = arith.constant 0 : i32
    %c0_i32_0 = arith.constant 0 : i32
    %c0_i32_1 = arith.constant 0 : i32
    return %c0_i32, %arg0, %c0_i32_0 : i32, i32, i32
  }
  func.func @transform_1(%arg0: i32) -> (i32, i32, i32) {
    %c0_i32 = arith.constant 0 : i32
    %c0_i32_0 = arith.constant 0 : i32
    %c0_i32_1 = arith.constant 0 : i32
    return %c0_i32, %arg0, %c0_i32_0 : i32, i32, i32
  }
  func.func @transform_2(%arg0: i32) -> (i32, i32) {
    %c0_i32 = arith.constant 0 : i32
    %c0_i32_0 = arith.constant 0 : i32
    %c0_i32_1 = arith.constant 0 : i32
    return %c0_i32, %c0_i32_0 : i32, i32
  }
  func.func @transform_3(%arg0: i32) -> (i32, i32) {
    %c0_i32 = arith.constant 0 : i32
    %c0_i32_0 = arith.constant 0 : i32
    %c0_i32_1 = arith.constant 0 : i32
    return %c0_i32, %c0_i32_0 : i32, i32
  }
  func.func @transform_4(%arg0: i32) -> (i32, i32) {
    %c0_i32 = arith.constant 0 : i32
    %c0_i32_0 = arith.constant 0 : i32
    %c0_i32_1 = arith.constant 0 : i32
    return %c0_i32, %c0_i32_0 : i32, i32
  }
  func.func @transform_5(%arg0: i32) -> (i32, i32) {
    %c0_i32 = arith.constant 0 : i32
    %c0_i32_0 = arith.constant 0 : i32
    %c0_i32_1 = arith.constant 0 : i32
    return %c0_i32, %c0_i32_0 : i32, i32
  }
  func.func @transform_6(%arg0: i32) -> (i32, i32) {
    %c0_i32 = arith.constant 0 : i32
    %c0_i32_0 = arith.constant 0 : i32
    %c0_i32_1 = arith.constant 0 : i32
    return %c0_i32, %c0_i32_0 : i32, i32
  }
  func.func @transform_7(%arg0: i32) -> (i32, i32) {
    %c0_i32 = arith.constant 0 : i32
    %c0_i32_0 = arith.constant 0 : i32
    %c0_i32_1 = arith.constant 0 : i32
    return %c0_i32, %c0_i32_0 : i32, i32
  }
  func.func @transform_8(%arg0: i32) -> (i32, i32) {
    %c0_i32 = arith.constant 0 : i32
    %c0_i32_0 = arith.constant 0 : i32
    %c0_i32_1 = arith.constant 0 : i32
    return %c0_i32, %c0_i32_0 : i32, i32
  }
  func.func @transform_9(%arg0: i32) -> (i32, i32) {
    %c0_i32 = arith.constant 0 : i32
    %c0_i32_0 = arith.constant 0 : i32
    %c0_i32_1 = arith.constant 0 : i32
    return %c0_i32, %c0_i32_0 : i32, i32
  }
  func.func @transform_10(%arg0: i32) -> (i32, i32) {
    %c0_i32 = arith.constant 0 : i32
    %c0_i32_0 = arith.constant 0 : i32
    %c0_i32_1 = arith.constant 0 : i32
    return %c0_i32, %c0_i32_0 : i32, i32
  }
  func.func @transform_11(%arg0: i32) -> (i32, i32) {
    %c0_i32 = arith.constant 0 : i32
    %c0_i32_0 = arith.constant 0 : i32
    %c0_i32_1 = arith.constant 0 : i32
    return %c0_i32, %c0_i32_0 : i32, i32
  }
  func.func @transform_12(%arg0: i32) -> (i32, i32) {
    %c0_i32 = arith.constant 0 : i32
    %c0_i32_0 = arith.constant 0 : i32
    %c0_i32_1 = arith.constant 0 : i32
    return %c0_i32, %c0_i32_0 : i32, i32
  }
  func.func @transform_13(%arg0: i32) -> (i32, i32) {
    %c0_i32 = arith.constant 0 : i32
    %c0_i32_0 = arith.constant 0 : i32
    %c0_i32_1 = arith.constant 0 : i32
    return %c0_i32, %c0_i32_0 : i32, i32
  }
  func.func @transform_14(%arg0: i32) -> (i32, i32) {
    %c0_i32 = arith.constant 0 : i32
    %c0_i32_0 = arith.constant 0 : i32
    %c0_i32_1 = arith.constant 0 : i32
    return %c0_i32, %c0_i32_0 : i32, i32
  }
  func.func @transform_15(%arg0: i32) -> (i32, i32) {
    %c0_i32 = arith.constant 0 : i32
    %c0_i32_0 = arith.constant 0 : i32
    %c0_i32_1 = arith.constant 0 : i32
    return %c0_i32, %c0_i32_0 : i32, i32
  }
  func.func @transform_16(%arg0: i32) -> (i32, i32) {
    %c0_i32 = arith.constant 0 : i32
    %c0_i32_0 = arith.constant 0 : i32
    %c0_i32_1 = arith.constant 0 : i32
    return %c0_i32, %c0_i32_0 : i32, i32
  }
  func.func @transform_17(%arg0: i32) -> (i32, i32) {
    %c0_i32 = arith.constant 0 : i32
    %c0_i32_0 = arith.constant 0 : i32
    %c0_i32_1 = arith.constant 0 : i32
    return %c0_i32, %c0_i32_0 : i32, i32
  }
  func.func @transform_18(%arg0: i32) -> (i32, i32) {
    %c0_i32 = arith.constant 0 : i32
    %c0_i32_0 = arith.constant 0 : i32
    %c0_i32_1 = arith.constant 0 : i32
    return %c0_i32, %c0_i32_0 : i32, i32
  }
  func.func @transform_19(%arg0: i32) -> (i32, i32) {
    %c0_i32 = arith.constant 0 : i32
    %c0_i32_0 = arith.constant 0 : i32
    %c0_i32_1 = arith.constant 0 : i32
    return %c0_i32, %c0_i32_0 : i32, i32
  }
  func.func @transform_20(%arg0: i32) -> (i32, i32) {
    %c0_i32 = arith.constant 0 : i32
    %c0_i32_0 = arith.constant 0 : i32
    %c0_i32_1 = arith.constant 0 : i32
    return %c0_i32, %c0_i32_0 : i32, i32
  }
  func.func @transform_21(%arg0: i32) -> (i32, i32) {
    %c0_i32 = arith.constant 0 : i32
    %c0_i32_0 = arith.constant 0 : i32
    %c0_i32_1 = arith.constant 0 : i32
    return %c0_i32, %c0_i32_0 : i32, i32
  }
  func.func @transform_22(%arg0: i32) -> (i32, i32) {
    %c0_i32 = arith.constant 0 : i32
    %c0_i32_0 = arith.constant 0 : i32
    %c0_i32_1 = arith.constant 0 : i32
    return %c0_i32, %c0_i32_0 : i32, i32
  }
  func.func @transform_23(%arg0: i32) -> (i32, i32) {
    %c0_i32 = arith.constant 0 : i32
    %c0_i32_0 = arith.constant 0 : i32
    %c0_i32_1 = arith.constant 0 : i32
    return %c0_i32, %c0_i32_0 : i32, i32
  }
  func.func @transform_24(%arg0: i32) -> (i32, i32) {
    %c0_i32 = arith.constant 0 : i32
    %c0_i32_0 = arith.constant 0 : i32
    %c0_i32_1 = arith.constant 0 : i32
    return %c0_i32, %c0_i32_0 : i32, i32
  }
  func.func @transform_25(%arg0: i32) -> (i32, i32, i32) {
    %c0_i32 = arith.constant 0 : i32
    %c0_i32_0 = arith.constant 0 : i32
    %c0_i32_1 = arith.constant 0 : i32
    return %c0_i32, %arg0, %c0_i32_0 : i32, i32, i32
  }
}

</mosaic_0001>

<bundles_post_ra>
// kernel: critic_forward.1
= control target key start
LH: loop header
LB: loop body
LE: loop exit
PB: predicated region body
PF: predicated region fallthrough
CT: control target
= control target key end

     0   :  { %s12546_s0 = inlined_call_operand.vmem [shape: f32[4,2,10], index: 0, kind: input, shape index: {}]   ;;  %s12547_s1 = inlined_call_operand.vmem [shape: f32[4,2,5], index: 1, kind: input, shape index: {}]   ;;  %s12548_s2 = inlined_call_operand.vmem [shape: bf16[10,300], index: 2, kind: input, shape index: {}]   ;;  %s12549_s3 = inlined_call_operand.vmem [shape: bf16[5,300], index: 3, kind: input, shape index: {}]   ;;  %s12550_s4 = inlined_call_operand.vmem [shape: f32[1,300], index: 4, kind: input, shape index: {}]   ;;  %s12551_s5 = inlined_call_operand.hbm [shape: bf16[300,300], index: 5, kind: input, shape index: {}]   ;;  %s12552_s6 = inlined_call_operand.vmem [shape: f32[1,300], index: 6, kind: input, shape index: {}]   ;;  %s12553_s7 = inlined_call_operand.hbm [shape: bf16[300,300], index: 7, kind: input, shape index: {}]   ;;  %s12554_s8 = inlined_call_operand.vmem [shape: f32[1,300], index: 8, kind: input, shape index: {}]   ;;  %s12555_s9 = inlined_call_operand.vmem [shape: bf16[300,150], index: 9, kind: input, shape index: {}]   ;;  %s12556_s10 = inlined_call_operand.vmem [shape: f32[1,150], index: 10, kind: input, shape index: {}]   ;;  %s12557_s11 = inlined_call_operand.vmem [shape: bf16[150,2048], index: 11, kind: input, shape index: {}]   ;;  %s12558_s12 = inlined_call_operand.vmem [shape: f32[1,2048], index: 12, kind: input, shape index: {}]   ;;  %s12559_s13 = inlined_call_operand.hbm [shape: bf16[256,1024], index: 13, kind: input, shape index: {}]   ;;  %s12560_s14 = inlined_call_operand.hbm [shape: bf16[256,1024], index: 14, kind: input, shape index: {}]   ;;  %s12561_s15 = inlined_call_operand.vmem [shape: bf16[256,150], index: 15, kind: input, shape index: {}]   ;;  %s12562_s16 = inlined_call_operand.vmem [shape: bf16[256,150], index: 16, kind: input, shape index: {}]   ;;  %s12563_s17 = inlined_call_operand.vmem [shape: bf16[10,150], index: 17, kind: input, shape index: {}]   ;;  %s12564_s18 = inlined_call_operand.vmem [shape: f32[1,150], index: 18, kind: input, shape index: {}]   ;;  %s12565_s19 = inlined_call_operand.vmem [shape: bf16[150,150], index: 19, kind: input, shape index: {}]   ;;  %s12566_s20 = inlined_call_operand.vmem [shape: f32[1,150], index: 20, kind: input, shape index: {}]   ;;  %s12567_s21 = inlined_call_operand.hbm [shape: bf16[150,150], index: 21, kind: input, shape index: {}]   ;;  %s12568_s22 = inlined_call_operand.vmem [shape: f32[1,150], index: 22, kind: input, shape index: {}]   ;;  %s12569_s23 = inlined_call_operand.vmem [shape: bf16[150,1], index: 23, kind: input, shape index: {}]   ;;  %s12570_s24 = inlined_call_operand.<no memory space> [shape: f32[1,1], index: 24, kind: input, shape index: {}]   ;;  %s12571_s25 = inlined_call_operand.vmem [shape: f32[4,2,1], index: 25, kind: output, shape index: {}]  }
   0x1   :  { %13145 = sst [smem:[#allocation283_spill]] %s12546_s0  ;;  %v30_v0 = vstv %s12570_s24 }
   0x2   :  { %13146 = sst [smem:[#allocation284_spill]] %s12547_s1  ;;  %31 = vst [vmem:[#allocation2] sm:$0x1] %v30_v0 }
   0x3   :  { %13147 = sst [smem:[#allocation285_spill]] %s12548_s2 }
   0x4   :  { %13148 = sst [smem:[#allocation286_spill]] %s12549_s3 }
   0x5   :  { %13149 = sst [smem:[#allocation287_spill]] %s12550_s4 }
   0x6   :  { %13150 = sst [smem:[#allocation288_spill]] %s12551_s5 }
   0x7   :  { %13151 = sst [smem:[#allocation289_spill]] %s12552_s6 }
   0x8   :  { %13152 = sst [smem:[#allocation290_spill]] %s12553_s7 }
   0x9   :  { %13153 = sst [smem:[#allocation291_spill]] %s12554_s8 }
   0xa   :  { %13154 = sst [smem:[#allocation292_spill]] %s12555_s9 }
   0xb   :  { %13155 = sst [smem:[#allocation293_spill]] %s12571_s25 }
   0xc   :  { %32 = vsyncpa [#allocation4], 0 }
   0xd   :  { %33 = vsyncpa [#allocation6], 0 }
   0xe   :  { %34 = vsyncpa [#allocation9], 0  ;;  %s9309_s6 = smov [#allocation5]  }
   0xf   :  { %s64_s30 = sshll.u32 %s9309_s6, 4  ;;  %s65_s30 = int_to_ptr.vmem [resolvable:$true] %s64_s30 }
  0x10   :  { %s9211_s7 = scalar_lea.vmem %s65_s30, 7296  ;;  %p9216_p1 = scmp.lt.s32.totalorder %s65_s30, %s65_s30 }
  0x11   :  { %p9212_p0 = scmp.ne.s32.totalorder %s65_s30, %s9211_s7  ;;  %p9217_p2 = scmp.lt.s32.totalorder %s9211_s7, %s9211_s7 }
  0x13   :  { %p9218_p3 = por %p9217_p2, %p9216_p1 }
  0x15   :  { %p9219_p4 = pnand %p9218_p3, %p9212_p0 }
  0x17   :  { %9222 = shalt.err (!%p9219_p4)
}
  0x18   :  { %s9310_s3 = smov 192   ;;  %s9311_s26 = smov 12  }
  0x19   :  { %s13156_s27 = sld [smem:[#allocation290_spill]]  ;;  %s9312_s24 = smov [#allocation8]  }
  0x1a   :  { %s98_s4 = sshll.u32 %s9312_s24, 4  ;;  %s9313_s28 = smov [#allocation3]   ;;  %s99_s4 = int_to_ptr.vmem [resolvable:$true] %s98_s4 }
  0x1b   :  { %s50_s9 = sshll.u32 %s9313_s28, 4  ;;  %s9231_s5 = scalar_lea.vmem %s99_s4, 16384  ;;  %s51_s9 = int_to_ptr.vmem [resolvable:$true] %s50_s9 }
  0x1c   :  { %p9232_p5 = scmp.ne.s32.totalorder %s99_s4, %s9231_s5  ;;  %p9236_p6 = scmp.lt.s32.totalorder %s99_s4, %s99_s4 }
  0x1d   :  { %p9237_p7 = scmp.lt.s32.totalorder %s9231_s5, %s9231_s5 }
  0x1f   :  { %70 = dma.hbm_to_vmem [thread:$0]  %s13156_s27, 7296, %s65_s30, [#allocation6], %s9310_s3, %s9310_s3, %s9311_s26  }
  0x20   :  { %p9238_p8 = por %p9237_p7, %p9236_p6 }
  0x22   :  { %p9239_p9 = pnand %p9238_p8, %p9232_p5 }
  0x24   :  { %9242 = shalt.err (!%p9239_p9)
}
  0x25   :  { %s9314_s0 = smov 512   ;;  %s9315_s29 = smov 32  }
  0x26   :  { %104 = dma.hbm_to_vmem [thread:$0]  %s12560_s14, 16384, %s99_s4, [#allocation9], %s9314_s0, %s9314_s0, %s9315_s29  }
  0x27   :  { %s9251_s30 = scalar_lea.vmem %s51_s9, 7296  ;;  %p9256_p11 = scmp.lt.s32.totalorder %s51_s9, %s51_s9 }
  0x28   :  { %p9252_p10 = scmp.ne.s32.totalorder %s51_s9, %s9251_s30  ;;  %p9257_p12 = scmp.lt.s32.totalorder %s9251_s30, %s9251_s30 }
  0x2a   :  { %p9258_p13 = por %p9257_p12, %p9256_p11 }
  0x2c   :  { %p9259_p0 = pnand %p9258_p13, %p9252_p10 }
  0x2e   :  { %9262 = shalt.err (!%p9259_p0)
}
  0x2f   :  { %s13157_s8 = sld [smem:[#allocation288_spill]]  ;;  %s9316_s27 = smov [#allocation7]  }
  0x30   :  { %s86_s24 = sshll.u32 %s9316_s27, 4  ;;  %s9317_s28 = smov [#allocation10]   ;;  %s87_s24 = int_to_ptr.vmem [resolvable:$true] %s86_s24 }
  0x31   :  { %s122_s5 = sshll.u32 %s9317_s28, 4  ;;  %s9271_s25 = scalar_lea.vmem %s87_s24, 16384  ;;  %s123_s5 = int_to_ptr.vmem [resolvable:$true] %s122_s5 }
  0x32   :  { %p9272_p1 = scmp.ne.s32.totalorder %s87_s24, %s9271_s25  ;;  %p9276_p2 = scmp.lt.s32.totalorder %s87_s24, %s87_s24 }
  0x33   :  { %p9277_p3 = scmp.lt.s32.totalorder %s9271_s25, %s9271_s25 }
  0x35   :  { %56 = dma.hbm_to_vmem [thread:$0]  %s13157_s8, 7296, %s51_s9, [#allocation4], %s9310_s3, %s9310_s3, %s9311_s26  }
  0x36   :  { %p9278_p4 = por %p9277_p3, %p9276_p2 }
  0x38   :  { %p9279_p5 = pnand %p9278_p4, %p9272_p1 }
  0x3a   :  { %9282 = shalt.err (!%p9279_p5)
}
  0x3b   :  { %92 = dma.hbm_to_vmem [thread:$0]  %s12559_s13, 16384, %s87_s24, [#allocation6], %s9314_s0, %s9314_s0, %s9315_s29  }
  0x3c   :  { %s9291_s2 = scalar_lea.vmem %s123_s5, 2432  ;;  %p9296_p7 = scmp.lt.s32.totalorder %s123_s5, %s123_s5 }
  0x3d   :  { %p9292_p6 = scmp.ne.s32.totalorder %s123_s5, %s9291_s2  ;;  %p9297_p8 = scmp.lt.s32.totalorder %s9291_s2, %s9291_s2 }
  0x3f   :  { %p9298_p9 = por %p9297_p8, %p9296_p7 }
  0x41   :  { %p9299_p10 = pnand %p9298_p9, %p9292_p6 }
  0x43   :  { %9302 = shalt.err (!%p9299_p10)
}
  0x44   :  { %s9318_s3 = smov 128   ;;  %s9319_s26 = smov 8  }
  0x45   :  { %128 = dma.hbm_to_vmem [thread:$0]  %s12567_s21, 2432, %s123_s5, [#allocation9], %s9318_s3, %s9318_s3, %s9319_s26  }
  0x46   :  { %9303 = dma.done.wait [#allocation4], 7296  }
  0x47   :  { %9304 = vsyncadd [#allocation4], 4294960000 }
  0x48   :  { %9305 = dma.done.wait [#allocation6], 23680  }
  0x49   :  { %9306 = vsyncadd [#allocation6], 4294943616 }
  0x4a   :  { %9307 = dma.done.wait [#allocation9], 18816  }
  0x4b   :  { %9308 = vsyncadd [#allocation9], 4294948480  ;;  %vm223_vm0 = vcmask 1041408   ;;  %v168_v1 = vlaneseq  ;;  %v12578_v2 = vmov 0   ;;  %v9321_v3 = vmov 1983009808  }
  0x4c   :  { %268 = vmatprep.mubr.bf16.mxu1 %v12578_v2  ;;  %376 = vmatprep.mubr.bf16.mxu0 %v12578_v2  ;;  %v166_v4 = vunpack.c.l.s4 %v9321_v3  ;;  %vm224_vm1 = vcmask 1042432   ;;  %v9322_v5 = vmov 65535   ;;  %s13158_s25 = sld [smem:[#allocation286_spill]]  ;;  %vm334_vm2 = vcmask 1044480   ;;  %v8653_v35 = vld [vmem:[#allocation3 + $0xac] ss:$12 sps:$4 sm:$0xff]  }
  0x4d   :  { %v225_v6 = vsel %vm223_vm0, 4294967295, %v9322_v5  ;;  %v9476_v8 = vshrl.u32 %v168_v1, 7  ;;  %s13159_s30 = sld [smem:[#allocation285_spill]]  ;;  %v9323_v34 = vmov 0.0   ;;  %vm219_vm3 = vcmask 39936  }
  0x4e   :  { %v167_v7 = vunpack.c.0.s8 %v166_v4  ;;  %v226_v10 = vsel %vm224_vm1, %v225_v6, 0  ;;  %s13161_s24 = sld [smem:[#allocation284_spill]]  ;;  %vm330_vm4 = vcmask 80896   ;;  %v8651_v43 = vld [vmem:[#allocation3 + $0xa8] ss:$12 sps:$4 sm:$0xff]   ;;  %vm9324_vm5 = vmmov 0  }
  0x4f   :  { %s13162_s21 = sld [smem:[#allocation283_spill]]  ;;  %v8656_v44 = vld [vmem:[#allocation3 + $0x94] ss:$12 sps:$4 sm:$0xff]   ;;  %v8654_v46 = vld [vmem:[#allocation3 + $0x90] ss:$12 sps:$4 sm:$0xff]   ;;  %vm849_vm6 = vcmask 1045504  }
  0x50   :  { %v9489_v15 = vsub.s32 %v167_v7, %v9476_v8  ;;  %v8659_v47 = vld [vmem:[#allocation3 + $0x7c] ss:$12 sps:$4 sm:$0xff]   ;;  %v8657_v49 = vld [vmem:[#allocation3 + $0x78] ss:$12 sps:$4 sm:$0xff]   ;;  %v8660_v51 = vld [vmem:[#allocation3 + $0x60] ss:$12 sps:$4 sm:$0xff]  }
  0x51   :  { %v8662_v50 = vld [vmem:[#allocation3 + $0x64] ss:$12 sps:$4 sm:$0xff]   ;;  %v8665_v52 = vld [vmem:[#allocation3 + $0x4c] ss:$12 sps:$4 sm:$0xff]   ;;  %v8663_v53 = vld [vmem:[#allocation3 + $0x48] ss:$12 sps:$4 sm:$0xff]  }
  0x52   :  { %v209_v9 = vld [vmem:[%s13158_s25] sm:$0x77]  ;;  %13160 = vst [vmem:[#allocation14_spill] sm:$0xff] %v9489_v15  ;;  %v8645_v21 = vld [vmem:[%s13158_s25 + $0x8] ss:$0 sps:$4 sm:$0x77]  }
  0x53   :  { %v7814_v11 = vcombine.high %v209_v9, %v209_v9  ;;  %v7813_v12 = vcombine.low %v209_v9, %v209_v9  ;;  %v8646_v13 = vld [vmem:[%s13159_s30 + $0x4] ss:$12 sps:$4 sm:$0x1f]   ;;  %v8649_v14 = vld [vmem:[%s13159_s30] ss:$12 sps:$4 sm:$0x1f]   ;;  %v234_v39 = vand.u32 %v8645_v21, %v226_v10 }
  0x54   :  { %v155_v18 = vld [vmem:[%s13161_s24] sm:$0x3]  ;;  %v156_v19 = vld [vmem:[%s13161_s24 + $0x2] sm:$0x3]  ;;  %v157_v20 = vld [vmem:[%s13161_s24 + $0x4] sm:$0x3]  ;;  %7821 = vmatprep.subr.msk.bf16.mxu0 %vm334_vm2, %v8646_v13 }
  0x55   :  { %v231_v16 = vand.u32 %v7814_v11, %v226_v10  ;;  %v228_v17 = vand.u32 %v7813_v12, %v226_v10  ;;  %v336_v22 = vsel %vm334_vm2, %v8649_v14, 0  ;;  %v158_v23 = vld [vmem:[%s13161_s24 + $0x6] sm:$0x3]  ;;  %v190_v24 = vcombine.low %v155_v18, %v156_v19  ;;  %v151_v25 = vld [vmem:[%s13162_s21] sm:$0x3]  ;;  %s13165_s5 = sld [smem:[#allocation287_spill]] }
  0x56   :  { %359 = vmatpush1.bf16.msra.mxu0 %v336_v22  ;;  %v191_v26 = vcombine.low %v157_v20, %v158_v23  ;;  %v152_v27 = vld [vmem:[%s13162_s21 + $0x2] sm:$0x3]  ;;  %v153_v28 = vld [vmem:[%s13162_s21 + $0x4] sm:$0x3]  ;;  %v154_v29 = vld [vmem:[%s13162_s21 + $0x6] sm:$0x3] }
  0x57   :  { %250 = vmatprep.subr.bf16.mxu1 %v231_v16  ;;  %v198_v30 = vrot.slane %v190_v24, %v9489_v15  ;;  %v163_v31 = vcombine.low %v151_v25, %v152_v27  ;;  %v164_v32 = vcombine.low %v153_v28, %v154_v29  ;;  %859 = vmatprep.subr.bf16.mxu0 %v8653_v35  ;;  %v8650_v45 = vld [vmem:[%s13159_s30 + $0x8] ss:$12 sps:$4 sm:$0x1f]   ;;  %v8668_v54 = vld [vmem:[#allocation3 + $0x34] ss:$12 sps:$4 sm:$0xff]   ;;  %v9546_v23 = vsub.s32 0, %v9476_v8 }
  0x58   :  { %251 = vmatpush1.bf16.msra.mxu1 %v228_v17  ;;  %v205_v33 = vrot.slane %v191_v26, %v9489_v15  ;;  %v342_v48 = vsel %vm334_vm2, %v8650_v45, 0  ;;  %v8666_v55 = vld [vmem:[#allocation3 + $0x30] ss:$12 sps:$4 sm:$0xff]   ;;  %v8669_v57 = vld [vmem:[#allocation3 + $0x18] ss:$12 sps:$4 sm:$0xff]   ;;  %v9552_v25 = vsub.s32 1, %v9476_v8 }
  0x59   :  { %8596 = vmatprep.subr.bf16.mxu1 %v9323_v34  ;;  %v171_v36 = vrot.slane %v163_v31, %v9489_v15  ;;  %v178_v37 = vrot.slane %v164_v32, %v9489_v15  ;;  %v8671_v56 = vld [vmem:[#allocation3 + $0x1c] ss:$12 sps:$4 sm:$0xff]   ;;  %v8674_v58 = vld [vmem:[#allocation3 + $0x4] ss:$12 sps:$4 sm:$0xff]   ;;  %v8672_v59 = vld [vmem:[#allocation3] ss:$12 sps:$4 sm:$0xff]  }
  0x5a   :  { %v206_v38 = vcombine.low %v198_v30, %v205_v33  ;;  %v8677_v60 = vld [vmem:[#allocation3 + $0x16c] ss:$12 sps:$4 sm:$0xff]   ;;  %v8675_v61 = vld [vmem:[#allocation3 + $0x168] ss:$12 sps:$4 sm:$0xff]   ;;  %v8678_v63 = vld [vmem:[#allocation3 + $0x150] ss:$12 sps:$4 sm:$0xff]  }
  0x5b   :  { %v179_v40 = vcombine.low %v171_v36, %v178_v37  ;;  %v8680_v62 = vld [vmem:[#allocation3 + $0x154] ss:$12 sps:$4 sm:$0xff]   ;;  %v8683_v0 = vld [vmem:[#allocation3 + $0x13c] ss:$12 sps:$4 sm:$0xff]   ;;  %v8681_v1 = vld [vmem:[#allocation3 + $0x138] ss:$12 sps:$4 sm:$0xff]  }
  0x5c   :  { %v208_v41 = vpack.c.bf16 %v206_v38, %v206_v38  ;;  %v8686_v3 = vld [vmem:[#allocation3 + $0x124] ss:$12 sps:$4 sm:$0xff]   ;;  %v8684_v4 = vld [vmem:[#allocation3 + $0x120] ss:$12 sps:$4 sm:$0xff]   ;;  %v8687_v6 = vld [vmem:[#allocation3 + $0x108] ss:$12 sps:$4 sm:$0xff]  }
  0x5d   :  { %v9525_v42 = vpack.c.bf16 %v179_v40, %v179_v40  ;;  %v8689_v5 = vld [vmem:[#allocation3 + $0x10c] ss:$12 sps:$4 sm:$0xff]   ;;  %v8692_v7 = vld [vmem:[#allocation3 + $0xf4] ss:$12 sps:$4 sm:$0xff]   ;;  %v8690_v9 = vld [vmem:[#allocation3 + $0xf0] ss:$12 sps:$4 sm:$0xff]  }
  0x5e   :  { %7816 = vmatmul.mubr.msk.bf16.vlgmr.msra.gmra.mxu1 %vm219_vm3, %v208_v41  ;;  %v8695_v10 = vld [vmem:[#allocation3 + $0xdc] ss:$12 sps:$4 sm:$0xff]   ;;  %v8693_v11 = vld [vmem:[#allocation3 + $0xd8] ss:$12 sps:$4 sm:$0xff]   ;;  %v8696_v13 = vld [vmem:[#allocation3 + $0xc0] ss:$12 sps:$4 sm:$0xff]  }
  0x5f   :  { %13163 = vst [vmem:[#allocation15_spill] sm:$0xff] %v9525_v42  ;;  %7822 = vmatmul.mubr.msk.bf16.vlgmr.msra.gmra.mxu0 %vm330_vm4, %v9525_v42  ;;  %8597 = vmatpush3.bf16.msra.mxu1 %v234_v39  ;;  %v8698_v12 = vld [vmem:[#allocation3 + $0xc4] ss:$12 sps:$4 sm:$0xff]   ;;  %v8699_v14 = vld [vmem:[#allocation3 + $0x1b4] ss:$12 sps:$4 sm:$0x3f]  }
  0x60   :  { %8598 = vmatprep.mubr.msk.bf16.mxu1 %vm9324_vm5, %v9323_v34  ;;  %8602 = vmatprep.subr.bf16.mxu1 %v9323_v34  ;;  %v8701_v16 = vld [vmem:[#allocation3 + $0x1b0] ss:$12 sps:$4 sm:$0x3f]   ;;  %v8702_v19 = vld [vmem:[#allocation3 + $0x198] ss:$12 sps:$4 sm:$0xff]   ;;  %13164 = vst [vmem:[#allocation16_spill] sm:$0xff] %v9546_v23 }
  0x61   :  { %860 = vmatpush1.bf16.msra.mxu0 %v8651_v43  ;;  %v851_v17 = vsel %vm849_vm6, %v8701_v16, 0  ;;  %v8704_v18 = vld [vmem:[#allocation3 + $0x19c] ss:$12 sps:$4 sm:$0xff]   ;;  %v8707_v20 = vld [vmem:[#allocation3 + $0x184] ss:$12 sps:$4 sm:$0xff]   ;;  %13166 = vst [vmem:[#allocation17_spill] sm:$0xff] %v9552_v25 }
  0x62   :  { %861 = vmatprep.subr.bf16.mxu0 %v8656_v44  ;;  %v8705_v21 = vld [vmem:[#allocation3 + $0x180] ss:$12 sps:$4 sm:$0xff]   ;;  %v8708_v22 = vld [vmem:[#allocation3 + $0x170] ss:$12 sps:$4 sm:$0xff]   ;;  %vm845_vm7 = vcmask 359424   ;;  %s13168_s2 = sld [smem:[#allocation289_spill]] }
  0x63   :  { %v425_v24 = vld [vmem:[%s13165_s5] sm:$0x7]  ;;  %s13169_s9 = sld [smem:[#allocation292_spill]]  ;;  %vm2928_vm8 = vcmask 179200   ;;  %vm6732_vm9 = vcmask 1043456   ;;  %vm7801_vm10 = vcmask 1024  }
  0x64   :  { %v430_v27 = vrot.slane %v425_v24, %v9546_v23  ;;  %v434_v31 = vrot.slane %v425_v24, %v9552_v25  ;;  %v8725_v16 = vld [vmem:[#allocation3 + $0x1a0] ss:$12 sps:$4 sm:$0xff]   ;;  %s13170_s6 = sld [smem:[#allocation291_spill]] }
  0x65   :  { %862 = vmatpush1.bf16.msra.mxu0 %v8654_v46 }
  0x66   :  { %8599 = vmatmul.mubr.msk.bf16.vlgmr.msra.gmra.mxu1 %vm219_vm3, %v208_v41  ;;  %863 = vmatprep.subr.bf16.mxu0 %v8659_v47 }
  0x67   :  { %8603 = vmatpush3.bf16.msra.mxu1 %v342_v48  ;;  %8604 = vmatprep.mubr.msk.bf16.mxu1 %vm9324_vm5, %v9323_v34  ;;  %v9557_v48 = vsub.s32 2, %v9476_v8 }
  0x68   :  { %7881 = vmatprep.subr.msk.bf16.mxu1 %vm849_vm6, %v8699_v14 }
  0x69   :  { %864 = vmatpush1.bf16.msra.mxu0 %v8657_v49  ;;  %13167 = vst [vmem:[#allocation18_spill] sm:$0xff] %v9557_v48 }
  0x6a   :  { %865 = vmatprep.subr.bf16.mxu0 %v8662_v50 }
  0x6d   :  { %866 = vmatpush1.bf16.msra.mxu0 %v8660_v51  ;;  %v438_v51 = vrot.slane %v425_v24, %v9557_v48  ;;  %v8733_v24 = vld [vmem:[#allocation5 + $0x78] ss:$12 sps:$4 sm:$0xff]  }
  0x6e   :  { %8605 = vmatmul.mubr.msk.bf16.vlgmr.msra.gmra.mxu1 %vm330_vm4, %v9525_v42  ;;  %867 = vmatprep.subr.bf16.mxu0 %v8665_v52 }
  0x6f   :  { %932 = vmatprep.mubr.bf16.mxu1 %v12578_v2  ;;  %911 = vmatpush1.bf16.msra.mxu1 %v851_v17  ;;  %v8726_v17 = vld [vmem:[#allocation3 + $0x188] ss:$12 sps:$4 sm:$0xff]  }
  0x70   :  { %912 = vmatprep.subr.bf16.mxu1 %v8704_v18  ;;  %v8729_v18 = vld [vmem:[#allocation5 + $0xac] ss:$12 sps:$4 sm:$0xff]  }
  0x71   :  { %868 = vmatpush1.bf16.msra.mxu0 %v8663_v53 }
  0x72   :  { %869 = vmatprep.subr.bf16.mxu0 %v8668_v54 }
  0x73   :  { %913 = vmatpush1.bf16.msra.mxu1 %v8702_v19  ;;  %v8727_v19 = vld [vmem:[#allocation5 + $0xa8] ss:$12 sps:$4 sm:$0xff]  }
  0x74   :  { %914 = vmatprep.subr.bf16.mxu1 %v8707_v20  ;;  %v8732_v20 = vld [vmem:[#allocation5 + $0x94] ss:$12 sps:$4 sm:$0xff]  }
  0x75   :  { %870 = vmatpush1.bf16.msra.mxu0 %v8666_v55 }
  0x76   :  { %871 = vmatprep.subr.bf16.mxu0 %v8671_v56 }
  0x77   :  { %915 = vmatpush1.bf16.msra.mxu1 %v8705_v21  ;;  %v8730_v21 = vld [vmem:[#allocation5 + $0x90] ss:$12 sps:$4 sm:$0xff]  }
  0x78   :  { %8544 = vmatprep.subr.bf16.mxu1 %v8708_v22  ;;  %v8735_v22 = vld [vmem:[#allocation5 + $0x7c] ss:$12 sps:$4 sm:$0xff]  }
  0x79   :  { %872 = vmatpush1.bf16.msra.mxu0 %v8669_v57 }
  0x7a   :  { %873 = vmatprep.subr.bf16.mxu0 %v8674_v58 }
  0x7d   :  { %874 = vmatpush1.bf16.msra.mxu0 %v8672_v59  ;;  %v8709_v59 = vld [vmem:[#allocation3 + $0xb0] ss:$12 sps:$4 sm:$0xff]  }
  0x7e   :  { %875 = vmatprep.subr.bf16.mxu0 %v8677_v60 }
  0x81   :  { %876 = vmatpush2.bf16.msra.mxu0 %v8675_v61  ;;  %v8710_v61 = vld [vmem:[#allocation3 + $0x158] ss:$12 sps:$4 sm:$0xff]  }
  0x82   :  { %877 = vmatprep.subr.bf16.mxu0 %v8680_v62  ;;  %v8711_v62 = vld [vmem:[#allocation3 + $0x98] ss:$12 sps:$4 sm:$0xff]  }
  0x85   :  { %878 = vmatpush2.bf16.msra.mxu0 %v8678_v63  ;;  %v8712_v63 = vld [vmem:[#allocation3 + $0x140] ss:$12 sps:$4 sm:$0xff]  }
  0x86   :  { %879 = vmatprep.subr.bf16.mxu0 %v8683_v0  ;;  %v8713_v0 = vld [vmem:[#allocation3 + $0x80] ss:$12 sps:$4 sm:$0xff]  }
  0x89   :  { %880 = vmatpush2.bf16.msra.mxu0 %v8681_v1  ;;  %v8714_v1 = vld [vmem:[#allocation3 + $0x128] ss:$12 sps:$4 sm:$0xff]  }
  0x8a   :  { %881 = vmatprep.subr.bf16.mxu0 %v8686_v3  ;;  %v8715_v3 = vld [vmem:[#allocation3 + $0x68] ss:$12 sps:$4 sm:$0xff]  }
  0x8d   :  { %882 = vmatpush2.bf16.msra.mxu0 %v8684_v4  ;;  %v8716_v4 = vld [vmem:[#allocation3 + $0x110] ss:$12 sps:$4 sm:$0xff]  }
  0x8e   :  { %883 = vmatprep.subr.bf16.mxu0 %v8689_v5  ;;  %v8717_v5 = vld [vmem:[#allocation3 + $0x50] ss:$12 sps:$4 sm:$0xff]  }
  0x91   :  { %884 = vmatpush2.bf16.msra.mxu0 %v8687_v6  ;;  %v8718_v6 = vld [vmem:[#allocation3 + $0xf8] ss:$12 sps:$4 sm:$0xff]  }
  0x92   :  { %885 = vmatprep.subr.bf16.mxu0 %v8692_v7  ;;  %v8719_v7 = vld [vmem:[#allocation3 + $0x38] ss:$12 sps:$4 sm:$0xff]  }
  0x95   :  { %886 = vmatpush2.bf16.msra.mxu0 %v8690_v9  ;;  %v8720_v9 = vld [vmem:[#allocation3 + $0xe0] ss:$12 sps:$4 sm:$0xff]  }
  0x96   :  { %887 = vmatprep.subr.bf16.mxu0 %v8695_v10  ;;  %v8721_v10 = vld [vmem:[#allocation3 + $0x20] ss:$12 sps:$4 sm:$0xff]  }
  0x99   :  { %888 = vmatpush2.bf16.msra.mxu0 %v8693_v11  ;;  %v8722_v11 = vld [vmem:[#allocation3 + $0xc8] ss:$12 sps:$4 sm:$0xff]  }
  0x9a   :  { %889 = vmatprep.subr.bf16.mxu0 %v8698_v12  ;;  %v8723_v12 = vld [vmem:[#allocation3 + $0x8] ss:$12 sps:$4 sm:$0xff]  }
  0x9d   :  { %890 = vmatpush2.bf16.msra.mxu0 %v8696_v13  ;;  %v8724_v13 = vld [vmem:[#allocation3 + $0x1b8] ss:$12 sps:$4 sm:$0x3f]  }
  0x9e   :  { %v857_v14 = vsel %vm849_vm6, %v8724_v13, 0 }
 0x11e   :  { %v270_v26 = vpop.f32.mrf.mxu1 }
 0x11f   :  { %v378_v28 = vpop.f32.mrf.mxu0 }
 0x120   :  { %v379_v29 = vadd.f32 %v378_v28, %v270_v26  ;;  %v272_v30 = vpop.f32.mrf.mxu1  ;;  %v8738_v26 = vld [vmem:[#allocation5 + $0x64] ss:$12 sps:$4 sm:$0xff]   ;;  %v8741_v28 = vld [vmem:[#allocation5 + $0x4c] ss:$12 sps:$4 sm:$0xff]  }
 0x121   :  { %v380_v32 = vpop.f32.mrf.mxu0 }
 0x122   :  { %v442_v33 = vadd.f32 %v430_v27, %v379_v29  ;;  %v381_v35 = vadd.f32 %v380_v32, %v272_v30  ;;  %v274_v36 = vpop.f32.mrf.mxu1  ;;  %v8736_v27 = vld [vmem:[#allocation5 + $0x60] ss:$12 sps:$4 sm:$0xff]   ;;  %v8739_v29 = vld [vmem:[#allocation5 + $0x48] ss:$12 sps:$4 sm:$0xff]  }
 0x123   :  { %v382_v37 = vpop.f32.mrf.mxu0  ;;  %v8744_v30 = vld [vmem:[#allocation5 + $0x34] ss:$12 sps:$4 sm:$0xff]   ;;  %v8747_v32 = vld [vmem:[#allocation5 + $0x1c] ss:$12 sps:$4 sm:$0xff]  }
 0x124   :  { %v443_v38 = vadd.f32 %v434_v31, %v381_v35  ;;  %v275_v39 = vpop.f32.mrf.mxu1  ;;  %v445_v40 = vmax.f32 %v442_v33, 0.0  ;;  %v8742_v31 = vld [vmem:[#allocation5 + $0x30] ss:$12 sps:$4 sm:$0xff]   ;;  %v8745_v33 = vld [vmem:[#allocation5 + $0x18] ss:$12 sps:$4 sm:$0xff]  }
 0x125   :  { %v383_v41 = vpop.f32.mrf.mxu0  ;;  %v8750_v35 = vld [vmem:[#allocation5 + $0x4] ss:$12 sps:$4 sm:$0xff]   ;;  %v8748_v36 = vld [vmem:[#allocation5] ss:$12 sps:$4 sm:$0xff]  }
 0x126   :  { %v446_v43 = vmax.f32 %v443_v38, 0.0  ;;  %v311_v44 = vpop.f32.mrf.mxu1  ;;  %v448_v47 = vpack.c.bf16 %v445_v40, %v445_v40  ;;  %v8753_v37 = vld [vmem:[#allocation5 + $0x16c] ss:$12 sps:$4 sm:$0xff]   ;;  %v8751_v38 = vld [vmem:[#allocation5 + $0x168] ss:$12 sps:$4 sm:$0xff]  }
 0x127   :  { %v8756_v39 = vld [vmem:[#allocation5 + $0x154] ss:$12 sps:$4 sm:$0xff]   ;;  %v8754_v40 = vld [vmem:[#allocation5 + $0x150] ss:$12 sps:$4 sm:$0xff]  }
 0x128   :  { %v449_v45 = vpack.c.bf16 %v446_v43, %v446_v43  ;;  %v8600_v46 = vpop.f32.mrf.mxu1  ;;  %v8759_v41 = vld [vmem:[#allocation5 + $0x13c] ss:$12 sps:$4 sm:$0xff]   ;;  %v8757_v43 = vld [vmem:[#allocation5 + $0x138] ss:$12 sps:$4 sm:$0xff]  }
 0x129   :  { %v8765_v46 = vld [vmem:[#allocation5 + $0x10c] ss:$12 sps:$4 sm:$0xff]  }
 0x12a   :  { %891 = vmatprep.mubr.bf16.mxu0 %v449_v45  ;;  %v314_v49 = vpop.f32.mrf.mxu1 }
 0x12b   :  { %892 = vmatmul.mubr.bf16.vlgmr.msra.gmra.mxu0 %v448_v47  ;;  %v8768_v49 = vld [vmem:[#allocation5 + $0xf4] ss:$12 sps:$4 sm:$0xff]  }
 0x12c   :  { %v8601_v50 = vpop.f32.mrf.mxu1  ;;  %1506 = vmatprep.mubr.bf16.mxu0 %v12578_v2 }
 0x12d   :  { %v8766_v50 = vld [vmem:[#allocation5 + $0xf0] ss:$12 sps:$4 sm:$0xff]  }
 0x12e   :  { %v419_v52 = vpop.f32.mrf.mxu1 }
 0x12f   :  { %v420_v53 = vadd.f32 %v419_v52, %v311_v44  ;;  %v8762_v44 = vld [vmem:[#allocation5 + $0x124] ss:$12 sps:$4 sm:$0xff]  }
 0x130   :  { %v8606_v54 = vpop.f32.mrf.mxu1  ;;  %v8769_v52 = vld [vmem:[#allocation5 + $0xd8] ss:$12 sps:$4 sm:$0xff]  }
 0x131   :  { %v444_v55 = vadd.f32 %v438_v51, %v420_v53  ;;  %v8771_v51 = vld [vmem:[#allocation5 + $0xdc] ss:$12 sps:$4 sm:$0xff]   ;;  %v8774_v53 = vld [vmem:[#allocation5 + $0xc4] ss:$12 sps:$4 sm:$0xff]  }
 0x132   :  { %v422_v56 = vpop.f32.mrf.mxu1  ;;  %v8775_v54 = vld [vmem:[#allocation5 + $0x1b4] ss:$12 sps:$4 sm:$0x3f]  }
 0x133   :  { %v447_v57 = vmax.f32 %v444_v55, 0.0  ;;  %v8777_v55 = vld [vmem:[#allocation5 + $0x1b0] ss:$12 sps:$4 sm:$0x3f]   ;;  %v8772_v56 = vld [vmem:[#allocation5 + $0xc0] ss:$12 sps:$4 sm:$0xff]   ;;  %7941 = vmatprep.subr.msk.bf16.mxu0 %vm849_vm6, %v8775_v54 }
 0x134   :  { %v8607_v58 = vpop.f32.mrf.mxu1  ;;  %v8799_v54 = vld [vmem:[#allocation5 + $0x8] ss:$12 sps:$4 sm:$0xff]  }
 0x135   :  { %v450_v60 = vpack.c.bf16 %v447_v57, %v447_v57  ;;  %v1425_v57 = vsel %vm849_vm6, %v8777_v55, 0  ;;  %v8780_v58 = vld [vmem:[#allocation5 + $0x19c] ss:$12 sps:$4 sm:$0xff]   ;;  %v8800_v55 = vld [vmem:[#allocation5 + $0x1b8] ss:$12 sps:$4 sm:$0x3f]  }
 0x136   :  { %1485 = vmatpush1.bf16.msra.mxu0 %v1425_v57  ;;  %v8801_v57 = vld [vmem:[#allocation5 + $0x1a0] ss:$12 sps:$4 sm:$0xff]  }
 0x137   :  { %7882 = vmatmul.mubr.msk.bf16.vlgmr.msra.gmra.mxu1 %vm845_vm7, %v450_v60  ;;  %1486 = vmatprep.subr.bf16.mxu0 %v8780_v58  ;;  %v8802_v58 = vld [vmem:[#allocation5 + $0x188] ss:$12 sps:$4 sm:$0xff]  }
 0x138   :  { %8545 = vmatpush3.bf16.msra.mxu1 %v8709_v59  ;;  %973 = vmatprep.mubr.bf16.mxu1 %v449_v45  ;;  %v8760_v45 = vld [vmem:[#allocation5 + $0x120] ss:$12 sps:$4 sm:$0xff]   ;;  %v8778_v59 = vld [vmem:[#allocation5 + $0x198] ss:$12 sps:$4 sm:$0xff]  }
 0x139   :  { %8546 = vmatprep.subr.bf16.mxu1 %v8710_v61  ;;  %v8781_v61 = vld [vmem:[#allocation5 + $0x180] ss:$12 sps:$4 sm:$0xff]  }
 0x13a   :  { %1487 = vmatpush1.bf16.msra.mxu0 %v8778_v59  ;;  %v8805_v59 = vld [vmem:[%s13169_s9 + $0x74] ss:$8 sps:$4 sm:$0xff]  }
 0x13c   :  { %8547 = vmatpush3.bf16.msra.mxu1 %v8711_v62  ;;  %v8784_v62 = vld [vmem:[#allocation5 + $0x170] ss:$12 sps:$4 sm:$0xff]  }
 0x13d   :  { %8548 = vmatprep.subr.bf16.mxu1 %v8712_v63 }
 0x140   :  { %8549 = vmatpush3.bf16.msra.mxu1 %v8713_v0 }
 0x141   :  { %8550 = vmatprep.subr.bf16.mxu1 %v8714_v1  ;;  %v527_v1 = vld [vmem:[%s13168_s2] sm:$0x7]  ;;  %s14139_s2 = sld [smem:[#allocation293_spill]] }
 0x144   :  { %8551 = vmatpush3.bf16.msra.mxu1 %v8715_v3 }
 0x145   :  { %8552 = vmatprep.subr.bf16.mxu1 %v8716_v4 }
 0x148   :  { %8553 = vmatpush3.bf16.msra.mxu1 %v8717_v5  ;;  %v532_v5 = vrot.slane %v527_v1, %v9546_v23 }
 0x149   :  { %8554 = vmatprep.subr.bf16.mxu1 %v8718_v6  ;;  %v536_v6 = vrot.slane %v527_v1, %v9552_v25 }
 0x14c   :  { %8555 = vmatpush3.bf16.msra.mxu1 %v8719_v7 }
 0x14d   :  { %8556 = vmatprep.subr.bf16.mxu1 %v8720_v9 }
 0x150   :  { %8557 = vmatpush3.bf16.msra.mxu1 %v8721_v10 }
 0x151   :  { %8558 = vmatprep.subr.bf16.mxu1 %v8722_v11 }
 0x154   :  { %8559 = vmatpush3.bf16.msra.mxu1 %v8723_v12 }
 0x155   :  { %8608 = vmatprep.subr.bf16.mxu1 %v9323_v34 }
 0x157   :  { %974 = vmatmul.mubr.bf16.vlgmr.msra.gmra.mxu1 %v448_v47  ;;  %v8763_v47 = vld [vmem:[#allocation5 + $0x108] ss:$12 sps:$4 sm:$0xff]  }
 0x158   :  { %8609 = vmatpush3.bf16.msra.mxu1 %v857_v14  ;;  %8614 = vmatprep.mubr.msk.bf16.mxu1 %vm9324_vm5, %v9323_v34 }
 0x159   :  { %8610 = vmatprep.subr.bf16.mxu1 %v9323_v34 }
 0x15c   :  { %8611 = vmatpush3.bf16.msra.mxu1 %v8725_v16 }
 0x15d   :  { %8612 = vmatprep.subr.bf16.mxu1 %v9323_v34 }
 0x160   :  { %8613 = vmatpush3.bf16.msra.mxu1 %v8726_v17 }
 0x161   :  { %1433 = vmatprep.subr.bf16.mxu1 %v8729_v18 }
 0x163   :  { %8615 = vmatmul.mubr.msk.bf16.vlgmr.msra.gmra.mxu1 %vm845_vm7, %v450_v60  ;;  %v8783_v60 = vld [vmem:[#allocation5 + $0x184] ss:$12 sps:$4 sm:$0xff]  }
 0x164   :  { %1434 = vmatpush1.bf16.msra.mxu1 %v8727_v19  ;;  %1488 = vmatprep.subr.bf16.mxu0 %v8783_v60  ;;  %v8803_v60 = vld [vmem:[%s13169_s9 + $0x70] ss:$8 sps:$4 sm:$0xff]  }
 0x165   :  { %1435 = vmatprep.subr.bf16.mxu1 %v8732_v20  ;;  %1489 = vmatpush1.bf16.msra.mxu0 %v8781_v61  ;;  %v8808_v61 = vld [vmem:[%s13169_s9 + $0x64] ss:$8 sps:$4 sm:$0xff]  }
 0x166   :  { %8570 = vmatprep.subr.bf16.mxu0 %v8784_v62  ;;  %v8811_v62 = vld [vmem:[%s13169_s9 + $0x54] ss:$8 sps:$4 sm:$0xff]  }
 0x168   :  { %1436 = vmatpush1.bf16.msra.mxu1 %v8730_v21 }
 0x169   :  { %1437 = vmatprep.subr.bf16.mxu1 %v8735_v22 }
 0x16c   :  { %1438 = vmatpush1.bf16.msra.mxu1 %v8733_v24 }
 0x16d   :  { %1439 = vmatprep.subr.bf16.mxu1 %v8738_v26 }
 0x170   :  { %1440 = vmatpush1.bf16.msra.mxu1 %v8736_v27 }
 0x171   :  { %1441 = vmatprep.subr.bf16.mxu1 %v8741_v28  ;;  %v540_v28 = vrot.slane %v527_v1, %v9557_v48  ;;  %v8812_v1 = vld [vmem:[%s13169_s9 + $0x40] ss:$8 sps:$4 sm:$0xff]  }
 0x174   :  { %1442 = vmatpush1.bf16.msra.mxu1 %v8739_v29 }
 0x175   :  { %1443 = vmatprep.subr.bf16.mxu1 %v8744_v30 }
 0x178   :  { %1444 = vmatpush1.bf16.msra.mxu1 %v8742_v31 }
 0x179   :  { %1445 = vmatprep.subr.bf16.mxu1 %v8747_v32 }
 0x17c   :  { %1446 = vmatpush1.bf16.msra.mxu1 %v8745_v33 }
 0x17d   :  { %1447 = vmatprep.subr.bf16.mxu1 %v8750_v35 }
 0x180   :  { %1448 = vmatpush1.bf16.msra.mxu1 %v8748_v36  ;;  %v8785_v36 = vld [vmem:[#allocation5 + $0xb0] ss:$12 sps:$4 sm:$0xff]  }
 0x181   :  { %1449 = vmatprep.subr.bf16.mxu1 %v8753_v37 }
 0x184   :  { %1450 = vmatpush2.bf16.msra.mxu1 %v8751_v38  ;;  %v8786_v38 = vld [vmem:[#allocation5 + $0x158] ss:$12 sps:$4 sm:$0xff]  }
 0x185   :  { %1451 = vmatprep.subr.bf16.mxu1 %v8756_v39 }
 0x188   :  { %1452 = vmatpush2.bf16.msra.mxu1 %v8754_v40  ;;  %v8787_v40 = vld [vmem:[#allocation5 + $0x98] ss:$12 sps:$4 sm:$0xff]  }
 0x189   :  { %1453 = vmatprep.subr.bf16.mxu1 %v8759_v41  ;;  %v8788_v41 = vld [vmem:[#allocation5 + $0x140] ss:$12 sps:$4 sm:$0xff]  }
 0x18c   :  { %1454 = vmatpush2.bf16.msra.mxu1 %v8757_v43  ;;  %v8789_v43 = vld [vmem:[#allocation5 + $0x80] ss:$12 sps:$4 sm:$0xff]  }
 0x18d   :  { %1455 = vmatprep.subr.bf16.mxu1 %v8762_v44  ;;  %v8790_v44 = vld [vmem:[#allocation5 + $0x128] ss:$12 sps:$4 sm:$0xff]  }
 0x190   :  { %1456 = vmatpush2.bf16.msra.mxu1 %v8760_v45  ;;  %v8791_v45 = vld [vmem:[#allocation5 + $0x68] ss:$12 sps:$4 sm:$0xff]  }
 0x191   :  { %1457 = vmatprep.subr.bf16.mxu1 %v8765_v46  ;;  %v8792_v46 = vld [vmem:[#allocation5 + $0x110] ss:$12 sps:$4 sm:$0xff]  }
 0x194   :  { %1458 = vmatpush2.bf16.msra.mxu1 %v8763_v47  ;;  %v8793_v47 = vld [vmem:[#allocation5 + $0x50] ss:$12 sps:$4 sm:$0xff]  }
 0x195   :  { %1459 = vmatprep.subr.bf16.mxu1 %v8768_v49  ;;  %v8794_v49 = vld [vmem:[#allocation5 + $0xf8] ss:$12 sps:$4 sm:$0xff]  }
 0x198   :  { %1460 = vmatpush2.bf16.msra.mxu1 %v8766_v50  ;;  %v8795_v50 = vld [vmem:[#allocation5 + $0x38] ss:$12 sps:$4 sm:$0xff]  }
 0x199   :  { %1461 = vmatprep.subr.bf16.mxu1 %v8771_v51  ;;  %v8796_v51 = vld [vmem:[#allocation5 + $0xe0] ss:$12 sps:$4 sm:$0xff]  }
 0x19c   :  { %1462 = vmatpush2.bf16.msra.mxu1 %v8769_v52  ;;  %v8797_v52 = vld [vmem:[#allocation5 + $0x20] ss:$12 sps:$4 sm:$0xff]  }
 0x19d   :  { %1463 = vmatprep.subr.bf16.mxu1 %v8774_v53  ;;  %v8798_v53 = vld [vmem:[#allocation5 + $0xc8] ss:$12 sps:$4 sm:$0xff]  }
 0x1a0   :  { %1464 = vmatpush2.bf16.msra.mxu1 %v8772_v56  ;;  %v1431_v56 = vsel %vm849_vm6, %v8800_v55, 0 }
 0x1eb   :  { %v893_v63 = vpop.f32.mrf.mxu0 }
 0x1ec   :  { %v894_v7 = vadd.f32 %v893_v63, %v532_v5  ;;  %v8809_v63 = vld [vmem:[%s13169_s9 + $0x50] ss:$8 sps:$4 sm:$0xff]   ;;  %v8820_v5 = vld [vmem:[%s13169_s9 + $0x24] ss:$8 sps:$4 sm:$0xff]  }
 0x1ed   :  { %v895_v0 = vpop.f32.mrf.mxu0 }
 0x1ee   :  { %v896_v10 = vadd.f32 %v895_v0, %v536_v6  ;;  %v8814_v0 = vld [vmem:[%s13169_s9 + $0x44] ss:$8 sps:$4 sm:$0xff]   ;;  %v8818_v6 = vld [vmem:[%s13169_s9 + $0x20] ss:$8 sps:$4 sm:$0xff]  }
 0x1ef   :  { %v897_v3 = vpop.f32.mrf.mxu0 }
 0x1f0   :  { %v8817_v3 = vld [vmem:[%s13169_s9 + $0x34] ss:$8 sps:$4 sm:$0xff]  }
 0x1f1   :  { %v898_v4 = vpop.f32.mrf.mxu0 }
 0x1f2   :  { %v8815_v4 = vld [vmem:[%s13169_s9 + $0x30] ss:$8 sps:$4 sm:$0xff]  }
 0x1f7   :  { %v934_v9 = vpop.f32.mrf.mxu1 }
 0x1f8   :  { %v935_v11 = vadd.f32 %v934_v9, %v894_v7  ;;  %v8823_v7 = vld [vmem:[%s13169_s9 + $0x14] ss:$8 sps:$4 sm:$0xff]   ;;  %v8821_v9 = vld [vmem:[%s13169_s9 + $0x10] ss:$8 sps:$4 sm:$0xff]  }
 0x1f9   :  { %v936_v12 = vpop.f32.mrf.mxu1 }
 0x1fa   :  { %v937_v13 = vadd.f32 %v936_v12, %v896_v10  ;;  %v1021_v14 = vmax.f32 %v935_v11, 0.0  ;;  %v8826_v10 = vld [vmem:[%s13169_s9 + $0x4] ss:$8 sps:$4 sm:$0xff]   ;;  %v8824_v11 = vld [vmem:[%s13169_s9] ss:$8 sps:$4 sm:$0xff]  }
 0x1fb   :  { %v938_v16 = vpop.f32.mrf.mxu1  ;;  %v8829_v12 = vld [vmem:[%s13169_s9 + $0xf4] ss:$8 sps:$4 sm:$0xff]  }
 0x1fc   :  { %v1022_v17 = vmax.f32 %v937_v13, 0.0  ;;  %v1024_v20 = vpack.c.bf16 %v1021_v14, %v1021_v14  ;;  %v8827_v13 = vld [vmem:[%s13169_s9 + $0xf0] ss:$8 sps:$4 sm:$0xff]   ;;  %v8832_v14 = vld [vmem:[%s13169_s9 + $0xe4] ss:$8 sps:$4 sm:$0xff]  }
 0x1fd   :  { %v939_v18 = vpop.f32.mrf.mxu1  ;;  %v8830_v16 = vld [vmem:[%s13169_s9 + $0xe0] ss:$8 sps:$4 sm:$0xff]  }
 0x1fe   :  { %v1025_v19 = vpack.c.bf16 %v1022_v17, %v1022_v17  ;;  %v8835_v17 = vld [vmem:[%s13169_s9 + $0xd4] ss:$8 sps:$4 sm:$0xff]   ;;  %v8833_v18 = vld [vmem:[%s13169_s9 + $0xd0] ss:$8 sps:$4 sm:$0xff]  }
 0x200   :  { %1465 = vmatprep.mubr.bf16.mxu1 %v1025_v19 }
 0x201   :  { %1466 = vmatmul.mubr.bf16.vlgmr.msra.gmra.mxu1 %v1024_v20 }
 0x202   :  { %1921 = vmatprep.mubr.bf16.mxu1 %v12578_v2 }
 0x217   :  { %v8560_v21 = vpop.f32.mrf.mxu1 }
 0x219   :  { %v8561_v22 = vpop.f32.mrf.mxu1 }
 0x21a   :  { %v8562_v27 = vadd.f32 %v8561_v22, %v8560_v21  ;;  %v8841_v21 = vld [vmem:[%s13169_s9 + $0xb4] ss:$8 sps:$4 sm:$0xff]   ;;  %v8839_v22 = vld [vmem:[%s13169_s9 + $0xb0] ss:$8 sps:$4 sm:$0xff]  }
 0x21b   :  { %v8563_v24 = vpop.f32.mrf.mxu1 }
 0x21c   :  { %v976_v29 = vadd.f32 %v8562_v27, %v540_v28  ;;  %v8844_v24 = vld [vmem:[%s13169_s9 + $0xa4] ss:$8 sps:$4 sm:$0xff]   ;;  %v8847_v27 = vld [vmem:[%s13169_s9 + $0x94] ss:$8 sps:$4 sm:$0xff]   ;;  %v8845_v28 = vld [vmem:[%s13169_s9 + $0x90] ss:$8 sps:$4 sm:$0xff]  }
 0x21d   :  { %v8564_v26 = vpop.f32.mrf.mxu1 }
 0x21e   :  { %v8842_v26 = vld [vmem:[%s13169_s9 + $0xa0] ss:$8 sps:$4 sm:$0xff]  }
 0x223   :  { %v1015_v30 = vpop.f32.mrf.mxu1 }
 0x224   :  { %v1016_v31 = vadd.f32 %v1015_v30, %v976_v29  ;;  %v8850_v29 = vld [vmem:[%s13169_s9 + $0x84] ss:$8 sps:$4 sm:$0xff]   ;;  %v8848_v30 = vld [vmem:[%s13169_s9 + $0x80] ss:$8 sps:$4 sm:$0xff]  }
 0x225   :  { %v8616_v32 = vpop.f32.mrf.mxu1 }
 0x226   :  { %v1023_v33 = vmax.f32 %v1016_v31, 0.0  ;;  %v8851_v31 = vld [vmem:[%s13169_s9 + $0x124] ss:$8 sps:$4 sm:$0x3f]  }
 0x227   :  { %v1018_v35 = vpop.f32.mrf.mxu1  ;;  %v8853_v32 = vld [vmem:[%s13169_s9 + $0x120] ss:$8 sps:$4 sm:$0x3f]   ;;  %7982 = vmatprep.subr.msk.bf16.mxu1 %vm849_vm6, %v8851_v31  ;;  %v2022_v31 = vld [vmem:[%s12557_s11 + $0x2d0] sm:$0xff] }
 0x228   :  { %v1026_v37 = vpack.c.bf16 %v1023_v33, %v1023_v33  ;;  %v8856_v33 = vld [vmem:[%s13169_s9 + $0x114] ss:$8 sps:$4 sm:$0xff]   ;;  %v1843_v35 = vsel %vm849_vm6, %v8853_v32, 0 }
 0x229   :  { %v8617_v39 = vpop.f32.mrf.mxu1  ;;  %1900 = vmatpush1.bf16.msra.mxu1 %v1843_v35 }
 0x22a   :  { %7942 = vmatmul.mubr.msk.bf16.vlgmr.msra.gmra.mxu0 %vm845_vm7, %v1026_v37  ;;  %1901 = vmatprep.subr.bf16.mxu1 %v8856_v33 }
 0x22b   :  { %8571 = vmatpush3.bf16.msra.mxu0 %v8785_v36  ;;  %1547 = vmatprep.mubr.bf16.mxu0 %v1025_v19  ;;  %v8838_v19 = vld [vmem:[%s13169_s9 + $0xc4] ss:$8 sps:$4 sm:$0xff]   ;;  %v8854_v36 = vld [vmem:[%s13169_s9 + $0x110] ss:$8 sps:$4 sm:$0xff]  }
 0x22c   :  { %8572 = vmatprep.subr.bf16.mxu0 %v8786_v38  ;;  %v8857_v38 = vld [vmem:[%s13169_s9 + $0x100] ss:$8 sps:$4 sm:$0xff]  }
 0x22d   :  { %1902 = vmatpush1.bf16.msra.mxu1 %v8854_v36 }
 0x22f   :  { %8573 = vmatpush3.bf16.msra.mxu0 %v8787_v40 }
 0x230   :  { %8574 = vmatprep.subr.bf16.mxu0 %v8788_v41 }
 0x233   :  { %8575 = vmatpush3.bf16.msra.mxu0 %v8789_v43 }
 0x234   :  { %8576 = vmatprep.subr.bf16.mxu0 %v8790_v44  ;;  %v1103_v44 = vld [vmem:[%s13170_s6] sm:$0x7] }
 0x237   :  { %8577 = vmatpush3.bf16.msra.mxu0 %v8791_v45  ;;  %v1108_v45 = vrot.slane %v1103_v44, %v9546_v23 }
 0x238   :  { %8578 = vmatprep.subr.bf16.mxu0 %v8792_v46  ;;  %v1112_v46 = vrot.slane %v1103_v44, %v9552_v25 }
 0x23b   :  { %8579 = vmatpush3.bf16.msra.mxu0 %v8793_v47 }
 0x23c   :  { %8580 = vmatprep.subr.bf16.mxu0 %v8794_v49 }
 0x23f   :  { %8581 = vmatpush3.bf16.msra.mxu0 %v8795_v50 }
 0x240   :  { %8582 = vmatprep.subr.bf16.mxu0 %v8796_v51 }
 0x243   :  { %8583 = vmatpush3.bf16.msra.mxu0 %v8797_v52 }
 0x244   :  { %8584 = vmatprep.subr.bf16.mxu0 %v8798_v53 }
 0x247   :  { %8585 = vmatpush3.bf16.msra.mxu0 %v8799_v54 }
 0x248   :  { %8618 = vmatprep.subr.bf16.mxu0 %v9323_v34 }
 0x24a   :  { %1548 = vmatmul.mubr.bf16.vlgmr.msra.gmra.mxu0 %v1024_v20  ;;  %v8836_v20 = vld [vmem:[%s13169_s9 + $0xc0] ss:$8 sps:$4 sm:$0xff]  }
 0x24b   :  { %8619 = vmatpush3.bf16.msra.mxu0 %v1431_v56  ;;  %8624 = vmatprep.mubr.msk.bf16.mxu0 %vm9324_vm5, %v9323_v34 }
 0x24c   :  { %8620 = vmatprep.subr.bf16.mxu0 %v9323_v34 }
 0x24f   :  { %8621 = vmatpush3.bf16.msra.mxu0 %v8801_v57 }
 0x250   :  { %8622 = vmatprep.subr.bf16.mxu0 %v9323_v34  ;;  %v8806_v34 = vld [vmem:[%s13169_s9 + $0x60] ss:$8 sps:$4 sm:$0xff]  }
 0x253   :  { %8623 = vmatpush3.bf16.msra.mxu0 %v8802_v58 }
 0x254   :  { %1848 = vmatprep.subr.bf16.mxu0 %v8805_v59 }
 0x256   :  { %8625 = vmatmul.mubr.msk.bf16.vlgmr.msra.gmra.mxu0 %vm845_vm7, %v1026_v37  ;;  %v8859_v37 = vld [vmem:[%s13169_s9 + $0x104] ss:$8 sps:$4 sm:$0xff]  }
 0x257   :  { %1849 = vmatpush1.bf16.msra.mxu0 %v8803_v60  ;;  %1903 = vmatprep.subr.bf16.mxu1 %v8859_v37  ;;  %v1996_v37 = vld [vmem:[%s12557_s11 + $0x200] sm:$0xff] }
 0x258   :  { %1850 = vmatprep.subr.bf16.mxu0 %v8808_v61  ;;  %1904 = vmatpush1.bf16.msra.mxu1 %v8857_v38  ;;  %v2004_v38 = vld [vmem:[%s12557_s11 + $0x240] sm:$0xff] }
 0x25b   :  { %1851 = vmatpush1.bf16.msra.mxu0 %v8806_v34 }
 0x25c   :  { %1852 = vmatprep.subr.bf16.mxu0 %v8811_v62 }
 0x25f   :  { %1853 = vmatpush1.bf16.msra.mxu0 %v8809_v63 }
 0x260   :  { %1854 = vmatprep.subr.bf16.mxu0 %v8814_v0  ;;  %v1116_v0 = vrot.slane %v1103_v44, %v9557_v48  ;;  %v8049_v44 = vcombine.high %v1996_v37, %v2004_v38  ;;  %v3418_v48 = vld [vmem:[#allocation7 + $0x370] sm:$0xff] }
 0x263   :  { %1855 = vmatpush1.bf16.msra.mxu0 %v8812_v1 }
 0x264   :  { %1856 = vmatprep.subr.bf16.mxu0 %v8817_v3 }
 0x267   :  { %1857 = vmatpush1.bf16.msra.mxu0 %v8815_v4 }
 0x268   :  { %1858 = vmatprep.subr.bf16.mxu0 %v8820_v5 }
 0x26b   :  { %1859 = vmatpush1.bf16.msra.mxu0 %v8818_v6 }
 0x26c   :  { %1860 = vmatprep.subr.bf16.mxu0 %v8823_v7 }
 0x26f   :  { %1861 = vmatpush1.bf16.msra.mxu0 %v8821_v9 }
 0x270   :  { %1862 = vmatprep.subr.bf16.mxu0 %v8826_v10 }
 0x273   :  { %1863 = vmatpush1.bf16.msra.mxu0 %v8824_v11  ;;  %v2044_v11 = vld [vmem:[%s12557_s11 + $0x380] sm:$0xff] }
 0x274   :  { %1864 = vmatprep.subr.bf16.mxu0 %v8829_v12  ;;  %v2052_v12 = vld [vmem:[%s12557_s11 + $0x3c0] sm:$0xff] }
 0x277   :  { %1865 = vmatpush2.bf16.msra.mxu0 %v8827_v13  ;;  %v2046_v13 = vld [vmem:[%s12557_s11 + $0x390] sm:$0xff] }
 0x278   :  { %1866 = vmatprep.subr.bf16.mxu0 %v8832_v14  ;;  %v8096_v14 = vcombine.low %v2044_v11, %v2052_v12 }
 0x27b   :  { %1867 = vmatpush2.bf16.msra.mxu0 %v8830_v16  ;;  %v8097_v16 = vcombine.high %v2044_v11, %v2052_v12  ;;  %v1942_v11 = vld [vmem:[%s12557_s11 + $0x50] sm:$0xff] }
 0x27c   :  { %1868 = vmatprep.subr.bf16.mxu0 %v8835_v17  ;;  %v2054_v17 = vld [vmem:[%s12557_s11 + $0x3d0] sm:$0xff] }
 0x27d   :  { %2980 = vmatprep.subr.bf16.mxu1 %v8097_v16 }
 0x27f   :  { %1869 = vmatpush2.bf16.msra.mxu0 %v8833_v18  ;;  %v2028_v18 = vld [vmem:[%s12557_s11 + $0x300] sm:$0xff] }
 0x280   :  { %1870 = vmatprep.subr.bf16.mxu0 %v8838_v19  ;;  %v2036_v19 = vld [vmem:[%s12557_s11 + $0x340] sm:$0xff] }
 0x281   :  { %v8080_v32 = vcombine.low %v2028_v18, %v2036_v19 }
 0x283   :  { %1871 = vmatpush2.bf16.msra.mxu0 %v8836_v20  ;;  %v8100_v20 = vcombine.low %v2046_v13, %v2054_v17 }
 0x284   :  { %1872 = vmatprep.subr.bf16.mxu0 %v8841_v21  ;;  %v8101_v21 = vcombine.high %v2046_v13, %v2054_v17  ;;  %v2076_v17 = vld [vmem:[%s12557_s11 + $0x480] sm:$0x77] }
 0x287   :  { %1873 = vmatpush2.bf16.msra.mxu0 %v8839_v22  ;;  %v8081_v22 = vcombine.high %v2028_v18, %v2036_v19  ;;  %v2078_v18 = vld [vmem:[%s12557_s11 + $0x490] sm:$0x77] }
 0x288   :  { %1874 = vmatprep.subr.bf16.mxu0 %v8844_v24  ;;  %v2030_v24 = vld [vmem:[%s12557_s11 + $0x310] sm:$0xff] }
 0x28b   :  { %1875 = vmatpush2.bf16.msra.mxu0 %v8842_v26  ;;  %v2038_v26 = vld [vmem:[%s12557_s11 + $0x350] sm:$0xff] }
 0x28c   :  { %1876 = vmatprep.subr.bf16.mxu0 %v8847_v27  ;;  %v2012_v27 = vld [vmem:[%s12557_s11 + $0x280] sm:$0xff]  ;;  %v8084_v33 = vcombine.low %v2030_v24, %v2038_v26 }
 0x28f   :  { %1877 = vmatpush2.bf16.msra.mxu0 %v8845_v28  ;;  %v8085_v28 = vcombine.high %v2030_v24, %v2038_v26  ;;  %v8128_v24 = vcombine.low %v2076_v17, %v2076_v17  ;;  %v8132_v26 = vcombine.low %v2078_v18, %v2078_v18 }
 0x290   :  { %1878 = vmatprep.subr.bf16.mxu0 %v8850_v29  ;;  %v2020_v29 = vld [vmem:[%s12557_s11 + $0x2c0] sm:$0xff] }
 0x291   :  { %v8065_v35 = vcombine.high %v2012_v27, %v2020_v29 }
 0x293   :  { %1879 = vmatpush2.bf16.msra.mxu0 %v8848_v30  ;;  %v2014_v30 = vld [vmem:[%s12557_s11 + $0x290] sm:$0xff] }
 0x294   :  { %3062 = vmatprep.subr.bf16.mxu0 %v8101_v21  ;;  %v8069_v36 = vcombine.high %v2014_v30, %v2022_v31  ;;  %v8129_v21 = vcombine.high %v2076_v17, %v2076_v17  ;;  %v1997_v17 = vld [vmem:[%s12557_s11 + $0x208] sm:$0xff] }
 0x2c1   :  { %v1467_v39 = vpop.f32.mrf.mxu1 }
 0x2c2   :  { %v1468_v47 = vadd.f32 %v1467_v39, %v1108_v45  ;;  %v1998_v39 = vld [vmem:[%s12557_s11 + $0x210] sm:$0xff] }
 0x2c3   :  { %v1469_v40 = vpop.f32.mrf.mxu1 }
 0x2c4   :  { %v1470_v50 = vadd.f32 %v1469_v40, %v1112_v46  ;;  %v2006_v40 = vld [vmem:[%s12557_s11 + $0x250] sm:$0xff]  ;;  %v1980_v46 = vld [vmem:[%s12557_s11 + $0x180] sm:$0xff] }
 0x2c5   :  { %v1471_v41 = vpop.f32.mrf.mxu1  ;;  %v8053_v45 = vcombine.high %v1998_v39, %v2006_v40 }
 0x2c6   :  { %v8064_v41 = vcombine.low %v2012_v27, %v2020_v29  ;;  %v2933_v27 = vsel %vm224_vm1, %v8128_v24, 0  ;;  %v2060_v29 = vld [vmem:[%s12557_s11 + $0x400] sm:$0xff] }
 0x2c7   :  { %v1472_v43 = vpop.f32.mrf.mxu1 }
 0x2c8   :  { %v8068_v43 = vcombine.low %v2014_v30, %v2022_v31  ;;  %v2068_v30 = vld [vmem:[%s12557_s11 + $0x440] sm:$0xff]  ;;  %v2062_v31 = vld [vmem:[%s12557_s11 + $0x410] sm:$0xff] }
 0x2ea   :  { %v1508_v49 = vpop.f32.mrf.mxu0 }
 0x2eb   :  { %v1509_v51 = vadd.f32 %v1508_v49, %v1468_v47  ;;  %v1988_v47 = vld [vmem:[%s12557_s11 + $0x1c0] sm:$0xff]  ;;  %v1982_v49 = vld [vmem:[%s12557_s11 + $0x190] sm:$0xff] }
 0x2ec   :  { %v1510_v52 = vpop.f32.mrf.mxu0 }
 0x2ed   :  { %v1511_v53 = vadd.f32 %v1510_v52, %v1470_v50  ;;  %v1595_v54 = vmax.f32 %v1509_v51, 0.0  ;;  %v1990_v50 = vld [vmem:[%s12557_s11 + $0x1d0] sm:$0xff]  ;;  %v8048_v51 = vcombine.low %v1996_v37, %v2004_v38  ;;  %v8052_v52 = vcombine.low %v1998_v39, %v2006_v40  ;;  %v2045_v38 = vld [vmem:[%s12557_s11 + $0x388] sm:$0xff]  ;;  %v2048_v40 = vld [vmem:[%s12557_s11 + $0x3a0] sm:$0xff] }
 0x2ee   :  { %v1512_v55 = vpop.f32.mrf.mxu0  ;;  %v2053_v39 = vld [vmem:[%s12557_s11 + $0x3c8] sm:$0xff] }
 0x2ef   :  { %v1596_v56 = vmax.f32 %v1511_v53, 0.0  ;;  %v1598_v59 = vpack.c.bf16 %v1595_v54, %v1595_v54  ;;  %v8033_v53 = vcombine.high %v1980_v46, %v1988_v47  ;;  %v8037_v54 = vcombine.high %v1982_v49, %v1990_v50  ;;  %v1964_v55 = vld [vmem:[%s12557_s11 + $0x100] sm:$0xff] }
 0x2f0   :  { %v1513_v57 = vpop.f32.mrf.mxu0 }
 0x2f1   :  { %v1599_v58 = vpack.c.bf16 %v1596_v56, %v1596_v56  ;;  %v1972_v56 = vld [vmem:[%s12557_s11 + $0x140] sm:$0xff]  ;;  %v1966_v57 = vld [vmem:[%s12557_s11 + $0x110] sm:$0xff] }
 0x2f3   :  { %1880 = vmatprep.mubr.bf16.mxu0 %v1599_v58  ;;  %v1974_v58 = vld [vmem:[%s12557_s11 + $0x150] sm:$0xff] }
 0x2f4   :  { %1881 = vmatmul.mubr.bf16.vlgmr.msra.gmra.mxu0 %v1598_v59  ;;  %v8032_v59 = vcombine.low %v1980_v46, %v1988_v47 }
 0x2f5   :  { %3063 = vmatpush1.bf16.msra.mxu0 %v8100_v20 }
 0x2f6   :  { %3064 = vmatprep.subr.bf16.mxu0 %v8085_v28  ;;  %v2945_v28 = vsel %vm224_vm1, %v8132_v26, 0 }
 0x2f9   :  { %3065 = vmatpush1.bf16.msra.mxu0 %v8084_v33  ;;  %v2070_v33 = vld [vmem:[%s12557_s11 + $0x450] sm:$0xff] }
 0x2fa   :  { %3066 = vmatprep.subr.bf16.mxu0 %v8069_v36  ;;  %v8116_v36 = vcombine.low %v2062_v31, %v2070_v33  ;;  %v8117_v37 = vcombine.high %v2062_v31, %v2070_v33 }
 0x2fd   :  { %3067 = vmatpush1.bf16.msra.mxu0 %v8068_v43  ;;  %v2056_v43 = vld [vmem:[%s12557_s11 + $0x3e0] sm:$0xff] }
 0x2fe   :  { %3068 = vmatprep.subr.bf16.mxu0 %v8053_v45  ;;  %v8104_v45 = vcombine.low %v2048_v40, %v2056_v43  ;;  %v8105_v46 = vcombine.high %v2048_v40, %v2056_v43 }
 0x301   :  { %3069 = vmatpush1.bf16.msra.mxu0 %v8052_v52  ;;  %v1639_v52 = vld [vmem:[%s12556_s10] sm:$0x3] }
 0x302   :  { %3070 = vmatprep.subr.bf16.mxu0 %v8037_v54  ;;  %v1648_v54 = vrot.slane %v1639_v52, %v9552_v25 }
 0x30a   :  { %v8586_v60 = vpop.f32.mrf.mxu0 }
 0x30c   :  { %v8587_v61 = vpop.f32.mrf.mxu0 }
 0x30d   :  { %v8588_v63 = vadd.f32 %v8587_v61, %v8586_v60  ;;  %v8036_v60 = vcombine.low %v1982_v49, %v1990_v50  ;;  %v8017_v61 = vcombine.high %v1964_v55, %v1972_v56 }
 0x30e   :  { %v8589_v34 = vpop.f32.mrf.mxu0 }
 0x30f   :  { %v1550_v1 = vadd.f32 %v8588_v63, %v1116_v0  ;;  %v8021_v34 = vcombine.high %v1966_v57, %v1974_v58  ;;  %v1956_v63 = vld [vmem:[%s12557_s11 + $0xc0] sm:$0xff]  ;;  %v1950_v0 = vld [vmem:[%s12557_s11 + $0x90] sm:$0xff]  ;;  %3071 = vmatpush1.bf16.msra.mxu0 %v8036_v60 }
 0x310   :  { %v8590_v62 = vpop.f32.mrf.mxu0 }
 0x311   :  { %v1948_v62 = vld [vmem:[%s12557_s11 + $0x80] sm:$0xff]  ;;  %3072 = vmatprep.subr.bf16.mxu0 %v8021_v34 }
 0x312   :  { %v8000_v12 = vcombine.low %v1948_v62, %v1956_v63 }
 0x316   :  { %v1589_v3 = vpop.f32.mrf.mxu0 }
 0x317   :  { %v1590_v4 = vadd.f32 %v1589_v3, %v1550_v1  ;;  %v1958_v1 = vld [vmem:[%s12557_s11 + $0xd0] sm:$0xff]  ;;  %v8016_v3 = vcombine.low %v1964_v55, %v1972_v56 }
 0x318   :  { %v8626_v5 = vpop.f32.mrf.mxu0  ;;  %v8004_v13 = vcombine.low %v1950_v0, %v1958_v1 }
 0x319   :  { %v1597_v6 = vmax.f32 %v1590_v4, 0.0  ;;  %v8020_v4 = vcombine.low %v1966_v57, %v1974_v58  ;;  %v8001_v5 = vcombine.high %v1948_v62, %v1956_v63  ;;  %v2037_v62 = vld [vmem:[%s12557_s11 + $0x348] sm:$0xff]  ;;  %v2032_v63 = vld [vmem:[%s12557_s11 + $0x320] sm:$0xff] }
 0x31a   :  { %v1592_v7 = vpop.f32.mrf.mxu0 }
 0x31b   :  { %v1600_v9 = vpack.c.bf16 %v1597_v6, %v1597_v6  ;;  %v8005_v6 = vcombine.high %v1950_v0, %v1958_v1  ;;  %v1932_v7 = vld [vmem:[%s12557_s11] sm:$0xff]  ;;  %3073 = vmatpush1.bf16.msra.mxu0 %v8020_v4 }
 0x31c   :  { %v8627_v10 = vpop.f32.mrf.mxu0  ;;  %v2040_v0 = vld [vmem:[%s12557_s11 + $0x360] sm:$0xff] }
 0x31d   :  { %7983 = vmatmul.mubr.msk.bf16.vlgmr.msra.gmra.mxu1 %vm845_vm7, %v1600_v9  ;;  %v1940_v9 = vld [vmem:[%s12557_s11 + $0x40] sm:$0xff]  ;;  %v1934_v10 = vld [vmem:[%s12557_s11 + $0x10] sm:$0xff]  ;;  %3074 = vmatprep.subr.bf16.mxu0 %v8005_v6 }
 0x31e   :  { %2981 = vmatpush1.bf16.msra.mxu1 %v8096_v14  ;;  %v7985_v14 = vcombine.high %v1932_v7, %v1940_v9  ;;  %v7989_v16 = vcombine.high %v1934_v10, %v1942_v11  ;;  %v7984_v19 = vcombine.low %v1932_v7, %v1940_v9  ;;  %v7988_v20 = vcombine.low %v1934_v10, %v1942_v11  ;;  %v2021_v9 = vld [vmem:[%s12557_s11 + $0x2c8] sm:$0xff]  ;;  %v2016_v10 = vld [vmem:[%s12557_s11 + $0x2a0] sm:$0xff] }
 0x31f   :  { %2982 = vmatprep.subr.bf16.mxu1 %v8081_v22  ;;  %3075 = vmatpush1.bf16.msra.mxu0 %v8004_v13  ;;  %v8133_v22 = vcombine.high %v2078_v18, %v2078_v18  ;;  %v8089_v7 = vcombine.high %v2032_v63, %v2040_v0  ;;  %v2024_v11 = vld [vmem:[%s12557_s11 + $0x2e0] sm:$0xff]  ;;  %v8088_v13 = vcombine.low %v2032_v63, %v2040_v0  ;;  %v2005_v18 = vld [vmem:[%s12557_s11 + $0x248] sm:$0xff] }
 0x320   :  { %3076 = vmatprep.subr.bf16.mxu0 %v7989_v16  ;;  %v8073_v16 = vcombine.high %v2016_v10, %v2024_v11  ;;  %v8051_v24 = vcombine.high %v1997_v17, %v2005_v18  ;;  %v8050_v31 = vcombine.low %v1997_v17, %v2005_v18  ;;  %v2047_v18 = vld [vmem:[%s12557_s11 + $0x398] sm:$0xff] }
 0x322   :  { %2983 = vmatpush1.bf16.msra.mxu1 %v8080_v32  ;;  %v8113_v32 = vcombine.high %v2060_v29, %v2068_v30 }
 0x323   :  { %2984 = vmatprep.subr.bf16.mxu1 %v8065_v35  ;;  %3077 = vmatpush1.bf16.msra.mxu0 %v7988_v20  ;;  %v8112_v35 = vcombine.low %v2060_v29, %v2068_v30  ;;  %v2008_v20 = vld [vmem:[%s12557_s11 + $0x260] sm:$0xff] }
 0x324   :  { %8148 = vmatprep.subr.msk.bf16.mxu0 %vm224_vm1, %v8133_v22  ;;  %v8072_v22 = vcombine.low %v2016_v10, %v2024_v11  ;;  %v1984_v29 = vld [vmem:[%s12557_s11 + $0x1a0] sm:$0xff]  ;;  %v2069_v10 = vld [vmem:[%s12557_s11 + $0x448] sm:$0xff] }
 0x325   :  { %v1992_v30 = vld [vmem:[%s12557_s11 + $0x1e0] sm:$0xff] }
 0x326   :  { %2985 = vmatpush1.bf16.msra.mxu1 %v8064_v41  ;;  %v8099_v41 = vcombine.high %v2045_v38, %v2053_v39  ;;  %v2064_v11 = vld [vmem:[%s12557_s11 + $0x420] sm:$0xff] }
 0x327   :  { %2986 = vmatprep.subr.bf16.mxu1 %v8049_v44  ;;  %3091 = vmatpush2.bf16.msra.mxu0 %v2945_v28  ;;  %v8098_v44 = vcombine.low %v2045_v38, %v2053_v39  ;;  %v1989_v28 = vld [vmem:[%s12557_s11 + $0x1c8] sm:$0xff]  ;;  %v1968_v38 = vld [vmem:[%s12557_s11 + $0x120] sm:$0xff] }
 0x328   :  { %3092 = vmatprep.subr.bf16.mxu0 %v8117_v37  ;;  %v1973_v37 = vld [vmem:[%s12557_s11 + $0x148] sm:$0xff]  ;;  %v1976_v39 = vld [vmem:[%s12557_s11 + $0x160] sm:$0xff] }
 0x32a   :  { %2987 = vmatpush1.bf16.msra.mxu1 %v8048_v51 }
 0x32b   :  { %2988 = vmatprep.subr.bf16.mxu1 %v8033_v53  ;;  %3093 = vmatpush2.bf16.msra.mxu0 %v8116_v36  ;;  %v1644_v53 = vrot.slane %v1639_v52, %v9546_v23  ;;  %v1965_v36 = vld [vmem:[%s12557_s11 + $0x108] sm:$0xff] }
 0x32c   :  { %3144 = vmatprep.subr.bf16.mxu0 %v8105_v46  ;;  %v8019_v43 = vcombine.high %v1965_v36, %v1973_v37  ;;  %v1957_v46 = vld [vmem:[%s12557_s11 + $0xc8] sm:$0xff] }
 0x32e   :  { %2989 = vmatpush1.bf16.msra.mxu1 %v8032_v59 }
 0x32f   :  { %2990 = vmatprep.subr.bf16.mxu1 %v8017_v61  ;;  %v2029_v61 = vld [vmem:[%s12557_s11 + $0x308] sm:$0xff] }
 0x330   :  { %v8083_v6 = vcombine.high %v2029_v61, %v2037_v62 }
 0x332   :  { %2991 = vmatpush1.bf16.msra.mxu1 %v8016_v3 }
 0x333   :  { %2992 = vmatprep.subr.bf16.mxu1 %v8001_v5  ;;  %v2013_v5 = vld [vmem:[%s12557_s11 + $0x288] sm:$0xff] }
 0x336   :  { %2993 = vmatpush1.bf16.msra.mxu1 %v8000_v12  ;;  %v8082_v12 = vcombine.low %v2029_v61, %v2037_v62  ;;  %v2080_v62 = vld [vmem:[%s12557_s11 + $0x4a0] sm:$0x77] }
 0x337   :  { %2994 = vmatprep.subr.bf16.mxu1 %v7985_v14  ;;  %v8067_v14 = vcombine.high %v2013_v5, %v2021_v9 }
 0x33a   :  { %2995 = vmatpush1.bf16.msra.mxu1 %v7984_v19  ;;  %v2000_v19 = vld [vmem:[%s12557_s11 + $0x220] sm:$0xff] }
 0x33b   :  { %8144 = vmatprep.subr.msk.bf16.mxu1 %vm224_vm1, %v8129_v21  ;;  %v8066_v21 = vcombine.low %v2013_v5, %v2021_v9  ;;  %v8057_v26 = vcombine.high %v2000_v19, %v2008_v20  ;;  %v8137_v5 = vcombine.high %v2080_v62, %v2080_v62  ;;  %v2061_v9 = vld [vmem:[%s12557_s11 + $0x408] sm:$0xff] }
 0x33e   :  { %3009 = vmatpush2.bf16.msra.mxu1 %v2933_v27  ;;  %v1981_v27 = vld [vmem:[%s12557_s11 + $0x188] sm:$0xff] }
 0x33f   :  { %3010 = vmatprep.subr.bf16.mxu1 %v8113_v32  ;;  %v8056_v32 = vcombine.low %v2000_v19, %v2008_v20  ;;  %v8035_v33 = vcombine.high %v1981_v27, %v1989_v28  ;;  %v8034_v40 = vcombine.low %v1981_v27, %v1989_v28  ;;  %v2055_v19 = vld [vmem:[%s12557_s11 + $0x3d8] sm:$0xff]  ;;  %v2050_v20 = vld [vmem:[%s12557_s11 + $0x3b0] sm:$0xff] }
 0x340   :  { %v2031_v28 = vld [vmem:[%s12557_s11 + $0x318] sm:$0xff] }
 0x342   :  { %3011 = vmatpush2.bf16.msra.mxu1 %v8112_v35  ;;  %v8041_v35 = vcombine.high %v1984_v29, %v1992_v30 }
 0x343   :  { %3021 = vmatprep.subr.bf16.mxu1 %v8099_v41  ;;  %v8040_v41 = vcombine.low %v1984_v29, %v1992_v30  ;;  %v2039_v29 = vld [vmem:[%s12557_s11 + $0x358] sm:$0xff]  ;;  %v2034_v30 = vld [vmem:[%s12557_s11 + $0x330] sm:$0xff] }
 0x3b4   :  { %v1882_v47 = vpop.f32.mrf.mxu0 }
 0x3b5   :  { %v1883_v55 = vadd.f32 %v1882_v47, %v1644_v53  ;;  %v1952_v47 = vld [vmem:[%s12557_s11 + $0xa0] sm:$0xff] }
 0x3b6   :  { %v1884_v49 = vpop.f32.mrf.mxu0 }
 0x3b7   :  { %v1885_v57 = vadd.f32 %v1884_v49, %v1648_v54  ;;  %v1960_v49 = vld [vmem:[%s12557_s11 + $0xe0] sm:$0xff]  ;;  %v1933_v54 = vld [vmem:[%s12557_s11 + $0x8] sm:$0xff] }
 0x3b8   :  { %v1886_v50 = vpop.f32.mrf.mxu0  ;;  %v8009_v53 = vcombine.high %v1952_v47, %v1960_v49 }
 0x3b9   :  { %v8018_v50 = vcombine.low %v1965_v36, %v1973_v37  ;;  %v2015_v37 = vld [vmem:[%s12557_s11 + $0x298] sm:$0xff] }
 0x3ba   :  { %v1887_v51 = vpop.f32.mrf.mxu0 }
 0x3bb   :  { %v8024_v51 = vcombine.low %v1968_v38, %v1976_v39 }
 0x3dd   :  { %v1923_v56 = vpop.f32.mrf.mxu1 }
 0x3de   :  { %v1924_v58 = vadd.f32 %v1923_v56, %v1883_v55  ;;  %v1941_v55 = vld [vmem:[%s12557_s11 + $0x48] sm:$0xff]  ;;  %v1936_v56 = vld [vmem:[%s12557_s11 + $0x20] sm:$0xff] }
 0x3df   :  { %v1925_v59 = vpop.f32.mrf.mxu1  ;;  %v7986_v63 = vcombine.low %v1933_v54, %v1941_v55 }
 0x3e0   :  { %v1926_v60 = vadd.f32 %v1925_v59, %v1885_v57  ;;  %v9858_v3 = vpack.c.bf16 %v1924_v58, %v1924_v58  ;;  %v1944_v57 = vld [vmem:[%s12557_s11 + $0x60] sm:$0xff]  ;;  %v8008_v59 = vcombine.low %v1952_v47, %v1960_v49  ;;  %v2007_v47 = vld [vmem:[%s12557_s11 + $0x258] sm:$0xff]  ;;  %v2002_v49 = vld [vmem:[%s12557_s11 + $0x230] sm:$0xff] }
 0x3e1   :  { %v1927_v34 = vpop.f32.mrf.mxu1  ;;  %v7993_v61 = vcombine.high %v1936_v56, %v1944_v57  ;;  %v7992_v0 = vcombine.low %v1936_v56, %v1944_v57  ;;  %v1991_v56 = vld [vmem:[%s12557_s11 + $0x1d8] sm:$0xff]  ;;  %v1986_v57 = vld [vmem:[%s12557_s11 + $0x1b0] sm:$0xff] }
 0x3e2   :  { %v9856_v1 = vpack.c.bf16 %v1926_v60, %v1926_v60  ;;  %v7987_v60 = vcombine.high %v1933_v54, %v1941_v55  ;;  %v2077_v34 = vld [vmem:[%s12557_s11 + $0x488] sm:$0x77]  ;;  %v1983_v55 = vld [vmem:[%s12557_s11 + $0x198] sm:$0xff] }
 0x3e3   :  { %v1928_v4 = vpop.f32.mrf.mxu1 }
 0x3e4   :  { %8145 = vmatprep.mubr.msk.bf16.mxu1 %vm2928_vm8, %v9856_v1  ;;  %8149 = vmatprep.mubr.msk.bf16.mxu0 %vm2928_vm8, %v9856_v1  ;;  %v8131_v4 = vcombine.high %v2077_v34, %v2077_v34 }
 0x3e5   :  { %3013 = vmatmul.mubr.bf16.vlgmr.msra.gmra.mxu1 %v9858_v3  ;;  %3095 = vmatmul.mubr.bf16.vlgmr.msra.gmra.mxu0 %v9858_v3 }
 0x3e6   :  { %3022 = vmatpush1.bf16.msra.mxu1 %v8098_v44  ;;  %3145 = vmatpush1.bf16.msra.mxu0 %v8104_v45  ;;  %v8025_v44 = vcombine.high %v1968_v38, %v1976_v39  ;;  %v1949_v45 = vld [vmem:[%s12557_s11 + $0x88] sm:$0xff]  ;;  %v2023_v38 = vld [vmem:[%s12557_s11 + $0x2d8] sm:$0xff]  ;;  %v2018_v39 = vld [vmem:[%s12557_s11 + $0x2b0] sm:$0xff] }
 0x3e7   :  { %8147 = vmatprep.mubr.msk.bf16.mxu1 %vm2928_vm8, %v9856_v1  ;;  %8153 = vmatprep.mubr.msk.bf16.mxu0 %vm2928_vm8, %v9856_v1  ;;  %v8003_v52 = vcombine.high %v1949_v45, %v1957_v46  ;;  %v8002_v58 = vcombine.low %v1949_v45, %v1957_v46  ;;  %v1999_v46 = vld [vmem:[%s12557_s11 + $0x218] sm:$0xff] }
 0x3e8   :  { %3023 = vmatprep.subr.bf16.mxu1 %v8083_v6  ;;  %3146 = vmatprep.subr.bf16.mxu0 %v8089_v7  ;;  %v8130_v6 = vcombine.low %v2077_v34, %v2077_v34  ;;  %v8136_v7 = vcombine.low %v2080_v62, %v2080_v62  ;;  %v1967_v62 = vld [vmem:[%s12557_s11 + $0x118] sm:$0xff] }
 0x3ea   :  { %3024 = vmatpush1.bf16.msra.mxu1 %v8082_v12  ;;  %3147 = vmatpush1.bf16.msra.mxu0 %v8088_v13  ;;  %v2072_v12 = vld [vmem:[%s12557_s11 + $0x460] sm:$0xff]  ;;  %v2939_v13 = vsel %vm224_vm1, %v8130_v6, 0 }
 0x3eb   :  { %3025 = vmatprep.subr.bf16.mxu1 %v8067_v14  ;;  %3148 = vmatprep.subr.bf16.mxu0 %v8073_v16  ;;  %v2957_v14 = vsel %vm224_vm1, %v8136_v7, 0  ;;  %v8115_v16 = vcombine.high %v2061_v9, %v2069_v10  ;;  %v8121_v17 = vcombine.high %v2064_v11, %v2072_v12 }
 0x3ee   :  { %3026 = vmatpush1.bf16.msra.mxu1 %v8066_v21  ;;  %3149 = vmatpush1.bf16.msra.mxu0 %v8072_v22  ;;  %v2058_v21 = vld [vmem:[%s12557_s11 + $0x3f0] sm:$0xff]  ;;  %v8114_v22 = vcombine.low %v2061_v9, %v2069_v10  ;;  %v1951_v10 = vld [vmem:[%s12557_s11 + $0x98] sm:$0xff] }
 0x3ef   :  { %3027 = vmatprep.subr.bf16.mxu1 %v8051_v24  ;;  %3150 = vmatprep.subr.bf16.mxu0 %v8057_v26  ;;  %v8120_v24 = vcombine.low %v2064_v11, %v2072_v12  ;;  %v8103_v26 = vcombine.high %v2047_v18, %v2055_v19  ;;  %v8109_v27 = vcombine.high %v2050_v20, %v2058_v21  ;;  %v1959_v11 = vld [vmem:[%s12557_s11 + $0xd8] sm:$0xff]  ;;  %v1954_v12 = vld [vmem:[%s12557_s11 + $0xb0] sm:$0xff] }
 0x3f2   :  { %3028 = vmatpush1.bf16.msra.mxu1 %v8050_v31  ;;  %3151 = vmatpush1.bf16.msra.mxu0 %v8056_v32  ;;  %v2042_v31 = vld [vmem:[%s12557_s11 + $0x370] sm:$0xff]  ;;  %v8102_v32 = vcombine.low %v2047_v18, %v2055_v19  ;;  %v1935_v19 = vld [vmem:[%s12557_s11 + $0x18] sm:$0xff] }
 0x3f3   :  { %3029 = vmatprep.subr.bf16.mxu1 %v8035_v33  ;;  %3152 = vmatprep.subr.bf16.mxu0 %v8041_v35  ;;  %v8108_v33 = vcombine.low %v2050_v20, %v2058_v21  ;;  %v8087_v35 = vcombine.high %v2031_v28, %v2039_v29  ;;  %v8093_v36 = vcombine.high %v2034_v30, %v2042_v31  ;;  %v1943_v20 = vld [vmem:[%s12557_s11 + $0x58] sm:$0xff]  ;;  %v1938_v21 = vld [vmem:[%s12557_s11 + $0x30] sm:$0xff] }
 0x3f6   :  { %3030 = vmatpush1.bf16.msra.mxu1 %v8034_v40  ;;  %3153 = vmatpush1.bf16.msra.mxu0 %v8040_v41  ;;  %v2026_v40 = vld [vmem:[%s12557_s11 + $0x2f0] sm:$0xff]  ;;  %v8086_v41 = vcombine.low %v2031_v28, %v2039_v29  ;;  %v2079_v29 = vld [vmem:[%s12557_s11 + $0x498] sm:$0x77] }
 0x3f7   :  { %3031 = vmatprep.subr.bf16.mxu1 %v8019_v43  ;;  %3154 = vmatprep.subr.bf16.mxu0 %v8025_v44  ;;  %v8092_v43 = vcombine.low %v2034_v30, %v2042_v31  ;;  %v8071_v44 = vcombine.high %v2015_v37, %v2023_v38  ;;  %v8077_v45 = vcombine.high %v2018_v39, %v2026_v40  ;;  %v2082_v30 = vld [vmem:[%s12557_s11 + $0x4b0] sm:$0x77] }
 0x3f8   :  { %v7990_v31 = vcombine.low %v1935_v19, %v1943_v20 }
 0x3fa   :  { %3032 = vmatpush1.bf16.msra.mxu1 %v8018_v50  ;;  %3155 = vmatpush1.bf16.msra.mxu0 %v8024_v51  ;;  %v2010_v50 = vld [vmem:[%s12557_s11 + $0x270] sm:$0xff]  ;;  %v8070_v51 = vcombine.low %v2015_v37, %v2023_v38  ;;  %v8140_v37 = vcombine.low %v2082_v30, %v2082_v30  ;;  %v2063_v38 = vld [vmem:[%s12557_s11 + $0x418] sm:$0xff] }
 0x3fb   :  { %3033 = vmatprep.subr.bf16.mxu1 %v8003_v52  ;;  %3156 = vmatprep.subr.bf16.mxu0 %v8009_v53  ;;  %v8076_v52 = vcombine.low %v2018_v39, %v2026_v40  ;;  %v8055_v53 = vcombine.high %v1999_v46, %v2007_v47  ;;  %v8061_v54 = vcombine.high %v2002_v49, %v2010_v50  ;;  %v2071_v39 = vld [vmem:[%s12557_s11 + $0x458] sm:$0xff]  ;;  %v2066_v40 = vld [vmem:[%s12557_s11 + $0x430] sm:$0xff] }
 0x3fe   :  { %3034 = vmatpush1.bf16.msra.mxu1 %v8002_v58  ;;  %3157 = vmatpush1.bf16.msra.mxu0 %v8008_v59  ;;  %v1994_v58 = vld [vmem:[%s12557_s11 + $0x1f0] sm:$0xff]  ;;  %v8054_v59 = vcombine.low %v1999_v46, %v2007_v47  ;;  %v2049_v47 = vld [vmem:[%s12557_s11 + $0x3a8] sm:$0xff] }
 0x3ff   :  { %3035 = vmatprep.subr.bf16.mxu1 %v7987_v60  ;;  %3158 = vmatprep.subr.bf16.mxu0 %v7993_v61  ;;  %v8060_v60 = vcombine.low %v2002_v49, %v2010_v50  ;;  %v8039_v61 = vcombine.high %v1983_v55, %v1991_v56  ;;  %v8045_v34 = vcombine.high %v1986_v57, %v1994_v58  ;;  %v2057_v49 = vld [vmem:[%s12557_s11 + $0x3e8] sm:$0xff]  ;;  %v3364_v50 = vld [vmem:[#allocation7 + $0x1c0] sm:$0xff] }
 0x400   :  { %v8044_v6 = vcombine.low %v1986_v57, %v1994_v58  ;;  %v2041_v57 = vld [vmem:[%s12557_s11 + $0x368] sm:$0xff]  ;;  %v3356_v58 = vld [vmem:[#allocation7 + $0x180] sm:$0xff] }
 0x402   :  { %3036 = vmatpush1.bf16.msra.mxu1 %v7986_v63  ;;  %3159 = vmatpush1.bf16.msra.mxu0 %v7992_v0  ;;  %v1975_v63 = vld [vmem:[%s12557_s11 + $0x158] sm:$0xff]  ;;  %v1970_v0 = vld [vmem:[%s12557_s11 + $0x130] sm:$0xff] }
 0x403   :  { %8146 = vmatprep.subr.msk.bf16.mxu1 %vm224_vm1, %v8131_v4  ;;  %8152 = vmatprep.subr.msk.bf16.mxu0 %vm224_vm1, %v8137_v5  ;;  %v1978_v4 = vld [vmem:[%s12557_s11 + $0x170] sm:$0xff]  ;;  %v8038_v5 = vcombine.low %v1983_v55, %v1991_v56  ;;  %v8023_v7 = vcombine.high %v1967_v62, %v1975_v63  ;;  %v2033_v56 = vld [vmem:[%s12557_s11 + $0x328] sm:$0xff] }
 0x404   :  { %v8029_v9 = vcombine.high %v1970_v0, %v1978_v4 }
 0x406   :  { %3050 = vmatpush2.bf16.msra.mxu1 %v2939_v13  ;;  %3173 = vmatpush2.bf16.msra.mxu0 %v2957_v14  ;;  %v1962_v13 = vld [vmem:[%s12557_s11 + $0xf0] sm:$0xff]  ;;  %v8022_v14 = vcombine.low %v1967_v62, %v1975_v63  ;;  %v2017_v63 = vld [vmem:[%s12557_s11 + $0x2a8] sm:$0xff] }
 0x407   :  { %3051 = vmatprep.subr.bf16.mxu1 %v8115_v16  ;;  %3174 = vmatprep.subr.bf16.mxu0 %v8121_v17  ;;  %v8028_v16 = vcombine.low %v1970_v0, %v1978_v4  ;;  %v8007_v17 = vcombine.high %v1951_v10, %v1959_v11  ;;  %v8013_v18 = vcombine.high %v1954_v12, %v1962_v13  ;;  %v2025_v0 = vld [vmem:[%s12557_s11 + $0x2e8] sm:$0xff]  ;;  %v3348_v4 = vld [vmem:[#allocation7 + $0x140] sm:$0xff] }
 0x40a   :  { %3052 = vmatpush2.bf16.msra.mxu1 %v8114_v22  ;;  %3175 = vmatpush2.bf16.msra.mxu0 %v8120_v24  ;;  %v1946_v22 = vld [vmem:[%s12557_s11 + $0x70] sm:$0xff]  ;;  %v8006_v24 = vcombine.low %v1951_v10, %v1959_v11  ;;  %v2001_v11 = vld [vmem:[%s12557_s11 + $0x228] sm:$0xff] }
 0x40b   :  { %3103 = vmatprep.subr.bf16.mxu1 %v8103_v26  ;;  %3226 = vmatprep.subr.bf16.mxu0 %v8109_v27  ;;  %v8012_v26 = vcombine.low %v1954_v12, %v1962_v13  ;;  %v7991_v27 = vcombine.high %v1935_v19, %v1943_v20  ;;  %v7997_v28 = vcombine.high %v1938_v21, %v1946_v22  ;;  %v2009_v12 = vld [vmem:[%s12557_s11 + $0x268] sm:$0xff]  ;;  %v3340_v13 = vld [vmem:[#allocation7 + $0x100] sm:$0xff] }
 0x40c   :  { %v1985_v20 = vld [vmem:[%s12557_s11 + $0x1a8] sm:$0xff] }
 0x40d   :  { %3054 = vmatmul.mubr.bf16.vlgmr.msra.gmra.mxu1 %v9858_v3  ;;  %3177 = vmatmul.mubr.bf16.vlgmr.msra.gmra.mxu0 %v9858_v3 }
 0x40e   :  { %3104 = vmatpush1.bf16.msra.mxu1 %v8102_v32  ;;  %8151 = vmatprep.mubr.msk.bf16.mxu1 %vm2928_vm8, %v9856_v1  ;;  %v7996_v32 = vcombine.low %v1938_v21, %v1946_v22  ;;  %v1993_v21 = vld [vmem:[%s12557_s11 + $0x1e8] sm:$0xff]  ;;  %v3332_v22 = vld [vmem:[#allocation7 + $0xc0] sm:$0xff] }
 0x40f   :  { %3227 = vmatpush1.bf16.msra.mxu0 %v8108_v33  ;;  %8157 = vmatprep.mubr.msk.bf16.mxu0 %vm2928_vm8, %v9856_v1  ;;  %v8135_v33 = vcombine.high %v2079_v29, %v2079_v29 }
 0x410   :  { %3105 = vmatprep.subr.bf16.mxu1 %v8087_v35  ;;  %3228 = vmatprep.subr.bf16.mxu0 %v8093_v36  ;;  %v8134_v35 = vcombine.low %v2079_v29, %v2079_v29  ;;  %v8141_v36 = vcombine.high %v2082_v30, %v2082_v30  ;;  %v1969_v30 = vld [vmem:[%s12557_s11 + $0x128] sm:$0xff] }
 0x412   :  { %3106 = vmatpush1.bf16.msra.mxu1 %v8086_v41  ;;  %v2074_v41 = vld [vmem:[%s12557_s11 + $0x470] sm:$0xff] }
 0x413   :  { %3229 = vmatpush1.bf16.msra.mxu0 %v8092_v43  ;;  %3107 = vmatprep.subr.bf16.mxu1 %v8071_v44  ;;  %v2951_v43 = vsel %vm224_vm1, %v8134_v35, 0  ;;  %v8119_v44 = vcombine.high %v2063_v38, %v2071_v39  ;;  %v8125_v46 = vcombine.high %v2066_v40, %v2074_v41  ;;  %v8042_v35 = vcombine.low %v1985_v20, %v1993_v21 }
 0x414   :  { %3230 = vmatprep.subr.bf16.mxu0 %v8077_v45  ;;  %v2969_v45 = vsel %vm224_vm1, %v8140_v37, 0 }
 0x416   :  { %3108 = vmatpush1.bf16.msra.mxu1 %v8070_v51  ;;  %v3368_v51 = vld [vmem:[#allocation7 + $0x1e0] sm:$0xff] }
 0x417   :  { %3231 = vmatpush1.bf16.msra.mxu0 %v8076_v52  ;;  %3109 = vmatprep.subr.bf16.mxu1 %v8055_v53  ;;  %v8118_v52 = vcombine.low %v2063_v38, %v2071_v39  ;;  %v8124_v53 = vcombine.low %v2066_v40, %v2074_v41  ;;  %v10094_v55 = vcombine.high %v3364_v50, %v3368_v51  ;;  %v1953_v39 = vld [vmem:[%s12557_s11 + $0xa8] sm:$0xff]  ;;  %v3316_v41 = vld [vmem:[#allocation7 + $0x40] sm:$0xff] }
 0x418   :  { %3232 = vmatprep.subr.bf16.mxu0 %v8061_v54  ;;  %v8107_v54 = vcombine.high %v2049_v47, %v2057_v49  ;;  %v1961_v40 = vld [vmem:[%s12557_s11 + $0xe8] sm:$0xff] }
 0x419   :  { %13171 = vst [vmem:[#allocation19_spill] sm:$0xff] %v10094_v55 }
 0x41a   :  { %3110 = vmatpush1.bf16.msra.mxu1 %v8054_v59  ;;  %v3360_v59 = vld [vmem:[#allocation7 + $0x1a0] sm:$0xff] }
 0x41b   :  { %3233 = vmatpush1.bf16.msra.mxu0 %v8060_v60  ;;  %3111 = vmatprep.subr.bf16.mxu1 %v8039_v61  ;;  %v8106_v60 = vcombine.low %v2049_v47, %v2057_v49  ;;  %v10102_v61 = vcombine.low %v3364_v50, %v3368_v51  ;;  %v10105_v62 = vcombine.high %v3356_v58, %v3360_v59  ;;  %v1937_v49 = vld [vmem:[%s12557_s11 + $0x28] sm:$0xff]  ;;  %v3308_v51 = vld [vmem:[#allocation7] sm:$0xff] }
 0x41c   :  { %3234 = vmatprep.subr.bf16.mxu0 %v8045_v34  ;;  %v8091_v34 = vcombine.high %v2033_v56, %v2041_v57  ;;  %v1945_v50 = vld [vmem:[%s12557_s11 + $0x68] sm:$0xff] }
 0x41d   :  { %13172 = vst [vmem:[#allocation20_spill] sm:$0xff] %v10102_v61  ;;  %13173 = vst [vmem:[#allocation21_spill] sm:$0xff] %v10105_v62 }
 0x41e   :  { %3112 = vmatpush1.bf16.msra.mxu1 %v8038_v5  ;;  %v3352_v5 = vld [vmem:[#allocation7 + $0x160] sm:$0xff] }
 0x41f   :  { %3235 = vmatpush1.bf16.msra.mxu0 %v8044_v6  ;;  %3113 = vmatprep.subr.bf16.mxu1 %v8023_v7  ;;  %v8090_v6 = vcombine.low %v2033_v56, %v2041_v57  ;;  %v10118_v7 = vcombine.low %v3356_v58, %v3360_v59  ;;  %v10121_v10 = vcombine.high %v3348_v4, %v3352_v5  ;;  %v2081_v58 = vld [vmem:[%s12557_s11 + $0x4a8] sm:$0x77]  ;;  %v3428_v59 = vld [vmem:[#allocation7 + $0x3c0] sm:$0xff] }
 0x420   :  { %3236 = vmatprep.subr.bf16.mxu0 %v8029_v9  ;;  %v8075_v9 = vcombine.high %v2017_v63, %v2025_v0  ;;  %v7995_v56 = vcombine.high %v1937_v49, %v1945_v50 }
 0x421   :  { %13174 = vst [vmem:[#allocation22_spill] sm:$0xff] %v10118_v7  ;;  %13175 = vst [vmem:[#allocation23_spill] sm:$0xff] %v10121_v10 }
 0x422   :  { %3114 = vmatpush1.bf16.msra.mxu1 %v8022_v14  ;;  %v3344_v14 = vld [vmem:[#allocation7 + $0x120] sm:$0xff] }
 0x423   :  { %3237 = vmatpush1.bf16.msra.mxu0 %v8028_v16  ;;  %3115 = vmatprep.subr.bf16.mxu1 %v8007_v17  ;;  %v8074_v16 = vcombine.low %v2017_v63, %v2025_v0  ;;  %v10131_v17 = vcombine.low %v3348_v4, %v3352_v5  ;;  %v10134_v19 = vcombine.high %v3340_v13, %v3344_v14 }
 0x424   :  { %3238 = vmatprep.subr.bf16.mxu0 %v8013_v18  ;;  %v8059_v18 = vcombine.high %v2001_v11, %v2009_v12  ;;  %v8139_v0 = vcombine.high %v2081_v58, %v2081_v58  ;;  %v8138_v4 = vcombine.low %v2081_v58, %v2081_v58  ;;  %v2003_v58 = vld [vmem:[%s12557_s11 + $0x238] sm:$0xff] }
 0x425   :  { %13176 = vst [vmem:[#allocation24_spill] sm:$0xff] %v10131_v17  ;;  %13177 = vst [vmem:[#allocation25_spill] sm:$0xff] %v10134_v19 }
 0x426   :  { %3116 = vmatpush1.bf16.msra.mxu1 %v8006_v24  ;;  %v3336_v24 = vld [vmem:[#allocation7 + $0xe0] sm:$0xff] }
 0x427   :  { %3239 = vmatpush1.bf16.msra.mxu0 %v8012_v26  ;;  %3117 = vmatprep.subr.bf16.mxu1 %v7991_v27  ;;  %v8058_v26 = vcombine.low %v2001_v11, %v2009_v12  ;;  %v10143_v27 = vcombine.low %v3340_v13, %v3344_v14  ;;  %v10146_v29 = vcombine.high %v3332_v22, %v3336_v24  ;;  %v3420_v11 = vld [vmem:[#allocation7 + $0x380] sm:$0xff]  ;;  %v2963_v13 = vsel %vm224_vm1, %v8138_v4, 0 }
 0x428   :  { %3240 = vmatprep.subr.bf16.mxu0 %v7997_v28  ;;  %v8043_v28 = vcombine.high %v1985_v20, %v1993_v21  ;;  %v3424_v12 = vld [vmem:[#allocation7 + $0x3a0] sm:$0xff] }
 0x429   :  { %13178 = vst [vmem:[#allocation26_spill] sm:$0xff] %v10143_v27  ;;  %13179 = vst [vmem:[#allocation27_spill] sm:$0xff] %v10146_v29  ;;  %v2051_v20 = vld [vmem:[%s12557_s11 + $0x3b8] sm:$0xff] }
 0x42a   :  { %3118 = vmatpush1.bf16.msra.mxu1 %v7990_v31  ;;  %v1977_v31 = vld [vmem:[%s12557_s11 + $0x168] sm:$0xff]  ;;  %v2059_v21 = vld [vmem:[%s12557_s11 + $0x3f8] sm:$0xff] }
 0x42b   :  { %3241 = vmatpush1.bf16.msra.mxu0 %v7996_v32  ;;  %8150 = vmatprep.subr.msk.bf16.mxu1 %vm224_vm1, %v8135_v33  ;;  %v3324_v32 = vld [vmem:[#allocation7 + $0x80] sm:$0xff]  ;;  %v8027_v37 = vcombine.high %v1969_v30, %v1977_v31 }
 0x42c   :  { %8156 = vmatprep.subr.msk.bf16.mxu0 %vm224_vm1, %v8141_v36  ;;  %v3328_v33 = vld [vmem:[#allocation7 + $0xa0] sm:$0xff]  ;;  %v10155_v36 = vcombine.low %v3332_v22, %v3336_v24 }
 0x42d   :  { %v10158_v38 = vcombine.high %v3324_v32, %v3328_v33  ;;  %v3412_v22 = vld [vmem:[#allocation7 + $0x340] sm:$0xff] }
 0x42e   :  { %3132 = vmatpush2.bf16.msra.mxu1 %v2951_v43  ;;  %13180 = vst [vmem:[#allocation28_spill] sm:$0xff] %v10155_v36  ;;  %v3320_v43 = vld [vmem:[#allocation7 + $0x60] sm:$0xff] }
 0x42f   :  { %3255 = vmatpush2.bf16.msra.mxu0 %v2969_v45  ;;  %3133 = vmatprep.subr.bf16.mxu1 %v8119_v44  ;;  %13181 = vst [vmem:[#allocation29_spill] sm:$0xff] %v10158_v38  ;;  %v8026_v44 = vcombine.low %v1969_v30, %v1977_v31  ;;  %v10167_v45 = vcombine.low %v3324_v32, %v3328_v33  ;;  %v3416_v24 = vld [vmem:[#allocation7 + $0x360] sm:$0xff] }
 0x430   :  { %3256 = vmatprep.subr.bf16.mxu0 %v8125_v46  ;;  %v8011_v46 = vcombine.high %v1953_v39, %v1961_v40  ;;  %v10170_v47 = vcombine.high %v3316_v41, %v3320_v43  ;;  %v8111_v30 = vcombine.high %v2051_v20, %v2059_v21  ;;  %v10217_v31 = vcombine.high %v3412_v22, %v3416_v24  ;;  %v2035_v32 = vld [vmem:[%s12557_s11 + $0x338] sm:$0xff] }
 0x431   :  { %13182 = vst [vmem:[#allocation30_spill] sm:$0xff] %v10167_v45  ;;  %v2043_v33 = vld [vmem:[%s12557_s11 + $0x378] sm:$0xff] }
 0x432   :  { %3134 = vmatpush2.bf16.msra.mxu1 %v8118_v52  ;;  %13183 = vst [vmem:[#allocation31_spill] sm:$0xff] %v10170_v47  ;;  %v3312_v52 = vld [vmem:[#allocation7 + $0x20] sm:$0xff]  ;;  %13191 = vst [vmem:[#allocation39_spill] sm:$0xff] %v10217_v31 }
 0x433   :  { %3257 = vmatpush2.bf16.msra.mxu0 %v8124_v53  ;;  %3185 = vmatprep.subr.bf16.mxu1 %v8107_v54  ;;  %v8010_v53 = vcombine.low %v1953_v39, %v1961_v40  ;;  %v10179_v54 = vcombine.low %v3316_v41, %v3320_v43  ;;  %v10182_v57 = vcombine.high %v3308_v51, %v3312_v52 }
 0x434   :  { %4204 = vmatprep.subr.bf16.mxu0 %v10094_v55  ;;  %v10188_v63 = vcombine.low %v3308_v51, %v3312_v52  ;;  %v8110_v39 = vcombine.low %v2051_v20, %v2059_v21  ;;  %v10226_v40 = vcombine.low %v3412_v22, %v3416_v24  ;;  %v8095_v41 = vcombine.high %v2035_v32, %v2043_v33  ;;  %v1971_v24 = vld [vmem:[%s12557_s11 + $0x138] sm:$0xff] }
 0x435   :  { %3136 = vmatmul.mubr.bf16.vlgmr.msra.gmra.mxu1 %v9858_v3  ;;  %13184 = vst [vmem:[#allocation32_spill] sm:$0xff] %v10179_v54  ;;  %13185 = vst [vmem:[#allocation33_spill] sm:$0xff] %v10182_v57  ;;  %v8094_v51 = vcombine.low %v2035_v32, %v2043_v33  ;;  %v3376_v32 = vld [vmem:[#allocation7 + $0x220] sm:$0xff] }
 0x436   :  { %3259 = vmatmul.mubr.bf16.vlgmr.msra.gmra.mxu0 %v9858_v3  ;;  %3186 = vmatpush1.bf16.msra.mxu1 %v8106_v60  ;;  %v3432_v60 = vld [vmem:[#allocation7 + $0x3e0] sm:$0xff]  ;;  %13186 = vst [vmem:[#allocation34_spill] sm:$0xff] %v10188_v63  ;;  %13192 = vst [vmem:[#allocation40_spill] sm:$0xff] %v10226_v40 }
 0x437   :  { %8155 = vmatprep.mubr.msk.bf16.mxu1 %vm2928_vm8, %v9856_v1  ;;  %4205 = vmatpush1.bf16.msra.mxu0 %v10102_v61  ;;  %v10191_v5 = vcombine.high %v3428_v59, %v3432_v60  ;;  %v10202_v14 = vcombine.low %v3428_v59, %v3432_v60  ;;  %v2011_v59 = vld [vmem:[%s12557_s11 + $0x278] sm:$0xff] }
 0x438   :  { %3187 = vmatprep.subr.bf16.mxu1 %v8091_v34  ;;  %4206 = vmatprep.subr.bf16.mxu0 %v10105_v62  ;;  %v7994_v34 = vcombine.low %v1937_v49, %v1945_v50  ;;  %v3396_v49 = vld [vmem:[#allocation7 + $0x2c0] sm:$0xff]  ;;  %v8063_v4 = vcombine.high %v2003_v58, %v2011_v59 }
 0x439   :  { %4236 = vmatprep.mubr.bf16.mxu0 %v12578_v2  ;;  %13187 = vst [vmem:[#allocation35_spill] sm:$0xff] %v10191_v5  ;;  %13188 = vst [vmem:[#allocation36_spill] sm:$0xff] %v10202_v14  ;;  %v3400_v50 = vld [vmem:[#allocation7 + $0x2e0] sm:$0xff] }
 0x43a   :  { %3188 = vmatpush1.bf16.msra.mxu1 %v8090_v6  ;;  %v2065_v6 = vld [vmem:[%s12557_s11 + $0x428] sm:$0xff]  ;;  %v3392_v60 = vld [vmem:[#allocation7 + $0x2a0] sm:$0xff] }
 0x43b   :  { %4207 = vmatpush1.bf16.msra.mxu0 %v10118_v7  ;;  %3189 = vmatprep.subr.bf16.mxu1 %v8075_v9  ;;  %v2073_v9 = vld [vmem:[%s12557_s11 + $0x468] sm:$0xff] }
 0x43c   :  { %4208 = vmatprep.subr.bf16.mxu0 %v10121_v10 }
 0x43e   :  { %3190 = vmatpush1.bf16.msra.mxu1 %v8074_v16  ;;  %v8123_v16 = vcombine.high %v2065_v6, %v2073_v9 }
 0x43f   :  { %4209 = vmatpush1.bf16.msra.mxu0 %v10131_v17  ;;  %3191 = vmatprep.subr.bf16.mxu1 %v8059_v18  ;;  %v10205_v18 = vcombine.high %v3420_v11, %v3424_v12 }
 0x440   :  { %4210 = vmatprep.subr.bf16.mxu0 %v10134_v19 }
 0x441   :  { %13189 = vst [vmem:[#allocation37_spill] sm:$0xff] %v10205_v18 }
 0x442   :  { %3192 = vmatpush1.bf16.msra.mxu1 %v8058_v26  ;;  %v8122_v26 = vcombine.low %v2065_v6, %v2073_v9  ;;  %v1987_v9 = vld [vmem:[%s12557_s11 + $0x1b8] sm:$0xff] }
 0x443   :  { %4211 = vmatpush1.bf16.msra.mxu0 %v10143_v27  ;;  %3193 = vmatprep.subr.bf16.mxu1 %v8043_v28  ;;  %v10214_v28 = vcombine.low %v3420_v11, %v3424_v12  ;;  %v1995_v11 = vld [vmem:[%s12557_s11 + $0x1f8] sm:$0xff] }
 0x444   :  { %4212 = vmatprep.subr.bf16.mxu0 %v10146_v29  ;;  %v3380_v12 = vld [vmem:[#allocation7 + $0x240] sm:$0xff]  ;;  %v8047_v21 = vcombine.high %v1987_v9, %v1995_v11  ;;  %v8046_v33 = vcombine.low %v1987_v9, %v1995_v11 }
 0x445   :  { %13190 = vst [vmem:[#allocation38_spill] sm:$0xff] %v10214_v28 }
 0x446   :  { %3194 = vmatpush1.bf16.msra.mxu1 %v8042_v35  ;;  %v3404_v35 = vld [vmem:[#allocation7 + $0x300] sm:$0xff] }
 0x447   :  { %4213 = vmatpush1.bf16.msra.mxu0 %v10155_v36  ;;  %3195 = vmatprep.subr.bf16.mxu1 %v8027_v37  ;;  %v3408_v37 = vld [vmem:[#allocation7 + $0x320] sm:$0xff] }
 0x448   :  { %4214 = vmatprep.subr.bf16.mxu0 %v10158_v38  ;;  %v10229_v43 = vcombine.high %v3404_v35, %v3408_v37  ;;  %v10241_v52 = vcombine.low %v3404_v35, %v3408_v37 }
 0x44a   :  { %3196 = vmatpush1.bf16.msra.mxu1 %v8026_v44  ;;  %13193 = vst [vmem:[#allocation41_spill] sm:$0xff] %v10229_v43  ;;  %v2019_v44 = vld [vmem:[%s12557_s11 + $0x2b8] sm:$0xff]  ;;  %13194 = vst [vmem:[#allocation42_spill] sm:$0xff] %v10241_v52 }
 0x44b   :  { %4215 = vmatpush1.bf16.msra.mxu0 %v10167_v45  ;;  %3197 = vmatprep.subr.bf16.mxu1 %v8011_v46  ;;  %v2027_v46 = vld [vmem:[%s12557_s11 + $0x2f8] sm:$0xff] }
 0x44c   :  { %4216 = vmatprep.subr.bf16.mxu0 %v10170_v47 }
 0x44e   :  { %3198 = vmatpush1.bf16.msra.mxu1 %v8010_v53  ;;  %v8079_v53 = vcombine.high %v2019_v44, %v2027_v46 }
 0x44f   :  { %4217 = vmatpush1.bf16.msra.mxu0 %v10179_v54  ;;  %3199 = vmatprep.subr.bf16.mxu1 %v7995_v56  ;;  %v10244_v56 = vcombine.high %v3396_v49, %v3400_v50 }
 0x450   :  { %4218 = vmatprep.subr.bf16.mxu0 %v10182_v57 }
 0x451   :  { %13195 = vst [vmem:[#allocation43_spill] sm:$0xff] %v10244_v56 }
 0x452   :  { %3200 = vmatpush1.bf16.msra.mxu1 %v7994_v34  ;;  %v8078_v34 = vcombine.low %v2019_v44, %v2027_v46  ;;  %v1963_v44 = vld [vmem:[%s12557_s11 + $0xf8] sm:$0xff]  ;;  %v3366_v46 = vld [vmem:[#allocation7 + $0x1d0] sm:$0xff] }
 0x453   :  { %4219 = vmatpush1.bf16.msra.mxu0 %v10188_v63  ;;  %8154 = vmatprep.subr.msk.bf16.mxu1 %vm224_vm1, %v8139_v0  ;;  %v10253_v0 = vcombine.low %v3396_v49, %v3400_v50  ;;  %v3370_v49 = vld [vmem:[#allocation7 + $0x1f0] sm:$0xff] }
 0x454   :  { %4220 = vmatprep.subr.bf16.mxu0 %v10191_v5  ;;  %v10301_v9 = vcombine.low %v3366_v46, %v3370_v49 }
 0x455   :  { %13196 = vst [vmem:[#allocation44_spill] sm:$0xff] %v10253_v0 }
 0x456   :  { %3214 = vmatpush2.bf16.msra.mxu1 %v2963_v13  ;;  %v3384_v13 = vld [vmem:[#allocation7 + $0x260] sm:$0xff]  ;;  %13204 = vst [vmem:[#allocation52_spill] sm:$0xff] %v10301_v9 }
 0x457   :  { %4221 = vmatpush2.bf16.msra.mxu0 %v10202_v14  ;;  %3215 = vmatprep.subr.bf16.mxu1 %v8123_v16  ;;  %v8062_v16 = vcombine.low %v2003_v58, %v2011_v59  ;;  %v10268_v22 = vcombine.high %v3380_v12, %v3384_v13  ;;  %v10277_v35 = vcombine.low %v3380_v12, %v3384_v13  ;;  %v1939_v59 = vld [vmem:[%s12557_s11 + $0x38] sm:$0xff] }
 0x458   :  { %4222 = vmatprep.subr.bf16.mxu0 %v10205_v18  ;;  %v10292_v58 = vcombine.high %v3366_v46, %v3370_v49  ;;  %v2083_v13 = vld [vmem:[%s12557_s11 + $0x4b8] sm:$0x77]  ;;  %v3346_v46 = vld [vmem:[#allocation7 + $0x130] sm:$0xff] }
 0x459   :  { %13199 = vst [vmem:[#allocation47_spill] sm:$0xff] %v10268_v22  ;;  %13200 = vst [vmem:[#allocation48_spill] sm:$0xff] %v10277_v35 }
 0x45a   :  { %3216 = vmatpush2.bf16.msra.mxu1 %v8122_v26  ;;  %v1979_v26 = vld [vmem:[%s12557_s11 + $0x178] sm:$0xff]  ;;  %13203 = vst [vmem:[#allocation51_spill] sm:$0xff] %v10292_v58 }
 0x45b   :  { %4223 = vmatpush2.bf16.msra.mxu0 %v10214_v28  ;;  %3267 = vmatprep.subr.bf16.mxu1 %v8111_v30  ;;  %v3372_v30 = vld [vmem:[#allocation7 + $0x200] sm:$0xff]  ;;  %v8031_v37 = vcombine.high %v1971_v24, %v1979_v26  ;;  %v8030_v50 = vcombine.low %v1971_v24, %v1979_v26 }
 0x45c   :  { %4224 = vmatprep.subr.bf16.mxu0 %v10217_v31 }
 0x45d   :  { %3218 = vmatmul.mubr.bf16.vlgmr.msra.gmra.mxu1 %v9858_v3 }
 0x45e   :  { %3268 = vmatpush1.bf16.msra.mxu1 %v8110_v39  ;;  %8159 = vmatprep.mubr.msk.bf16.mxu1 %vm2928_vm8, %v9856_v1  ;;  %v3388_v1 = vld [vmem:[#allocation7 + $0x280] sm:$0xff]  ;;  %v10280_v39 = vcombine.high %v3372_v30, %v3376_v32 }
 0x45f   :  { %4225 = vmatpush2.bf16.msra.mxu0 %v10226_v40  ;;  %3269 = vmatprep.subr.bf16.mxu1 %v8095_v41  ;;  %v10256_v6 = vcombine.high %v3388_v1, %v3392_v60  ;;  %v10265_v20 = vcombine.low %v3388_v1, %v3392_v60  ;;  %v1955_v41 = vld [vmem:[%s12557_s11 + $0xb8] sm:$0xff]  ;;  %v3358_v60 = vld [vmem:[#allocation7 + $0x190] sm:$0xff] }
 0x460   :  { %4226 = vmatprep.subr.bf16.mxu0 %v10229_v43  ;;  %13201 = vst [vmem:[#allocation49_spill] sm:$0xff] %v10280_v39  ;;  %v1947_v1 = vld [vmem:[%s12557_s11 + $0x78] sm:$0xff] }
 0x461   :  { %13197 = vst [vmem:[#allocation45_spill] sm:$0xff] %v10256_v6  ;;  %13198 = vst [vmem:[#allocation46_spill] sm:$0xff] %v10265_v20  ;;  %v7999_v11 = vcombine.high %v1939_v59, %v1947_v1  ;;  %v7998_v24 = vcombine.low %v1939_v59, %v1947_v1  ;;  %v3365_v1 = vld [vmem:[#allocation7 + $0x1c8] sm:$0xff] }
 0x462   :  { %3270 = vmatpush1.bf16.msra.mxu1 %v8094_v51  ;;  %v10289_v51 = vcombine.low %v3372_v30, %v3376_v32  ;;  %v8143_v30 = vcombine.high %v2083_v13, %v2083_v13  ;;  %v8142_v32 = vcombine.low %v2083_v13, %v2083_v13 }
 0x463   :  { %4227 = vmatpush2.bf16.msra.mxu0 %v10241_v52  ;;  %3271 = vmatprep.subr.bf16.mxu1 %v8079_v53  ;;  %v8015_v53 = vcombine.high %v1955_v41, %v1963_v44 }
 0x464   :  { %4228 = vmatprep.subr.bf16.mxu0 %v10244_v56  ;;  %13202 = vst [vmem:[#allocation50_spill] sm:$0xff] %v10289_v51  ;;  %v2975_v49 = vsel %vm224_vm1, %v8142_v32, 0  ;;  %v3326_v32 = vld [vmem:[#allocation7 + $0x90] sm:$0xff] }
 0x466   :  { %3272 = vmatpush1.bf16.msra.mxu1 %v8078_v34  ;;  %v3362_v34 = vld [vmem:[#allocation7 + $0x1b0] sm:$0xff] }
 0x467   :  { %4229 = vmatpush2.bf16.msra.mxu0 %v10253_v0  ;;  %3273 = vmatprep.subr.bf16.mxu1 %v8063_v4  ;;  %v8014_v4 = vcombine.low %v1955_v41, %v1963_v44  ;;  %v10304_v12 = vcombine.high %v3358_v60, %v3362_v34  ;;  %v10311_v26 = vcombine.low %v3358_v60, %v3362_v34  ;;  %v2075_v41 = vld [vmem:[%s12557_s11 + $0x478] sm:$0xff]  ;;  %v3342_v44 = vld [vmem:[#allocation7 + $0x110] sm:$0xff] }
 0x468   :  { %4230 = vmatprep.subr.bf16.mxu0 %v10256_v6  ;;  %v10329_v59 = vcombine.high %v3342_v44, %v3346_v46  ;;  %v3369_v60 = vld [vmem:[#allocation7 + $0x1e8] sm:$0xff]  ;;  %v3334_v34 = vld [vmem:[#allocation7 + $0xd0] sm:$0xff]  ;;  %v10332_v13 = vcombine.low %v3342_v44, %v3346_v46 }
 0x469   :  { %13205 = vst [vmem:[#allocation53_spill] sm:$0xff] %v10304_v12  ;;  %13206 = vst [vmem:[#allocation54_spill] sm:$0xff] %v10311_v26  ;;  %v10339_v15 = vcombine.low %v3365_v1, %v3369_v60  ;;  %v3349_v46 = vld [vmem:[#allocation7 + $0x148] sm:$0xff] }
 0x46a   :  { %3274 = vmatpush1.bf16.msra.mxu1 %v8062_v16  ;;  %v3350_v16 = vld [vmem:[#allocation7 + $0x150] sm:$0xff]  ;;  %13209 = vst [vmem:[#allocation57_spill] sm:$0xff] %v10329_v59  ;;  %13210 = vst [vmem:[#allocation58_spill] sm:$0xff] %v10332_v13 }
 0x46b   :  { %4231 = vmatpush2.bf16.msra.mxu0 %v10265_v20  ;;  %3275 = vmatprep.subr.bf16.mxu1 %v8047_v21  ;;  %v3354_v21 = vld [vmem:[#allocation7 + $0x170] sm:$0xff]  ;;  %13213 = vst [vmem:[#allocation61_spill] sm:$0xff] %v10339_v15 }
 0x46c   :  { %4232 = vmatprep.subr.bf16.mxu0 %v10268_v22 }
 0x46e   :  { %3276 = vmatpush1.bf16.msra.mxu1 %v8046_v33  ;;  %v10314_v33 = vcombine.high %v3350_v16, %v3354_v21 }
 0x46f   :  { %4233 = vmatpush2.bf16.msra.mxu0 %v10277_v35  ;;  %3277 = vmatprep.subr.bf16.mxu1 %v8031_v37  ;;  %v2067_v37 = vld [vmem:[%s12557_s11 + $0x438] sm:$0xff] }
 0x470   :  { %4234 = vmatprep.subr.bf16.mxu0 %v10280_v39  ;;  %13207 = vst [vmem:[#allocation55_spill] sm:$0xff] %v10314_v33 }
 0x472   :  { %3278 = vmatpush1.bf16.msra.mxu1 %v8030_v50  ;;  %v10326_v50 = vcombine.low %v3350_v16, %v3354_v21  ;;  %v3357_v21 = vld [vmem:[#allocation7 + $0x188] sm:$0xff] }
 0x473   :  { %4235 = vmatpush2.bf16.msra.mxu0 %v10289_v51  ;;  %3279 = vmatprep.subr.bf16.mxu1 %v8015_v53  ;;  %v8127_v53 = vcombine.high %v2067_v37, %v2075_v41 }
 0x474   :  { %4286 = vmatprep.subr.bf16.mxu0 %v10292_v58  ;;  %13208 = vst [vmem:[#allocation56_spill] sm:$0xff] %v10326_v50 }
 0x476   :  { %4237 = vmatmul.mubr.bf16.vlgmr.msra.gmra.mxu0 %v12578_v2  ;;  %3280 = vmatpush1.bf16.msra.mxu1 %v8014_v4  ;;  %v3338_v4 = vld [vmem:[#allocation7 + $0xf0] sm:$0xff] }
 0x477   :  { %4287 = vmatpush1.bf16.msra.mxu0 %v10301_v9  ;;  %3281 = vmatprep.subr.bf16.mxu1 %v7999_v11  ;;  %v8126_v11 = vcombine.low %v2067_v37, %v2075_v41  ;;  %v10337_v16 = vcombine.high %v3334_v34, %v3338_v4  ;;  %v10343_v37 = vcombine.low %v3334_v34, %v3338_v4  ;;  %v3414_v9 = vld [vmem:[#allocation7 + $0x350] sm:$0xff] }
 0x478   :  { %4288 = vmatprep.subr.bf16.mxu0 %v10304_v12  ;;  %4318 = vmatprep.mubr.bf16.mxu0 %v12578_v2  ;;  %v3330_v2 = vld [vmem:[#allocation7 + $0xb0] sm:$0xff] }
 0x479   :  { %13212 = vst [vmem:[#allocation60_spill] sm:$0xff] %v10337_v16  ;;  %13214 = vst [vmem:[#allocation62_spill] sm:$0xff] %v10343_v37  ;;  %v10348_v44 = vcombine.high %v3326_v32, %v3330_v2  ;;  %v10357_v34 = vcombine.low %v3326_v32, %v3330_v2  ;;  %v3426_v12 = vld [vmem:[#allocation7 + $0x3b0] sm:$0xff] }
 0x47a   :  { %3282 = vmatpush1.bf16.msra.mxu1 %v7998_v24  ;;  %v10334_v24 = vcombine.high %v3365_v1, %v3369_v60  ;;  %v13218_v60 = vmov 0  }
 0x47b   :  { %4289 = vmatpush1.bf16.msra.mxu0 %v10311_v26  ;;  %8158 = vmatprep.subr.msk.bf16.mxu1 %vm224_vm1, %v8143_v30  ;;  %v3361_v30 = vld [vmem:[#allocation7 + $0x1a8] sm:$0xff]  ;;  %13216 = vst [vmem:[#allocation64_spill] sm:$0xff] %v10348_v44  ;;  %13219 = vst [vmem:[#allocation66_spill] sm:$0xff] %v10357_v34  ;;  %v3422_v26 = vld [vmem:[#allocation7 + $0x390] sm:$0xff] }
 0x47c   :  { %4290 = vmatprep.subr.bf16.mxu0 %v10314_v33  ;;  %13211 = vst [vmem:[#allocation59_spill] sm:$0xff] %v10334_v24  ;;  %v10345_v41 = vcombine.high %v3357_v21, %v3361_v30  ;;  %v10352_v1 = vcombine.low %v3357_v21, %v3361_v30  ;;  %v3434_v33 = vld [vmem:[#allocation7 + $0x3f0] sm:$0xff] }
 0x47e   :  { %3296 = vmatpush2.bf16.msra.mxu1 %v2975_v49  ;;  %13215 = vst [vmem:[#allocation63_spill] sm:$0xff] %v10345_v41  ;;  %v3353_v49 = vld [vmem:[#allocation7 + $0x168] sm:$0xff]  ;;  %13217 = vst [vmem:[#allocation65_spill] sm:$0xff] %v10352_v1 }
 0x47f   :  { %4291 = vmatpush1.bf16.msra.mxu0 %v10326_v50  ;;  %3297 = vmatprep.subr.bf16.mxu1 %v8127_v53  ;;  %v3318_v53 = vld [vmem:[#allocation7 + $0x50] sm:$0xff]  ;;  %v10359_v4 = vcombine.high %v3349_v46, %v3353_v49  ;;  %v10365_v21 = vcombine.low %v3349_v46, %v3353_v49 }
 0x480   :  { %4292 = vmatprep.subr.bf16.mxu0 %v10329_v59  ;;  %v3314_v59 = vld [vmem:[#allocation7 + $0x30] sm:$0xff] }
 0x481   :  { %13220 = vst [vmem:[#allocation67_spill] sm:$0xff] %v10359_v4  ;;  %13222 = vst [vmem:[#allocation69_spill] sm:$0xff] %v10365_v21  ;;  %v3430_v50 = vld [vmem:[#allocation7 + $0x3d0] sm:$0xff] }
 0x482   :  { %3298 = vmatpush2.bf16.msra.mxu1 %v8126_v11  ;;  %v3322_v11 = vld [vmem:[#allocation7 + $0x70] sm:$0xff] }
 0x483   :  { %4293 = vmatpush1.bf16.msra.mxu0 %v10332_v13  ;;  %4245 = vmatprep.subr.bf16.mxu1 %v10334_v24  ;;  %v10362_v42 = vcombine.high %v3318_v53, %v3322_v11  ;;  %v3310_v13 = vld [vmem:[#allocation7 + $0x10] sm:$0xff]  ;;  %v10369_v2 = vcombine.low %v3318_v53, %v3322_v11  ;;  %v10386_v11 = vcombine.high %v3430_v50, %v3434_v33 }
 0x484   :  { %4294 = vmatprep.subr.bf16.mxu0 %v10337_v16  ;;  %v3345_v16 = vld [vmem:[#allocation7 + $0x128] sm:$0xff]  ;;  %v10374_v32 = vcombine.high %v3310_v13, %v3314_v59  ;;  %v10381_v49 = vcombine.low %v3310_v13, %v3314_v59  ;;  %v10393_v59 = vcombine.low %v3430_v50, %v3434_v33  ;;  %v10405_v33 = vcombine.low %v3422_v26, %v3426_v12 }
 0x485   :  { %3300 = vmatmul.mubr.bf16.vlgmr.msra.gmra.mxu1 %v9858_v3  ;;  %13221 = vst [vmem:[#allocation68_spill] sm:$0xff] %v10362_v42  ;;  %v3341_v3 = vld [vmem:[#allocation7 + $0x108] sm:$0xff]  ;;  %13223 = vst [vmem:[#allocation70_spill] sm:$0xff] %v10369_v2 }
 0x486   :  { %4246 = vmatpush1.bf16.msra.mxu1 %v10339_v15  ;;  %4277 = vmatprep.mubr.bf16.mxu1 %v13218_v60  ;;  %v10371_v30 = vcombine.high %v3341_v3, %v3345_v16  ;;  %13225 = vst [vmem:[#allocation72_spill] sm:$0xff] %v10374_v32  ;;  %v10377_v46 = vcombine.low %v3341_v3, %v3345_v16  ;;  %13227 = vst [vmem:[#allocation74_spill] sm:$0xff] %v10381_v49 }
 0x487   :  { %4295 = vmatpush1.bf16.msra.mxu0 %v10343_v37  ;;  %4247 = vmatprep.subr.bf16.mxu1 %v10345_v41  ;;  %v3337_v37 = vld [vmem:[#allocation7 + $0xe8] sm:$0xff]  ;;  %13229 = vst [vmem:[#allocation76_spill] sm:$0xff] %v10386_v11  ;;  %13231 = vst [vmem:[#allocation78_spill] sm:$0xff] %v10393_v59  ;;  %v10398_v3 = vcombine.high %v3422_v26, %v3426_v12  ;;  %v10417_v12 = vcombine.low %v3414_v9, %v3418_v48  ;;  %v3492_v41 = vld [vmem:[#allocation8 + $0x1c0] sm:$0xff] }
 0x488   :  { %4296 = vmatprep.subr.bf16.mxu0 %v10348_v44  ;;  %13224 = vst [vmem:[#allocation71_spill] sm:$0xff] %v10371_v30  ;;  %v3333_v44 = vld [vmem:[#allocation7 + $0xc8] sm:$0xff]  ;;  %13226 = vst [vmem:[#allocation73_spill] sm:$0xff] %v10377_v46 }
 0x489   :  { %v10383_v53 = vcombine.high %v3333_v44, %v3337_v37  ;;  %v10389_v16 = vcombine.low %v3333_v44, %v3337_v37  ;;  %13233 = vst [vmem:[#allocation80_spill] sm:$0xff] %v10398_v3  ;;  %13235 = vst [vmem:[#allocation82_spill] sm:$0xff] %v10405_v33  ;;  %v10410_v44 = vcombine.high %v3414_v9, %v3418_v48 }
 0x48a   :  { %4248 = vmatpush1.bf16.msra.mxu1 %v10352_v1  ;;  %13239 = vst [vmem:[#allocation86_spill] sm:$0xff] %v10417_v12  ;;  %v3401_v1 = vld [vmem:[#allocation7 + $0x2e8] sm:$0xff] }
 0x48b   :  { %4297 = vmatpush1.bf16.msra.mxu0 %v10357_v34  ;;  %4249 = vmatprep.subr.bf16.mxu1 %v10359_v4  ;;  %13228 = vst [vmem:[#allocation75_spill] sm:$0xff] %v10383_v53  ;;  %v3329_v34 = vld [vmem:[#allocation7 + $0xa8] sm:$0xff]  ;;  %13230 = vst [vmem:[#allocation77_spill] sm:$0xff] %v10389_v16 }
 0x48c   :  { %4298 = vmatprep.subr.bf16.mxu0 %v10362_v42  ;;  %v3325_v42 = vld [vmem:[#allocation7 + $0x88] sm:$0xff]  ;;  %13237 = vst [vmem:[#allocation84_spill] sm:$0xff] %v10410_v44 }
 0x48d   :  { %v10395_v13 = vcombine.high %v3325_v42, %v3329_v34  ;;  %v10401_v37 = vcombine.low %v3325_v42, %v3329_v34 }
 0x48e   :  { %4250 = vmatpush1.bf16.msra.mxu1 %v10365_v21  ;;  %v3374_v21 = vld [vmem:[#allocation7 + $0x210] sm:$0xff] }
 0x48f   :  { %4299 = vmatpush1.bf16.msra.mxu0 %v10369_v2  ;;  %4251 = vmatprep.subr.bf16.mxu1 %v10371_v30  ;;  %13232 = vst [vmem:[#allocation79_spill] sm:$0xff] %v10395_v13  ;;  %v3321_v2 = vld [vmem:[#allocation7 + $0x68] sm:$0xff]  ;;  %13234 = vst [vmem:[#allocation81_spill] sm:$0xff] %v10401_v37 }
 0x490   :  { %4300 = vmatprep.subr.bf16.mxu0 %v10374_v32  ;;  %v3317_v32 = vld [vmem:[#allocation7 + $0x48] sm:$0xff] }
 0x491   :  { %v10407_v50 = vcombine.high %v3317_v32, %v3321_v2  ;;  %v10413_v42 = vcombine.low %v3317_v32, %v3321_v2  ;;  %v3405_v30 = vld [vmem:[#allocation7 + $0x308] sm:$0xff] }
 0x492   :  { %4252 = vmatpush1.bf16.msra.mxu1 %v10377_v46  ;;  %v3410_v46 = vld [vmem:[#allocation7 + $0x330] sm:$0xff] }
 0x493   :  { %4301 = vmatpush1.bf16.msra.mxu0 %v10381_v49  ;;  %4253 = vmatprep.subr.bf16.mxu1 %v10383_v53  ;;  %13236 = vst [vmem:[#allocation83_spill] sm:$0xff] %v10407_v50  ;;  %v3313_v49 = vld [vmem:[#allocation7 + $0x28] sm:$0xff]  ;;  %v3406_v53 = vld [vmem:[#allocation7 + $0x310] sm:$0xff]  ;;  %13238 = vst [vmem:[#allocation85_spill] sm:$0xff] %v10413_v42 }
 0x494   :  { %4302 = vmatprep.subr.bf16.mxu0 %v10386_v11  ;;  %v3309_v11 = vld [vmem:[#allocation7 + $0x8] sm:$0xff]  ;;  %v10422_v34 = vcombine.high %v3406_v53, %v3410_v46  ;;  %v10429_v48 = vcombine.low %v3406_v53, %v3410_v46 }
 0x495   :  { %v10419_v26 = vcombine.high %v3309_v11, %v3313_v49  ;;  %v10425_v2 = vcombine.low %v3309_v11, %v3313_v49 }
 0x496   :  { %4254 = vmatpush1.bf16.msra.mxu1 %v10389_v16  ;;  %13241 = vst [vmem:[#allocation88_spill] sm:$0xff] %v10422_v34  ;;  %v3402_v16 = vld [vmem:[#allocation7 + $0x2f0] sm:$0xff]  ;;  %13243 = vst [vmem:[#allocation90_spill] sm:$0xff] %v10429_v48 }
 0x497   :  { %4303 = vmatpush2.bf16.msra.mxu0 %v10393_v59  ;;  %4255 = vmatprep.subr.bf16.mxu1 %v10395_v13  ;;  %13240 = vst [vmem:[#allocation87_spill] sm:$0xff] %v10419_v26  ;;  %v3433_v59 = vld [vmem:[#allocation7 + $0x3e8] sm:$0xff]  ;;  %v3398_v13 = vld [vmem:[#allocation7 + $0x2d0] sm:$0xff]  ;;  %13242 = vst [vmem:[#allocation89_spill] sm:$0xff] %v10425_v2 }
 0x498   :  { %4304 = vmatprep.subr.bf16.mxu0 %v10398_v3  ;;  %v3429_v3 = vld [vmem:[#allocation7 + $0x3c8] sm:$0xff]  ;;  %v10434_v32 = vcombine.high %v3398_v13, %v3402_v16  ;;  %v10441_v46 = vcombine.low %v3398_v13, %v3402_v16 }
 0x499   :  { %v10431_v9 = vcombine.high %v3429_v3, %v3433_v59  ;;  %v10437_v49 = vcombine.low %v3429_v3, %v3433_v59  ;;  %v3382_v59 = vld [vmem:[#allocation7 + $0x250] sm:$0xff] }
 0x49a   :  { %4256 = vmatpush1.bf16.msra.mxu1 %v10401_v37  ;;  %13245 = vst [vmem:[#allocation92_spill] sm:$0xff] %v10434_v32  ;;  %v3394_v37 = vld [vmem:[#allocation7 + $0x2b0] sm:$0xff]  ;;  %13247 = vst [vmem:[#allocation94_spill] sm:$0xff] %v10441_v46 }
 0x49b   :  { %4305 = vmatpush2.bf16.msra.mxu0 %v10405_v33  ;;  %4257 = vmatprep.subr.bf16.mxu1 %v10407_v50  ;;  %13244 = vst [vmem:[#allocation91_spill] sm:$0xff] %v10431_v9  ;;  %v3425_v33 = vld [vmem:[#allocation7 + $0x3a8] sm:$0xff]  ;;  %v3390_v50 = vld [vmem:[#allocation7 + $0x290] sm:$0xff]  ;;  %13246 = vst [vmem:[#allocation93_spill] sm:$0xff] %v10437_v49 }
 0x49c   :  { %4306 = vmatprep.subr.bf16.mxu0 %v10410_v44  ;;  %v3421_v44 = vld [vmem:[#allocation7 + $0x388] sm:$0xff]  ;;  %v10446_v11 = vcombine.high %v3390_v50, %v3394_v37  ;;  %v3386_v3 = vld [vmem:[#allocation7 + $0x270] sm:$0xff] }
 0x49d   :  { %v10443_v53 = vcombine.high %v3421_v44, %v3425_v33 }
 0x49e   :  { %4258 = vmatpush1.bf16.msra.mxu1 %v10413_v42  ;;  %13249 = vst [vmem:[#allocation96_spill] sm:$0xff] %v10446_v11 }
 0x49f   :  { %4307 = vmatpush2.bf16.msra.mxu0 %v10417_v12  ;;  %4259 = vmatprep.subr.bf16.mxu1 %v10419_v26  ;;  %13248 = vst [vmem:[#allocation95_spill] sm:$0xff] %v10443_v53  ;;  %v3417_v12 = vld [vmem:[#allocation7 + $0x368] sm:$0xff] }
 0x4a0   :  { %4308 = vmatprep.subr.bf16.mxu0 %v10422_v34  ;;  %v3413_v34 = vld [vmem:[#allocation7 + $0x348] sm:$0xff] }
 0x4a1   :  { %v10469_v4 = vcombine.low %v3413_v34, %v3417_v12 }
 0x4a2   :  { %4260 = vmatpush1.bf16.msra.mxu1 %v10425_v2  ;;  %v10466_v2 = vcombine.high %v3382_v59, %v3386_v3 }
 0x4a3   :  { %4309 = vmatpush2.bf16.msra.mxu0 %v10429_v48  ;;  %4261 = vmatprep.subr.bf16.mxu1 %v10431_v9  ;;  %v10453_v48 = vcombine.low %v3421_v44, %v3425_v33  ;;  %v10463_v9 = vcombine.high %v3413_v34, %v3417_v12  ;;  %13254 = vst [vmem:[#allocation101_spill] sm:$0xff] %v10469_v4 }
 0x4a4   :  { %4310 = vmatprep.subr.bf16.mxu0 %v10434_v32  ;;  %v10461_v32 = vcombine.low %v3390_v50, %v3394_v37  ;;  %13253 = vst [vmem:[#allocation100_spill] sm:$0xff] %v10466_v2 }
 0x4a5   :  { %v10448_v26 = vpop.f32.mrf.mxu1  ;;  %v10450_v42 = vpop.f32.mrf.mxu0  ;;  %13250 = vst [vmem:[#allocation97_spill] sm:$0xff] %v10453_v48  ;;  %13252 = vst [vmem:[#allocation99_spill] sm:$0xff] %v10463_v9 }
 0x4a6   :  { %4262 = vmatpush2.bf16.msra.mxu1 %v10437_v49  ;;  %13251 = vst [vmem:[#allocation98_spill] sm:$0xff] %v10461_v32  ;;  %v3409_v49 = vld [vmem:[#allocation7 + $0x328] sm:$0xff] }
 0x4a7   :  { %4311 = vmatpush2.bf16.msra.mxu0 %v10441_v46  ;;  %v10456_v16 = vpop.f32.mrf.mxu1  ;;  %v10458_v13 = vpop.f32.mrf.mxu0  ;;  %4263 = vmatprep.subr.bf16.mxu1 %v10443_v53  ;;  %v3378_v46 = vld [vmem:[#allocation7 + $0x230] sm:$0xff]  ;;  %v10473_v53 = vcombine.low %v3382_v59, %v3386_v3  ;;  %v10481_v12 = vcombine.low %v3405_v30, %v3409_v49 }
 0x4a8   :  { %4312 = vmatprep.subr.bf16.mxu0 %v10446_v11  ;;  %v10475_v11 = vcombine.high %v3405_v30, %v3409_v49  ;;  %v10485_v34 = vcombine.low %v3374_v21, %v3378_v46 }
 0x4a9   :  { %v3018_v33 = vpop.f32.mrf.mxu1  ;;  %v3100_v44 = vpop.f32.mrf.mxu0  ;;  %13255 = vst [vmem:[#allocation102_spill] sm:$0xff] %v10473_v53  ;;  %13258 = vst [vmem:[#allocation105_spill] sm:$0xff] %v10481_v12 }
 0x4aa   :  { %4264 = vmatpush2.bf16.msra.mxu1 %v10453_v48  ;;  %13256 = vst [vmem:[#allocation103_spill] sm:$0xff] %v10475_v11  ;;  %v10478_v33 = vcombine.high %v3374_v21, %v3378_v46  ;;  %v3397_v44 = vld [vmem:[#allocation7 + $0x2c8] sm:$0xff]  ;;  %v3496_v48 = vld [vmem:[#allocation8 + $0x1e0] sm:$0xff]  ;;  %13259 = vst [vmem:[#allocation106_spill] sm:$0xff] %v10485_v34 }
 0x4ab   :  { %4313 = vmatpush2.bf16.msra.mxu0 %v10461_v32  ;;  %v3019_v37 = vpop.f32.mrf.mxu1  ;;  %v3101_v50 = vpop.f32.mrf.mxu0  ;;  %4265 = vmatprep.subr.bf16.mxu1 %v10463_v9  ;;  %v10487_v59 = vcombine.high %v3397_v44, %v3401_v1  ;;  %v10490_v3 = vcombine.high %v3492_v41, %v3496_v48  ;;  %v3488_v32 = vld [vmem:[#allocation8 + $0x1a0] sm:$0xff]  ;;  %v10493_v30 = vcombine.low %v3397_v44, %v3401_v1 }
 0x4ac   :  { %4314 = vmatprep.subr.bf16.mxu0 %v10466_v2  ;;  %13257 = vst [vmem:[#allocation104_spill] sm:$0xff] %v10478_v33  ;;  %v3389_v37 = vld [vmem:[#allocation7 + $0x288] sm:$0xff]  ;;  %v3484_v2 = vld [vmem:[#allocation8 + $0x180] sm:$0xff]  ;;  %v10497_v21 = vcombine.low %v3492_v41, %v3496_v48 }
 0x4ad   :  { %13260 = vst [vmem:[#allocation107_spill] sm:$0xff] %v10487_v59  ;;  %13261 = vst [vmem:[#allocation108_spill] sm:$0xff] %v10490_v3  ;;  %v3393_v50 = vld [vmem:[#allocation7 + $0x2a8] sm:$0xff]  ;;  %v10502_v46 = vcombine.high %v3484_v2, %v3488_v32  ;;  %v10510_v41 = vcombine.low %v3484_v2, %v3488_v32  ;;  %v3548_v9 = vld [vmem:[#allocation8 + $0x380] sm:$0xff] }
 0x4ae   :  { %4266 = vmatpush2.bf16.msra.mxu1 %v10469_v4  ;;  %13262 = vst [vmem:[#allocation109_spill] sm:$0xff] %v10493_v30  ;;  %13263 = vst [vmem:[#allocation110_spill] sm:$0xff] %v10497_v21  ;;  %v10499_v49 = vcombine.high %v3389_v37, %v3393_v50  ;;  %v3480_v4 = vld [vmem:[#allocation8 + $0x160] sm:$0xff]  ;;  %v10506_v1 = vcombine.low %v3389_v37, %v3393_v50 }
 0x4af   :  { %4315 = vmatpush2.bf16.msra.mxu0 %v10473_v53  ;;  %4267 = vmatprep.subr.bf16.mxu1 %v10475_v11  ;;  %13265 = vst [vmem:[#allocation112_spill] sm:$0xff] %v10502_v46  ;;  %v3385_v53 = vld [vmem:[#allocation7 + $0x268] sm:$0xff]  ;;  %v3476_v11 = vld [vmem:[#allocation8 + $0x140] sm:$0xff]  ;;  %13267 = vst [vmem:[#allocation114_spill] sm:$0xff] %v10510_v41 }
 0x4b0   :  { %4316 = vmatprep.subr.bf16.mxu0 %v10478_v33  ;;  %13264 = vst [vmem:[#allocation111_spill] sm:$0xff] %v10499_v49  ;;  %v3381_v33 = vld [vmem:[#allocation7 + $0x248] sm:$0xff]  ;;  %13266 = vst [vmem:[#allocation113_spill] sm:$0xff] %v10506_v1  ;;  %v10515_v44 = vcombine.high %v3476_v11, %v3480_v4  ;;  %v10523_v2 = vcombine.low %v3476_v11, %v3480_v4 }
 0x4b1   :  { %v10512_v48 = vcombine.high %v3381_v33, %v3385_v53  ;;  %v10519_v37 = vcombine.low %v3381_v33, %v3385_v53 }
 0x4b2   :  { %4268 = vmatpush2.bf16.msra.mxu1 %v10481_v12  ;;  %13269 = vst [vmem:[#allocation116_spill] sm:$0xff] %v10515_v44  ;;  %13271 = vst [vmem:[#allocation118_spill] sm:$0xff] %v10523_v2  ;;  %v3464_v12 = vld [vmem:[#allocation8 + $0xe0] sm:$0xff] }
 0x4b3   :  { %4317 = vmatpush2.bf16.msra.mxu0 %v10485_v34  ;;  %4269 = vmatprep.subr.bf16.mxu1 %v10487_v59  ;;  %13268 = vst [vmem:[#allocation115_spill] sm:$0xff] %v10512_v48  ;;  %v3377_v34 = vld [vmem:[#allocation7 + $0x228] sm:$0xff]  ;;  %v3468_v59 = vld [vmem:[#allocation8 + $0x100] sm:$0xff]  ;;  %13270 = vst [vmem:[#allocation117_spill] sm:$0xff] %v10519_v37 }
 0x4b4   :  { %5016 = vmatprep.subr.bf16.mxu0 %v10490_v3  ;;  %v3373_v3 = vld [vmem:[#allocation7 + $0x208] sm:$0xff] }
 0x4b5   :  { %v10525_v32 = vcombine.high %v3373_v3, %v3377_v34  ;;  %v10531_v53 = vcombine.low %v3373_v3, %v3377_v34 }
 0x4b6   :  { %4319 = vmatmul.mubr.bf16.vlgmr.msra.gmra.mxu0 %v13218_v60  ;;  %4270 = vmatpush2.bf16.msra.mxu1 %v10493_v30  ;;  %v3472_v30 = vld [vmem:[#allocation8 + $0x120] sm:$0xff] }
 0x4b7   :  { %5017 = vmatpush1.bf16.msra.mxu0 %v10497_v21  ;;  %4271 = vmatprep.subr.bf16.mxu1 %v10499_v49  ;;  %13272 = vst [vmem:[#allocation119_spill] sm:$0xff] %v10525_v32  ;;  %v10528_v50 = vcombine.high %v3468_v59, %v3472_v30  ;;  %v3371_v21 = vld [vmem:[#allocation7 + $0x1f8] sm:$0xff]  ;;  %v3460_v49 = vld [vmem:[#allocation8 + $0xc0] sm:$0xff]  ;;  %13274 = vst [vmem:[#allocation121_spill] sm:$0xff] %v10531_v53  ;;  %v10535_v4 = vcombine.low %v3468_v59, %v3472_v30 }
 0x4b8   :  { %5018 = vmatprep.subr.bf16.mxu0 %v10502_v46  ;;  %5048 = vmatprep.mubr.bf16.mxu0 %v13218_v60  ;;  %v3367_v46 = vld [vmem:[#allocation7 + $0x1d8] sm:$0xff]  ;;  %v10540_v33 = vcombine.high %v3460_v49, %v3464_v12  ;;  %v10547_v59 = vcombine.low %v3460_v49, %v3464_v12 }
 0x4b9   :  { %13273 = vst [vmem:[#allocation120_spill] sm:$0xff] %v10528_v50  ;;  %13275 = vst [vmem:[#allocation122_spill] sm:$0xff] %v10535_v4  ;;  %v10537_v11 = vcombine.high %v3367_v46, %v3371_v21  ;;  %v10543_v34 = vcombine.low %v3367_v46, %v3371_v21 }
 0x4ba   :  { %4272 = vmatpush2.bf16.msra.mxu1 %v10506_v1  ;;  %13277 = vst [vmem:[#allocation124_spill] sm:$0xff] %v10540_v33  ;;  %v3456_v1 = vld [vmem:[#allocation8 + $0xa0] sm:$0xff]  ;;  %13279 = vst [vmem:[#allocation126_spill] sm:$0xff] %v10547_v59 }
 0x4bb   :  { %5019 = vmatpush1.bf16.msra.mxu0 %v10510_v41  ;;  %4273 = vmatprep.subr.bf16.mxu1 %v10512_v48  ;;  %13276 = vst [vmem:[#allocation123_spill] sm:$0xff] %v10537_v11  ;;  %v3363_v41 = vld [vmem:[#allocation7 + $0x1b8] sm:$0xff]  ;;  %v3452_v48 = vld [vmem:[#allocation8 + $0x80] sm:$0xff]  ;;  %13278 = vst [vmem:[#allocation125_spill] sm:$0xff] %v10543_v34 }
 0x4bc   :  { %5020 = vmatprep.subr.bf16.mxu0 %v10515_v44  ;;  %v3359_v44 = vld [vmem:[#allocation7 + $0x198] sm:$0xff]  ;;  %v10552_v30 = vcombine.high %v3452_v48, %v3456_v1  ;;  %v10561_v12 = vcombine.low %v3452_v48, %v3456_v1 }
 0x4bd   :  { %v10549_v3 = vcombine.high %v3359_v44, %v3363_v41  ;;  %v10556_v21 = vcombine.low %v3359_v44, %v3363_v41 }
 0x4be   :  { %4274 = vmatpush2.bf16.msra.mxu1 %v10519_v37  ;;  %13281 = vst [vmem:[#allocation128_spill] sm:$0xff] %v10552_v30  ;;  %13283 = vst [vmem:[#allocation130_spill] sm:$0xff] %v10561_v12 }
 0x4bf   :  { %5021 = vmatpush1.bf16.msra.mxu0 %v10523_v2  ;;  %4275 = vmatprep.subr.bf16.mxu1 %v10525_v32  ;;  %13280 = vst [vmem:[#allocation127_spill] sm:$0xff] %v10549_v3  ;;  %v3355_v2 = vld [vmem:[#allocation7 + $0x178] sm:$0xff]  ;;  %v3444_v32 = vld [vmem:[#allocation8 + $0x40] sm:$0xff]  ;;  %13282 = vst [vmem:[#allocation129_spill] sm:$0xff] %v10556_v21 }
 0x4c0   :  { %5022 = vmatprep.subr.bf16.mxu0 %v10528_v50  ;;  %v3351_v50 = vld [vmem:[#allocation7 + $0x158] sm:$0xff] }
 0x4c1   :  { %v10563_v49 = vcombine.high %v3351_v50, %v3355_v2  ;;  %v10569_v41 = vcombine.low %v3351_v50, %v3355_v2  ;;  %v3556_v2 = vld [vmem:[#allocation8 + $0x3c0] sm:$0xff] }
 0x4c2   :  { %4276 = vmatpush2.bf16.msra.mxu1 %v10531_v53  ;;  %v3448_v53 = vld [vmem:[#allocation8 + $0x60] sm:$0xff] }
 0x4c3   :  { %5023 = vmatpush1.bf16.msra.mxu0 %v10535_v4  ;;  %4327 = vmatprep.subr.bf16.mxu1 %v10537_v11  ;;  %13284 = vst [vmem:[#allocation131_spill] sm:$0xff] %v10563_v49  ;;  %v10566_v46 = vcombine.high %v3444_v32, %v3448_v53  ;;  %v3347_v4 = vld [vmem:[#allocation7 + $0x138] sm:$0xff]  ;;  %v3436_v11 = vld [vmem:[#allocation8] sm:$0xff]  ;;  %13286 = vst [vmem:[#allocation133_spill] sm:$0xff] %v10569_v41  ;;  %v10573_v1 = vcombine.low %v3444_v32, %v3448_v53 }
 0x4c4   :  { %5024 = vmatprep.subr.bf16.mxu0 %v10540_v33  ;;  %v3343_v33 = vld [vmem:[#allocation7 + $0x118] sm:$0xff]  ;;  %v3560_v50 = vld [vmem:[#allocation8 + $0x3e0] sm:$0xff] }
 0x4c5   :  { %4278 = vmatmul.mubr.bf16.vlgmr.msra.gmra.mxu1 %v13218_v60  ;;  %13285 = vst [vmem:[#allocation132_spill] sm:$0xff] %v10566_v46  ;;  %13287 = vst [vmem:[#allocation134_spill] sm:$0xff] %v10573_v1  ;;  %v10575_v48 = vcombine.high %v3343_v33, %v3347_v4 }
 0x4c6   :  { %4328 = vmatpush1.bf16.msra.mxu1 %v10543_v34  ;;  %4359 = vmatprep.mubr.bf16.mxu1 %v13218_v60  ;;  %v3440_v34 = vld [vmem:[#allocation8 + $0x20] sm:$0xff] }
 0x4c7   :  { %5025 = vmatpush1.bf16.msra.mxu0 %v10547_v59  ;;  %4329 = vmatprep.subr.bf16.mxu1 %v10549_v3  ;;  %13288 = vst [vmem:[#allocation135_spill] sm:$0xff] %v10575_v48  ;;  %v10578_v44 = vcombine.high %v3436_v11, %v3440_v34  ;;  %v3339_v59 = vld [vmem:[#allocation7 + $0xf8] sm:$0xff] }
 0x4c8   :  { %5026 = vmatprep.subr.bf16.mxu0 %v10552_v30  ;;  %v3335_v30 = vld [vmem:[#allocation7 + $0xd8] sm:$0xff] }
 0x4c9   :  { %13289 = vst [vmem:[#allocation136_spill] sm:$0xff] %v10578_v44 }
 0x4ca   :  { %4330 = vmatpush1.bf16.msra.mxu1 %v10556_v21  ;;  %v3327_v21 = vld [vmem:[#allocation7 + $0x98] sm:$0xff] }
 0x4cb   :  { %5027 = vmatpush1.bf16.msra.mxu0 %v10561_v12  ;;  %4331 = vmatprep.subr.bf16.mxu1 %v10563_v49  ;;  %v10585_v12 = vcombine.low %v3343_v33, %v3347_v4  ;;  %v10595_v49 = vcombine.high %v3335_v30, %v3339_v59 }
 0x4cc   :  { %5028 = vmatprep.subr.bf16.mxu0 %v10566_v46  ;;  %v10593_v46 = vcombine.low %v3436_v11, %v3440_v34 }
 0x4cd   :  { %v10580_v3 = vpop.f32.mrf.mxu1  ;;  %v10582_v37 = vpop.f32.mrf.mxu0  ;;  %13292 = vst [vmem:[#allocation139_spill] sm:$0xff] %v10585_v12  ;;  %13296 = vst [vmem:[#allocation143_spill] sm:$0xff] %v10595_v49 }
 0x4ce   :  { %13290 = vst [vmem:[#allocation137_spill] sm:$0xff] %v10580_v3  ;;  %13291 = vst [vmem:[#allocation138_spill] sm:$0xff] %v10582_v37  ;;  %4332 = vmatpush1.bf16.msra.mxu1 %v10569_v41  ;;  %v10598_v37 = vcombine.high %v3556_v2, %v3560_v50  ;;  %v3331_v41 = vld [vmem:[#allocation7 + $0xb8] sm:$0xff]  ;;  %v3540_v3 = vld [vmem:[#allocation8 + $0x340] sm:$0xff] }
 0x4cf   :  { %5029 = vmatpush1.bf16.msra.mxu0 %v10573_v1  ;;  %v10588_v32 = vpop.f32.mrf.mxu1  ;;  %v10590_v53 = vpop.f32.mrf.mxu0  ;;  %4333 = vmatprep.subr.bf16.mxu1 %v10575_v48  ;;  %13295 = vst [vmem:[#allocation142_spill] sm:$0xff] %v10593_v46  ;;  %v3552_v1 = vld [vmem:[#allocation8 + $0x3a0] sm:$0xff]  ;;  %v10605_v48 = vcombine.low %v3556_v2, %v3560_v50 }
 0x4d0   :  { %13293 = vst [vmem:[#allocation140_spill] sm:$0xff] %v10588_v32  ;;  %13294 = vst [vmem:[#allocation141_spill] sm:$0xff] %v10590_v53  ;;  %5030 = vmatprep.subr.bf16.mxu0 %v10578_v44  ;;  %v10601_v32 = vcombine.low %v3335_v30, %v3339_v59  ;;  %v10607_v44 = vcombine.high %v3327_v21, %v3331_v41  ;;  %v3323_v53 = vld [vmem:[#allocation7 + $0x78] sm:$0xff]  ;;  %v10613_v59 = vcombine.low %v3327_v21, %v3331_v41 }
 0x4d1   :  { %13297 = vst [vmem:[#allocation144_spill] sm:$0xff] %v10598_v37  ;;  %v3059_v4 = vpop.f32.mrf.mxu1  ;;  %v3182_v33 = vpop.f32.mrf.mxu0  ;;  %13299 = vst [vmem:[#allocation146_spill] sm:$0xff] %v10605_v48  ;;  %v10617_v30 = vcombine.low %v3548_v9, %v3552_v1 }
 0x4d2   :  { %4334 = vmatpush1.bf16.msra.mxu1 %v10585_v12  ;;  %13298 = vst [vmem:[#allocation145_spill] sm:$0xff] %v10601_v32  ;;  %13300 = vst [vmem:[#allocation147_spill] sm:$0xff] %v10607_v44  ;;  %v10610_v4 = vcombine.high %v3548_v9, %v3552_v1  ;;  %v3319_v33 = vld [vmem:[#allocation7 + $0x58] sm:$0xff]  ;;  %v3544_v12 = vld [vmem:[#allocation8 + $0x360] sm:$0xff] }
 0x4d3   :  { %5031 = vmatpush1.bf16.msra.mxu0 %v10593_v46  ;;  %v3060_v11 = vpop.f32.mrf.mxu1  ;;  %v3183_v34 = vpop.f32.mrf.mxu0  ;;  %4335 = vmatprep.subr.bf16.mxu1 %v10595_v49  ;;  %13302 = vst [vmem:[#allocation149_spill] sm:$0xff] %v10613_v59  ;;  %13303 = vst [vmem:[#allocation150_spill] sm:$0xff] %v10617_v30  ;;  %v10619_v2 = vcombine.high %v3319_v33, %v3323_v53  ;;  %v10622_v50 = vcombine.high %v3540_v3, %v3544_v12  ;;  %v3536_v46 = vld [vmem:[#allocation8 + $0x320] sm:$0xff] }
 0x4d4   :  { %5032 = vmatprep.subr.bf16.mxu0 %v10598_v37  ;;  %13301 = vst [vmem:[#allocation148_spill] sm:$0xff] %v10610_v4  ;;  %v3311_v11 = vld [vmem:[#allocation7 + $0x18] sm:$0xff]  ;;  %v3532_v37 = vld [vmem:[#allocation8 + $0x300] sm:$0xff]  ;;  %v10625_v21 = vcombine.low %v3319_v33, %v3323_v53  ;;  %v10629_v9 = vcombine.low %v3540_v3, %v3544_v12 }
 0x4d5   :  { %13304 = vst [vmem:[#allocation151_spill] sm:$0xff] %v10619_v2  ;;  %13305 = vst [vmem:[#allocation152_spill] sm:$0xff] %v10622_v50  ;;  %v3315_v34 = vld [vmem:[#allocation7 + $0x38] sm:$0xff]  ;;  %v10634_v1 = vcombine.high %v3532_v37, %v3536_v46  ;;  %v10641_v3 = vcombine.low %v3532_v37, %v3536_v46 }
 0x4d6   :  { %4336 = vmatpush1.bf16.msra.mxu1 %v10601_v32  ;;  %13306 = vst [vmem:[#allocation153_spill] sm:$0xff] %v10625_v21  ;;  %13307 = vst [vmem:[#allocation154_spill] sm:$0xff] %v10629_v9  ;;  %v10631_v41 = vcombine.high %v3311_v11, %v3315_v34  ;;  %v3528_v32 = vld [vmem:[#allocation8 + $0x2e0] sm:$0xff]  ;;  %v10637_v53 = vcombine.low %v3311_v11, %v3315_v34 }
 0x4d7   :  { %5033 = vmatpush2.bf16.msra.mxu0 %v10605_v48  ;;  %4337 = vmatprep.subr.bf16.mxu1 %v10607_v44  ;;  %13309 = vst [vmem:[#allocation156_spill] sm:$0xff] %v10634_v1  ;;  %v3435_v48 = vld [vmem:[#allocation7 + $0x3f8] sm:$0xff]  ;;  %v3524_v44 = vld [vmem:[#allocation8 + $0x2c0] sm:$0xff]  ;;  %13311 = vst [vmem:[#allocation158_spill] sm:$0xff] %v10641_v3 }
 0x4d8   :  { %5034 = vmatprep.subr.bf16.mxu0 %v10610_v4  ;;  %13308 = vst [vmem:[#allocation155_spill] sm:$0xff] %v10631_v41  ;;  %v3431_v4 = vld [vmem:[#allocation7 + $0x3d8] sm:$0xff]  ;;  %13310 = vst [vmem:[#allocation157_spill] sm:$0xff] %v10637_v53  ;;  %v10646_v33 = vcombine.high %v3524_v44, %v3528_v32  ;;  %v10653_v37 = vcombine.low %v3524_v44, %v3528_v32 }
 0x4d9   :  { %v10643_v12 = vcombine.high %v3431_v4, %v3435_v48  ;;  %v10649_v11 = vcombine.low %v3431_v4, %v3435_v48 }
 0x4da   :  { %4338 = vmatpush1.bf16.msra.mxu1 %v10613_v59  ;;  %13313 = vst [vmem:[#allocation160_spill] sm:$0xff] %v10646_v33  ;;  %v3520_v59 = vld [vmem:[#allocation8 + $0x2a0] sm:$0xff]  ;;  %13315 = vst [vmem:[#allocation162_spill] sm:$0xff] %v10653_v37 }
 0x4db   :  { %5035 = vmatpush2.bf16.msra.mxu0 %v10617_v30  ;;  %4339 = vmatprep.subr.bf16.mxu1 %v10619_v2  ;;  %13312 = vst [vmem:[#allocation159_spill] sm:$0xff] %v10643_v12  ;;  %v3427_v30 = vld [vmem:[#allocation7 + $0x3b8] sm:$0xff]  ;;  %v3516_v2 = vld [vmem:[#allocation8 + $0x280] sm:$0xff]  ;;  %13314 = vst [vmem:[#allocation161_spill] sm:$0xff] %v10649_v11 }
 0x4dc   :  { %5036 = vmatprep.subr.bf16.mxu0 %v10622_v50  ;;  %v3423_v50 = vld [vmem:[#allocation7 + $0x398] sm:$0xff]  ;;  %v10658_v34 = vcombine.high %v3516_v2, %v3520_v59  ;;  %v10665_v44 = vcombine.low %v3516_v2, %v3520_v59 }
 0x4dd   :  { %v10655_v46 = vcombine.high %v3423_v50, %v3427_v30  ;;  %v10661_v48 = vcombine.low %v3423_v50, %v3427_v30 }
 0x4de   :  { %4340 = vmatpush1.bf16.msra.mxu1 %v10625_v21  ;;  %13317 = vst [vmem:[#allocation164_spill] sm:$0xff] %v10658_v34  ;;  %v3512_v21 = vld [vmem:[#allocation8 + $0x260] sm:$0xff]  ;;  %13319 = vst [vmem:[#allocation166_spill] sm:$0xff] %v10665_v44 }
 0x4df   :  { %5037 = vmatpush2.bf16.msra.mxu0 %v10629_v9  ;;  %4341 = vmatprep.subr.bf16.mxu1 %v10631_v41  ;;  %13316 = vst [vmem:[#allocation163_spill] sm:$0xff] %v10655_v46  ;;  %v3419_v9 = vld [vmem:[#allocation7 + $0x378] sm:$0xff]  ;;  %v3508_v41 = vld [vmem:[#allocation8 + $0x240] sm:$0xff]  ;;  %13318 = vst [vmem:[#allocation165_spill] sm:$0xff] %v10661_v48 }
 0x4e0   :  { %5038 = vmatprep.subr.bf16.mxu0 %v10634_v1  ;;  %v3415_v1 = vld [vmem:[#allocation7 + $0x358] sm:$0xff]  ;;  %v10670_v4 = vcombine.high %v3508_v41, %v3512_v21  ;;  %v10677_v59 = vcombine.low %v3508_v41, %v3512_v21 }
 0x4e1   :  { %v10667_v32 = vcombine.high %v3415_v1, %v3419_v9  ;;  %v10673_v30 = vcombine.low %v3415_v1, %v3419_v9 }
 0x4e2   :  { %4342 = vmatpush1.bf16.msra.mxu1 %v10637_v53  ;;  %13321 = vst [vmem:[#allocation168_spill] sm:$0xff] %v10670_v4  ;;  %v3504_v53 = vld [vmem:[#allocation8 + $0x220] sm:$0xff]  ;;  %13323 = vst [vmem:[#allocation170_spill] sm:$0xff] %v10677_v59 }
 0x4e3   :  { %5039 = vmatpush2.bf16.msra.mxu0 %v10641_v3  ;;  %4343 = vmatprep.subr.bf16.mxu1 %v10643_v12  ;;  %13320 = vst [vmem:[#allocation167_spill] sm:$0xff] %v10667_v32  ;;  %v3411_v3 = vld [vmem:[#allocation7 + $0x338] sm:$0xff]  ;;  %v3500_v12 = vld [vmem:[#allocation8 + $0x200] sm:$0xff]  ;;  %13322 = vst [vmem:[#allocation169_spill] sm:$0xff] %v10673_v30 }
 0x4e4   :  { %5040 = vmatprep.subr.bf16.mxu0 %v10646_v33  ;;  %v3407_v33 = vld [vmem:[#allocation7 + $0x318] sm:$0xff]  ;;  %v10682_v50 = vcombine.high %v3500_v12, %v3504_v53  ;;  %v10689_v21 = vcombine.low %v3500_v12, %v3504_v53 }
 0x4e5   :  { %v10679_v2 = vcombine.high %v3407_v33, %v3411_v3  ;;  %v10685_v9 = vcombine.low %v3407_v33, %v3411_v3 }
 0x4e6   :  { %4344 = vmatpush2.bf16.msra.mxu1 %v10649_v11  ;;  %13325 = vst [vmem:[#allocation172_spill] sm:$0xff] %v10682_v50  ;;  %v3498_v11 = vld [vmem:[#allocation8 + $0x1f0] sm:$0xff]  ;;  %13327 = vst [vmem:[#allocation174_spill] sm:$0xff] %v10689_v21 }
 0x4e7   :  { %5041 = vmatpush2.bf16.msra.mxu0 %v10653_v37  ;;  %4345 = vmatprep.subr.bf16.mxu1 %v10655_v46  ;;  %13324 = vst [vmem:[#allocation171_spill] sm:$0xff] %v10679_v2  ;;  %v3403_v37 = vld [vmem:[#allocation7 + $0x2f8] sm:$0xff]  ;;  %v3494_v46 = vld [vmem:[#allocation8 + $0x1d0] sm:$0xff]  ;;  %13326 = vst [vmem:[#allocation173_spill] sm:$0xff] %v10685_v9 }
 0x4e8   :  { %5042 = vmatprep.subr.bf16.mxu0 %v10658_v34  ;;  %v3399_v34 = vld [vmem:[#allocation7 + $0x2d8] sm:$0xff]  ;;  %v10694_v1 = vcombine.high %v3494_v46, %v3498_v11  ;;  %v10701_v53 = vcombine.low %v3494_v46, %v3498_v11 }
 0x4e9   :  { %v10691_v41 = vcombine.high %v3399_v34, %v3403_v37  ;;  %v10697_v3 = vcombine.low %v3399_v34, %v3403_v37 }
 0x4ea   :  { %4346 = vmatpush2.bf16.msra.mxu1 %v10661_v48  ;;  %13329 = vst [vmem:[#allocation176_spill] sm:$0xff] %v10694_v1  ;;  %v3490_v48 = vld [vmem:[#allocation8 + $0x1b0] sm:$0xff]  ;;  %13331 = vst [vmem:[#allocation178_spill] sm:$0xff] %v10701_v53 }
 0x4eb   :  { %5043 = vmatpush2.bf16.msra.mxu0 %v10665_v44  ;;  %4347 = vmatprep.subr.bf16.mxu1 %v10667_v32  ;;  %13328 = vst [vmem:[#allocation175_spill] sm:$0xff] %v10691_v41  ;;  %v3395_v44 = vld [vmem:[#allocation7 + $0x2b8] sm:$0xff]  ;;  %v3486_v32 = vld [vmem:[#allocation8 + $0x190] sm:$0xff]  ;;  %13330 = vst [vmem:[#allocation177_spill] sm:$0xff] %v10697_v3 }
 0x4ec   :  { %5044 = vmatprep.subr.bf16.mxu0 %v10670_v4  ;;  %v3391_v4 = vld [vmem:[#allocation7 + $0x298] sm:$0xff]  ;;  %v10706_v33 = vcombine.high %v3486_v32, %v3490_v48  ;;  %v10720_v34 = vcombine.low %v3486_v32, %v3490_v48 }
 0x4ed   :  { %v10703_v12 = vcombine.high %v3391_v4, %v3395_v44  ;;  %v10714_v11 = vcombine.low %v3391_v4, %v3395_v44  ;;  %v3470_v4 = vld [vmem:[#allocation8 + $0x110] sm:$0xff] }
 0x4ee   :  { %4348 = vmatpush2.bf16.msra.mxu1 %v10673_v30  ;;  %13333 = vst [vmem:[#allocation180_spill] sm:$0xff] %v10706_v33  ;;  %v3478_v30 = vld [vmem:[#allocation8 + $0x150] sm:$0xff]  ;;  %13338 = vst [vmem:[#allocation185_spill] sm:$0xff] %v10720_v34 }
 0x4ef   :  { %5045 = vmatpush2.bf16.msra.mxu0 %v10677_v59  ;;  %4349 = vmatprep.subr.bf16.mxu1 %v10679_v2  ;;  %13332 = vst [vmem:[#allocation179_spill] sm:$0xff] %v10703_v12  ;;  %v3387_v59 = vld [vmem:[#allocation7 + $0x278] sm:$0xff]  ;;  %13336 = vst [vmem:[#allocation183_spill] sm:$0xff] %v10714_v11 }
 0x4f0   :  { %5046 = vmatprep.subr.bf16.mxu0 %v10682_v50  ;;  %v3383_v50 = vld [vmem:[#allocation7 + $0x258] sm:$0xff] }
 0x4f1   :  { %v10731_v48 = vcombine.low %v3383_v50, %v3387_v59 }
 0x4f2   :  { %4350 = vmatpush2.bf16.msra.mxu1 %v10685_v9  ;;  %v3482_v9 = vld [vmem:[#allocation8 + $0x170] sm:$0xff] }
 0x4f3   :  { %5047 = vmatpush2.bf16.msra.mxu0 %v10689_v21  ;;  %4351 = vmatprep.subr.bf16.mxu1 %v10691_v41  ;;  %v10727_v41 = vcombine.high %v3478_v30, %v3482_v9  ;;  %13342 = vst [vmem:[#allocation189_spill] sm:$0xff] %v10731_v48 }
 0x4f4   :  { %5098 = vmatprep.subr.bf16.mxu0 %v10694_v1  ;;  %v10722_v1 = vcombine.high %v3383_v50, %v3387_v59 }
 0x4f5   :  { %v10708_v2 = vpop.f32.mrf.mxu1  ;;  %13341 = vst [vmem:[#allocation188_spill] sm:$0xff] %v10727_v41 }
 0x4f6   :  { %13334 = vst [vmem:[#allocation181_spill] sm:$0xff] %v10708_v2  ;;  %v10710_v37 = vpop.f32.mrf.mxu0  ;;  %5049 = vmatmul.mubr.bf16.vlgmr.msra.gmra.mxu0 %v13218_v60  ;;  %4352 = vmatpush2.bf16.msra.mxu1 %v10697_v3  ;;  %13339 = vst [vmem:[#allocation186_spill] sm:$0xff] %v10722_v1  ;;  %v3379_v3 = vld [vmem:[#allocation7 + $0x238] sm:$0xff]  ;;  %v3462_v2 = vld [vmem:[#allocation8 + $0xd0] sm:$0xff] }
 0x4f7   :  { %13335 = vst [vmem:[#allocation182_spill] sm:$0xff] %v10710_v37  ;;  %5099 = vmatpush1.bf16.msra.mxu0 %v10701_v53  ;;  %v10717_v46 = vpop.f32.mrf.mxu1  ;;  %4353 = vmatprep.subr.bf16.mxu1 %v10703_v12  ;;  %v3375_v37 = vld [vmem:[#allocation7 + $0x218] sm:$0xff]  ;;  %v3474_v53 = vld [vmem:[#allocation8 + $0x130] sm:$0xff] }
 0x4f8   :  { %13337 = vst [vmem:[#allocation184_spill] sm:$0xff] %v10717_v46  ;;  %v10724_v21 = vpop.f32.mrf.mxu0  ;;  %5100 = vmatprep.subr.bf16.mxu0 %v10706_v33  ;;  %5130 = vmatprep.mubr.bf16.mxu0 %v13218_v60  ;;  %v10735_v33 = vcombine.low %v3478_v30, %v3482_v9  ;;  %v10737_v12 = vcombine.high %v3375_v37, %v3379_v3  ;;  %v3493_v46 = vld [vmem:[#allocation8 + $0x1c8] sm:$0xff] }
 0x4f9   :  { %13340 = vst [vmem:[#allocation187_spill] sm:$0xff] %v10724_v21  ;;  %v3141_v44 = vpop.f32.mrf.mxu1  ;;  %v10743_v59 = vcombine.low %v3375_v37, %v3379_v3  ;;  %v10747_v30 = vcombine.low %v3470_v4, %v3474_v53 }
 0x4fa   :  { %v3264_v49 = vpop.f32.mrf.mxu0  ;;  %4354 = vmatpush2.bf16.msra.mxu1 %v10714_v11  ;;  %13343 = vst [vmem:[#allocation190_spill] sm:$0xff] %v10735_v33  ;;  %13344 = vst [vmem:[#allocation191_spill] sm:$0xff] %v10737_v12  ;;  %v10740_v44 = vcombine.high %v3470_v4, %v3474_v53  ;;  %v3466_v11 = vld [vmem:[#allocation8 + $0xf0] sm:$0xff] }
 0x4fb   :  { %5101 = vmatpush1.bf16.msra.mxu0 %v10720_v34  ;;  %v3142_v32 = vpop.f32.mrf.mxu1  ;;  %4355 = vmatprep.subr.bf16.mxu1 %v10722_v1  ;;  %v3497_v49 = vld [vmem:[#allocation8 + $0x1e8] sm:$0xff]  ;;  %13346 = vst [vmem:[#allocation193_spill] sm:$0xff] %v10743_v59  ;;  %13347 = vst [vmem:[#allocation194_spill] sm:$0xff] %v10747_v30  ;;  %v10752_v9 = vcombine.high %v3462_v2, %v3466_v11  ;;  %v3458_v34 = vld [vmem:[#allocation8 + $0xb0] sm:$0xff]  ;;  %v10759_v53 = vcombine.low %v3462_v2, %v3466_v11 }
 0x4fc   :  { %v3265_v21 = vpop.f32.mrf.mxu0  ;;  %5102 = vmatprep.subr.bf16.mxu0 %v10727_v41  ;;  %13345 = vst [vmem:[#allocation192_spill] sm:$0xff] %v10740_v44  ;;  %v10749_v50 = vcombine.high %v3493_v46, %v3497_v49  ;;  %v3489_v32 = vld [vmem:[#allocation8 + $0x1a8] sm:$0xff]  ;;  %v3454_v41 = vld [vmem:[#allocation8 + $0x90] sm:$0xff]  ;;  %v10755_v3 = vcombine.low %v3493_v46, %v3497_v49 }
 0x4fd   :  { %13349 = vst [vmem:[#allocation196_spill] sm:$0xff] %v10752_v9  ;;  %v3485_v21 = vld [vmem:[#allocation8 + $0x188] sm:$0xff]  ;;  %13351 = vst [vmem:[#allocation198_spill] sm:$0xff] %v10759_v53  ;;  %v10764_v4 = vcombine.high %v3454_v41, %v3458_v34  ;;  %v10773_v2 = vcombine.low %v3454_v41, %v3458_v34  ;;  %v3514_v1 = vld [vmem:[#allocation8 + $0x270] sm:$0xff] }
 0x4fe   :  { %4356 = vmatpush2.bf16.msra.mxu1 %v10731_v48  ;;  %13348 = vst [vmem:[#allocation195_spill] sm:$0xff] %v10749_v50  ;;  %13350 = vst [vmem:[#allocation197_spill] sm:$0xff] %v10755_v3  ;;  %v10761_v37 = vcombine.high %v3485_v21, %v3489_v32  ;;  %v10768_v46 = vcombine.low %v3485_v21, %v3489_v32  ;;  %v3562_v48 = vld [vmem:[#allocation8 + $0x3f0] sm:$0xff] }
 0x4ff   :  { %5103 = vmatpush1.bf16.msra.mxu0 %v10735_v33  ;;  %4357 = vmatprep.subr.bf16.mxu1 %v10737_v12  ;;  %13353 = vst [vmem:[#allocation200_spill] sm:$0xff] %v10764_v4  ;;  %v3481_v33 = vld [vmem:[#allocation8 + $0x168] sm:$0xff]  ;;  %v3446_v12 = vld [vmem:[#allocation8 + $0x50] sm:$0xff]  ;;  %13355 = vst [vmem:[#allocation202_spill] sm:$0xff] %v10773_v2 }
 0x500   :  { %5104 = vmatprep.subr.bf16.mxu0 %v10740_v44  ;;  %13352 = vst [vmem:[#allocation199_spill] sm:$0xff] %v10761_v37  ;;  %v3477_v44 = vld [vmem:[#allocation8 + $0x148] sm:$0xff]  ;;  %13354 = vst [vmem:[#allocation201_spill] sm:$0xff] %v10768_v46 }
 0x501   :  { %v10775_v11 = vcombine.high %v3477_v44, %v3481_v33  ;;  %v10781_v21 = vcombine.low %v3477_v44, %v3481_v33 }
 0x502   :  { %4358 = vmatpush2.bf16.msra.mxu1 %v10743_v59  ;;  %v3450_v59 = vld [vmem:[#allocation8 + $0x70] sm:$0xff] }
 0x503   :  { %5105 = vmatpush1.bf16.msra.mxu0 %v10747_v30  ;;  %5057 = vmatprep.subr.bf16.mxu1 %v10749_v50  ;;  %13356 = vst [vmem:[#allocation203_spill] sm:$0xff] %v10775_v11  ;;  %v10778_v49 = vcombine.high %v3446_v12, %v3450_v59  ;;  %v3473_v30 = vld [vmem:[#allocation8 + $0x128] sm:$0xff]  ;;  %v3438_v50 = vld [vmem:[#allocation8 + $0x10] sm:$0xff]  ;;  %13358 = vst [vmem:[#allocation205_spill] sm:$0xff] %v10781_v21  ;;  %v10785_v41 = vcombine.low %v3446_v12, %v3450_v59 }
 0x504   :  { %5106 = vmatprep.subr.bf16.mxu0 %v10752_v9  ;;  %v3469_v9 = vld [vmem:[#allocation8 + $0x108] sm:$0xff] }
 0x505   :  { %4360 = vmatmul.mubr.bf16.vlgmr.msra.gmra.mxu1 %v13218_v60  ;;  %13357 = vst [vmem:[#allocation204_spill] sm:$0xff] %v10778_v49  ;;  %13359 = vst [vmem:[#allocation206_spill] sm:$0xff] %v10785_v41  ;;  %v10787_v34 = vcombine.high %v3469_v9, %v3473_v30  ;;  %v10793_v33 = vcombine.low %v3469_v9, %v3473_v30 }
 0x506   :  { %5058 = vmatpush1.bf16.msra.mxu1 %v10755_v3  ;;  %5089 = vmatprep.mubr.bf16.mxu1 %v13218_v60  ;;  %v3442_v3 = vld [vmem:[#allocation8 + $0x30] sm:$0xff] }
 0x507   :  { %5107 = vmatpush1.bf16.msra.mxu0 %v10759_v53  ;;  %5059 = vmatprep.subr.bf16.mxu1 %v10761_v37  ;;  %13360 = vst [vmem:[#allocation207_spill] sm:$0xff] %v10787_v34  ;;  %v10790_v32 = vcombine.high %v3438_v50, %v3442_v3  ;;  %v3465_v53 = vld [vmem:[#allocation8 + $0xe8] sm:$0xff]  ;;  %v3558_v37 = vld [vmem:[#allocation8 + $0x3d0] sm:$0xff]  ;;  %13362 = vst [vmem:[#allocation209_spill] sm:$0xff] %v10793_v33  ;;  %v10797_v12 = vcombine.low %v3438_v50, %v3442_v3 }
 0x508   :  { %5108 = vmatprep.subr.bf16.mxu0 %v10764_v4  ;;  %v3461_v4 = vld [vmem:[#allocation8 + $0xc8] sm:$0xff]  ;;  %v10802_v59 = vcombine.high %v3558_v37, %v3562_v48  ;;  %v10809_v50 = vcombine.low %v3558_v37, %v3562_v48 }
 0x509   :  { %13361 = vst [vmem:[#allocation208_spill] sm:$0xff] %v10790_v32  ;;  %13363 = vst [vmem:[#allocation210_spill] sm:$0xff] %v10797_v12  ;;  %v10799_v44 = vcombine.high %v3461_v4, %v3465_v53  ;;  %v10805_v30 = vcombine.low %v3461_v4, %v3465_v53 }
 0x50a   :  { %5060 = vmatpush1.bf16.msra.mxu1 %v10768_v46  ;;  %13365 = vst [vmem:[#allocation212_spill] sm:$0xff] %v10802_v59  ;;  %v3554_v46 = vld [vmem:[#allocation8 + $0x3b0] sm:$0xff]  ;;  %13367 = vst [vmem:[#allocation214_spill] sm:$0xff] %v10809_v50 }
 0x50b   :  { %5109 = vmatpush1.bf16.msra.mxu0 %v10773_v2  ;;  %5061 = vmatprep.subr.bf16.mxu1 %v10775_v11  ;;  %13364 = vst [vmem:[#allocation211_spill] sm:$0xff] %v10799_v44  ;;  %v3457_v2 = vld [vmem:[#allocation8 + $0xa8] sm:$0xff]  ;;  %v3550_v11 = vld [vmem:[#allocation8 + $0x390] sm:$0xff]  ;;  %13366 = vst [vmem:[#allocation213_spill] sm:$0xff] %v10805_v30 }
 0x50c   :  { %5110 = vmatprep.subr.bf16.mxu0 %v10778_v49  ;;  %v3453_v49 = vld [vmem:[#allocation8 + $0x88] sm:$0xff]  ;;  %v10814_v3 = vcombine.high %v3550_v11, %v3554_v46  ;;  %v10821_v48 = vcombine.low %v3550_v11, %v3554_v46 }
 0x50d   :  { %v10811_v9 = vcombine.high %v3453_v49, %v3457_v2  ;;  %v10817_v53 = vcombine.low %v3453_v49, %v3457_v2 }
 0x50e   :  { %5062 = vmatpush1.bf16.msra.mxu1 %v10781_v21  ;;  %13369 = vst [vmem:[#allocation216_spill] sm:$0xff] %v10814_v3  ;;  %v3546_v21 = vld [vmem:[#allocation8 + $0x370] sm:$0xff]  ;;  %13371 = vst [vmem:[#allocation218_spill] sm:$0xff] %v10821_v48 }
 0x50f   :  { %5111 = vmatpush1.bf16.msra.mxu0 %v10785_v41  ;;  %5063 = vmatprep.subr.bf16.mxu1 %v10787_v34  ;;  %13368 = vst [vmem:[#allocation215_spill] sm:$0xff] %v10811_v9  ;;  %v3449_v41 = vld [vmem:[#allocation8 + $0x68] sm:$0xff]  ;;  %v3542_v34 = vld [vmem:[#allocation8 + $0x350] sm:$0xff]  ;;  %13370 = vst [vmem:[#allocation217_spill] sm:$0xff] %v10817_v53 }
 0x510   :  { %5112 = vmatprep.subr.bf16.mxu0 %v10790_v32  ;;  %v3445_v32 = vld [vmem:[#allocation8 + $0x48] sm:$0xff]  ;;  %v10826_v4 = vcombine.high %v3542_v34, %v3546_v21  ;;  %v10833_v46 = vcombine.low %v3542_v34, %v3546_v21 }
 0x511   :  { %v10823_v37 = vcombine.high %v3445_v32, %v3449_v41  ;;  %v10829_v2 = vcombine.low %v3445_v32, %v3449_v41 }
 0x512   :  { %5064 = vmatpush1.bf16.msra.mxu1 %v10793_v33  ;;  %13373 = vst [vmem:[#allocation220_spill] sm:$0xff] %v10826_v4  ;;  %v3538_v33 = vld [vmem:[#allocation8 + $0x330] sm:$0xff]  ;;  %13375 = vst [vmem:[#allocation222_spill] sm:$0xff] %v10833_v46 }
 0x513   :  { %5113 = vmatpush1.bf16.msra.mxu0 %v10797_v12  ;;  %5065 = vmatprep.subr.bf16.mxu1 %v10799_v44  ;;  %13372 = vst [vmem:[#allocation219_spill] sm:$0xff] %v10823_v37  ;;  %v3441_v12 = vld [vmem:[#allocation8 + $0x28] sm:$0xff]  ;;  %v3534_v44 = vld [vmem:[#allocation8 + $0x310] sm:$0xff]  ;;  %13374 = vst [vmem:[#allocation221_spill] sm:$0xff] %v10829_v2 }
 0x514   :  { %5114 = vmatprep.subr.bf16.mxu0 %v10802_v59  ;;  %v3437_v59 = vld [vmem:[#allocation8 + $0x8] sm:$0xff]  ;;  %v10838_v49 = vcombine.high %v3534_v44, %v3538_v33  ;;  %v10849_v34 = vcombine.low %v3534_v44, %v3538_v33 }
 0x515   :  { %v10835_v11 = vcombine.high %v3437_v59, %v3441_v12  ;;  %v10843_v41 = vcombine.low %v3437_v59, %v3441_v12  ;;  %v3522_v12 = vld [vmem:[#allocation8 + $0x2b0] sm:$0xff] }
 0x516   :  { %5066 = vmatpush1.bf16.msra.mxu1 %v10805_v30  ;;  %13377 = vst [vmem:[#allocation224_spill] sm:$0xff] %v10838_v49  ;;  %v3526_v30 = vld [vmem:[#allocation8 + $0x2d0] sm:$0xff]  ;;  %13381 = vst [vmem:[#allocation228_spill] sm:$0xff] %v10849_v34 }
 0x517   :  { %5115 = vmatpush2.bf16.msra.mxu0 %v10809_v50  ;;  %5067 = vmatprep.subr.bf16.mxu1 %v10811_v9  ;;  %13376 = vst [vmem:[#allocation223_spill] sm:$0xff] %v10835_v11  ;;  %v3561_v50 = vld [vmem:[#allocation8 + $0x3e8] sm:$0xff]  ;;  %13379 = vst [vmem:[#allocation226_spill] sm:$0xff] %v10843_v41 }
 0x518   :  { %5116 = vmatprep.subr.bf16.mxu0 %v10814_v3  ;;  %v3557_v3 = vld [vmem:[#allocation8 + $0x3c8] sm:$0xff] }
 0x519   :  { %v10851_v32 = vcombine.high %v3557_v3, %v3561_v50  ;;  %v10857_v59 = vcombine.low %v3557_v3, %v3561_v50 }
 0x51a   :  { %5068 = vmatpush1.bf16.msra.mxu1 %v10817_v53  ;;  %v3530_v53 = vld [vmem:[#allocation8 + $0x2f0] sm:$0xff] }
 0x51b   :  { %5117 = vmatpush2.bf16.msra.mxu0 %v10821_v48  ;;  %5069 = vmatprep.subr.bf16.mxu1 %v10823_v37  ;;  %13382 = vst [vmem:[#allocation229_spill] sm:$0xff] %v10851_v32  ;;  %v3549_v48 = vld [vmem:[#allocation8 + $0x388] sm:$0xff]  ;;  %13384 = vst [vmem:[#allocation231_spill] sm:$0xff] %v10857_v59  ;;  %v10861_v33 = vcombine.low %v3526_v30, %v3530_v53 }
 0x51c   :  { %5118 = vmatprep.subr.bf16.mxu0 %v10826_v4  ;;  %v10854_v4 = vcombine.high %v3526_v30, %v3530_v53  ;;  %v3553_v37 = vld [vmem:[#allocation8 + $0x3a8] sm:$0xff] }
 0x51d   :  { %v10840_v9 = vpop.f32.mrf.mxu1  ;;  %13385 = vst [vmem:[#allocation232_spill] sm:$0xff] %v10861_v33  ;;  %v10863_v44 = vcombine.high %v3549_v48, %v3553_v37  ;;  %v10869_v50 = vcombine.low %v3549_v48, %v3553_v37 }
 0x51e   :  { %13378 = vst [vmem:[#allocation225_spill] sm:$0xff] %v10840_v9  ;;  %5070 = vmatpush1.bf16.msra.mxu1 %v10829_v2  ;;  %13383 = vst [vmem:[#allocation230_spill] sm:$0xff] %v10854_v4  ;;  %v3518_v2 = vld [vmem:[#allocation8 + $0x290] sm:$0xff] }
 0x51f   :  { %5119 = vmatpush2.bf16.msra.mxu0 %v10833_v46  ;;  %v10846_v21 = vpop.f32.mrf.mxu1  ;;  %5071 = vmatprep.subr.bf16.mxu1 %v10835_v11  ;;  %13386 = vst [vmem:[#allocation233_spill] sm:$0xff] %v10863_v44  ;;  %v3545_v11 = vld [vmem:[#allocation8 + $0x368] sm:$0xff]  ;;  %v10873_v30 = vcombine.low %v3518_v2, %v3522_v12 }
 0x520   :  { %13380 = vst [vmem:[#allocation227_spill] sm:$0xff] %v10846_v21  ;;  %5120 = vmatprep.subr.bf16.mxu0 %v10838_v49  ;;  %v10866_v49 = vcombine.high %v3518_v2, %v3522_v12  ;;  %v3510_v21 = vld [vmem:[#allocation8 + $0x250] sm:$0xff] }
 0x521   :  { %v3223_v9 = vpop.f32.mrf.mxu1  ;;  %13388 = vst [vmem:[#allocation235_spill] sm:$0xff] %v10873_v30  ;;  %v10878_v53 = vcombine.high %v3510_v21, %v3514_v1  ;;  %v10885_v37 = vcombine.low %v3510_v21, %v3514_v1  ;;  %v3517_v21 = vld [vmem:[#allocation8 + $0x288] sm:$0xff] }
 0x522   :  { %5072 = vmatpush1.bf16.msra.mxu1 %v10843_v41  ;;  %13387 = vst [vmem:[#allocation234_spill] sm:$0xff] %v10866_v49  ;;  %v3541_v9 = vld [vmem:[#allocation8 + $0x348] sm:$0xff] }
 0x523   :  { %5121 = vmatpush2.bf16.msra.mxu0 %v10849_v34  ;;  %v3224_v46 = vpop.f32.mrf.mxu1  ;;  %5073 = vmatprep.subr.bf16.mxu1 %v10851_v32  ;;  %v10875_v3 = vcombine.high %v3541_v9, %v3545_v11  ;;  %13389 = vst [vmem:[#allocation236_spill] sm:$0xff] %v10878_v53  ;;  %v3502_v34 = vld [vmem:[#allocation8 + $0x210] sm:$0xff]  ;;  %v10881_v48 = vcombine.low %v3541_v9, %v3545_v11  ;;  %13390 = vst [vmem:[#allocation237_spill] sm:$0xff] %v10885_v37  ;;  %v3521_v9 = vld [vmem:[#allocation8 + $0x2a8] sm:$0xff] }
 0x524   :  { %5122 = vmatprep.subr.bf16.mxu0 %v10854_v4  ;;  %v3533_v46 = vld [vmem:[#allocation8 + $0x308] sm:$0xff]  ;;  %v3506_v32 = vld [vmem:[#allocation8 + $0x230] sm:$0xff] }
 0x525   :  { %v3537_v4 = vld [vmem:[#allocation8 + $0x328] sm:$0xff]  ;;  %v10890_v12 = vcombine.high %v3502_v34, %v3506_v32  ;;  %v10897_v11 = vcombine.low %v3502_v34, %v3506_v32  ;;  %v10914_v32 = vcombine.low %v3517_v21, %v3521_v9 }
 0x526   :  { %5074 = vmatpush2.bf16.msra.mxu1 %v10857_v59  ;;  %v10887_v2 = vcombine.high %v3533_v46, %v3537_v4 }
 0x527   :  { %5123 = vmatpush2.bf16.msra.mxu0 %v10861_v33  ;;  %5075 = vmatprep.subr.bf16.mxu1 %v10863_v44  ;;  %13391 = vst [vmem:[#allocation238_spill] sm:$0xff] %v10890_v12  ;;  %v3529_v33 = vld [vmem:[#allocation8 + $0x2e8] sm:$0xff]  ;;  %v10893_v44 = vcombine.low %v3533_v46, %v3537_v4  ;;  %13392 = vst [vmem:[#allocation239_spill] sm:$0xff] %v10897_v11  ;;  %v10907_v4 = vcombine.high %v3517_v21, %v3521_v9  ;;  %v3495_v9 = vld [vmem:[#allocation8 + $0x1d8] sm:$0xff] }
 0x528   :  { %5124 = vmatprep.subr.bf16.mxu0 %v10866_v49  ;;  %v3525_v49 = vld [vmem:[#allocation8 + $0x2c8] sm:$0xff]  ;;  %13396 = vst [vmem:[#allocation243_spill] sm:$0xff] %v10914_v32 }
 0x529   :  { %v10899_v1 = vcombine.high %v3525_v49, %v3529_v33  ;;  %13395 = vst [vmem:[#allocation242_spill] sm:$0xff] %v10907_v4  ;;  %v3509_v46 = vld [vmem:[#allocation8 + $0x248] sm:$0xff] }
 0x52a   :  { %5076 = vmatpush2.bf16.msra.mxu1 %v10869_v50 }
 0x52b   :  { %5125 = vmatpush2.bf16.msra.mxu0 %v10873_v30  ;;  %5077 = vmatprep.subr.bf16.mxu1 %v10875_v3  ;;  %13393 = vst [vmem:[#allocation240_spill] sm:$0xff] %v10899_v1 }
 0x52c   :  { %5126 = vmatprep.subr.bf16.mxu0 %v10878_v53  ;;  %v10903_v53 = vcombine.low %v3525_v49, %v3529_v33 }
 0x52e   :  { %5078 = vmatpush2.bf16.msra.mxu1 %v10881_v48  ;;  %13394 = vst [vmem:[#allocation241_spill] sm:$0xff] %v10903_v53 }
 0x52f   :  { %5127 = vmatpush2.bf16.msra.mxu0 %v10885_v37  ;;  %5079 = vmatprep.subr.bf16.mxu1 %v10887_v2  ;;  %v3513_v37 = vld [vmem:[#allocation8 + $0x268] sm:$0xff] }
 0x530   :  { %5128 = vmatprep.subr.bf16.mxu0 %v10890_v12  ;;  %v10917_v49 = vcombine.high %v3509_v46, %v3513_v37  ;;  %v3505_v12 = vld [vmem:[#allocation8 + $0x228] sm:$0xff] }
 0x532   :  { %5080 = vmatpush2.bf16.msra.mxu1 %v10893_v44  ;;  %13397 = vst [vmem:[#allocation244_spill] sm:$0xff] %v10917_v49 }
 0x533   :  { %5129 = vmatpush2.bf16.msra.mxu0 %v10897_v11  ;;  %5081 = vmatprep.subr.bf16.mxu1 %v10899_v1  ;;  %v3501_v11 = vld [vmem:[#allocation8 + $0x208] sm:$0xff] }
 0x534   :  { %5286 = vmatprep.subr.bf16.mxu0 %v10094_v55  ;;  %v10924_v55 = vcombine.low %v3509_v46, %v3513_v37  ;;  %v10927_v21 = vcombine.high %v3501_v11, %v3505_v12  ;;  %v3491_v46 = vld [vmem:[#allocation8 + $0x1b8] sm:$0xff] }
 0x536   :  { %v10910_v34 = vpop.f32.mrf.mxu0  ;;  %5131 = vmatmul.mubr.bf16.vlgmr.msra.gmra.mxu0 %v13218_v60  ;;  %5082 = vmatpush2.bf16.msra.mxu1 %v10903_v53  ;;  %v10932_v53 = vcombine.low %v3501_v11, %v3505_v12  ;;  %v3479_v12 = vld [vmem:[#allocation8 + $0x158] sm:$0xff] }
 0x537   :  { %5083 = vmatprep.subr.bf16.mxu1 %v10907_v4  ;;  %5287 = vmatpush1.bf16.msra.mxu0 %v10102_v61  ;;  %v3499_v4 = vld [vmem:[#allocation8 + $0x1f8] sm:$0xff] }
 0x538   :  { %v10920_v33 = vpop.f32.mrf.mxu0  ;;  %5288 = vmatprep.subr.bf16.mxu0 %v10105_v62  ;;  %13398 = vst [vmem:[#allocation245_spill] sm:$0xff] %v10932_v53  ;;  %v10935_v37 = vcombine.high %v3495_v9, %v3499_v4  ;;  %v3483_v11 = vld [vmem:[#allocation8 + $0x178] sm:$0xff] }
 0x539   :  { %v10962_v62 = vcombine.low %v3479_v12, %v3483_v11 }
 0x53a   :  { %5084 = vmatpush2.bf16.msra.mxu1 %v10914_v32  ;;  %v4242_v30 = vpop.f32.mrf.mxu0  ;;  %13399 = vst [vmem:[#allocation246_spill] sm:$0xff] %v10935_v37 }
 0x53b   :  { %5085 = vmatprep.subr.bf16.mxu1 %v10917_v49  ;;  %5289 = vmatpush1.bf16.msra.mxu0 %v10118_v7  ;;  %v3487_v30 = vld [vmem:[#allocation8 + $0x198] sm:$0xff]  ;;  %v10940_v7 = vcombine.low %v3495_v9, %v3499_v4  ;;  %v10957_v9 = vcombine.high %v3479_v12, %v3483_v11  ;;  %13404 = vst [vmem:[#allocation251_spill] sm:$0xff] %v10962_v62 }
 0x53c   :  { %v4243_v61 = vpop.f32.mrf.mxu0  ;;  %5290 = vmatprep.subr.bf16.mxu0 %v10121_v10  ;;  %v3455_v12 = vld [vmem:[#allocation8 + $0x98] sm:$0xff] }
 0x53d   :  { %13400 = vst [vmem:[#allocation247_spill] sm:$0xff] %v10940_v7  ;;  %v10943_v61 = vcombine.high %v3487_v30, %v3491_v46  ;;  %13403 = vst [vmem:[#allocation250_spill] sm:$0xff] %v10957_v9  ;;  %v3459_v11 = vld [vmem:[#allocation8 + $0xb8] sm:$0xff] }
 0x53e   :  { %5086 = vmatpush2.bf16.msra.mxu1 %v10924_v55 }
 0x53f   :  { %5087 = vmatprep.subr.bf16.mxu1 %v10927_v21  ;;  %5291 = vmatpush1.bf16.msra.mxu0 %v10131_v17  ;;  %13401 = vst [vmem:[#allocation248_spill] sm:$0xff] %v10943_v61 }
 0x540   :  { %5292 = vmatprep.subr.bf16.mxu0 %v10134_v19  ;;  %v10951_v19 = vcombine.low %v3487_v30, %v3491_v46 }
 0x542   :  { %5088 = vmatpush2.bf16.msra.mxu1 %v10932_v53  ;;  %13402 = vst [vmem:[#allocation249_spill] sm:$0xff] %v10951_v19 }
 0x543   :  { %5139 = vmatprep.subr.bf16.mxu1 %v10935_v37  ;;  %5293 = vmatpush1.bf16.msra.mxu0 %v10143_v27  ;;  %v3471_v27 = vld [vmem:[#allocation8 + $0x118] sm:$0xff] }
 0x544   :  { %5294 = vmatprep.subr.bf16.mxu0 %v10146_v29  ;;  %v3475_v29 = vld [vmem:[#allocation8 + $0x138] sm:$0xff] }
 0x545   :  { %v10947_v10 = vpop.f32.mrf.mxu1  ;;  %5090 = vmatmul.mubr.bf16.vlgmr.msra.gmra.mxu1 %v13218_v60  ;;  %v10965_v46 = vcombine.high %v3471_v27, %v3475_v29 }
 0x546   :  { %5140 = vmatpush1.bf16.msra.mxu1 %v10940_v7  ;;  %5171 = vmatprep.mubr.bf16.mxu1 %v13218_v60  ;;  %v3467_v7 = vld [vmem:[#allocation8 + $0xf8] sm:$0xff] }
 0x547   :  { %v10954_v4 = vpop.f32.mrf.mxu1  ;;  %5141 = vmatprep.subr.bf16.mxu1 %v10943_v61  ;;  %5295 = vmatpush1.bf16.msra.mxu0 %v10155_v36  ;;  %13405 = vst [vmem:[#allocation252_spill] sm:$0xff] %v10965_v46  ;;  %v3463_v61 = vld [vmem:[#allocation8 + $0xd8] sm:$0xff]  ;;  %v10970_v36 = vcombine.low %v3471_v27, %v3475_v29 }
 0x548   :  { %5296 = vmatprep.subr.bf16.mxu0 %v10158_v38  ;;  %v3447_v27 = vld [vmem:[#allocation8 + $0x58] sm:$0xff] }
 0x549   :  { %v3305_v17 = vpop.f32.mrf.mxu1  ;;  %13406 = vst [vmem:[#allocation253_spill] sm:$0xff] %v10970_v36  ;;  %v3451_v29 = vld [vmem:[#allocation8 + $0x78] sm:$0xff] }
 0x54a   :  { %5142 = vmatpush1.bf16.msra.mxu1 %v10951_v19  ;;  %v10973_v17 = vcombine.high %v3463_v61, %v3467_v7 }
 0x54b   :  { %v3306_v30 = vpop.f32.mrf.mxu1  ;;  %5143 = vmatprep.subr.bf16.mxu1 %v10957_v9  ;;  %5297 = vmatpush1.bf16.msra.mxu0 %v10167_v45  ;;  %v3547_v45 = vld [vmem:[#allocation8 + $0x378] sm:$0xff] }
 0x54c   :  { %5298 = vmatprep.subr.bf16.mxu0 %v10170_v47  ;;  %13407 = vst [vmem:[#allocation254_spill] sm:$0xff] %v10973_v17  ;;  %v10978_v30 = vcombine.low %v3463_v61, %v3467_v7  ;;  %v10981_v47 = vcombine.high %v3455_v12, %v3459_v11  ;;  %v3439_v7 = vld [vmem:[#allocation8 + $0x18] sm:$0xff] }
 0x54d   :  { %v3443_v61 = vld [vmem:[#allocation8 + $0x38] sm:$0xff] }
 0x54e   :  { %5144 = vmatpush1.bf16.msra.mxu1 %v10962_v62  ;;  %13408 = vst [vmem:[#allocation255_spill] sm:$0xff] %v10978_v30  ;;  %13409 = vst [vmem:[#allocation256_spill] sm:$0xff] %v10981_v47 }
 0x54f   :  { %5145 = vmatprep.subr.bf16.mxu1 %v10965_v46  ;;  %5299 = vmatpush1.bf16.msra.mxu0 %v10179_v54  ;;  %v10986_v54 = vcombine.low %v3455_v12, %v3459_v11  ;;  %v3559_v12 = vld [vmem:[#allocation8 + $0x3d8] sm:$0xff] }
 0x550   :  { %5300 = vmatprep.subr.bf16.mxu0 %v10182_v57  ;;  %v10989_v57 = vcombine.high %v3447_v27, %v3451_v29  ;;  %v3563_v11 = vld [vmem:[#allocation8 + $0x3f8] sm:$0xff] }
 0x551   :  { %13410 = vst [vmem:[#allocation257_spill] sm:$0xff] %v10986_v54 }
 0x552   :  { %5146 = vmatpush1.bf16.msra.mxu1 %v10970_v36  ;;  %13411 = vst [vmem:[#allocation258_spill] sm:$0xff] %v10989_v57 }
 0x553   :  { %5147 = vmatprep.subr.bf16.mxu1 %v10973_v17  ;;  %5301 = vmatpush1.bf16.msra.mxu0 %v10188_v63  ;;  %v10994_v63 = vcombine.low %v3447_v27, %v3451_v29  ;;  %v11011_v27 = vld [vmem:[%s12558_s12] sm:$0xff]  ;;  %v3551_v29 = vld [vmem:[#allocation8 + $0x398] sm:$0xff] }
 0x554   :  { %5302 = vmatprep.subr.bf16.mxu0 %v10191_v5  ;;  %v10997_v5 = vcombine.high %v3439_v7, %v3443_v61 }
 0x555   :  { %13412 = vst [vmem:[#allocation259_spill] sm:$0xff] %v10994_v63 }
 0x556   :  { %5148 = vmatpush1.bf16.msra.mxu1 %v10978_v30  ;;  %13413 = vst [vmem:[#allocation260_spill] sm:$0xff] %v10997_v5 }
 0x557   :  { %5149 = vmatprep.subr.bf16.mxu1 %v10981_v47  ;;  %5303 = vmatpush2.bf16.msra.mxu0 %v10202_v14  ;;  %v11002_v14 = vcombine.low %v3439_v7, %v3443_v61  ;;  %v2091_v7 = vrot.slane %v11011_v27, %v9546_v23 }
 0x558   :  { %5304 = vmatprep.subr.bf16.mxu0 %v10205_v18  ;;  %v11005_v18 = vcombine.high %v3559_v12, %v3563_v11 }
 0x559   :  { %13414 = vst [vmem:[#allocation261_spill] sm:$0xff] %v11002_v14 }
 0x55a   :  { %5150 = vmatpush1.bf16.msra.mxu1 %v10986_v54  ;;  %13415 = vst [vmem:[#allocation262_spill] sm:$0xff] %v11005_v18 }
 0x55b   :  { %5151 = vmatprep.subr.bf16.mxu1 %v10989_v57  ;;  %5305 = vmatpush2.bf16.msra.mxu0 %v10214_v28  ;;  %v3555_v28 = vld [vmem:[#allocation8 + $0x3b8] sm:$0xff] }
 0x55c   :  { %5306 = vmatprep.subr.bf16.mxu0 %v10217_v31  ;;  %v11015_v31 = vcombine.low %v3559_v12, %v3563_v11  ;;  %v11020_v61 = vcombine.high %v3551_v29, %v3555_v28  ;;  %v11027_v12 = vcombine.low %v3551_v29, %v3555_v28  ;;  %v11030_v11 = vadd.f32 %v10448_v26, %v2091_v7 }
 0x55e   :  { %5152 = vmatpush1.bf16.msra.mxu1 %v10994_v63  ;;  %13416 = vst [vmem:[#allocation263_spill] sm:$0xff] %v11015_v31  ;;  %13417 = vst [vmem:[#allocation264_spill] sm:$0xff] %v11020_v61  ;;  %v4368_v28 = vadd.f32 %v10910_v34, %v11030_v11 }
 0x55f   :  { %5153 = vmatprep.subr.bf16.mxu1 %v10997_v5  ;;  %5307 = vmatpush2.bf16.msra.mxu0 %v10226_v40  ;;  %v3543_v40 = vld [vmem:[#allocation8 + $0x358] sm:$0xff]  ;;  %13418 = vst [vmem:[#allocation265_spill] sm:$0xff] %v11027_v12  ;;  %13419 = vst [vmem:[#allocation266_spill] sm:$0xff] %v11030_v11 }
 0x560   :  { %5308 = vmatprep.subr.bf16.mxu0 %v10229_v43  ;;  %v2095_v43 = vrot.slane %v11011_v27, %v9552_v25  ;;  %v11033_v38 = vcombine.high %v3543_v40, %v3547_v45  ;;  %v11043_v26 = vcombine.low %v3543_v40, %v3547_v45  ;;  %v13005_v40 = vsub.s32 5, %v9476_v8 }
 0x562   :  { %5154 = vmatpush1.bf16.msra.mxu1 %v11002_v14  ;;  %13420 = vst [vmem:[#allocation267_spill] sm:$0xff] %v11033_v38  ;;  %13422 = vst [vmem:[#allocation269_spill] sm:$0xff] %v11043_v26 }
 0x563   :  { %5155 = vmatprep.subr.bf16.mxu1 %v11005_v18  ;;  %5309 = vmatpush2.bf16.msra.mxu0 %v10241_v52  ;;  %v3535_v52 = vld [vmem:[#allocation8 + $0x318] sm:$0xff] }
 0x564   :  { %5310 = vmatprep.subr.bf16.mxu0 %v10244_v56  ;;  %v3539_v18 = vld [vmem:[#allocation8 + $0x338] sm:$0xff]  ;;  %v11038_v56 = vadd.f32 %v10456_v16, %v2095_v43  ;;  %v13006_v43 = vsub.s32 4, %v9476_v8  ;;  %v5212_v16 = vmul.f32 0.5, %v4368_v28 }
 0x565   :  { %v11048_v7 = vcombine.high %v3535_v52, %v3539_v18  ;;  %v11054_v45 = vcombine.low %v3535_v52, %v3539_v18  ;;  %v2111_v52 = vrot.slane %v11011_v27, %v13005_v40 }
 0x566   :  { %5156 = vmatpush2.bf16.msra.mxu1 %v11015_v31  ;;  %13421 = vst [vmem:[#allocation268_spill] sm:$0xff] %v11038_v56  ;;  %v4369_v29 = vadd.f32 %v10920_v33, %v11038_v56  ;;  %v3523_v56 = vld [vmem:[#allocation8 + $0x2b8] sm:$0xff]  ;;  %v2107_v28 = vrot.slane %v11011_v27, %v13006_v43  ;;  %9043 = vtanh.f32 %v5212_v16 }
 0x567   :  { %5157 = vmatprep.subr.bf16.mxu1 %v11020_v61  ;;  %5311 = vmatpush2.bf16.msra.mxu0 %v10253_v0  ;;  %13423 = vst [vmem:[#allocation270_spill] sm:$0xff] %v11048_v7  ;;  %v3531_v0 = vld [vmem:[#allocation8 + $0x2f8] sm:$0xff]  ;;  %13424 = vst [vmem:[#allocation271_spill] sm:$0xff] %v11054_v45 }
 0x568   :  { %5312 = vmatprep.subr.bf16.mxu0 %v10256_v6  ;;  %v3527_v6 = vld [vmem:[#allocation8 + $0x2d8] sm:$0xff]  ;;  %v5213_v34 = vmul.f32 0.5, %v4369_v29  ;;  %v11077_v16 = vadd.f32 %v10450_v42, %v2107_v28 }
 0x569   :  { %v11058_v33 = vcombine.high %v3527_v6, %v3531_v0  ;;  %v11066_v18 = vcombine.low %v3527_v6, %v3531_v0 }
 0x56a   :  { %5158 = vmatpush2.bf16.msra.mxu1 %v11027_v12  ;;  %9045 = vtanh.f32 %v5213_v34  ;;  %13428 = vst [vmem:[#allocation275_spill] sm:$0xff] %v11077_v16  ;;  %v11083_v34 = vadd.f32 %v10458_v13, %v2111_v52 }
 0x56b   :  { %5159 = vmatprep.subr.bf16.mxu1 %v11033_v38  ;;  %5313 = vmatpush2.bf16.msra.mxu0 %v10265_v20  ;;  %13425 = vst [vmem:[#allocation272_spill] sm:$0xff] %v11058_v33  ;;  %v3519_v20 = vld [vmem:[#allocation8 + $0x298] sm:$0xff]  ;;  %13426 = vst [vmem:[#allocation273_spill] sm:$0xff] %v11066_v18 }
 0x56c   :  { %5314 = vmatprep.subr.bf16.mxu0 %v10268_v22  ;;  %v11072_v29 = vcombine.high %v3519_v20, %v3523_v56  ;;  %v11080_v6 = vcombine.low %v3519_v20, %v3523_v56  ;;  %13430 = vst [vmem:[#allocation277_spill] sm:$0xff] %v11083_v34  ;;  %v3503_v22 = vld [vmem:[#allocation8 + $0x218] sm:$0xff] }
 0x56e   :  { %5160 = vmatpush2.bf16.msra.mxu1 %v11043_v26  ;;  %13427 = vst [vmem:[#allocation274_spill] sm:$0xff] %v11072_v29  ;;  %13429 = vst [vmem:[#allocation276_spill] sm:$0xff] %v11080_v6 }
 0x56f   :  { %5161 = vmatprep.subr.bf16.mxu1 %v11048_v7  ;;  %5315 = vmatpush2.bf16.msra.mxu0 %v10277_v35  ;;  %v3515_v35 = vld [vmem:[#allocation8 + $0x278] sm:$0xff] }
 0x570   :  { %5316 = vmatprep.subr.bf16.mxu0 %v10280_v39  ;;  %v3511_v39 = vld [vmem:[#allocation8 + $0x258] sm:$0xff] }
 0x571   :  { %v11087_v43 = vcombine.high %v3511_v39, %v3515_v35  ;;  %v11091_v28 = vcombine.low %v3511_v39, %v3515_v35 }
 0x572   :  { %5162 = vmatpush2.bf16.msra.mxu1 %v11054_v45 }
 0x573   :  { %5163 = vmatprep.subr.bf16.mxu1 %v11058_v33  ;;  %5317 = vmatpush2.bf16.msra.mxu0 %v10289_v51  ;;  %13431 = vst [vmem:[#allocation278_spill] sm:$0xff] %v11087_v43  ;;  %13432 = vst [vmem:[#allocation279_spill] sm:$0xff] %v11091_v28  ;;  %v9044_v52 = vpop.eup %9043 }
 0x574   :  { %5368 = vmatprep.subr.bf16.mxu0 %v10292_v58  ;;  %v3507_v58 = vld [vmem:[#allocation8 + $0x238] sm:$0xff] }
 0x575   :  { %v11094_v20 = vcombine.high %v3503_v22, %v3507_v58 }
 0x576   :  { %v4320_v0 = vpop.f32.mrf.mxu0  ;;  %5164 = vmatpush2.bf16.msra.mxu1 %v11066_v18 }
 0x577   :  { %v4372_v40 = vadd.f32 %v4320_v0, %v11077_v16  ;;  %5165 = vmatprep.subr.bf16.mxu1 %v11072_v29  ;;  %13433 = vst [vmem:[#allocation280_spill] sm:$0xff] %v11094_v20  ;;  %v11097_v0 = vcombine.low %v3503_v22, %v3507_v58  ;;  %v13435_v58 = vld [vmem:[#allocation63_spill] sm:$0xff] }
 0x578   :  { %v4322_v51 = vpop.f32.mrf.mxu0 }
 0x579   :  { %9047 = vtanh.f32 %v4372_v40  ;;  %v4373_v42 = vadd.f32 %v4322_v51, %v11083_v34  ;;  %13434 = vst [vmem:[#allocation281_spill] sm:$0xff] %v11097_v0  ;;  %v9046_v40 = vpop.eup %9045  ;;  %v5216_v51 = vadd.f32 1.0, %v9044_v52 }
 0x57a   :  { %5166 = vmatpush2.bf16.msra.mxu1 %v11080_v6  ;;  %v4324_v56 = vpop.f32.mrf.mxu0  ;;  %v5217_v35 = vadd.f32 1.0, %v9046_v40  ;;  %v13436_v40 = vld [vmem:[#allocation65_spill] sm:$0xff] }
 0x57b   :  { %9049 = vtanh.f32 %v4373_v42  ;;  %5167 = vmatprep.subr.bf16.mxu1 %v11087_v43  ;;  %v5218_v39 = vmul.f32 0.5, %v5216_v51  ;;  %v13437_v51 = vld [vmem:[#allocation67_spill] sm:$0xff]  ;;  %v13459_v43 = vld [vmem:[#allocation101_spill] sm:$0xff] }
 0x57c   :  { %v4325_v13 = vpop.f32.mrf.mxu0 }
 0x57d   :  { %v5219_v13 = vmul.f32 0.5, %v5217_v35  ;;  %v13441_v35 = vld [vmem:[#allocation75_spill] sm:$0xff] }
 0x57e   :  { %5168 = vmatpush2.bf16.msra.mxu1 %v11091_v28  ;;  %v13457_v28 = vld [vmem:[#allocation97_spill] sm:$0xff] }
 0x57f   :  { %5169 = vmatprep.subr.bf16.mxu1 %v11094_v20 }
 0x582   :  { %5170 = vmatpush2.bf16.msra.mxu1 %v11097_v0  ;;  %v13438_v0 = vld [vmem:[#allocation69_spill] sm:$0xff] }
 0x583   :  { %5327 = vmatprep.subr.bf16.mxu1 %v10334_v24 }
 0x585   :  { %v4279_v42 = vpop.f32.mrf.mxu1  ;;  %5172 = vmatmul.mubr.bf16.vlgmr.msra.gmra.mxu1 %v13218_v60  ;;  %v13439_v60 = vld [vmem:[#allocation71_spill] sm:$0xff] }
 0x586   :  { %v9048_v56 = vpop.eup %9047  ;;  %5328 = vmatpush1.bf16.msra.mxu1 %v10339_v15  ;;  %v13440_v15 = vld [vmem:[#allocation73_spill] sm:$0xff] }
 0x587   :  { %v11104_v34 = vmul.f32 %v9048_v56, %v5218_v39  ;;  %v4281_v22 = vpop.f32.mrf.mxu1  ;;  %5329 = vmatprep.subr.bf16.mxu1 %v13435_v58  ;;  %v13442_v39 = vld [vmem:[#allocation77_spill] sm:$0xff]  ;;  %v13443_v56 = vld [vmem:[#allocation79_spill] sm:$0xff] }
 0x588   :  { %v9050_v16 = vpop.eup %9049  ;;  %v13456_v58 = vld [vmem:[#allocation95_spill] sm:$0xff] }
 0x589   :  { %v11107_v52 = vmul.f32 %v9050_v16, %v5219_v13  ;;  %v4283_v11 = vpop.f32.mrf.mxu1  ;;  %v13444_v16 = vld [vmem:[#allocation81_spill] sm:$0xff] }
 0x58a   :  { %5330 = vmatpush1.bf16.msra.mxu1 %v13436_v40  ;;  %v13445_v11 = vld [vmem:[#allocation83_spill] sm:$0xff]  ;;  %v13446_v13 = vld [vmem:[#allocation85_spill] sm:$0xff] }
 0x58b   :  { %v4284_v24 = vpop.f32.mrf.mxu1  ;;  %5331 = vmatprep.subr.bf16.mxu1 %v13437_v51  ;;  %v13447_v51 = vld [vmem:[#allocation87_spill] sm:$0xff] }
 0x58c   :  { %v13030_v24 = vsub.s32 3, %v9476_v8 }
 0x58e   :  { %5332 = vmatpush1.bf16.msra.mxu1 %v13438_v0  ;;  %v13448_v0 = vld [vmem:[#allocation18_spill] sm:$0xff] }
 0x58f   :  { %5333 = vmatprep.subr.bf16.mxu1 %v13439_v60  ;;  %v2099_v60 = vrot.slane %v11011_v27, %v13448_v0 }
 0x592   :  { %5334 = vmatpush1.bf16.msra.mxu1 %v13440_v15 }
 0x593   :  { %5335 = vmatprep.subr.bf16.mxu1 %v13441_v35  ;;  %v2103_v35 = vrot.slane %v11011_v27, %v13030_v24 }
 0x596   :  { %5336 = vmatpush1.bf16.msra.mxu1 %v13442_v39  ;;  %v13449_v39 = vld [vmem:[#allocation89_spill] sm:$0xff] }
 0x597   :  { %5337 = vmatprep.subr.bf16.mxu1 %v13443_v56  ;;  %v13450_v56 = vld [vmem:[#allocation91_spill] sm:$0xff] }
 0x59a   :  { %5338 = vmatpush1.bf16.msra.mxu1 %v13444_v16  ;;  %v13451_v16 = vld [vmem:[#allocation137_spill] sm:$0xff] }
 0x59b   :  { %5339 = vmatprep.subr.bf16.mxu1 %v13445_v11  ;;  %v11130_v15 = vadd.f32 %v13451_v16, %v2099_v60  ;;  %v13453_v11 = vld [vmem:[#allocation140_spill] sm:$0xff]  ;;  %v13460_v60 = vld [vmem:[#allocation103_spill] sm:$0xff] }
 0x59c   :  { %v11133_v40 = vadd.f32 %v13453_v11, %v2103_v35  ;;  %v13461_v35 = vld [vmem:[#allocation105_spill] sm:$0xff]  ;;  %v13462_v16 = vld [vmem:[#allocation107_spill] sm:$0xff] }
 0x59d   :  { %13452 = vst [vmem:[#allocation18_spill] sm:$0xff] %v11130_v15  ;;  %v13463_v11 = vld [vmem:[#allocation109_spill] sm:$0xff] }
 0x59e   :  { %5340 = vmatpush1.bf16.msra.mxu1 %v13446_v13  ;;  %13454 = vst [vmem:[#allocation137_spill] sm:$0xff] %v11133_v40  ;;  %v13455_v13 = vld [vmem:[#allocation93_spill] sm:$0xff]  ;;  %v4371_v20 = vadd.f32 %v4281_v22, %v11133_v40  ;;  %v13464_v22 = vld [vmem:[#allocation111_spill] sm:$0xff] }
 0x59f   :  { %5341 = vmatprep.subr.bf16.mxu1 %v13447_v51  ;;  %v4370_v51 = vadd.f32 %v4279_v42, %v11130_v15  ;;  %v13465_v40 = vld [vmem:[#allocation113_spill] sm:$0xff]  ;;  %v13466_v15 = vld [vmem:[#allocation115_spill] sm:$0xff] }
 0x5a1   :  { %v5220_v24 = vmul.f32 0.5, %v4370_v51 }
 0x5a2   :  { %5342 = vmatpush1.bf16.msra.mxu1 %v13449_v39  ;;  %v13458_v39 = vld [vmem:[#allocation99_spill] sm:$0xff] }
 0x5a3   :  { %5343 = vmatprep.subr.bf16.mxu1 %v13450_v56  ;;  %v5221_v56 = vmul.f32 0.5, %v4371_v20  ;;  %9051 = vtanh.f32 %v5220_v24 }
 0x5a5   :  { %9053 = vtanh.f32 %v5221_v56  ;;  %v13039_v56 = vsub.s32 6, %v9476_v8 }
 0x5a6   :  { %5344 = vmatpush2.bf16.msra.mxu1 %v13455_v13 }
 0x5a7   :  { %5345 = vmatprep.subr.bf16.mxu1 %v13456_v58  ;;  %v13471_v58 = vld [vmem:[#allocation181_spill] sm:$0xff] }
 0x5aa   :  { %5346 = vmatpush2.bf16.msra.mxu1 %v13457_v28  ;;  %v13470_v28 = vld [vmem:[#allocation123_spill] sm:$0xff] }
 0x5ab   :  { %5347 = vmatprep.subr.bf16.mxu1 %v13458_v39 }
 0x5ae   :  { %5348 = vmatpush2.bf16.msra.mxu1 %v13459_v43  ;;  %v13467_v43 = vld [vmem:[#allocation117_spill] sm:$0xff] }
 0x5af   :  { %5349 = vmatprep.subr.bf16.mxu1 %v13460_v60 }
 0x5b0   :  { %v9052_v24 = vpop.eup %9051 }
 0x5b1   :  { %v5224_v39 = vadd.f32 1.0, %v9052_v24 }
 0x5b2   :  { %5350 = vmatpush2.bf16.msra.mxu1 %v13461_v35  ;;  %v9054_v35 = vpop.eup %9053 }
 0x5b3   :  { %5351 = vmatprep.subr.bf16.mxu1 %v13462_v16  ;;  %v13046_v16 = vsub.s32 7, %v9476_v8 }
 0x5b6   :  { %v11145_v42 = vpop.f32.mrf.mxu0  ;;  %5352 = vmatpush2.bf16.msra.mxu1 %v13463_v11  ;;  %v13468_v11 = vld [vmem:[#allocation119_spill] sm:$0xff] }
 0x5b7   :  { %5353 = vmatprep.subr.bf16.mxu1 %v13464_v22  ;;  %v2115_v22 = vrot.slane %v11011_v27, %v13039_v56 }
 0x5b8   :  { %v11149_v51 = vpop.f32.mrf.mxu0 }
 0x5b9   :  { %v11166_v13 = vadd.f32 %v13471_v58, %v2115_v22 }
 0x5ba   :  { %5354 = vmatpush2.bf16.msra.mxu1 %v13465_v40  ;;  %v5054_v20 = vpop.f32.mrf.mxu0  ;;  %v5225_v40 = vadd.f32 1.0, %v9054_v35 }
 0x5bb   :  { %5355 = vmatprep.subr.bf16.mxu1 %v13466_v15  ;;  %v2119_v20 = vrot.slane %v11011_v27, %v13046_v16  ;;  %v13469_v15 = vld [vmem:[#allocation121_spill] sm:$0xff]  ;;  %13472 = vst [vmem:[#allocation140_spill] sm:$0xff] %v11166_v13 }
 0x5bc   :  { %v5055_v60 = vpop.f32.mrf.mxu0  ;;  %v5227_v24 = vmul.f32 0.5, %v5225_v40 }
 0x5bd   :  { %v5226_v60 = vmul.f32 0.5, %v5224_v39 }
 0x5be   :  { %5356 = vmatpush2.bf16.msra.mxu1 %v13467_v43  ;;  %v5239_v18 = vmul.f32 0.0, %v5227_v24  ;;  %v11194_v24 = vld [vmem:[%s12558_s12 + $0x8] sm:$0xff] }
 0x5bf   :  { %5357 = vmatprep.subr.bf16.mxu1 %v13468_v11  ;;  %v13473_v11 = vld [vmem:[#allocation184_spill] sm:$0xff]  ;;  %v5238_v35 = vmul.f32 0.0, %v5226_v60 }
 0x5c0   :  { %v11169_v6 = vadd.f32 %v13473_v11, %v2119_v20  ;;  %v11177_v40 = vadd.f32 %v11107_v52, %v5239_v18 }
 0x5c2   :  { %5358 = vmatpush2.bf16.msra.mxu1 %v13469_v15  ;;  %13474 = vst [vmem:[#allocation181_spill] sm:$0xff] %v11169_v6 }
 0x5c3   :  { %5409 = vmatprep.subr.bf16.mxu1 %v13470_v28  ;;  %v11174_v28 = vadd.f32 %v11104_v34, %v5238_v35  ;;  %v13477_v35 = vld [vmem:[#allocation52_spill] sm:$0xff] }
 0x5c5   :  { %v4361_v43 = vpop.f32.mrf.mxu1 }
 0x5c6   :  { %v4374_v56 = vadd.f32 %v4361_v43, %v11166_v13 }
 0x5c7   :  { %v4363_v29 = vpop.f32.mrf.mxu1 }
 0x5c8   :  { %v5230_v33 = vmul.f32 0.5, %v4374_v56  ;;  %v4375_v27 = vadd.f32 %v4363_v29, %v11169_v6 }
 0x5c9   :  { %v4365_v16 = vpop.f32.mrf.mxu1 }
 0x5ca   :  { %9055 = vtanh.f32 %v5230_v33  ;;  %v5231_v39 = vmul.f32 0.5, %v4375_v27  ;;  %v13478_v27 = vld [vmem:[#allocation125_spill] sm:$0xff] }
 0x5cb   :  { %v4366_v58 = vpop.f32.mrf.mxu1 }
 0x5cc   :  { %9057 = vtanh.f32 %v5231_v39  ;;  %v2123_v39 = vrot.slane %v11194_v24, %v9546_v23  ;;  %v13479_v58 = vld [vmem:[#allocation53_spill] sm:$0xff]  ;;  %v13485_v23 = vld [vmem:[#allocation55_spill] sm:$0xff] }
 0x5cd   :  { %9059 = vtanh.f32 %v11174_v28 }
 0x5ce   :  { %9061 = vtanh.f32 %v11177_v40 }
 0x5d7   :  { %v9056_v43 = vpop.eup %9055 }
 0x5d8   :  { %v5234_v11 = vadd.f32 1.0, %v9056_v43  ;;  %v13480_v43 = vld [vmem:[#allocation127_spill] sm:$0xff] }
 0x5d9   :  { %v9058_v22 = vpop.eup %9057 }
 0x5da   :  { %v5236_v56 = vmul.f32 0.5, %v5234_v11  ;;  %v5235_v29 = vadd.f32 1.0, %v9058_v22  ;;  %v9060_v16 = vpop.eup %9059  ;;  %v2127_v11 = vrot.slane %v11194_v24, %v9552_v25  ;;  %v5188_v22 = vrot.slane %v11145_v42, 2  ;;  %v13490_v42 = vld [vmem:[#allocation133_spill] sm:$0xff] }
 0x5db   :  { %v9062_v20 = vpop.eup %9061 }
 0x5dc   :  { %v5237_v33 = vmul.f32 0.5, %v5235_v29  ;;  %v11181_v60 = vmul.f32 %v9060_v16, %v5236_v56  ;;  %v13481_v56 = vld [vmem:[#allocation54_spill] sm:$0xff]  ;;  %v13482_v29 = vld [vmem:[#allocation129_spill] sm:$0xff] }
 0x5dd   :  { %v13483_v16 = vld [vmem:[#allocation138_spill] sm:$0xff] }
 0x5de   :  { %13475 = vst [vmem:[#allocation184_spill] sm:$0xff] %v11181_v60  ;;  %v11183_v34 = vmul.f32 %v9062_v20, %v5237_v33  ;;  %v11189_v52 = vpack.c.bf16 %v11181_v60, %v11181_v60  ;;  %v11210_v33 = vadd.f32 %v13483_v16, %v2123_v39  ;;  %v5189_v20 = vrot.slane %v11149_v51, 2  ;;  %v13492_v39 = vld [vmem:[#allocation135_spill] sm:$0xff]  ;;  %v13493_v16 = vld [vmem:[#allocation58_spill] sm:$0xff] }
 0x5e0   :  { %13476 = vst [vmem:[#allocation282_spill] sm:$0xff] %v11183_v34  ;;  %v5285_v18 = vpack.c.bf16 %v11183_v34, %v11183_v34  ;;  %13484 = vst [vmem:[#allocation52_spill] sm:$0xff] %v11210_v33  ;;  %v13487_v34 = vld [vmem:[#allocation141_spill] sm:$0xff]  ;;  %v5204_v25 = vadd.f32 %v5188_v22, %v11210_v33  ;;  %v13497_v22 = vsub.s32 4, %v9476_v8 }
 0x5e1   :  { %v11216_v60 = vadd.f32 %v13487_v34, %v2127_v11  ;;  %v13495_v34 = vld [vmem:[#allocation60_spill] sm:$0xff]  ;;  %v13496_v11 = vld [vmem:[#allocation143_spill] sm:$0xff] }
 0x5e2   :  { %5318 = vmatprep.mubr.bf16.mxu0 %v5285_v18  ;;  %5359 = vmatprep.mubr.bf16.mxu1 %v5285_v18  ;;  %v5248_v51 = vmul.f32 0.5, %v5204_v25  ;;  %v2139_v33 = vrot.slane %v11194_v24, %v13497_v22  ;;  %v13500_v25 = vsub.s32 5, %v9476_v8 }
 0x5e3   :  { %5319 = vmatmul.mubr.bf16.vlgmr.msra.gmra.mxu0 %v11189_v52  ;;  %5360 = vmatmul.mubr.bf16.vlgmr.msra.gmra.mxu1 %v11189_v52  ;;  %13488 = vst [vmem:[#allocation138_spill] sm:$0xff] %v11216_v60 }
 0x5e4   :  { %5369 = vmatpush1.bf16.msra.mxu0 %v13477_v35  ;;  %5410 = vmatpush1.bf16.msra.mxu1 %v13478_v27  ;;  %9063 = vtanh.f32 %v5248_v51  ;;  %v13505_v51 = vld [vmem:[#allocation66_spill] sm:$0xff]  ;;  %v13529_v27 = vld [vmem:[#allocation88_spill] sm:$0xff] }
 0x5e5   :  { %5400 = vmatprep.mubr.bf16.mxu0 %v5285_v18  ;;  %5441 = vmatprep.mubr.bf16.mxu1 %v5285_v18  ;;  %v13486_v18 = vld [vmem:[#allocation131_spill] sm:$0xff] }
 0x5e6   :  { %5370 = vmatprep.subr.bf16.mxu0 %v13479_v58  ;;  %5411 = vmatprep.subr.bf16.mxu1 %v13480_v43  ;;  %v13489_v43 = vld [vmem:[#allocation56_spill] sm:$0xff] }
 0x5e8   :  { %5371 = vmatpush1.bf16.msra.mxu0 %v13481_v56  ;;  %5412 = vmatpush1.bf16.msra.mxu1 %v13482_v29  ;;  %v5205_v29 = vadd.f32 %v5189_v20, %v11216_v60  ;;  %v13491_v56 = vld [vmem:[#allocation57_spill] sm:$0xff]  ;;  %v13498_v20 = vld [vmem:[#allocation62_spill] sm:$0xff] }
 0x5e9   :  { %5372 = vmatprep.subr.bf16.mxu0 %v13485_v23  ;;  %5413 = vmatprep.subr.bf16.mxu1 %v13486_v18  ;;  %v13494_v23 = vld [vmem:[#allocation139_spill] sm:$0xff]  ;;  %v13499_v60 = vld [vmem:[#allocation145_spill] sm:$0xff] }
 0x5ea   :  { %v5249_v18 = vmul.f32 0.5, %v5205_v29  ;;  %v13502_v29 = vld [vmem:[#allocation147_spill] sm:$0xff] }
 0x5ec   :  { %5373 = vmatpush1.bf16.msra.mxu0 %v13489_v43  ;;  %5414 = vmatpush1.bf16.msra.mxu1 %v13490_v42  ;;  %9065 = vtanh.f32 %v5249_v18  ;;  %v13509_v43 = vld [vmem:[#allocation68_spill] sm:$0xff] }
 0x5ed   :  { %5374 = vmatprep.subr.bf16.mxu0 %v13491_v56  ;;  %5415 = vmatprep.subr.bf16.mxu1 %v13492_v39 }
 0x5f0   :  { %5375 = vmatpush1.bf16.msra.mxu0 %v13493_v16  ;;  %5416 = vmatpush1.bf16.msra.mxu1 %v13494_v23  ;;  %v2143_v16 = vrot.slane %v11194_v24, %v13500_v25  ;;  %v13501_v23 = vld [vmem:[#allocation64_spill] sm:$0xff] }
 0x5f1   :  { %5376 = vmatprep.subr.bf16.mxu0 %v13495_v34  ;;  %5417 = vmatprep.subr.bf16.mxu1 %v13496_v11  ;;  %v13503_v11 = vld [vmem:[#allocation182_spill] sm:$0xff] }
 0x5f2   :  { %v11239_v39 = vadd.f32 %v13503_v11, %v2139_v33  ;;  %v13512_v11 = vld [vmem:[#allocation153_spill] sm:$0xff] }
 0x5f4   :  { %5377 = vmatpush1.bf16.msra.mxu0 %v13498_v20  ;;  %5418 = vmatpush1.bf16.msra.mxu1 %v13499_v60  ;;  %13504 = vst [vmem:[#allocation141_spill] sm:$0xff] %v11239_v39  ;;  %v13506_v20 = vld [vmem:[#allocation149_spill] sm:$0xff]  ;;  %v13507_v60 = vld [vmem:[#allocation187_spill] sm:$0xff] }
 0x5f5   :  { %5378 = vmatprep.subr.bf16.mxu0 %v13501_v23  ;;  %5419 = vmatprep.subr.bf16.mxu1 %v13502_v29  ;;  %v11244_v42 = vadd.f32 %v13507_v60, %v2143_v16  ;;  %v13510_v23 = vld [vmem:[#allocation151_spill] sm:$0xff]  ;;  %v13515_v16 = vld [vmem:[#allocation74_spill] sm:$0xff] }
 0x5f6   :  { %v5132_v34 = vpop.f32.mrf.mxu0  ;;  %v13514_v60 = vld [vmem:[#allocation155_spill] sm:$0xff] }
 0x5f7   :  { %v5192_v56 = vrot.slane %v5132_v34, 2  ;;  %13508 = vst [vmem:[#allocation182_spill] sm:$0xff] %v11244_v42  ;;  %v13511_v34 = vld [vmem:[#allocation70_spill] sm:$0xff] }
 0x5f8   :  { %v5134_v22 = vpop.f32.mrf.mxu0  ;;  %5379 = vmatpush1.bf16.msra.mxu0 %v13505_v51  ;;  %5420 = vmatpush1.bf16.msra.mxu1 %v13506_v20  ;;  %v13513_v20 = vld [vmem:[#allocation72_spill] sm:$0xff] }
 0x5f9   :  { %v5208_v25 = vadd.f32 %v5192_v56, %v11239_v39  ;;  %v5193_v18 = vrot.slane %v5134_v22, 2  ;;  %5380 = vmatprep.subr.bf16.mxu0 %v13509_v43  ;;  %5421 = vmatprep.subr.bf16.mxu1 %v13510_v23  ;;  %v9064_v56 = vpop.eup %9063  ;;  %v13516_v22 = vld [vmem:[#allocation157_spill] sm:$0xff]  ;;  %v13517_v39 = vld [vmem:[#allocation76_spill] sm:$0xff] }
 0x5fa   :  { %v5136_v29 = vpop.f32.mrf.mxu0 }
 0x5fb   :  { %9067 = vtanh.f32 %v5208_v25  ;;  %v5209_v33 = vadd.f32 %v5193_v18, %v11244_v42  ;;  %v13518_v29 = vld [vmem:[#allocation159_spill] sm:$0xff]  ;;  %v9066_v25 = vpop.eup %9065  ;;  %v5252_v18 = vadd.f32 1.0, %v9064_v56  ;;  %v13519_v42 = vld [vmem:[#allocation78_spill] sm:$0xff] }
 0x5fc   :  { %5381 = vmatpush1.bf16.msra.mxu0 %v13511_v34  ;;  %5422 = vmatpush1.bf16.msra.mxu1 %v13512_v11  ;;  %v5137_v51 = vpop.f32.mrf.mxu0  ;;  %v13520_v11 = vld [vmem:[#allocation161_spill] sm:$0xff] }
 0x5fd   :  { %9069 = vtanh.f32 %v5209_v33  ;;  %5382 = vmatprep.subr.bf16.mxu0 %v13513_v20  ;;  %5423 = vmatprep.subr.bf16.mxu1 %v13514_v60  ;;  %v5253_v51 = vadd.f32 1.0, %v9066_v25  ;;  %v13521_v20 = vld [vmem:[#allocation80_spill] sm:$0xff]  ;;  %v13522_v60 = vld [vmem:[#allocation163_spill] sm:$0xff]  ;;  %v5254_v34 = vmul.f32 0.5, %v5252_v18  ;;  %v13528_v18 = vld [vmem:[#allocation169_spill] sm:$0xff] }
 0x600   :  { %5383 = vmatpush1.bf16.msra.mxu0 %v13515_v16  ;;  %5424 = vmatpush1.bf16.msra.mxu1 %v13516_v22  ;;  %v13523_v22 = vld [vmem:[#allocation82_spill] sm:$0xff] }
 0x601   :  { %5384 = vmatprep.subr.bf16.mxu0 %v13517_v39  ;;  %5425 = vmatprep.subr.bf16.mxu1 %v13518_v29  ;;  %v13524_v39 = vld [vmem:[#allocation165_spill] sm:$0xff]  ;;  %v5255_v29 = vmul.f32 0.5, %v5253_v51  ;;  %v13531_v51 = vld [vmem:[#allocation90_spill] sm:$0xff] }
 0x604   :  { %5385 = vmatpush2.bf16.msra.mxu0 %v13519_v42  ;;  %5426 = vmatpush2.bf16.msra.mxu1 %v13520_v11  ;;  %v13525_v42 = vld [vmem:[#allocation84_spill] sm:$0xff]  ;;  %v13526_v11 = vld [vmem:[#allocation167_spill] sm:$0xff] }
 0x605   :  { %v5091_v33 = vpop.f32.mrf.mxu1  ;;  %5386 = vmatprep.subr.bf16.mxu0 %v13521_v20  ;;  %5427 = vmatprep.subr.bf16.mxu1 %v13522_v60  ;;  %v13527_v60 = vld [vmem:[#allocation86_spill] sm:$0xff] }
 0x607   :  { %v5093_v16 = vpop.f32.mrf.mxu1 }
 0x608   :  { %v9068_v23 = vpop.eup %9067  ;;  %5387 = vmatpush2.bf16.msra.mxu0 %v13523_v22  ;;  %5428 = vmatpush2.bf16.msra.mxu1 %v13524_v39  ;;  %v13530_v22 = vld [vmem:[#allocation171_spill] sm:$0xff] }
 0x609   :  { %v11264_v43 = vmul.f32 %v9068_v23, %v5254_v34  ;;  %v5095_v56 = vpop.f32.mrf.mxu1  ;;  %5388 = vmatprep.subr.bf16.mxu0 %v13525_v42  ;;  %5429 = vmatprep.subr.bf16.mxu1 %v13526_v11  ;;  %v13532_v23 = vld [vmem:[#allocation173_spill] sm:$0xff]  ;;  %v13533_v34 = vld [vmem:[#allocation92_spill] sm:$0xff]  ;;  %v13535_v11 = vld [vmem:[#allocation94_spill] sm:$0xff] }
 0x60a   :  { %v9070_v25 = vpop.eup %9069  ;;  %v13534_v56 = vld [vmem:[#allocation175_spill] sm:$0xff]  ;;  %v13560_v42 = vld [vmem:[#allocation114_spill] sm:$0xff] }
 0x60b   :  { %v11268_v58 = vmul.f32 %v9070_v25, %v5255_v29  ;;  %v5096_v20 = vpop.f32.mrf.mxu1  ;;  %v13536_v29 = vld [vmem:[#allocation177_spill] sm:$0xff]  ;;  %v13538_v25 = vld [vmem:[#allocation179_spill] sm:$0xff] }
 0x60c   :  { %5389 = vmatpush2.bf16.msra.mxu0 %v13527_v60  ;;  %5430 = vmatpush2.bf16.msra.mxu1 %v13528_v18  ;;  %v13537_v20 = vld [vmem:[#allocation96_spill] sm:$0xff]  ;;  %v13539_v18 = vld [vmem:[#allocation98_spill] sm:$0xff] }
 0x60d   :  { %5390 = vmatprep.subr.bf16.mxu0 %v13529_v27  ;;  %5431 = vmatprep.subr.bf16.mxu1 %v13530_v22  ;;  %v13540_v27 = vld [vmem:[#allocation183_spill] sm:$0xff]  ;;  %v13541_v22 = vld [vmem:[#allocation100_spill] sm:$0xff] }
 0x610   :  { %5391 = vmatpush2.bf16.msra.mxu0 %v13531_v51  ;;  %5432 = vmatpush2.bf16.msra.mxu1 %v13532_v23  ;;  %v13542_v51 = vld [vmem:[#allocation186_spill] sm:$0xff] }
 0x611   :  { %5392 = vmatprep.subr.bf16.mxu0 %v13533_v34  ;;  %5433 = vmatprep.subr.bf16.mxu1 %v13534_v56  ;;  %v13543_v23 = vld [vmem:[#allocation102_spill] sm:$0xff]  ;;  %v13544_v34 = vld [vmem:[#allocation189_spill] sm:$0xff]  ;;  %v13545_v56 = vld [vmem:[#allocation104_spill] sm:$0xff] }
 0x614   :  { %5393 = vmatpush2.bf16.msra.mxu0 %v13535_v11  ;;  %5434 = vmatpush2.bf16.msra.mxu1 %v13536_v29  ;;  %v13546_v11 = vld [vmem:[#allocation191_spill] sm:$0xff]  ;;  %v13547_v29 = vld [vmem:[#allocation106_spill] sm:$0xff] }
 0x615   :  { %5394 = vmatprep.subr.bf16.mxu0 %v13537_v20  ;;  %5435 = vmatprep.subr.bf16.mxu1 %v13538_v25  ;;  %v13548_v20 = vld [vmem:[#allocation193_spill] sm:$0xff]  ;;  %v13549_v25 = vld [vmem:[#allocation108_spill] sm:$0xff] }
 0x618   :  { %5395 = vmatpush2.bf16.msra.mxu0 %v13539_v18  ;;  %5436 = vmatpush2.bf16.msra.mxu1 %v13540_v27  ;;  %v13550_v18 = vld [vmem:[#allocation195_spill] sm:$0xff] }
 0x619   :  { %5396 = vmatprep.subr.bf16.mxu0 %v13541_v22  ;;  %5437 = vmatprep.subr.bf16.mxu1 %v13542_v51  ;;  %v2131_v22 = vrot.slane %v11194_v24, %v13448_v0  ;;  %v5191_v0 = vrot.slane %v5093_v16, 2  ;;  %v13558_v27 = vld [vmem:[#allocation227_spill] sm:$0xff]  ;;  %v13566_v16 = vld [vmem:[#allocation120_spill] sm:$0xff] }
 0x61c   :  { %5397 = vmatpush2.bf16.msra.mxu0 %v13543_v23  ;;  %5438 = vmatpush2.bf16.msra.mxu1 %v13544_v34  ;;  %v13551_v34 = vsub.s32 3, %v9476_v8  ;;  %v13552_v23 = vld [vmem:[#allocation110_spill] sm:$0xff] }
 0x61d   :  { %5398 = vmatprep.subr.bf16.mxu0 %v13545_v56  ;;  %5439 = vmatprep.subr.bf16.mxu1 %v13546_v11  ;;  %v5190_v11 = vrot.slane %v5091_v33, 2  ;;  %v13561_v33 = vld [vmem:[#allocation201_spill] sm:$0xff] }
 0x61e   :  { %v2135_v56 = vrot.slane %v11194_v24, %v13551_v34  ;;  %v13562_v34 = vld [vmem:[#allocation116_spill] sm:$0xff] }
 0x620   :  { %5399 = vmatpush2.bf16.msra.mxu0 %v13547_v29  ;;  %5440 = vmatpush2.bf16.msra.mxu1 %v13548_v20  ;;  %v13553_v29 = vld [vmem:[#allocation197_spill] sm:$0xff]  ;;  %v13554_v20 = vld [vmem:[#allocation112_spill] sm:$0xff]  ;;  %v11309_v60 = vadd.f32 %v13558_v27, %v2135_v56  ;;  %v13567_v27 = vld [vmem:[#allocation207_spill] sm:$0xff] }
 0x621   :  { %5490 = vmatprep.subr.bf16.mxu0 %v13549_v25  ;;  %5531 = vmatprep.subr.bf16.mxu1 %v13550_v18  ;;  %v13555_v25 = vld [vmem:[#allocation199_spill] sm:$0xff]  ;;  %v13556_v18 = vld [vmem:[#allocation225_spill] sm:$0xff] }
 0x622   :  { %v11306_v51 = vadd.f32 %v13556_v18, %v2131_v22  ;;  %13559 = vst [vmem:[#allocation225_spill] sm:$0xff] %v11309_v60  ;;  %v13565_v22 = vld [vmem:[#allocation205_spill] sm:$0xff]  ;;  %v13568_v18 = vld [vmem:[#allocation122_spill] sm:$0xff] }
 0x623   :  { %5401 = vmatmul.mubr.bf16.vlgmr.msra.gmra.mxu0 %v11189_v52  ;;  %5442 = vmatmul.mubr.bf16.vlgmr.msra.gmra.mxu1 %v11189_v52  ;;  %v13569_v56 = vld [vmem:[#allocation209_spill] sm:$0xff] }
 0x624   :  { %5491 = vmatpush1.bf16.msra.mxu0 %v13552_v23  ;;  %5532 = vmatpush1.bf16.msra.mxu1 %v13553_v29  ;;  %13557 = vst [vmem:[#allocation187_spill] sm:$0xff] %v11306_v51  ;;  %v5206_v52 = vadd.f32 %v5190_v11, %v11306_v51  ;;  %v13563_v29 = vld [vmem:[#allocation203_spill] sm:$0xff]  ;;  %v13564_v23 = vld [vmem:[#allocation118_spill] sm:$0xff]  ;;  %v13570_v51 = vld [vmem:[#allocation124_spill] sm:$0xff] }
 0x625   :  { %5492 = vmatprep.subr.bf16.mxu0 %v13554_v20  ;;  %5533 = vmatprep.subr.bf16.mxu1 %v13555_v25  ;;  %v5207_v20 = vadd.f32 %v5191_v0, %v11309_v60  ;;  %v13572_v0 = vld [vmem:[#allocation126_spill] sm:$0xff]  ;;  %v13574_v60 = vld [vmem:[#allocation128_spill] sm:$0xff] }
 0x626   :  { %v5256_v25 = vmul.f32 0.5, %v5206_v52  ;;  %v13573_v52 = vld [vmem:[#allocation213_spill] sm:$0xff] }
 0x627   :  { %v5257_v11 = vmul.f32 0.5, %v5207_v20  ;;  %v13577_v20 = vld [vmem:[#allocation217_spill] sm:$0xff] }
 0x628   :  { %5493 = vmatpush1.bf16.msra.mxu0 %v13560_v42  ;;  %5534 = vmatpush1.bf16.msra.mxu1 %v13561_v33  ;;  %9071 = vtanh.f32 %v5256_v25  ;;  %v13578_v25 = vld [vmem:[#allocation132_spill] sm:$0xff] }
 0x629   :  { %5494 = vmatprep.subr.bf16.mxu0 %v13562_v34  ;;  %5535 = vmatprep.subr.bf16.mxu1 %v13563_v29  ;;  %v13571_v29 = vld [vmem:[#allocation211_spill] sm:$0xff]  ;;  %9073 = vtanh.f32 %v5257_v11 }
 0x62c   :  { %5495 = vmatpush1.bf16.msra.mxu0 %v13564_v23  ;;  %5536 = vmatpush1.bf16.msra.mxu1 %v13565_v22  ;;  %v13589_v22 = vld [vmem:[#allocation146_spill] sm:$0xff] }
 0x62d   :  { %5496 = vmatprep.subr.bf16.mxu0 %v13566_v16  ;;  %5537 = vmatprep.subr.bf16.mxu1 %v13567_v27  ;;  %v13575_v16 = vld [vmem:[#allocation215_spill] sm:$0xff]  ;;  %v13576_v27 = vld [vmem:[#allocation130_spill] sm:$0xff] }
 0x630   :  { %5497 = vmatpush1.bf16.msra.mxu0 %v13568_v18  ;;  %5538 = vmatpush1.bf16.msra.mxu1 %v13569_v56  ;;  %v13579_v56 = vld [vmem:[#allocation219_spill] sm:$0xff] }
 0x631   :  { %5498 = vmatprep.subr.bf16.mxu0 %v13570_v51  ;;  %5539 = vmatprep.subr.bf16.mxu1 %v13571_v29  ;;  %v13580_v51 = vld [vmem:[#allocation134_spill] sm:$0xff]  ;;  %v13581_v29 = vld [vmem:[#allocation221_spill] sm:$0xff] }
 0x634   :  { %5499 = vmatpush1.bf16.msra.mxu0 %v13572_v0  ;;  %5540 = vmatpush1.bf16.msra.mxu1 %v13573_v52  ;;  %v13582_v0 = vld [vmem:[#allocation136_spill] sm:$0xff]  ;;  %v13583_v52 = vld [vmem:[#allocation223_spill] sm:$0xff] }
 0x635   :  { %5500 = vmatprep.subr.bf16.mxu0 %v13574_v60  ;;  %5541 = vmatprep.subr.bf16.mxu1 %v13575_v16  ;;  %v9072_v11 = vpop.eup %9071  ;;  %v13584_v16 = vld [vmem:[#allocation142_spill] sm:$0xff] }
 0x636   :  { %v9074_v60 = vpop.eup %9073  ;;  %v5260_v18 = vadd.f32 1.0, %v9072_v11 }
 0x638   :  { %5501 = vmatpush1.bf16.msra.mxu0 %v13576_v27  ;;  %5542 = vmatpush1.bf16.msra.mxu1 %v13577_v20  ;;  %v13585_v20 = vld [vmem:[#allocation144_spill] sm:$0xff]  ;;  %v13588_v27 = vsub.s32 7, %v9476_v8 }
 0x639   :  { %5502 = vmatprep.subr.bf16.mxu0 %v13578_v25  ;;  %5543 = vmatprep.subr.bf16.mxu1 %v13579_v56  ;;  %v13586_v25 = vld [vmem:[#allocation229_spill] sm:$0xff]  ;;  %v13587_v56 = vsub.s32 6, %v9476_v8 }
 0x63c   :  { %5503 = vmatpush1.bf16.msra.mxu0 %v13580_v51  ;;  %5544 = vmatpush1.bf16.msra.mxu1 %v13581_v29  ;;  %v2147_v51 = vrot.slane %v11194_v24, %v13587_v56  ;;  %v5261_v29 = vadd.f32 1.0, %v9074_v60 }
 0x63d   :  { %5504 = vmatprep.subr.bf16.mxu0 %v13582_v0  ;;  %5545 = vmatprep.subr.bf16.mxu1 %v13583_v52  ;;  %v2151_v0 = vrot.slane %v11194_v24, %v13588_v27  ;;  %v5262_v52 = vmul.f32 0.5, %v5260_v18 }
 0x63f   :  { %v11355_v8 = vadd.f32 %v10954_v4, %v2151_v0  ;;  %v5274_v24 = vmul.f32 0.0, %v5262_v52  ;;  %v13595_v52 = vld [vmem:[#allocation154_spill] sm:$0xff] }
 0x640   :  { %5505 = vmatpush1.bf16.msra.mxu0 %v13584_v16  ;;  %5546 = vmatpush1.bf16.msra.mxu1 %v10843_v41  ;;  %v13590_v41 = vld [vmem:[#allocation148_spill] sm:$0xff]  ;;  %v5263_v16 = vmul.f32 0.5, %v5261_v29 }
 0x641   :  { %5506 = vmatprep.subr.bf16.mxu0 %v13585_v20  ;;  %5547 = vmatprep.subr.bf16.mxu1 %v13586_v25  ;;  %v13591_v20 = vld [vmem:[#allocation233_spill] sm:$0xff]  ;;  %v11352_v25 = vadd.f32 %v10947_v10, %v2147_v51  ;;  %v11364_v4 = vadd.f32 %v11264_v43, %v5274_v24  ;;  %v13598_v43 = vld [vmem:[#allocation160_spill] sm:$0xff] }
 0x642   :  { %v5275_v10 = vmul.f32 0.0, %v5263_v16  ;;  %v13597_v16 = vld [vmem:[#allocation158_spill] sm:$0xff]  ;;  %v13600_v24 = vld [vmem:[#allocation241_spill] sm:$0xff] }
 0x643   :  { %13592 = vst [vmem:[#allocation227_spill] sm:$0xff] %v11352_v25 }
 0x644   :  { %5507 = vmatpush2.bf16.msra.mxu0 %v13589_v22  ;;  %5548 = vmatpush2.bf16.msra.mxu1 %v10857_v59  ;;  %v13593_v22 = vld [vmem:[#allocation150_spill] sm:$0xff]  ;;  %v13594_v59 = vld [vmem:[#allocation152_spill] sm:$0xff] }
 0x645   :  { %v5173_v11 = vpop.f32.mrf.mxu1  ;;  %5508 = vmatprep.subr.bf16.mxu0 %v13590_v41  ;;  %5549 = vmatprep.subr.bf16.mxu1 %v13591_v20 }
 0x646   :  { %v5194_v56 = vrot.slane %v5173_v11, 2 }
 0x647   :  { %v5175_v60 = vpop.f32.mrf.mxu1 }
 0x648   :  { %v5210_v27 = vadd.f32 %v5194_v56, %v11352_v25  ;;  %v5195_v18 = vrot.slane %v5175_v60, 2  ;;  %5509 = vmatpush2.bf16.msra.mxu0 %v13593_v22  ;;  %5550 = vmatpush2.bf16.msra.mxu1 %v10869_v50  ;;  %v13596_v56 = vld [vmem:[#allocation156_spill] sm:$0xff]  ;;  %v13599_v60 = vld [vmem:[#allocation162_spill] sm:$0xff] }
 0x649   :  { %v5177_v41 = vpop.f32.mrf.mxu1  ;;  %5510 = vmatprep.subr.bf16.mxu0 %v13594_v59  ;;  %5551 = vmatprep.subr.bf16.mxu1 %v10875_v3 }
 0x64a   :  { %v5266_v51 = vmul.f32 0.5, %v5210_v27  ;;  %v5211_v29 = vadd.f32 %v5195_v18, %v11355_v8  ;;  %v11371_v41 = vadd.f32 %v11268_v58, %v5275_v10  ;;  %v13601_v27 = vld [vmem:[#allocation164_spill] sm:$0xff]  ;;  %v13602_v58 = vld [vmem:[#allocation242_spill] sm:$0xff] }
 0x64b   :  { %v5178_v11 = vpop.f32.mrf.mxu1  ;;  %v13603_v18 = vld [vmem:[#allocation166_spill] sm:$0xff] }
 0x64c   :  { %9075 = vtanh.f32 %v5266_v51  ;;  %v5267_v0 = vmul.f32 0.5, %v5211_v29  ;;  %5511 = vmatpush2.bf16.msra.mxu0 %v13595_v52  ;;  %5552 = vmatpush2.bf16.msra.mxu1 %v10881_v48  ;;  %v13604_v51 = vld [vmem:[#allocation168_spill] sm:$0xff] }
 0x64d   :  { %5512 = vmatprep.subr.bf16.mxu0 %v13596_v56  ;;  %5553 = vmatprep.subr.bf16.mxu1 %v10887_v2 }
 0x64e   :  { %9077 = vtanh.f32 %v5267_v0 }
 0x64f   :  { %9079 = vtanh.f32 %v11364_v4 }
 0x650   :  { %5513 = vmatpush2.bf16.msra.mxu0 %v13597_v16  ;;  %5554 = vmatpush2.bf16.msra.mxu1 %v10893_v44  ;;  %9081 = vtanh.f32 %v11371_v41 }
 0x651   :  { %5514 = vmatprep.subr.bf16.mxu0 %v13598_v43  ;;  %5555 = vmatprep.subr.bf16.mxu1 %v10899_v1 }
 0x654   :  { %5515 = vmatpush2.bf16.msra.mxu0 %v13599_v60  ;;  %5556 = vmatpush2.bf16.msra.mxu1 %v13600_v24  ;;  %v13605_v60 = vld [vmem:[#allocation170_spill] sm:$0xff]  ;;  %v13606_v24 = vld [vmem:[#allocation172_spill] sm:$0xff] }
 0x655   :  { %5516 = vmatprep.subr.bf16.mxu0 %v13601_v27  ;;  %5557 = vmatprep.subr.bf16.mxu1 %v13602_v58 }
 0x658   :  { %5517 = vmatpush2.bf16.msra.mxu0 %v13603_v18  ;;  %5558 = vmatpush2.bf16.msra.mxu1 %v10914_v32 }
 0x659   :  { %v9076_v10 = vpop.eup %9075  ;;  %5518 = vmatprep.subr.bf16.mxu0 %v13604_v51  ;;  %5559 = vmatprep.subr.bf16.mxu1 %v10917_v49  ;;  %v13609_v49 = vld [vmem:[#allocation174_spill] sm:$0xff] }
 0x65a   :  { %v5270_v29 = vadd.f32 1.0, %v9076_v10  ;;  %v13610_v10 = vld [vmem:[#allocation176_spill] sm:$0xff] }
 0x65b   :  { %v9078_v11 = vpop.eup %9077 }
 0x65c   :  { %v5272_v0 = vmul.f32 0.5, %v5270_v29  ;;  %v5271_v1 = vadd.f32 1.0, %v9078_v11  ;;  %5519 = vmatpush2.bf16.msra.mxu0 %v13605_v60  ;;  %5560 = vmatpush2.bf16.msra.mxu1 %v10924_v55  ;;  %v9080_v27 = vpop.eup %9079 }
 0x65d   :  { %5520 = vmatprep.subr.bf16.mxu0 %v13606_v24  ;;  %5561 = vmatprep.subr.bf16.mxu1 %v10927_v21  ;;  %v9082_v58 = vpop.eup %9081 }
 0x65e   :  { %v11391_v18 = vmul.f32 %v9080_v27, %v5272_v0  ;;  %v5273_v32 = vmul.f32 0.5, %v5271_v1  ;;  %v13611_v1 = vld [vmem:[#allocation178_spill] sm:$0xff] }
 0x660   :  { %13607 = vst [vmem:[#allocation150_spill] sm:$0xff] %v11391_v18  ;;  %v11393_v51 = vmul.f32 %v9082_v58, %v5273_v32  ;;  %5521 = vmatpush2.bf16.msra.mxu0 %v13609_v49  ;;  %5562 = vmatpush2.bf16.msra.mxu1 %v10932_v53  ;;  %v5482_v29 = vpack.c.bf16 %v11391_v18, %v11391_v18  ;;  %v13612_v32 = vld [vmem:[#allocation247_spill] sm:$0xff]  ;;  %v13613_v58 = vld [vmem:[#allocation180_spill] sm:$0xff] }
 0x661   :  { %5572 = vmatprep.subr.bf16.mxu0 %v13610_v10  ;;  %5613 = vmatprep.subr.bf16.mxu1 %v10935_v37  ;;  %v13614_v18 = vld [vmem:[#allocation248_spill] sm:$0xff] }
 0x662   :  { %13608 = vst [vmem:[#allocation152_spill] sm:$0xff] %v11393_v51  ;;  %v5483_v11 = vpack.c.bf16 %v11393_v51, %v11393_v51  ;;  %v11403_v0 = vrot.slane %v5482_v29, 3  ;;  %v13615_v51 = vld [vmem:[#allocation185_spill] sm:$0xff]  ;;  %v13616_v29 = vld [vmem:[#allocation188_spill] sm:$0xff] }
 0x664   :  { %v5487_v27 = vrot.slane %v5483_v11, 3  ;;  %v13617_v11 = vld [vmem:[#allocation190_spill] sm:$0xff] }
 0x666   :  { %5522 = vmatprep.mubr.bf16.mxu0 %v5487_v27  ;;  %5563 = vmatprep.mubr.bf16.mxu1 %v5487_v27 }
 0x667   :  { %5523 = vmatmul.mubr.bf16.vlgmr.msra.gmra.mxu0 %v11403_v0  ;;  %5564 = vmatmul.mubr.bf16.vlgmr.msra.gmra.mxu1 %v11403_v0 }
 0x668   :  { %5573 = vmatpush1.bf16.msra.mxu0 %v13611_v1  ;;  %5614 = vmatpush1.bf16.msra.mxu1 %v13612_v32  ;;  %v13618_v1 = vld [vmem:[#allocation192_spill] sm:$0xff] }
 0x669   :  { %5604 = vmatprep.mubr.bf16.mxu0 %v5487_v27  ;;  %5645 = vmatprep.mubr.bf16.mxu1 %v5487_v27  ;;  %v13619_v27 = vld [vmem:[#allocation194_spill] sm:$0xff] }
 0x66a   :  { %5574 = vmatprep.subr.bf16.mxu0 %v13613_v58  ;;  %5615 = vmatprep.subr.bf16.mxu1 %v13614_v18  ;;  %v13620_v18 = vld [vmem:[#allocation196_spill] sm:$0xff] }
 0x66c   :  { %5575 = vmatpush1.bf16.msra.mxu0 %v13615_v51  ;;  %5616 = vmatpush1.bf16.msra.mxu1 %v10951_v19  ;;  %v13621_v19 = vld [vmem:[#allocation198_spill] sm:$0xff] }
 0x66d   :  { %5576 = vmatprep.subr.bf16.mxu0 %v13616_v29  ;;  %5617 = vmatprep.subr.bf16.mxu1 %v10957_v9  ;;  %v13622_v9 = vld [vmem:[#allocation200_spill] sm:$0xff] }
 0x670   :  { %5577 = vmatpush1.bf16.msra.mxu0 %v13617_v11  ;;  %5618 = vmatpush1.bf16.msra.mxu1 %v10962_v62  ;;  %v13623_v62 = vld [vmem:[#allocation202_spill] sm:$0xff] }
 0x671   :  { %5578 = vmatprep.subr.bf16.mxu0 %v13618_v1  ;;  %5619 = vmatprep.subr.bf16.mxu1 %v10965_v46  ;;  %v13624_v46 = vld [vmem:[#allocation204_spill] sm:$0xff] }
 0x674   :  { %5579 = vmatpush1.bf16.msra.mxu0 %v13619_v27  ;;  %5620 = vmatpush1.bf16.msra.mxu1 %v10970_v36  ;;  %v13625_v36 = vld [vmem:[#allocation206_spill] sm:$0xff] }
 0x675   :  { %5580 = vmatprep.subr.bf16.mxu0 %v13620_v18  ;;  %5621 = vmatprep.subr.bf16.mxu1 %v10973_v17  ;;  %v13626_v17 = vld [vmem:[#allocation208_spill] sm:$0xff] }
 0x678   :  { %5581 = vmatpush1.bf16.msra.mxu0 %v13621_v19  ;;  %5622 = vmatpush1.bf16.msra.mxu1 %v10978_v30  ;;  %v13627_v30 = vld [vmem:[#allocation210_spill] sm:$0xff] }
 0x679   :  { %5582 = vmatprep.subr.bf16.mxu0 %v13622_v9  ;;  %5623 = vmatprep.subr.bf16.mxu1 %v10981_v47  ;;  %v13628_v47 = vld [vmem:[#allocation212_spill] sm:$0xff]  ;;  %v13711_v9 = vld [vmem:[#allocation46_spill] sm:$0xff] }
 0x67c   :  { %5583 = vmatpush1.bf16.msra.mxu0 %v13623_v62  ;;  %5624 = vmatpush1.bf16.msra.mxu1 %v10986_v54  ;;  %v13629_v62 = vld [vmem:[#allocation262_spill] sm:$0xff] }
 0x67d   :  { %5584 = vmatprep.subr.bf16.mxu0 %v13624_v46  ;;  %5625 = vmatprep.subr.bf16.mxu1 %v10989_v57  ;;  %v13630_v54 = vld [vmem:[#allocation214_spill] sm:$0xff]  ;;  %v13631_v57 = vld [vmem:[#allocation216_spill] sm:$0xff] }
 0x680   :  { %5585 = vmatpush1.bf16.msra.mxu0 %v13625_v36  ;;  %5626 = vmatpush1.bf16.msra.mxu1 %v10994_v63  ;;  %v13632_v63 = vld [vmem:[#allocation218_spill] sm:$0xff]  ;;  %v13708_v36 = vld [vmem:[#allocation45_spill] sm:$0xff] }
 0x681   :  { %5586 = vmatprep.subr.bf16.mxu0 %v13626_v17  ;;  %5627 = vmatprep.subr.bf16.mxu1 %v10997_v5  ;;  %v13633_v5 = vld [vmem:[#allocation220_spill] sm:$0xff]  ;;  %v13662_v17 = vld [vmem:[#allocation67_spill] sm:$0xff] }
 0x684   :  { %5587 = vmatpush1.bf16.msra.mxu0 %v13627_v30  ;;  %5628 = vmatpush1.bf16.msra.mxu1 %v11002_v14  ;;  %v13634_v14 = vld [vmem:[#allocation222_spill] sm:$0xff] }
 0x685   :  { %5588 = vmatprep.subr.bf16.mxu0 %v13628_v47  ;;  %5629 = vmatprep.subr.bf16.mxu1 %v13629_v62  ;;  %v13635_v62 = vld [vmem:[#allocation224_spill] sm:$0xff]  ;;  %v13658_v47 = vld [vmem:[#allocation63_spill] sm:$0xff]  ;;  %v13659_v30 = vld [vmem:[#allocation22_spill] sm:$0xff] }
 0x688   :  { %5589 = vmatpush2.bf16.msra.mxu0 %v13630_v54  ;;  %5630 = vmatpush2.bf16.msra.mxu1 %v11015_v31  ;;  %v13636_v31 = vld [vmem:[#allocation228_spill] sm:$0xff]  ;;  %v13657_v54 = vld [vmem:[#allocation21_spill] sm:$0xff] }
 0x689   :  { %5590 = vmatprep.subr.bf16.mxu0 %v13631_v57  ;;  %5631 = vmatprep.subr.bf16.mxu1 %v11020_v61  ;;  %v13637_v61 = vld [vmem:[#allocation230_spill] sm:$0xff]  ;;  %v13656_v57 = vld [vmem:[#allocation61_spill] sm:$0xff] }
 0x68c   :  { %5591 = vmatpush2.bf16.msra.mxu0 %v13632_v63  ;;  %5632 = vmatpush2.bf16.msra.mxu1 %v11027_v12  ;;  %v13638_v63 = vld [vmem:[#allocation272_spill] sm:$0xff] }
 0x68d   :  { %5592 = vmatprep.subr.bf16.mxu0 %v13633_v5  ;;  %5633 = vmatprep.subr.bf16.mxu1 %v11033_v38  ;;  %v13639_v12 = vld [vmem:[#allocation232_spill] sm:$0xff]  ;;  %v13640_v5 = vld [vmem:[#allocation273_spill] sm:$0xff]  ;;  %v13641_v38 = vld [vmem:[#allocation234_spill] sm:$0xff] }
 0x690   :  { %5593 = vmatpush2.bf16.msra.mxu0 %v13634_v14  ;;  %5634 = vmatpush2.bf16.msra.mxu1 %v11043_v26  ;;  %v13642_v14 = vld [vmem:[#allocation274_spill] sm:$0xff]  ;;  %v13643_v26 = vld [vmem:[#allocation235_spill] sm:$0xff] }
 0x691   :  { %5594 = vmatprep.subr.bf16.mxu0 %v13635_v62  ;;  %5635 = vmatprep.subr.bf16.mxu1 %v11048_v7  ;;  %v13644_v62 = vld [vmem:[#allocation276_spill] sm:$0xff] }
 0x692   :  { %v13645_v7 = vld [vmem:[#allocation236_spill] sm:$0xff] }
 0x694   :  { %5595 = vmatpush2.bf16.msra.mxu0 %v13636_v31  ;;  %5636 = vmatpush2.bf16.msra.mxu1 %v11054_v45  ;;  %v13646_v31 = vld [vmem:[#allocation278_spill] sm:$0xff]  ;;  %v13647_v45 = vld [vmem:[#allocation237_spill] sm:$0xff] }
 0x695   :  { %5596 = vmatprep.subr.bf16.mxu0 %v13637_v61  ;;  %5637 = vmatprep.subr.bf16.mxu1 %v13638_v63  ;;  %v13648_v61 = vld [vmem:[#allocation279_spill] sm:$0xff]  ;;  %v13649_v63 = vld [vmem:[#allocation238_spill] sm:$0xff] }
 0x698   :  { %5597 = vmatpush2.bf16.msra.mxu0 %v13639_v12  ;;  %5638 = vmatpush2.bf16.msra.mxu1 %v13640_v5  ;;  %v13650_v12 = vld [vmem:[#allocation280_spill] sm:$0xff] }
 0x699   :  { %5598 = vmatprep.subr.bf16.mxu0 %v13641_v38  ;;  %5639 = vmatprep.subr.bf16.mxu1 %v13642_v14  ;;  %v13651_v14 = vld [vmem:[#allocation239_spill] sm:$0xff] }
 0x69c   :  { %5599 = vmatpush2.bf16.msra.mxu0 %v13643_v26  ;;  %5640 = vmatpush2.bf16.msra.mxu1 %v13644_v62  ;;  %v13652_v26 = vld [vmem:[#allocation281_spill] sm:$0xff] }
 0x69d   :  { %5600 = vmatprep.subr.bf16.mxu0 %v13645_v7  ;;  %5641 = vmatprep.subr.bf16.mxu1 %v13646_v31  ;;  %v13653_v31 = vld [vmem:[#allocation19_spill] sm:$0xff] }
 0x6a0   :  { %5601 = vmatpush2.bf16.msra.mxu0 %v13647_v45  ;;  %5642 = vmatpush2.bf16.msra.mxu1 %v13648_v61  ;;  %v13654_v45 = vld [vmem:[#allocation59_spill] sm:$0xff]  ;;  %v13655_v61 = vld [vmem:[#allocation20_spill] sm:$0xff] }
 0x6a1   :  { %5602 = vmatprep.subr.bf16.mxu0 %v13649_v63  ;;  %5643 = vmatprep.subr.bf16.mxu1 %v13650_v12 }
 0x6a3   :  { %v11467_v5 = vpop.f32.mrf.mxu0  ;;  %v11469_v38 = vpop.f32.mrf.mxu1 }
 0x6a4   :  { %5603 = vmatpush2.bf16.msra.mxu0 %v13651_v14  ;;  %5644 = vmatpush2.bf16.msra.mxu1 %v13652_v26 }
 0x6a5   :  { %v11473_v62 = vpop.f32.mrf.mxu0  ;;  %v11475_v7 = vpop.f32.mrf.mxu1  ;;  %5778 = vmatprep.subr.bf16.mxu0 %v13653_v31  ;;  %5819 = vmatprep.subr.bf16.mxu1 %v13654_v45  ;;  %v13660_v31 = vld [vmem:[#allocation65_spill] sm:$0xff]  ;;  %v13661_v45 = vld [vmem:[#allocation23_spill] sm:$0xff] }
 0x6a7   :  { %5605 = vmatmul.mubr.bf16.vlgmr.msra.gmra.mxu0 %v11403_v0  ;;  %5646 = vmatmul.mubr.bf16.vlgmr.msra.gmra.mxu1 %v11403_v0  ;;  %v5324_v12 = vpop.f32.mrf.mxu0  ;;  %v5365_v63 = vpop.f32.mrf.mxu1  ;;  %v13665_v0 = vld [vmem:[#allocation25_spill] sm:$0xff] }
 0x6a8   :  { %5779 = vmatpush1.bf16.msra.mxu0 %v13655_v61  ;;  %5820 = vmatpush1.bf16.msra.mxu1 %v13656_v57  ;;  %v13663_v12 = vld [vmem:[#allocation24_spill] sm:$0xff]  ;;  %v13664_v63 = vld [vmem:[#allocation69_spill] sm:$0xff]  ;;  %v13704_v57 = vld [vmem:[#allocation266_spill] sm:$0xff] }
 0x6a9   :  { %v5325_v14 = vpop.f32.mrf.mxu0  ;;  %v5366_v26 = vpop.f32.mrf.mxu1  ;;  %5780 = vmatprep.subr.bf16.mxu0 %v13657_v54  ;;  %5821 = vmatprep.subr.bf16.mxu1 %v13658_v47  ;;  %v13668_v54 = vld [vmem:[#allocation73_spill] sm:$0xff]  ;;  %v13669_v47 = vld [vmem:[#allocation27_spill] sm:$0xff]  ;;  %v13705_v61 = vld [vmem:[#allocation44_spill] sm:$0xff] }
 0x6aa   :  { %v13666_v14 = vld [vmem:[#allocation71_spill] sm:$0xff]  ;;  %v13667_v26 = vld [vmem:[#allocation26_spill] sm:$0xff] }
 0x6ac   :  { %5781 = vmatpush1.bf16.msra.mxu0 %v13659_v30  ;;  %5822 = vmatpush1.bf16.msra.mxu1 %v13660_v31  ;;  %v13670_v30 = vld [vmem:[#allocation75_spill] sm:$0xff]  ;;  %v13671_v31 = vld [vmem:[#allocation28_spill] sm:$0xff] }
 0x6ad   :  { %5782 = vmatprep.subr.bf16.mxu0 %v13661_v45  ;;  %5823 = vmatprep.subr.bf16.mxu1 %v13662_v17  ;;  %v13672_v45 = vld [vmem:[#allocation77_spill] sm:$0xff] }
 0x6ae   :  { %v13673_v17 = vld [vmem:[#allocation29_spill] sm:$0xff] }
 0x6b0   :  { %5783 = vmatpush1.bf16.msra.mxu0 %v13663_v12  ;;  %5824 = vmatpush1.bf16.msra.mxu1 %v13664_v63  ;;  %v13674_v12 = vld [vmem:[#allocation79_spill] sm:$0xff]  ;;  %v13675_v63 = vld [vmem:[#allocation30_spill] sm:$0xff] }
 0x6b1   :  { %5784 = vmatprep.subr.bf16.mxu0 %v13665_v0  ;;  %5825 = vmatprep.subr.bf16.mxu1 %v13666_v14  ;;  %v13676_v0 = vld [vmem:[#allocation81_spill] sm:$0xff]  ;;  %v13677_v14 = vld [vmem:[#allocation31_spill] sm:$0xff] }
 0x6b4   :  { %5785 = vmatpush1.bf16.msra.mxu0 %v13667_v26  ;;  %5826 = vmatpush1.bf16.msra.mxu1 %v13668_v54  ;;  %v13678_v26 = vld [vmem:[#allocation83_spill] sm:$0xff]  ;;  %v13679_v54 = vld [vmem:[#allocation32_spill] sm:$0xff] }
 0x6b5   :  { %5786 = vmatprep.subr.bf16.mxu0 %v13669_v47  ;;  %5827 = vmatprep.subr.bf16.mxu1 %v13670_v30  ;;  %v13680_v47 = vld [vmem:[#allocation85_spill] sm:$0xff] }
 0x6b6   :  { %v13681_v30 = vld [vmem:[#allocation33_spill] sm:$0xff] }
 0x6b8   :  { %5787 = vmatpush1.bf16.msra.mxu0 %v13671_v31  ;;  %5828 = vmatpush1.bf16.msra.mxu1 %v13672_v45  ;;  %v13682_v31 = vld [vmem:[#allocation87_spill] sm:$0xff]  ;;  %v13683_v45 = vld [vmem:[#allocation34_spill] sm:$0xff] }
 0x6b9   :  { %5788 = vmatprep.subr.bf16.mxu0 %v13673_v17  ;;  %5829 = vmatprep.subr.bf16.mxu1 %v13674_v12  ;;  %v13684_v17 = vld [vmem:[#allocation89_spill] sm:$0xff]  ;;  %v13685_v12 = vld [vmem:[#allocation35_spill] sm:$0xff] }
 0x6bc   :  { %5789 = vmatpush1.bf16.msra.mxu0 %v13675_v63  ;;  %5830 = vmatpush1.bf16.msra.mxu1 %v13676_v0  ;;  %v13686_v63 = vld [vmem:[#allocation91_spill] sm:$0xff]  ;;  %v13687_v0 = vld [vmem:[#allocation36_spill] sm:$0xff] }
 0x6bd   :  { %5790 = vmatprep.subr.bf16.mxu0 %v13677_v14  ;;  %5831 = vmatprep.subr.bf16.mxu1 %v13678_v26  ;;  %v13688_v14 = vld [vmem:[#allocation93_spill] sm:$0xff] }
 0x6be   :  { %v13689_v26 = vld [vmem:[#allocation37_spill] sm:$0xff] }
 0x6c0   :  { %5791 = vmatpush1.bf16.msra.mxu0 %v13679_v54  ;;  %5832 = vmatpush1.bf16.msra.mxu1 %v13680_v47  ;;  %v13690_v54 = vld [vmem:[#allocation95_spill] sm:$0xff]  ;;  %v13691_v47 = vld [vmem:[#allocation38_spill] sm:$0xff] }
 0x6c1   :  { %5792 = vmatprep.subr.bf16.mxu0 %v13681_v30  ;;  %5833 = vmatprep.subr.bf16.mxu1 %v13682_v31  ;;  %v13692_v30 = vld [vmem:[#allocation97_spill] sm:$0xff]  ;;  %v13693_v31 = vld [vmem:[#allocation39_spill] sm:$0xff] }
 0x6c4   :  { %5793 = vmatpush1.bf16.msra.mxu0 %v13683_v45  ;;  %5834 = vmatpush1.bf16.msra.mxu1 %v13684_v17  ;;  %v13694_v45 = vld [vmem:[#allocation99_spill] sm:$0xff]  ;;  %v13695_v17 = vld [vmem:[#allocation40_spill] sm:$0xff] }
 0x6c5   :  { %5794 = vmatprep.subr.bf16.mxu0 %v13685_v12  ;;  %5835 = vmatprep.subr.bf16.mxu1 %v13686_v63  ;;  %v13696_v12 = vld [vmem:[#allocation101_spill] sm:$0xff] }
 0x6c6   :  { %v13697_v63 = vld [vmem:[#allocation41_spill] sm:$0xff] }
 0x6c8   :  { %5795 = vmatpush2.bf16.msra.mxu0 %v13687_v0  ;;  %5836 = vmatpush2.bf16.msra.mxu1 %v13688_v14  ;;  %v13698_v0 = vld [vmem:[#allocation103_spill] sm:$0xff]  ;;  %v13699_v14 = vld [vmem:[#allocation42_spill] sm:$0xff] }
 0x6c9   :  { %5796 = vmatprep.subr.bf16.mxu0 %v13689_v26  ;;  %5837 = vmatprep.subr.bf16.mxu1 %v13690_v54  ;;  %v5460_v26 = vrot.slane %v11469_v38, 6  ;;  %v5458_v54 = vrot.slane %v11467_v5, 6  ;;  %v13706_v38 = vld [vmem:[#allocation109_spill] sm:$0xff] }
 0x6ca   :  { %v13707_v5 = vld [vmem:[#allocation137_spill] sm:$0xff] }
 0x6cc   :  { %5797 = vmatpush2.bf16.msra.mxu0 %v13691_v47  ;;  %5838 = vmatpush2.bf16.msra.mxu1 %v13692_v30  ;;  %v13700_v47 = vld [vmem:[#allocation105_spill] sm:$0xff]  ;;  %v13701_v30 = vld [vmem:[#allocation43_spill] sm:$0xff] }
 0x6cd   :  { %5798 = vmatprep.subr.bf16.mxu0 %v13693_v31  ;;  %5839 = vmatprep.subr.bf16.mxu1 %v13694_v45  ;;  %v5461_v31 = vrot.slane %v11475_v7, 6  ;;  %v13702_v45 = vld [vmem:[#allocation107_spill] sm:$0xff] }
 0x6d0   :  { %5799 = vmatpush2.bf16.msra.mxu0 %v13695_v17  ;;  %5840 = vmatpush2.bf16.msra.mxu1 %v13696_v12  ;;  %v13703_v17 = vld [vmem:[#allocation18_spill] sm:$0xff] }
 0x6d1   :  { %5800 = vmatprep.subr.bf16.mxu0 %v13697_v63  ;;  %5841 = vmatprep.subr.bf16.mxu1 %v13698_v0  ;;  %v5476_v12 = vadd.f32 %v5460_v26, %v13703_v17  ;;  %v5459_v63 = vrot.slane %v11473_v62, 6  ;;  %v5474_v0 = vadd.f32 %v5458_v54, %v13704_v57  ;;  %v13712_v26 = vld [vmem:[#allocation113_spill] sm:$0xff]  ;;  %v13713_v54 = vld [vmem:[#allocation47_spill] sm:$0xff] }
 0x6d3   :  { %v5694_v7 = vmul.f32 0.5, %v5476_v12  ;;  %v13717_v12 = vld [vmem:[#allocation49_spill] sm:$0xff] }
 0x6d4   :  { %5801 = vmatpush2.bf16.msra.mxu0 %v13699_v14  ;;  %5842 = vmatpush2.bf16.msra.mxu1 %v13700_v47  ;;  %v5477_v14 = vadd.f32 %v5461_v31, %v13707_v5  ;;  %v13709_v47 = vld [vmem:[#allocation111_spill] sm:$0xff]  ;;  %v13715_v31 = vld [vmem:[#allocation48_spill] sm:$0xff] }
 0x6d5   :  { %5802 = vmatprep.subr.bf16.mxu0 %v13701_v30  ;;  %5843 = vmatprep.subr.bf16.mxu1 %v13702_v45  ;;  %v13710_v30 = vld [vmem:[#allocation268_spill] sm:$0xff]  ;;  %v5686_v45 = vmul.f32 0.5, %v5474_v0  ;;  %9083 = vtanh.f32 %v5694_v7 }
 0x6d6   :  { %v5475_v46 = vadd.f32 %v5459_v63, %v13710_v30  ;;  %v5695_v62 = vmul.f32 0.5, %v5477_v14  ;;  %v13718_v63 = vld [vmem:[#allocation119_spill] sm:$0xff] }
 0x6d7   :  { %9085 = vtanh.f32 %v5686_v45  ;;  %v13720_v45 = vld [vmem:[#allocation51_spill] sm:$0xff] }
 0x6d8   :  { %5803 = vmatpush2.bf16.msra.mxu0 %v13705_v61  ;;  %5844 = vmatpush2.bf16.msra.mxu1 %v13706_v38  ;;  %v13714_v61 = vld [vmem:[#allocation115_spill] sm:$0xff]  ;;  %v5687_v38 = vmul.f32 0.5, %v5475_v46  ;;  %9087 = vtanh.f32 %v5695_v62 }
 0x6d9   :  { %5804 = vmatprep.subr.bf16.mxu0 %v13708_v36  ;;  %5845 = vmatprep.subr.bf16.mxu1 %v13709_v47  ;;  %v13716_v36 = vld [vmem:[#allocation117_spill] sm:$0xff] }
 0x6da   :  { %9089 = vtanh.f32 %v5687_v38  ;;  %v13723_v38 = vld [vmem:[#allocation277_spill] sm:$0xff] }
 0x6dc   :  { %5805 = vmatpush2.bf16.msra.mxu0 %v13711_v9  ;;  %5846 = vmatpush2.bf16.msra.mxu1 %v13712_v26  ;;  %v13719_v9 = vld [vmem:[#allocation50_spill] sm:$0xff] }
 0x6dd   :  { %5806 = vmatprep.subr.bf16.mxu0 %v13713_v54  ;;  %5847 = vmatprep.subr.bf16.mxu1 %v13714_v61 }
 0x6e0   :  { %5807 = vmatpush2.bf16.msra.mxu0 %v13715_v31  ;;  %5848 = vmatpush2.bf16.msra.mxu1 %v13716_v36  ;;  %v13721_v31 = vld [vmem:[#allocation123_spill] sm:$0xff] }
 0x6e1   :  { %5808 = vmatprep.subr.bf16.mxu0 %v13717_v12  ;;  %5849 = vmatprep.subr.bf16.mxu1 %v13718_v63  ;;  %v13722_v36 = vld [vmem:[#allocation275_spill] sm:$0xff] }
 0x6e2   :  { %v9084_v5 = vpop.eup %9083 }
 0x6e3   :  { %v5402_v0 = vpop.f32.mrf.mxu0  ;;  %v5443_v26 = vpop.f32.mrf.mxu1  ;;  %v5698_v17 = vadd.f32 1.0, %v9084_v5 }
 0x6e4   :  { %v5462_v14 = vrot.slane %v5402_v0, 6  ;;  %5809 = vmatpush2.bf16.msra.mxu0 %v13719_v9  ;;  %5850 = vmatpush2.bf16.msra.mxu1 %v13469_v15  ;;  %v5464_v61 = vrot.slane %v5443_v26, 6  ;;  %v9086_v57 = vpop.eup %9085 }
 0x6e5   :  { %v5404_v7 = vpop.f32.mrf.mxu0  ;;  %v5445_v46 = vpop.f32.mrf.mxu1  ;;  %5860 = vmatprep.subr.bf16.mxu0 %v13720_v45  ;;  %5901 = vmatprep.subr.bf16.mxu1 %v13721_v31 }
 0x6e6   :  { %v5478_v62 = vadd.f32 %v5462_v14, %v13722_v36  ;;  %v5463_v12 = vrot.slane %v5404_v7, 6  ;;  %v5465_v0 = vrot.slane %v5445_v46, 6  ;;  %v5480_v15 = vadd.f32 %v5464_v61, %v11166_v13  ;;  %v9088_v31 = vpop.eup %9087 }
 0x6e7   :  { %v5406_v54 = vpop.f32.mrf.mxu0  ;;  %v5447_v63 = vpop.f32.mrf.mxu1  ;;  %v5690_v7 = vadd.f32 1.0, %v9086_v57 }
 0x6e8   :  { %9091 = vtanh.f32 %v5478_v62  ;;  %v5479_v30 = vadd.f32 %v5463_v12, %v13723_v38  ;;  %v5481_v45 = vadd.f32 %v5465_v0, %v11169_v6  ;;  %v5704_v14 = vmul.f32 0.5, %v5480_v15  ;;  %v9090_v26 = vpop.eup %9089 }
 0x6e9   :  { %v5407_v47 = vpop.f32.mrf.mxu0  ;;  %v5448_v9 = vpop.f32.mrf.mxu1  ;;  %v5699_v54 = vadd.f32 1.0, %v9088_v31  ;;  %v5700_v62 = vmul.f32 0.5, %v5698_v17  ;;  %v5691_v12 = vadd.f32 1.0, %v9090_v26  ;;  %v5715_v0 = vrot.slane %v11177_v40, 6 }
 0x6ea   :  { %9093 = vtanh.f32 %v5479_v30  ;;  %v5705_v63 = vmul.f32 0.5, %v5481_v45  ;;  %v5714_v47 = vrot.slane %v11174_v28, 6  ;;  %v5692_v9 = vmul.f32 0.5, %v5690_v7 }
 0x6eb   :  { %9095 = vtanh.f32 %v5704_v14  ;;  %v5701_v61 = vmul.f32 0.5, %v5699_v54  ;;  %v5693_v6 = vmul.f32 0.5, %v5691_v12 }
 0x6ec   :  { %9097 = vtanh.f32 %v5705_v63  ;;  %v5718_v30 = vmul.f32 %v5714_v47, %v5700_v62 }
 0x6ed   :  { %v5719_v57 = vmul.f32 %v5715_v0, %v5701_v61  ;;  %v13725_v61 = vld [vmem:[#allocation53_spill] sm:$0xff]  ;;  %v13727_v0 = vld [vmem:[#allocation54_spill] sm:$0xff] }
 0x6f5   :  { %v9092_v46 = vpop.eup %9091 }
 0x6f6   :  { %v5720_v13 = vmul.f32 %v9092_v46, %v5692_v9  ;;  %v13724_v46 = vld [vmem:[#allocation125_spill] sm:$0xff] }
 0x6f7   :  { %v9094_v5 = vpop.eup %9093 }
 0x6f8   :  { %v11559_v15 = vadd.f32 %v5720_v13, %v5718_v30  ;;  %v5721_v31 = vmul.f32 %v9094_v5, %v5693_v6  ;;  %v9096_v28 = vpop.eup %9095  ;;  %v13726_v30 = vld [vmem:[#allocation127_spill] sm:$0xff]  ;;  %v13728_v5 = vld [vmem:[#allocation129_spill] sm:$0xff] }
 0x6f9   :  { %v9098_v45 = vpop.eup %9097  ;;  %v5708_v14 = vadd.f32 1.0, %v9096_v28  ;;  %v13731_v28 = vld [vmem:[#allocation56_spill] sm:$0xff] }
 0x6fa   :  { %9099 = vtanh.f32 %v11559_v15  ;;  %v11562_v17 = vadd.f32 %v5721_v31, %v5719_v57  ;;  %v5709_v26 = vadd.f32 1.0, %v9098_v45  ;;  %v13729_v57 = vld [vmem:[#allocation55_spill] sm:$0xff]  ;;  %v13732_v45 = vld [vmem:[#allocation133_spill] sm:$0xff] }
 0x6fb   :  { %v5710_v7 = vmul.f32 0.5, %v5708_v14  ;;  %v13730_v31 = vld [vmem:[#allocation131_spill] sm:$0xff]  ;;  %v13733_v14 = vld [vmem:[#allocation57_spill] sm:$0xff] }
 0x6fc   :  { %9101 = vtanh.f32 %v11562_v17  ;;  %v5711_v40 = vmul.f32 0.5, %v5709_v26  ;;  %v13734_v26 = vld [vmem:[#allocation135_spill] sm:$0xff] }
 0x707   :  { %v9100_v54 = vpop.eup %9099 }
 0x708   :  { %v11565_v63 = vmul.f32 %v9100_v54, %v5710_v7  ;;  %v13735_v7 = vld [vmem:[#allocation58_spill] sm:$0xff]  ;;  %v13736_v54 = vld [vmem:[#allocation139_spill] sm:$0xff] }
 0x709   :  { %v9102_v62 = vpop.eup %9101 }
 0x70a   :  { %v11567_v13 = vmul.f32 %v9102_v62, %v5711_v40  ;;  %v5770_v6 = vpack.c.bf16 %v11565_v63, %v11565_v63  ;;  %v13737_v40 = vld [vmem:[#allocation60_spill] sm:$0xff]  ;;  %v13738_v62 = vld [vmem:[#allocation143_spill] sm:$0xff] }
 0x70c   :  { %v5771_v12 = vpack.c.bf16 %v11567_v13, %v11567_v13  ;;  %v11573_v9 = vrot.slane %v5770_v6, 1  ;;  %v13739_v6 = vld [vmem:[#allocation62_spill] sm:$0xff] }
 0x70e   :  { %v5775_v47 = vrot.slane %v5771_v12, 1  ;;  %v13740_v12 = vld [vmem:[#allocation145_spill] sm:$0xff] }
 0x710   :  { %5810 = vmatprep.mubr.bf16.mxu0 %v5775_v47  ;;  %5851 = vmatprep.mubr.bf16.mxu1 %v5775_v47 }
 0x711   :  { %5811 = vmatmul.mubr.bf16.vlgmr.msra.gmra.mxu0 %v11573_v9  ;;  %5852 = vmatmul.mubr.bf16.vlgmr.msra.gmra.mxu1 %v11573_v9 }
 0x712   :  { %5861 = vmatpush1.bf16.msra.mxu0 %v13477_v35  ;;  %5902 = vmatpush1.bf16.msra.mxu1 %v13724_v46 }
 0x713   :  { %5892 = vmatprep.mubr.bf16.mxu0 %v5775_v47  ;;  %5933 = vmatprep.mubr.bf16.mxu1 %v5775_v47  ;;  %v13741_v47 = vld [vmem:[#allocation64_spill] sm:$0xff] }
 0x714   :  { %5862 = vmatprep.subr.bf16.mxu0 %v13725_v61  ;;  %5903 = vmatprep.subr.bf16.mxu1 %v13726_v30  ;;  %v13754_v30 = vld [vmem:[#allocation159_spill] sm:$0xff]  ;;  %v13755_v61 = vld [vmem:[#allocation78_spill] sm:$0xff] }
 0x716   :  { %5863 = vmatpush1.bf16.msra.mxu0 %v13727_v0  ;;  %5904 = vmatpush1.bf16.msra.mxu1 %v13728_v5  ;;  %v13751_v0 = vld [vmem:[#allocation74_spill] sm:$0xff] }
 0x717   :  { %5864 = vmatprep.subr.bf16.mxu0 %v13729_v57  ;;  %5905 = vmatprep.subr.bf16.mxu1 %v13730_v31  ;;  %v13749_v31 = vld [vmem:[#allocation72_spill] sm:$0xff] }
 0x71a   :  { %5865 = vmatpush1.bf16.msra.mxu0 %v13731_v28  ;;  %5906 = vmatpush1.bf16.msra.mxu1 %v13732_v45  ;;  %v13742_v28 = vld [vmem:[#allocation147_spill] sm:$0xff]  ;;  %v13743_v45 = vld [vmem:[#allocation66_spill] sm:$0xff] }
 0x71b   :  { %5866 = vmatprep.subr.bf16.mxu0 %v13733_v14  ;;  %5907 = vmatprep.subr.bf16.mxu1 %v13734_v26  ;;  %v13744_v14 = vld [vmem:[#allocation149_spill] sm:$0xff] }
 0x71e   :  { %5867 = vmatpush1.bf16.msra.mxu0 %v13735_v7  ;;  %5908 = vmatpush1.bf16.msra.mxu1 %v13736_v54  ;;  %v13745_v54 = vld [vmem:[#allocation68_spill] sm:$0xff] }
 0x71f   :  { %5868 = vmatprep.subr.bf16.mxu0 %v13737_v40  ;;  %5909 = vmatprep.subr.bf16.mxu1 %v13738_v62  ;;  %v13746_v40 = vld [vmem:[#allocation151_spill] sm:$0xff] }
 0x722   :  { %5869 = vmatpush1.bf16.msra.mxu0 %v13739_v6  ;;  %5910 = vmatpush1.bf16.msra.mxu1 %v13740_v12  ;;  %v13747_v12 = vld [vmem:[#allocation70_spill] sm:$0xff] }
 0x723   :  { %5870 = vmatprep.subr.bf16.mxu0 %v13741_v47  ;;  %5911 = vmatprep.subr.bf16.mxu1 %v13742_v28  ;;  %v13748_v47 = vld [vmem:[#allocation153_spill] sm:$0xff] }
 0x726   :  { %5871 = vmatpush1.bf16.msra.mxu0 %v13743_v45  ;;  %5912 = vmatpush1.bf16.msra.mxu1 %v13744_v14  ;;  %v13750_v14 = vld [vmem:[#allocation155_spill] sm:$0xff] }
 0x727   :  { %v11599_v26 = vpop.f32.mrf.mxu0  ;;  %v11601_v7 = vpop.f32.mrf.mxu1  ;;  %5872 = vmatprep.subr.bf16.mxu0 %v13745_v54  ;;  %5913 = vmatprep.subr.bf16.mxu1 %v13746_v40  ;;  %v13752_v54 = vld [vmem:[#allocation157_spill] sm:$0xff]  ;;  %v13753_v40 = vld [vmem:[#allocation76_spill] sm:$0xff] }
 0x729   :  { %v11605_v62 = vpop.f32.mrf.mxu0  ;;  %v11607_v6 = vpop.f32.mrf.mxu1 }
 0x72a   :  { %5873 = vmatpush1.bf16.msra.mxu0 %v13747_v12  ;;  %5914 = vmatpush1.bf16.msra.mxu1 %v13748_v47  ;;  %v13756_v12 = vld [vmem:[#allocation161_spill] sm:$0xff] }
 0x72b   :  { %v5528_v28 = vpop.f32.mrf.mxu0  ;;  %v5569_v45 = vpop.f32.mrf.mxu1  ;;  %5874 = vmatprep.subr.bf16.mxu0 %v13749_v31  ;;  %5915 = vmatprep.subr.bf16.mxu1 %v13750_v14  ;;  %v13759_v31 = vld [vmem:[#allocation82_spill] sm:$0xff] }
 0x72c   :  { %v13757_v28 = vld [vmem:[#allocation80_spill] sm:$0xff]  ;;  %v13758_v45 = vld [vmem:[#allocation163_spill] sm:$0xff] }
 0x72d   :  { %v5529_v57 = vpop.f32.mrf.mxu0  ;;  %v5570_v5 = vpop.f32.mrf.mxu1 }
 0x72e   :  { %5875 = vmatpush1.bf16.msra.mxu0 %v13751_v0  ;;  %5916 = vmatpush1.bf16.msra.mxu1 %v13752_v54  ;;  %v13760_v5 = vld [vmem:[#allocation84_spill] sm:$0xff]  ;;  %v13761_v57 = vld [vmem:[#allocation167_spill] sm:$0xff]  ;;  %v13762_v54 = vld [vmem:[#allocation86_spill] sm:$0xff] }
 0x72f   :  { %5876 = vmatprep.subr.bf16.mxu0 %v13753_v40  ;;  %5917 = vmatprep.subr.bf16.mxu1 %v13754_v30  ;;  %v13763_v40 = vld [vmem:[#allocation169_spill] sm:$0xff]  ;;  %v13764_v30 = vld [vmem:[#allocation88_spill] sm:$0xff] }
 0x732   :  { %5877 = vmatpush2.bf16.msra.mxu0 %v13755_v61  ;;  %5918 = vmatpush2.bf16.msra.mxu1 %v13756_v12  ;;  %v13765_v61 = vld [vmem:[#allocation171_spill] sm:$0xff]  ;;  %v13766_v12 = vld [vmem:[#allocation90_spill] sm:$0xff] }
 0x733   :  { %5878 = vmatprep.subr.bf16.mxu0 %v13757_v28  ;;  %5919 = vmatprep.subr.bf16.mxu1 %v13758_v45  ;;  %v13767_v28 = vld [vmem:[#allocation173_spill] sm:$0xff]  ;;  %v13768_v45 = vld [vmem:[#allocation92_spill] sm:$0xff] }
 0x736   :  { %5879 = vmatpush2.bf16.msra.mxu0 %v13759_v31  ;;  %5920 = vmatpush2.bf16.msra.mxu1 %v13524_v39  ;;  %v13769_v31 = vld [vmem:[#allocation175_spill] sm:$0xff]  ;;  %v13770_v39 = vld [vmem:[#allocation94_spill] sm:$0xff] }
 0x737   :  { %5880 = vmatprep.subr.bf16.mxu0 %v13760_v5  ;;  %5921 = vmatprep.subr.bf16.mxu1 %v13761_v57  ;;  %v13771_v5 = vld [vmem:[#allocation177_spill] sm:$0xff]  ;;  %v13772_v57 = vld [vmem:[#allocation96_spill] sm:$0xff] }
 0x73a   :  { %5881 = vmatpush2.bf16.msra.mxu0 %v13762_v54  ;;  %5922 = vmatpush2.bf16.msra.mxu1 %v13763_v40  ;;  %v13773_v54 = vld [vmem:[#allocation179_spill] sm:$0xff]  ;;  %v13774_v40 = vld [vmem:[#allocation98_spill] sm:$0xff] }
 0x73b   :  { %5882 = vmatprep.subr.bf16.mxu0 %v13764_v30  ;;  %5923 = vmatprep.subr.bf16.mxu1 %v13765_v61  ;;  %v13775_v30 = vld [vmem:[#allocation183_spill] sm:$0xff]  ;;  %v13776_v61 = vld [vmem:[#allocation100_spill] sm:$0xff] }
 0x73e   :  { %5883 = vmatpush2.bf16.msra.mxu0 %v13766_v12  ;;  %5924 = vmatpush2.bf16.msra.mxu1 %v13767_v28  ;;  %v13777_v12 = vld [vmem:[#allocation186_spill] sm:$0xff] }
 0x73f   :  { %5884 = vmatprep.subr.bf16.mxu0 %v13768_v45  ;;  %5925 = vmatprep.subr.bf16.mxu1 %v13769_v31  ;;  %v13778_v28 = vld [vmem:[#allocation102_spill] sm:$0xff]  ;;  %v13779_v45 = vld [vmem:[#allocation189_spill] sm:$0xff]  ;;  %v13780_v31 = vld [vmem:[#allocation104_spill] sm:$0xff] }
 0x742   :  { %5885 = vmatpush2.bf16.msra.mxu0 %v13770_v39  ;;  %5926 = vmatpush2.bf16.msra.mxu1 %v13771_v5  ;;  %v13781_v39 = vld [vmem:[#allocation191_spill] sm:$0xff]  ;;  %v13782_v5 = vld [vmem:[#allocation106_spill] sm:$0xff] }
 0x743   :  { %5886 = vmatprep.subr.bf16.mxu0 %v13772_v57  ;;  %5927 = vmatprep.subr.bf16.mxu1 %v13773_v54  ;;  %v13783_v57 = vld [vmem:[#allocation193_spill] sm:$0xff]  ;;  %v13784_v54 = vld [vmem:[#allocation108_spill] sm:$0xff] }
 0x746   :  { %5887 = vmatpush2.bf16.msra.mxu0 %v13774_v40  ;;  %5928 = vmatpush2.bf16.msra.mxu1 %v13775_v30  ;;  %v13785_v40 = vld [vmem:[#allocation195_spill] sm:$0xff] }
 0x747   :  { %5888 = vmatprep.subr.bf16.mxu0 %v13776_v61  ;;  %5929 = vmatprep.subr.bf16.mxu1 %v13777_v12  ;;  %v13786_v12 = vld [vmem:[#allocation110_spill] sm:$0xff] }
 0x74a   :  { %5889 = vmatpush2.bf16.msra.mxu0 %v13778_v28  ;;  %5930 = vmatpush2.bf16.msra.mxu1 %v13779_v45  ;;  %v13787_v28 = vld [vmem:[#allocation197_spill] sm:$0xff]  ;;  %v13788_v45 = vld [vmem:[#allocation112_spill] sm:$0xff] }
 0x74b   :  { %5890 = vmatprep.subr.bf16.mxu0 %v13780_v31  ;;  %5931 = vmatprep.subr.bf16.mxu1 %v13781_v39  ;;  %v13789_v31 = vld [vmem:[#allocation199_spill] sm:$0xff] }
 0x74e   :  { %5891 = vmatpush2.bf16.msra.mxu0 %v13782_v5  ;;  %5932 = vmatpush2.bf16.msra.mxu1 %v13783_v57  ;;  %v5664_v5 = vrot.slane %v11601_v7, 4  ;;  %v13793_v7 = vld [vmem:[#allocation52_spill] sm:$0xff] }
 0x74f   :  { %5982 = vmatprep.subr.bf16.mxu0 %v13784_v54  ;;  %6023 = vmatprep.subr.bf16.mxu1 %v13785_v40  ;;  %v5662_v40 = vrot.slane %v11599_v26, 4  ;;  %v13790_v54 = vld [vmem:[#allocation203_spill] sm:$0xff]  ;;  %v13794_v57 = vld [vmem:[#allocation120_spill] sm:$0xff]  ;;  %v13796_v26 = vld [vmem:[#allocation225_spill] sm:$0xff] }
 0x751   :  { %5893 = vmatmul.mubr.bf16.vlgmr.msra.gmra.mxu0 %v11573_v9  ;;  %5934 = vmatmul.mubr.bf16.vlgmr.msra.gmra.mxu1 %v11573_v9  ;;  %v5665_v9 = vrot.slane %v11607_v6, 4  ;;  %v13798_v6 = vld [vmem:[#allocation122_spill] sm:$0xff] }
 0x752   :  { %5983 = vmatpush1.bf16.msra.mxu0 %v13786_v12  ;;  %6024 = vmatpush1.bf16.msra.mxu1 %v13787_v28  ;;  %v13791_v12 = vld [vmem:[#allocation187_spill] sm:$0xff] }
 0x753   :  { %5984 = vmatprep.subr.bf16.mxu0 %v13788_v45  ;;  %6025 = vmatprep.subr.bf16.mxu1 %v13789_v31  ;;  %v5680_v28 = vadd.f32 %v5664_v5, %v13791_v12  ;;  %v5663_v45 = vrot.slane %v11605_v62, 4  ;;  %v13792_v31 = vld [vmem:[#allocation205_spill] sm:$0xff]  ;;  %v13800_v12 = vld [vmem:[#allocation124_spill] sm:$0xff] }
 0x754   :  { %v13799_v5 = vld [vmem:[#allocation209_spill] sm:$0xff] }
 0x755   :  { %v5736_v39 = vmul.f32 0.5, %v5680_v28  ;;  %v13804_v28 = vld [vmem:[#allocation128_spill] sm:$0xff] }
 0x756   :  { %5985 = vmatpush1.bf16.msra.mxu0 %v13560_v42  ;;  %6026 = vmatpush1.bf16.msra.mxu1 %v13561_v33  ;;  %v5678_v42 = vadd.f32 %v5662_v40, %v13793_v7  ;;  %v13795_v33 = vld [vmem:[#allocation207_spill] sm:$0xff] }
 0x757   :  { %5986 = vmatprep.subr.bf16.mxu0 %v13562_v34  ;;  %6027 = vmatprep.subr.bf16.mxu1 %v13790_v54  ;;  %v5681_v34 = vadd.f32 %v5665_v9, %v13796_v26  ;;  %v13797_v54 = vld [vmem:[#allocation138_spill] sm:$0xff]  ;;  %9103 = vtanh.f32 %v5736_v39  ;;  %v13808_v39 = vld [vmem:[#allocation132_spill] sm:$0xff] }
 0x758   :  { %v5679_v61 = vadd.f32 %v5663_v45, %v13797_v54  ;;  %v5728_v62 = vmul.f32 0.5, %v5678_v42  ;;  %v13805_v45 = vld [vmem:[#allocation215_spill] sm:$0xff]  ;;  %v13812_v54 = vld [vmem:[#allocation221_spill] sm:$0xff] }
 0x75a   :  { %5987 = vmatpush1.bf16.msra.mxu0 %v13564_v23  ;;  %6028 = vmatpush1.bf16.msra.mxu1 %v13792_v31  ;;  %v13801_v23 = vld [vmem:[#allocation211_spill] sm:$0xff]  ;;  %v5737_v31 = vmul.f32 0.5, %v5681_v34  ;;  %v5729_v40 = vmul.f32 0.5, %v5679_v61  ;;  %9105 = vtanh.f32 %v5728_v62  ;;  %v13810_v62 = vld [vmem:[#allocation141_spill] sm:$0xff] }
 0x75b   :  { %5988 = vmatprep.subr.bf16.mxu0 %v13794_v57  ;;  %6029 = vmatprep.subr.bf16.mxu1 %v13795_v33  ;;  %v13802_v57 = vld [vmem:[#allocation126_spill] sm:$0xff]  ;;  %v13803_v33 = vld [vmem:[#allocation213_spill] sm:$0xff]  ;;  %v13809_v61 = vld [vmem:[#allocation219_spill] sm:$0xff] }
 0x75c   :  { %9107 = vtanh.f32 %v5737_v31 }
 0x75d   :  { %9109 = vtanh.f32 %v5729_v40  ;;  %v13811_v40 = vld [vmem:[#allocation134_spill] sm:$0xff] }
 0x75e   :  { %5989 = vmatpush1.bf16.msra.mxu0 %v13798_v6  ;;  %6030 = vmatpush1.bf16.msra.mxu1 %v13799_v5  ;;  %v13806_v5 = vld [vmem:[#allocation130_spill] sm:$0xff] }
 0x75f   :  { %5990 = vmatprep.subr.bf16.mxu0 %v13800_v12  ;;  %6031 = vmatprep.subr.bf16.mxu1 %v13801_v23  ;;  %v13807_v12 = vld [vmem:[#allocation217_spill] sm:$0xff] }
 0x762   :  { %5991 = vmatpush1.bf16.msra.mxu0 %v13802_v57  ;;  %6032 = vmatpush1.bf16.msra.mxu1 %v13803_v33 }
 0x763   :  { %5992 = vmatprep.subr.bf16.mxu0 %v13804_v28  ;;  %6033 = vmatprep.subr.bf16.mxu1 %v13805_v45 }
 0x766   :  { %5993 = vmatpush1.bf16.msra.mxu0 %v13806_v5  ;;  %6034 = vmatpush1.bf16.msra.mxu1 %v13807_v12  ;;  %v13813_v5 = vld [vmem:[#allocation182_spill] sm:$0xff] }
 0x767   :  { %v5606_v9 = vpop.f32.mrf.mxu0  ;;  %v5647_v42 = vpop.f32.mrf.mxu1  ;;  %5994 = vmatprep.subr.bf16.mxu0 %v13808_v39  ;;  %6035 = vmatprep.subr.bf16.mxu1 %v13809_v61  ;;  %v13815_v39 = vld [vmem:[#allocation223_spill] sm:$0xff] }
 0x768   :  { %v5666_v34 = vrot.slane %v5606_v9, 4  ;;  %v5668_v28 = vrot.slane %v5647_v42, 4  ;;  %v13814_v9 = vld [vmem:[#allocation136_spill] sm:$0xff]  ;;  %v9104_v42 = vpop.eup %9103 }
 0x769   :  { %v5608_v57 = vpop.f32.mrf.mxu0  ;;  %v5649_v33 = vpop.f32.mrf.mxu1 }
 0x76a   :  { %v5682_v23 = vadd.f32 %v5666_v34, %v13810_v62  ;;  %v5667_v6 = vrot.slane %v5608_v57, 4  ;;  %5995 = vmatpush1.bf16.msra.mxu0 %v13811_v40  ;;  %6036 = vmatpush1.bf16.msra.mxu1 %v13812_v54  ;;  %v5669_v61 = vrot.slane %v5649_v33, 4  ;;  %v5684_v34 = vadd.f32 %v5668_v28, %v11352_v25  ;;  %v13816_v57 = vld [vmem:[#allocation142_spill] sm:$0xff]  ;;  %v13822_v25 = vld [vmem:[#allocation148_spill] sm:$0xff] }
 0x76b   :  { %v5610_v45 = vpop.f32.mrf.mxu0  ;;  %v5651_v31 = vpop.f32.mrf.mxu1  ;;  %5996 = vmatprep.subr.bf16.mxu0 %v13814_v9  ;;  %6037 = vmatprep.subr.bf16.mxu1 %v13815_v39  ;;  %v5740_v39 = vadd.f32 1.0, %v9104_v42 }
 0x76c   :  { %9111 = vtanh.f32 %v5682_v23  ;;  %v5683_v12 = vadd.f32 %v5667_v6, %v13813_v5  ;;  %v13817_v45 = vld [vmem:[#allocation226_spill] sm:$0xff]  ;;  %v13818_v31 = vld [vmem:[#allocation144_spill] sm:$0xff]  ;;  %v13819_v23 = vld [vmem:[#allocation229_spill] sm:$0xff]  ;;  %v9106_v6 = vpop.eup %9105  ;;  %v5685_v9 = vadd.f32 %v5669_v61, %v11355_v8  ;;  %v5746_v33 = vmul.f32 0.5, %v5684_v34 }
 0x76d   :  { %v5611_v26 = vpop.f32.mrf.mxu0  ;;  %v5652_v7 = vpop.f32.mrf.mxu1  ;;  %v5756_v34 = vrot.slane %v11364_v4, 2 }
 0x76e   :  { %9113 = vtanh.f32 %v5683_v12  ;;  %5997 = vmatpush1.bf16.msra.mxu0 %v13816_v57  ;;  %6038 = vmatpush1.bf16.msra.mxu1 %v13817_v45  ;;  %v9108_v5 = vpop.eup %9107  ;;  %v13820_v26 = vld [vmem:[#allocation146_spill] sm:$0xff]  ;;  %v13821_v7 = vld [vmem:[#allocation231_spill] sm:$0xff]  ;;  %v5732_v12 = vadd.f32 1.0, %v9106_v6  ;;  %v5742_v57 = vmul.f32 0.5, %v5740_v39  ;;  %v5757_v39 = vrot.slane %v11371_v41, 2  ;;  %v13823_v41 = vld [vmem:[#allocation240_spill] sm:$0xff] }
 0x76f   :  { %5998 = vmatprep.subr.bf16.mxu0 %v13818_v31  ;;  %6039 = vmatprep.subr.bf16.mxu1 %v13819_v23  ;;  %v9110_v28 = vpop.eup %9109  ;;  %v5741_v45 = vadd.f32 1.0, %v9108_v5  ;;  %v5747_v31 = vmul.f32 0.5, %v5685_v9  ;;  %9115 = vtanh.f32 %v5746_v33 }
 0x770   :  { %v5733_v23 = vadd.f32 1.0, %v9110_v28  ;;  %v5734_v61 = vmul.f32 0.5, %v5732_v12 }
 0x771   :  { %v5743_v6 = vmul.f32 0.5, %v5741_v45  ;;  %9117 = vtanh.f32 %v5747_v31  ;;  %v13824_v45 = vld [vmem:[#allocation162_spill] sm:$0xff]  ;;  %v13825_v31 = vld [vmem:[#allocation241_spill] sm:$0xff] }
 0x772   :  { %5999 = vmatpush2.bf16.msra.mxu0 %v13820_v26  ;;  %6040 = vmatpush2.bf16.msra.mxu1 %v13821_v7  ;;  %v5735_v9 = vmul.f32 0.5, %v5733_v23  ;;  %v13826_v23 = vld [vmem:[#allocation164_spill] sm:$0xff] }
 0x773   :  { %6000 = vmatprep.subr.bf16.mxu0 %v13822_v25  ;;  %6041 = vmatprep.subr.bf16.mxu1 %v13591_v20  ;;  %v5760_v20 = vmul.f32 %v5756_v34, %v5742_v57  ;;  %v5761_v4 = vmul.f32 %v5757_v39, %v5743_v6  ;;  %v13828_v6 = vld [vmem:[#allocation166_spill] sm:$0xff]  ;;  %v13831_v39 = vld [vmem:[#allocation244_spill] sm:$0xff] }
 0x776   :  { %6001 = vmatpush2.bf16.msra.mxu0 %v13593_v22  ;;  %6042 = vmatpush2.bf16.msra.mxu1 %v10869_v50 }
 0x777   :  { %6002 = vmatprep.subr.bf16.mxu0 %v13594_v59  ;;  %6043 = vmatprep.subr.bf16.mxu1 %v10875_v3 }
 0x779   :  { %v9112_v42 = vpop.eup %9111 }
 0x77a   :  { %v5762_v5 = vmul.f32 %v9112_v42, %v5734_v61  ;;  %6003 = vmatpush2.bf16.msra.mxu0 %v13595_v52  ;;  %6044 = vmatpush2.bf16.msra.mxu1 %v10881_v48  ;;  %v13827_v61 = vld [vmem:[#allocation242_spill] sm:$0xff] }
 0x77b   :  { %v9114_v33 = vpop.eup %9113  ;;  %6004 = vmatprep.subr.bf16.mxu0 %v13596_v56  ;;  %6045 = vmatprep.subr.bf16.mxu1 %v10887_v2 }
 0x77c   :  { %v11707_v28 = vadd.f32 %v5762_v5, %v5760_v20  ;;  %v5763_v12 = vmul.f32 %v9114_v33, %v5735_v9  ;;  %v9116_v20 = vpop.eup %9115  ;;  %v13829_v5 = vld [vmem:[#allocation243_spill] sm:$0xff]  ;;  %v13830_v9 = vld [vmem:[#allocation168_spill] sm:$0xff] }
 0x77d   :  { %v5750_v42 = vadd.f32 1.0, %v9116_v20 }
 0x77e   :  { %9119 = vtanh.f32 %v11707_v28  ;;  %v11712_v57 = vadd.f32 %v5763_v12, %v5761_v4  ;;  %6005 = vmatpush2.bf16.msra.mxu0 %v13597_v16  ;;  %6046 = vmatpush2.bf16.msra.mxu1 %v10893_v44  ;;  %v9118_v34 = vpop.eup %9117 }
 0x77f   :  { %6006 = vmatprep.subr.bf16.mxu0 %v13598_v43  ;;  %6047 = vmatprep.subr.bf16.mxu1 %v13823_v41  ;;  %v5751_v33 = vadd.f32 1.0, %v9118_v34  ;;  %v5752_v4 = vmul.f32 0.5, %v5750_v42 }
 0x780   :  { %9121 = vtanh.f32 %v11712_v57 }
 0x781   :  { %v5753_v20 = vmul.f32 0.5, %v5751_v33  ;;  %v13835_v33 = vld [vmem:[#allocation248_spill] sm:$0xff] }
 0x782   :  { %6007 = vmatpush2.bf16.msra.mxu0 %v13824_v45  ;;  %6048 = vmatpush2.bf16.msra.mxu1 %v13825_v31 }
 0x783   :  { %6008 = vmatprep.subr.bf16.mxu0 %v13826_v23  ;;  %6049 = vmatprep.subr.bf16.mxu1 %v13827_v61 }
 0x786   :  { %6009 = vmatpush2.bf16.msra.mxu0 %v13828_v6  ;;  %6050 = vmatpush2.bf16.msra.mxu1 %v13829_v5 }
 0x787   :  { %6010 = vmatprep.subr.bf16.mxu0 %v13830_v9  ;;  %6051 = vmatprep.subr.bf16.mxu1 %v13831_v39 }
 0x78a   :  { %6011 = vmatpush2.bf16.msra.mxu0 %v13605_v60  ;;  %6052 = vmatpush2.bf16.msra.mxu1 %v10924_v55 }
 0x78b   :  { %v9120_v12 = vpop.eup %9119  ;;  %6012 = vmatprep.subr.bf16.mxu0 %v13606_v24  ;;  %6053 = vmatprep.subr.bf16.mxu1 %v10927_v21 }
 0x78c   :  { %v11729_v23 = vmul.f32 %v9120_v12, %v5752_v4 }
 0x78d   :  { %v9122_v6 = vpop.eup %9121 }
 0x78e   :  { %13832 = vst [vmem:[#allocation154_spill] sm:$0xff] %v11729_v23  ;;  %v11733_v5 = vmul.f32 %v9122_v6, %v5753_v20  ;;  %6013 = vmatpush2.bf16.msra.mxu0 %v13609_v49  ;;  %6054 = vmatpush2.bf16.msra.mxu1 %v10932_v53  ;;  %v5974_v34 = vpack.c.bf16 %v11729_v23, %v11729_v23  ;;  %v13834_v6 = vld [vmem:[#allocation178_spill] sm:$0xff]  ;;  %v13836_v20 = vld [vmem:[#allocation249_spill] sm:$0xff] }
 0x78f   :  { %6064 = vmatprep.subr.bf16.mxu0 %v13610_v10  ;;  %6105 = vmatprep.subr.bf16.mxu1 %v10935_v37  ;;  %v13841_v23 = vld [vmem:[#allocation254_spill] sm:$0xff] }
 0x790   :  { %13833 = vst [vmem:[#allocation156_spill] sm:$0xff] %v11733_v5  ;;  %v5975_v42 = vpack.c.bf16 %v11733_v5, %v11733_v5  ;;  %v11743_v12 = vrot.slane %v5974_v34, 2  ;;  %v13837_v34 = vld [vmem:[#allocation250_spill] sm:$0xff]  ;;  %v13839_v5 = vld [vmem:[#allocation252_spill] sm:$0xff] }
 0x791   :  { %v13945_v10 = vld [vmem:[#allocation46_spill] sm:$0xff] }
 0x792   :  { %v5979_v4 = vrot.slane %v5975_v42, 2  ;;  %v13838_v42 = vld [vmem:[#allocation251_spill] sm:$0xff] }
 0x794   :  { %6014 = vmatprep.mubr.bf16.mxu0 %v5979_v4  ;;  %6055 = vmatprep.mubr.bf16.mxu1 %v5979_v4 }
 0x795   :  { %6015 = vmatmul.mubr.bf16.vlgmr.msra.gmra.mxu0 %v11743_v12  ;;  %6056 = vmatmul.mubr.bf16.vlgmr.msra.gmra.mxu1 %v11743_v12 }
 0x796   :  { %6065 = vmatpush1.bf16.msra.mxu0 %v13834_v6  ;;  %6106 = vmatpush1.bf16.msra.mxu1 %v13612_v32  ;;  %v13896_v32 = vld [vmem:[#allocation67_spill] sm:$0xff]  ;;  %v13942_v6 = vld [vmem:[#allocation45_spill] sm:$0xff] }
 0x797   :  { %6096 = vmatprep.mubr.bf16.mxu0 %v5979_v4  ;;  %6137 = vmatprep.mubr.bf16.mxu1 %v5979_v4  ;;  %v13840_v4 = vld [vmem:[#allocation253_spill] sm:$0xff] }
 0x798   :  { %6066 = vmatprep.subr.bf16.mxu0 %v13613_v58  ;;  %6107 = vmatprep.subr.bf16.mxu1 %v13835_v33  ;;  %v13892_v33 = vld [vmem:[#allocation63_spill] sm:$0xff]  ;;  %v13893_v58 = vld [vmem:[#allocation22_spill] sm:$0xff] }
 0x79a   :  { %6067 = vmatpush1.bf16.msra.mxu0 %v13615_v51  ;;  %6108 = vmatpush1.bf16.msra.mxu1 %v13836_v20  ;;  %v13890_v20 = vld [vmem:[#allocation61_spill] sm:$0xff] }
 0x79b   :  { %6068 = vmatprep.subr.bf16.mxu0 %v13616_v29  ;;  %6109 = vmatprep.subr.bf16.mxu1 %v13837_v34  ;;  %v13842_v29 = vld [vmem:[#allocation255_spill] sm:$0xff]  ;;  %v13843_v34 = vld [vmem:[#allocation200_spill] sm:$0xff]  ;;  %v13891_v51 = vld [vmem:[#allocation21_spill] sm:$0xff] }
 0x79e   :  { %6069 = vmatpush1.bf16.msra.mxu0 %v13617_v11  ;;  %6110 = vmatpush1.bf16.msra.mxu1 %v13838_v42  ;;  %v13844_v11 = vld [vmem:[#allocation256_spill] sm:$0xff]  ;;  %v13845_v42 = vld [vmem:[#allocation202_spill] sm:$0xff] }
 0x79f   :  { %6070 = vmatprep.subr.bf16.mxu0 %v13618_v1  ;;  %6111 = vmatprep.subr.bf16.mxu1 %v13839_v5  ;;  %v13846_v1 = vld [vmem:[#allocation257_spill] sm:$0xff]  ;;  %v13847_v5 = vld [vmem:[#allocation204_spill] sm:$0xff] }
 0x7a2   :  { %6071 = vmatpush1.bf16.msra.mxu0 %v13619_v27  ;;  %6112 = vmatpush1.bf16.msra.mxu1 %v13840_v4  ;;  %v13848_v27 = vld [vmem:[#allocation258_spill] sm:$0xff] }
 0x7a3   :  { %6072 = vmatprep.subr.bf16.mxu0 %v13620_v18  ;;  %6113 = vmatprep.subr.bf16.mxu1 %v13841_v23  ;;  %v13849_v4 = vld [vmem:[#allocation206_spill] sm:$0xff]  ;;  %v13850_v18 = vld [vmem:[#allocation259_spill] sm:$0xff]  ;;  %v13851_v23 = vld [vmem:[#allocation208_spill] sm:$0xff] }
 0x7a6   :  { %6073 = vmatpush1.bf16.msra.mxu0 %v13621_v19  ;;  %6114 = vmatpush1.bf16.msra.mxu1 %v13842_v29  ;;  %v13852_v19 = vld [vmem:[#allocation260_spill] sm:$0xff]  ;;  %v13853_v29 = vld [vmem:[#allocation210_spill] sm:$0xff] }
 0x7a7   :  { %6074 = vmatprep.subr.bf16.mxu0 %v13843_v34  ;;  %6115 = vmatprep.subr.bf16.mxu1 %v13844_v11  ;;  %v13854_v34 = vld [vmem:[#allocation261_spill] sm:$0xff]  ;;  %v13855_v11 = vld [vmem:[#allocation212_spill] sm:$0xff] }
 0x7aa   :  { %6075 = vmatpush1.bf16.msra.mxu0 %v13845_v42  ;;  %6116 = vmatpush1.bf16.msra.mxu1 %v13846_v1  ;;  %v13856_v42 = vld [vmem:[#allocation262_spill] sm:$0xff] }
 0x7ab   :  { %6076 = vmatprep.subr.bf16.mxu0 %v13847_v5  ;;  %6117 = vmatprep.subr.bf16.mxu1 %v13848_v27  ;;  %v13857_v1 = vld [vmem:[#allocation214_spill] sm:$0xff]  ;;  %v13858_v5 = vld [vmem:[#allocation263_spill] sm:$0xff]  ;;  %v13859_v27 = vld [vmem:[#allocation216_spill] sm:$0xff] }
 0x7ae   :  { %6077 = vmatpush1.bf16.msra.mxu0 %v13849_v4  ;;  %6118 = vmatpush1.bf16.msra.mxu1 %v13850_v18  ;;  %v13860_v4 = vld [vmem:[#allocation264_spill] sm:$0xff]  ;;  %v13861_v18 = vld [vmem:[#allocation218_spill] sm:$0xff] }
 0x7af   :  { %6078 = vmatprep.subr.bf16.mxu0 %v13851_v23  ;;  %6119 = vmatprep.subr.bf16.mxu1 %v13852_v19  ;;  %v13862_v23 = vld [vmem:[#allocation265_spill] sm:$0xff]  ;;  %v13863_v19 = vld [vmem:[#allocation220_spill] sm:$0xff] }
 0x7b2   :  { %6079 = vmatpush1.bf16.msra.mxu0 %v13853_v29  ;;  %6120 = vmatpush1.bf16.msra.mxu1 %v13854_v34  ;;  %v13864_v29 = vld [vmem:[#allocation267_spill] sm:$0xff]  ;;  %v13865_v34 = vld [vmem:[#allocation222_spill] sm:$0xff] }
 0x7b3   :  { %6080 = vmatprep.subr.bf16.mxu0 %v13855_v11  ;;  %6121 = vmatprep.subr.bf16.mxu1 %v13856_v42  ;;  %v13866_v11 = vld [vmem:[#allocation269_spill] sm:$0xff]  ;;  %v13867_v42 = vld [vmem:[#allocation224_spill] sm:$0xff] }
 0x7b6   :  { %6081 = vmatpush2.bf16.msra.mxu0 %v13857_v1  ;;  %6122 = vmatpush2.bf16.msra.mxu1 %v13858_v5  ;;  %v13868_v1 = vld [vmem:[#allocation270_spill] sm:$0xff]  ;;  %v13869_v5 = vld [vmem:[#allocation228_spill] sm:$0xff] }
 0x7b7   :  { %6082 = vmatprep.subr.bf16.mxu0 %v13859_v27  ;;  %6123 = vmatprep.subr.bf16.mxu1 %v13860_v4  ;;  %v13870_v27 = vld [vmem:[#allocation271_spill] sm:$0xff]  ;;  %v13871_v4 = vld [vmem:[#allocation230_spill] sm:$0xff] }
 0x7ba   :  { %6083 = vmatpush2.bf16.msra.mxu0 %v13861_v18  ;;  %6124 = vmatpush2.bf16.msra.mxu1 %v13862_v23  ;;  %v13872_v18 = vld [vmem:[#allocation272_spill] sm:$0xff] }
 0x7bb   :  { %6084 = vmatprep.subr.bf16.mxu0 %v13863_v19  ;;  %6125 = vmatprep.subr.bf16.mxu1 %v13864_v29  ;;  %v13873_v23 = vld [vmem:[#allocation232_spill] sm:$0xff]  ;;  %v13874_v19 = vld [vmem:[#allocation273_spill] sm:$0xff]  ;;  %v13875_v29 = vld [vmem:[#allocation234_spill] sm:$0xff] }
 0x7be   :  { %6085 = vmatpush2.bf16.msra.mxu0 %v13865_v34  ;;  %6126 = vmatpush2.bf16.msra.mxu1 %v13866_v11  ;;  %v13876_v34 = vld [vmem:[#allocation274_spill] sm:$0xff]  ;;  %v13877_v11 = vld [vmem:[#allocation235_spill] sm:$0xff] }
 0x7bf   :  { %6086 = vmatprep.subr.bf16.mxu0 %v13867_v42  ;;  %6127 = vmatprep.subr.bf16.mxu1 %v13868_v1  ;;  %v13878_v42 = vld [vmem:[#allocation276_spill] sm:$0xff] }
 0x7c0   :  { %v13879_v1 = vld [vmem:[#allocation236_spill] sm:$0xff] }
 0x7c2   :  { %6087 = vmatpush2.bf16.msra.mxu0 %v13869_v5  ;;  %6128 = vmatpush2.bf16.msra.mxu1 %v13870_v27  ;;  %v13880_v5 = vld [vmem:[#allocation278_spill] sm:$0xff]  ;;  %v13881_v27 = vld [vmem:[#allocation237_spill] sm:$0xff] }
 0x7c3   :  { %6088 = vmatprep.subr.bf16.mxu0 %v13871_v4  ;;  %6129 = vmatprep.subr.bf16.mxu1 %v13872_v18  ;;  %v13882_v4 = vld [vmem:[#allocation279_spill] sm:$0xff]  ;;  %v13883_v18 = vld [vmem:[#allocation238_spill] sm:$0xff] }
 0x7c6   :  { %6089 = vmatpush2.bf16.msra.mxu0 %v13873_v23  ;;  %6130 = vmatpush2.bf16.msra.mxu1 %v13874_v19  ;;  %v13884_v23 = vld [vmem:[#allocation280_spill] sm:$0xff] }
 0x7c7   :  { %6090 = vmatprep.subr.bf16.mxu0 %v13875_v29  ;;  %6131 = vmatprep.subr.bf16.mxu1 %v13876_v34  ;;  %v13885_v34 = vld [vmem:[#allocation239_spill] sm:$0xff] }
 0x7ca   :  { %6091 = vmatpush2.bf16.msra.mxu0 %v13877_v11  ;;  %6132 = vmatpush2.bf16.msra.mxu1 %v13878_v42  ;;  %v13886_v11 = vld [vmem:[#allocation281_spill] sm:$0xff] }
 0x7cb   :  { %6092 = vmatprep.subr.bf16.mxu0 %v13879_v1  ;;  %6133 = vmatprep.subr.bf16.mxu1 %v13880_v5  ;;  %v13887_v5 = vld [vmem:[#allocation19_spill] sm:$0xff] }
 0x7ce   :  { %6093 = vmatpush2.bf16.msra.mxu0 %v13881_v27  ;;  %6134 = vmatpush2.bf16.msra.mxu1 %v13882_v4  ;;  %v13888_v27 = vld [vmem:[#allocation59_spill] sm:$0xff]  ;;  %v13889_v4 = vld [vmem:[#allocation20_spill] sm:$0xff] }
 0x7cf   :  { %6094 = vmatprep.subr.bf16.mxu0 %v13883_v18  ;;  %6135 = vmatprep.subr.bf16.mxu1 %v13884_v23 }
 0x7d1   :  { %v11807_v19 = vpop.f32.mrf.mxu0  ;;  %v11809_v29 = vpop.f32.mrf.mxu1 }
 0x7d2   :  { %6095 = vmatpush2.bf16.msra.mxu0 %v13885_v34  ;;  %6136 = vmatpush2.bf16.msra.mxu1 %v13886_v11 }
 0x7d3   :  { %v11813_v42 = vpop.f32.mrf.mxu0  ;;  %v11815_v1 = vpop.f32.mrf.mxu1  ;;  %6270 = vmatprep.subr.bf16.mxu0 %v13887_v5  ;;  %6311 = vmatprep.subr.bf16.mxu1 %v13888_v27  ;;  %v13894_v5 = vld [vmem:[#allocation65_spill] sm:$0xff]  ;;  %v13895_v27 = vld [vmem:[#allocation23_spill] sm:$0xff] }
 0x7d5   :  { %6097 = vmatmul.mubr.bf16.vlgmr.msra.gmra.mxu0 %v11743_v12  ;;  %6138 = vmatmul.mubr.bf16.vlgmr.msra.gmra.mxu1 %v11743_v12  ;;  %v5816_v23 = vpop.f32.mrf.mxu0  ;;  %v5857_v18 = vpop.f32.mrf.mxu1  ;;  %v13899_v12 = vld [vmem:[#allocation25_spill] sm:$0xff] }
 0x7d6   :  { %6271 = vmatpush1.bf16.msra.mxu0 %v13889_v4  ;;  %6312 = vmatpush1.bf16.msra.mxu1 %v13890_v20  ;;  %v13897_v23 = vld [vmem:[#allocation24_spill] sm:$0xff]  ;;  %v13898_v18 = vld [vmem:[#allocation69_spill] sm:$0xff]  ;;  %v13900_v20 = vld [vmem:[#allocation71_spill] sm:$0xff] }
 0x7d7   :  { %v5817_v34 = vpop.f32.mrf.mxu0  ;;  %v5858_v11 = vpop.f32.mrf.mxu1  ;;  %6272 = vmatprep.subr.bf16.mxu0 %v13891_v51  ;;  %6313 = vmatprep.subr.bf16.mxu1 %v13892_v33  ;;  %v13902_v51 = vld [vmem:[#allocation73_spill] sm:$0xff]  ;;  %v13903_v33 = vld [vmem:[#allocation27_spill] sm:$0xff] }
 0x7d8   :  { %v13901_v11 = vld [vmem:[#allocation26_spill] sm:$0xff]  ;;  %v13905_v34 = vld [vmem:[#allocation28_spill] sm:$0xff]  ;;  %v13906_v4 = vld [vmem:[#allocation77_spill] sm:$0xff] }
 0x7da   :  { %6273 = vmatpush1.bf16.msra.mxu0 %v13893_v58  ;;  %6314 = vmatpush1.bf16.msra.mxu1 %v13894_v5  ;;  %v13904_v58 = vld [vmem:[#allocation75_spill] sm:$0xff] }
 0x7db   :  { %6274 = vmatprep.subr.bf16.mxu0 %v13895_v27  ;;  %6315 = vmatprep.subr.bf16.mxu1 %v13896_v32  ;;  %v13907_v32 = vld [vmem:[#allocation29_spill] sm:$0xff]  ;;  %v13908_v5 = vld [vmem:[#allocation79_spill] sm:$0xff]  ;;  %v13909_v27 = vld [vmem:[#allocation30_spill] sm:$0xff] }
 0x7de   :  { %6275 = vmatpush1.bf16.msra.mxu0 %v13897_v23  ;;  %6316 = vmatpush1.bf16.msra.mxu1 %v13898_v18  ;;  %v13910_v23 = vld [vmem:[#allocation81_spill] sm:$0xff]  ;;  %v13911_v18 = vld [vmem:[#allocation31_spill] sm:$0xff] }
 0x7df   :  { %6276 = vmatprep.subr.bf16.mxu0 %v13899_v12  ;;  %6317 = vmatprep.subr.bf16.mxu1 %v13900_v20  ;;  %v13912_v12 = vld [vmem:[#allocation83_spill] sm:$0xff]  ;;  %v13913_v20 = vld [vmem:[#allocation32_spill] sm:$0xff] }
 0x7e2   :  { %6277 = vmatpush1.bf16.msra.mxu0 %v13901_v11  ;;  %6318 = vmatpush1.bf16.msra.mxu1 %v13902_v51  ;;  %v13914_v11 = vld [vmem:[#allocation85_spill] sm:$0xff] }
 0x7e3   :  { %6278 = vmatprep.subr.bf16.mxu0 %v13903_v33  ;;  %6319 = vmatprep.subr.bf16.mxu1 %v13904_v58  ;;  %v13915_v51 = vld [vmem:[#allocation33_spill] sm:$0xff]  ;;  %v13916_v33 = vld [vmem:[#allocation87_spill] sm:$0xff]  ;;  %v13917_v58 = vld [vmem:[#allocation34_spill] sm:$0xff] }
 0x7e6   :  { %6279 = vmatpush1.bf16.msra.mxu0 %v13905_v34  ;;  %6320 = vmatpush1.bf16.msra.mxu1 %v13906_v4  ;;  %v13918_v34 = vld [vmem:[#allocation89_spill] sm:$0xff]  ;;  %v13919_v4 = vld [vmem:[#allocation35_spill] sm:$0xff] }
 0x7e7   :  { %6280 = vmatprep.subr.bf16.mxu0 %v13907_v32  ;;  %6321 = vmatprep.subr.bf16.mxu1 %v13908_v5  ;;  %v13920_v32 = vld [vmem:[#allocation91_spill] sm:$0xff]  ;;  %v13921_v5 = vld [vmem:[#allocation36_spill] sm:$0xff] }
 0x7ea   :  { %6281 = vmatpush1.bf16.msra.mxu0 %v13909_v27  ;;  %6322 = vmatpush1.bf16.msra.mxu1 %v13910_v23  ;;  %v13922_v27 = vld [vmem:[#allocation93_spill] sm:$0xff] }
 0x7eb   :  { %6282 = vmatprep.subr.bf16.mxu0 %v13911_v18  ;;  %6323 = vmatprep.subr.bf16.mxu1 %v13912_v12  ;;  %v13923_v23 = vld [vmem:[#allocation37_spill] sm:$0xff]  ;;  %v13924_v18 = vld [vmem:[#allocation95_spill] sm:$0xff]  ;;  %v13925_v12 = vld [vmem:[#allocation38_spill] sm:$0xff] }
 0x7ee   :  { %6283 = vmatpush1.bf16.msra.mxu0 %v13913_v20  ;;  %6324 = vmatpush1.bf16.msra.mxu1 %v13914_v11  ;;  %v13926_v20 = vld [vmem:[#allocation97_spill] sm:$0xff]  ;;  %v13927_v11 = vld [vmem:[#allocation39_spill] sm:$0xff] }
 0x7ef   :  { %6284 = vmatprep.subr.bf16.mxu0 %v13915_v51  ;;  %6325 = vmatprep.subr.bf16.mxu1 %v13916_v33  ;;  %v13928_v51 = vld [vmem:[#allocation99_spill] sm:$0xff]  ;;  %v13929_v33 = vld [vmem:[#allocation40_spill] sm:$0xff] }
 0x7f2   :  { %6285 = vmatpush1.bf16.msra.mxu0 %v13917_v58  ;;  %6326 = vmatpush1.bf16.msra.mxu1 %v13918_v34  ;;  %v13930_v58 = vld [vmem:[#allocation101_spill] sm:$0xff] }
 0x7f3   :  { %6286 = vmatprep.subr.bf16.mxu0 %v13919_v4  ;;  %6327 = vmatprep.subr.bf16.mxu1 %v13920_v32  ;;  %v13931_v34 = vld [vmem:[#allocation41_spill] sm:$0xff]  ;;  %v13932_v4 = vld [vmem:[#allocation103_spill] sm:$0xff]  ;;  %v5952_v32 = vrot.slane %v11809_v29, 4 }
 0x7f4   :  { %v13940_v29 = vld [vmem:[#allocation109_spill] sm:$0xff] }
 0x7f6   :  { %6287 = vmatpush2.bf16.msra.mxu0 %v13921_v5  ;;  %6328 = vmatpush2.bf16.msra.mxu1 %v13922_v27  ;;  %v5950_v5 = vrot.slane %v11807_v19, 4  ;;  %v13933_v27 = vld [vmem:[#allocation42_spill] sm:$0xff]  ;;  %v13941_v19 = vld [vmem:[#allocation137_spill] sm:$0xff] }
 0x7f7   :  { %6288 = vmatprep.subr.bf16.mxu0 %v13923_v23  ;;  %6329 = vmatprep.subr.bf16.mxu1 %v13924_v18  ;;  %v13934_v23 = vld [vmem:[#allocation105_spill] sm:$0xff]  ;;  %v5953_v18 = vrot.slane %v11815_v1, 4 }
 0x7fa   :  { %6289 = vmatpush2.bf16.msra.mxu0 %v13925_v12  ;;  %6330 = vmatpush2.bf16.msra.mxu1 %v13926_v20  ;;  %v13935_v12 = vld [vmem:[#allocation43_spill] sm:$0xff] }
 0x7fb   :  { %6290 = vmatprep.subr.bf16.mxu0 %v13927_v11  ;;  %6331 = vmatprep.subr.bf16.mxu1 %v13928_v51  ;;  %v13936_v20 = vld [vmem:[#allocation107_spill] sm:$0xff]  ;;  %v13937_v11 = vld [vmem:[#allocation18_spill] sm:$0xff] }
 0x7fc   :  { %v5968_v51 = vadd.f32 %v5952_v32, %v13937_v11  ;;  %v13946_v32 = vld [vmem:[#allocation113_spill] sm:$0xff] }
 0x7fe   :  { %6291 = vmatpush2.bf16.msra.mxu0 %v13929_v33  ;;  %6332 = vmatpush2.bf16.msra.mxu1 %v13930_v58  ;;  %v5951_v33 = vrot.slane %v11813_v42, 4  ;;  %v13938_v58 = vld [vmem:[#allocation266_spill] sm:$0xff]  ;;  %v6186_v1 = vmul.f32 0.5, %v5968_v51  ;;  %v13951_v51 = vld [vmem:[#allocation49_spill] sm:$0xff] }
 0x7ff   :  { %6292 = vmatprep.subr.bf16.mxu0 %v13931_v34  ;;  %6333 = vmatprep.subr.bf16.mxu1 %v13932_v4  ;;  %v5966_v34 = vadd.f32 %v5950_v5, %v13938_v58  ;;  %v13939_v4 = vld [vmem:[#allocation44_spill] sm:$0xff]  ;;  %v13947_v5 = vld [vmem:[#allocation47_spill] sm:$0xff] }
 0x800   :  { %9123 = vtanh.f32 %v6186_v1 }
 0x802   :  { %6293 = vmatpush2.bf16.msra.mxu0 %v13933_v27  ;;  %6334 = vmatpush2.bf16.msra.mxu1 %v13934_v23  ;;  %v5969_v27 = vadd.f32 %v5953_v18, %v13941_v19  ;;  %v13943_v23 = vld [vmem:[#allocation111_spill] sm:$0xff]  ;;  %v13949_v18 = vld [vmem:[#allocation48_spill] sm:$0xff] }
 0x803   :  { %6294 = vmatprep.subr.bf16.mxu0 %v13935_v12  ;;  %6335 = vmatprep.subr.bf16.mxu1 %v13936_v20  ;;  %v13944_v12 = vld [vmem:[#allocation268_spill] sm:$0xff]  ;;  %v6178_v20 = vmul.f32 0.5, %v5966_v34 }
 0x804   :  { %v5967_v37 = vadd.f32 %v5951_v33, %v13944_v12  ;;  %v6187_v42 = vmul.f32 0.5, %v5969_v27  ;;  %v13952_v33 = vld [vmem:[#allocation119_spill] sm:$0xff]  ;;  %v13957_v12 = vld [vmem:[#allocation140_spill] sm:$0xff] }
 0x805   :  { %9125 = vtanh.f32 %v6178_v20  ;;  %v13955_v20 = vld [vmem:[#allocation51_spill] sm:$0xff] }
 0x806   :  { %6295 = vmatpush2.bf16.msra.mxu0 %v13939_v4  ;;  %6336 = vmatpush2.bf16.msra.mxu1 %v13940_v29  ;;  %v13948_v4 = vld [vmem:[#allocation115_spill] sm:$0xff]  ;;  %v6179_v29 = vmul.f32 0.5, %v5967_v37  ;;  %9127 = vtanh.f32 %v6187_v42 }
 0x807   :  { %6296 = vmatprep.subr.bf16.mxu0 %v13942_v6  ;;  %6337 = vmatprep.subr.bf16.mxu1 %v13943_v23  ;;  %v13950_v6 = vld [vmem:[#allocation117_spill] sm:$0xff]  ;;  %v13953_v23 = vld [vmem:[#allocation50_spill] sm:$0xff] }
 0x808   :  { %9129 = vtanh.f32 %v6179_v29 }
 0x80a   :  { %6297 = vmatpush2.bf16.msra.mxu0 %v13945_v10  ;;  %6338 = vmatpush2.bf16.msra.mxu1 %v13946_v32  ;;  %v13954_v32 = vld [vmem:[#allocation121_spill] sm:$0xff] }
 0x80b   :  { %6298 = vmatprep.subr.bf16.mxu0 %v13947_v5  ;;  %6339 = vmatprep.subr.bf16.mxu1 %v13948_v4  ;;  %v13956_v5 = vld [vmem:[#allocation123_spill] sm:$0xff] }
 0x80d   :  { %v9124_v19 = vpop.eup %9123 }
 0x80e   :  { %6299 = vmatpush2.bf16.msra.mxu0 %v13949_v18  ;;  %6340 = vmatpush2.bf16.msra.mxu1 %v13950_v6  ;;  %v6190_v53 = vadd.f32 1.0, %v9124_v19 }
 0x80f   :  { %6300 = vmatprep.subr.bf16.mxu0 %v13951_v51  ;;  %6341 = vmatprep.subr.bf16.mxu1 %v13952_v33 }
 0x811   :  { %v5894_v10 = vpop.f32.mrf.mxu0  ;;  %v5935_v34 = vpop.f32.mrf.mxu1 }
 0x812   :  { %v5954_v27 = vrot.slane %v5894_v10, 4  ;;  %6301 = vmatpush2.bf16.msra.mxu0 %v13953_v23  ;;  %6342 = vmatpush2.bf16.msra.mxu1 %v13954_v32  ;;  %v5956_v4 = vrot.slane %v5935_v34, 4  ;;  %v9126_v58 = vpop.eup %9125 }
 0x813   :  { %v5896_v1 = vpop.f32.mrf.mxu0  ;;  %v5937_v37 = vpop.f32.mrf.mxu1  ;;  %6352 = vmatprep.subr.bf16.mxu0 %v13955_v20  ;;  %6393 = vmatprep.subr.bf16.mxu1 %v13956_v5  ;;  %v13958_v20 = vld [vmem:[#allocation181_spill] sm:$0xff] }
 0x814   :  { %v5970_v42 = vadd.f32 %v5954_v27, %v13722_v36  ;;  %v5955_v18 = vrot.slane %v5896_v1, 4  ;;  %v5957_v33 = vrot.slane %v5937_v37, 4  ;;  %v5972_v32 = vadd.f32 %v5956_v4, %v13957_v12  ;;  %v9128_v5 = vpop.eup %9127 }
 0x815   :  { %v5898_v6 = vpop.f32.mrf.mxu0  ;;  %v5939_v51 = vpop.f32.mrf.mxu1  ;;  %v6182_v1 = vadd.f32 1.0, %v9126_v58 }
 0x816   :  { %9131 = vtanh.f32 %v5970_v42  ;;  %v5971_v29 = vadd.f32 %v5955_v18, %v13723_v38  ;;  %v5973_v11 = vadd.f32 %v5957_v33, %v13958_v20  ;;  %v6196_v27 = vmul.f32 0.5, %v5972_v32  ;;  %v9130_v34 = vpop.eup %9129 }
 0x817   :  { %v5899_v10 = vpop.f32.mrf.mxu0  ;;  %v5940_v23 = vpop.f32.mrf.mxu1  ;;  %v6191_v6 = vadd.f32 1.0, %v9128_v5  ;;  %v6192_v42 = vmul.f32 0.5, %v6190_v53  ;;  %v6183_v18 = vadd.f32 1.0, %v9130_v34  ;;  %v6184_v37 = vmul.f32 0.5, %v6182_v1 }
 0x818   :  { %9133 = vtanh.f32 %v5971_v29  ;;  %v6197_v51 = vmul.f32 0.5, %v5973_v11  ;;  %v6206_v10 = vrot.slane %v11559_v15, 6  ;;  %v6207_v33 = vrot.slane %v11562_v17, 6  ;;  %v13959_v17 = vld [vmem:[#allocation184_spill] sm:$0xff] }
 0x819   :  { %9135 = vtanh.f32 %v6196_v27  ;;  %v6193_v4 = vmul.f32 0.5, %v6191_v6  ;;  %v6185_v38 = vmul.f32 0.5, %v6183_v18 }
 0x81a   :  { %9137 = vtanh.f32 %v6197_v51  ;;  %v6210_v29 = vmul.f32 %v6206_v10, %v6192_v42 }
 0x81b   :  { %v6211_v58 = vmul.f32 %v6207_v33, %v6193_v4 }
 0x823   :  { %v9132_v23 = vpop.eup %9131 }
 0x824   :  { %v6212_v12 = vmul.f32 %v9132_v23, %v6184_v37  ;;  %v13960_v23 = vld [vmem:[#allocation282_spill] sm:$0xff] }
 0x825   :  { %v9134_v19 = vpop.eup %9133  ;;  %v6731_v4 = vsel %vm223_vm0, %v13960_v23, %v11567_v13  ;;  %v13962_v13 = vld [vmem:[#allocation127_spill] sm:$0xff]  ;;  %v13979_v23 = vld [vmem:[#allocation66_spill] sm:$0xff] }
 0x826   :  { %v11899_v32 = vadd.f32 %v6212_v12, %v6210_v29  ;;  %v6213_v5 = vmul.f32 %v9134_v19, %v6185_v38  ;;  %v9136_v15 = vpop.eup %9135  ;;  %v6730_v12 = vsel %vm223_vm0, %v13959_v17, %v11565_v63  ;;  %v13961_v63 = vld [vmem:[#allocation53_spill] sm:$0xff]  ;;  %v13973_v17 = vld [vmem:[#allocation60_spill] sm:$0xff] }
 0x827   :  { %v9138_v11 = vpop.eup %9137  ;;  %v6200_v27 = vadd.f32 1.0, %v9136_v15  ;;  %v13964_v15 = vld [vmem:[#allocation129_spill] sm:$0xff] }
 0x828   :  { %9139 = vtanh.f32 %v11899_v32  ;;  %v11902_v53 = vadd.f32 %v6213_v5, %v6211_v58  ;;  %v6201_v34 = vadd.f32 1.0, %v9138_v11  ;;  %v13963_v5 = vld [vmem:[#allocation54_spill] sm:$0xff]  ;;  %v13965_v11 = vld [vmem:[#allocation55_spill] sm:$0xff] }
 0x829   :  { %v6202_v1 = vmul.f32 0.5, %v6200_v27  ;;  %v13966_v27 = vld [vmem:[#allocation131_spill] sm:$0xff] }
 0x82a   :  { %9141 = vtanh.f32 %v11902_v53  ;;  %v6203_v42 = vmul.f32 0.5, %v6201_v34  ;;  %v13967_v34 = vld [vmem:[#allocation56_spill] sm:$0xff] }
 0x835   :  { %v9140_v6 = vpop.eup %9139 }
 0x836   :  { %v6218_v51 = vmul.f32 %v9140_v6, %v6202_v1  ;;  %v13968_v1 = vld [vmem:[#allocation133_spill] sm:$0xff]  ;;  %v13971_v6 = vld [vmem:[#allocation58_spill] sm:$0xff] }
 0x837   :  { %v9142_v38 = vpop.eup %9141 }
 0x838   :  { %v11909_v18 = vsel %vm6732_vm9, %v6730_v12, %v6218_v51  ;;  %v6219_v37 = vmul.f32 %v9142_v38, %v6203_v42  ;;  %v6262_v10 = vpack.c.bf16 %v6218_v51, %v6218_v51  ;;  %v13972_v51 = vld [vmem:[#allocation139_spill] sm:$0xff]  ;;  %v13975_v42 = vld [vmem:[#allocation62_spill] sm:$0xff]  ;;  %v13976_v38 = vld [vmem:[#allocation145_spill] sm:$0xff] }
 0x839   :  { %v13974_v12 = vld [vmem:[#allocation143_spill] sm:$0xff] }
 0x83a   :  { %v6263_v29 = vpack.c.bf16 %v6219_v37, %v6219_v37  ;;  %v11915_v33 = vsel %vm6732_vm9, %v6731_v4, %v6219_v37  ;;  %v11917_v58 = vrot.slane %v6262_v10, 2  ;;  %v13977_v37 = vld [vmem:[#allocation64_spill] sm:$0xff]  ;;  %v13978_v10 = vld [vmem:[#allocation147_spill] sm:$0xff]  ;;  %v13980_v4 = vld [vmem:[#allocation149_spill] sm:$0xff] }
 0x83c   :  { %v6267_v19 = vrot.slane %v6263_v29, 2 }
 0x83e   :  { %6302 = vmatprep.mubr.bf16.mxu0 %v6267_v19  ;;  %6343 = vmatprep.mubr.bf16.mxu1 %v6267_v19 }
 0x83f   :  { %6303 = vmatmul.mubr.bf16.vlgmr.msra.gmra.mxu0 %v11917_v58  ;;  %6344 = vmatmul.mubr.bf16.vlgmr.msra.gmra.mxu1 %v11917_v58 }
 0x840   :  { %6353 = vmatpush1.bf16.msra.mxu0 %v13477_v35  ;;  %6394 = vmatpush1.bf16.msra.mxu1 %v13724_v46  ;;  %v13969_v35 = vld [vmem:[#allocation57_spill] sm:$0xff]  ;;  %v13970_v46 = vld [vmem:[#allocation135_spill] sm:$0xff] }
 0x841   :  { %6384 = vmatprep.mubr.bf16.mxu0 %v6267_v19  ;;  %6425 = vmatprep.mubr.bf16.mxu1 %v6267_v19 }
 0x842   :  { %6354 = vmatprep.subr.bf16.mxu0 %v13961_v63  ;;  %6395 = vmatprep.subr.bf16.mxu1 %v13962_v13  ;;  %v13981_v63 = vld [vmem:[#allocation68_spill] sm:$0xff]  ;;  %v13982_v13 = vld [vmem:[#allocation151_spill] sm:$0xff] }
 0x844   :  { %6355 = vmatpush1.bf16.msra.mxu0 %v13963_v5  ;;  %6396 = vmatpush1.bf16.msra.mxu1 %v13964_v15 }
 0x845   :  { %6356 = vmatprep.subr.bf16.mxu0 %v13965_v11  ;;  %6397 = vmatprep.subr.bf16.mxu1 %v13966_v27  ;;  %v13983_v11 = vld [vmem:[#allocation70_spill] sm:$0xff] }
 0x848   :  { %6357 = vmatpush1.bf16.msra.mxu0 %v13967_v34  ;;  %6398 = vmatpush1.bf16.msra.mxu1 %v13968_v1  ;;  %v13984_v1 = vld [vmem:[#allocation72_spill] sm:$0xff] }
 0x849   :  { %6358 = vmatprep.subr.bf16.mxu0 %v13969_v35  ;;  %6399 = vmatprep.subr.bf16.mxu1 %v13970_v46 }
 0x84c   :  { %6359 = vmatpush1.bf16.msra.mxu0 %v13971_v6  ;;  %6400 = vmatpush1.bf16.msra.mxu1 %v13972_v51  ;;  %v13985_v6 = vld [vmem:[#allocation157_spill] sm:$0xff]  ;;  %v13986_v51 = vld [vmem:[#allocation76_spill] sm:$0xff] }
 0x84d   :  { %6360 = vmatprep.subr.bf16.mxu0 %v13973_v17  ;;  %6401 = vmatprep.subr.bf16.mxu1 %v13974_v12  ;;  %v13987_v17 = vld [vmem:[#allocation159_spill] sm:$0xff]  ;;  %v13988_v12 = vld [vmem:[#allocation78_spill] sm:$0xff] }
 0x850   :  { %6361 = vmatpush1.bf16.msra.mxu0 %v13975_v42  ;;  %6402 = vmatpush1.bf16.msra.mxu1 %v13976_v38  ;;  %v13989_v42 = vld [vmem:[#allocation161_spill] sm:$0xff]  ;;  %v13991_v38 = vld [vmem:[#allocation163_spill] sm:$0xff] }
 0x851   :  { %6362 = vmatprep.subr.bf16.mxu0 %v13977_v37  ;;  %6403 = vmatprep.subr.bf16.mxu1 %v13978_v10  ;;  %v13992_v37 = vld [vmem:[#allocation82_spill] sm:$0xff]  ;;  %v13994_v10 = vld [vmem:[#allocation84_spill] sm:$0xff] }
 0x854   :  { %6363 = vmatpush1.bf16.msra.mxu0 %v13979_v23  ;;  %6404 = vmatpush1.bf16.msra.mxu1 %v13980_v4  ;;  %v13996_v23 = vld [vmem:[#allocation86_spill] sm:$0xff]  ;;  %v13997_v4 = vld [vmem:[#allocation169_spill] sm:$0xff] }
 0x855   :  { %v11943_v29 = vpop.f32.mrf.mxu0  ;;  %v11945_v19 = vpop.f32.mrf.mxu1  ;;  %6364 = vmatprep.subr.bf16.mxu0 %v13981_v63  ;;  %6405 = vmatprep.subr.bf16.mxu1 %v13982_v13  ;;  %v13998_v63 = vld [vmem:[#allocation88_spill] sm:$0xff]  ;;  %v13999_v13 = vld [vmem:[#allocation171_spill] sm:$0xff] }
 0x857   :  { %v11949_v5 = vpop.f32.mrf.mxu0  ;;  %v11951_v15 = vpop.f32.mrf.mxu1 }
 0x858   :  { %6365 = vmatpush1.bf16.msra.mxu0 %v13983_v11  ;;  %6406 = vmatpush1.bf16.msra.mxu1 %v13748_v47  ;;  %v13990_v47 = vld [vmem:[#allocation80_spill] sm:$0xff]  ;;  %v14000_v11 = vld [vmem:[#allocation90_spill] sm:$0xff] }
 0x859   :  { %v6020_v27 = vpop.f32.mrf.mxu0  ;;  %v6061_v34 = vpop.f32.mrf.mxu1  ;;  %6366 = vmatprep.subr.bf16.mxu0 %v13984_v1  ;;  %6407 = vmatprep.subr.bf16.mxu1 %v13750_v14  ;;  %v13993_v14 = vld [vmem:[#allocation165_spill] sm:$0xff]  ;;  %v14003_v1 = vld [vmem:[#allocation175_spill] sm:$0xff] }
 0x85a   :  { %v14001_v27 = vld [vmem:[#allocation173_spill] sm:$0xff]  ;;  %v14002_v34 = vld [vmem:[#allocation92_spill] sm:$0xff] }
 0x85b   :  { %v6021_v35 = vpop.f32.mrf.mxu0  ;;  %v6062_v46 = vpop.f32.mrf.mxu1 }
 0x85c   :  { %6367 = vmatpush1.bf16.msra.mxu0 %v13751_v0  ;;  %6408 = vmatpush1.bf16.msra.mxu1 %v13985_v6  ;;  %v13995_v0 = vld [vmem:[#allocation167_spill] sm:$0xff]  ;;  %v14004_v35 = vld [vmem:[#allocation94_spill] sm:$0xff]  ;;  %v14005_v46 = vld [vmem:[#allocation177_spill] sm:$0xff] }
 0x85d   :  { %6368 = vmatprep.subr.bf16.mxu0 %v13986_v51  ;;  %6409 = vmatprep.subr.bf16.mxu1 %v13987_v17  ;;  %v14006_v6 = vld [vmem:[#allocation96_spill] sm:$0xff]  ;;  %v14007_v51 = vld [vmem:[#allocation179_spill] sm:$0xff]  ;;  %v14008_v17 = vld [vmem:[#allocation98_spill] sm:$0xff] }
 0x860   :  { %6369 = vmatpush2.bf16.msra.mxu0 %v13988_v12  ;;  %6410 = vmatpush2.bf16.msra.mxu1 %v13989_v42  ;;  %v14009_v12 = vld [vmem:[#allocation100_spill] sm:$0xff]  ;;  %v14010_v42 = vld [vmem:[#allocation186_spill] sm:$0xff] }
 0x861   :  { %6370 = vmatprep.subr.bf16.mxu0 %v13990_v47  ;;  %6411 = vmatprep.subr.bf16.mxu1 %v13991_v38  ;;  %v14011_v47 = vld [vmem:[#allocation102_spill] sm:$0xff]  ;;  %v14012_v38 = vld [vmem:[#allocation189_spill] sm:$0xff] }
 0x864   :  { %6371 = vmatpush2.bf16.msra.mxu0 %v13992_v37  ;;  %6412 = vmatpush2.bf16.msra.mxu1 %v13993_v14  ;;  %v14013_v37 = vld [vmem:[#allocation104_spill] sm:$0xff]  ;;  %v14014_v14 = vld [vmem:[#allocation191_spill] sm:$0xff] }
 0x865   :  { %6372 = vmatprep.subr.bf16.mxu0 %v13994_v10  ;;  %6413 = vmatprep.subr.bf16.mxu1 %v13995_v0  ;;  %v14015_v10 = vld [vmem:[#allocation106_spill] sm:$0xff]  ;;  %v14016_v0 = vld [vmem:[#allocation193_spill] sm:$0xff] }
 0x868   :  { %6373 = vmatpush2.bf16.msra.mxu0 %v13996_v23  ;;  %6414 = vmatpush2.bf16.msra.mxu1 %v13997_v4  ;;  %v14017_v23 = vld [vmem:[#allocation108_spill] sm:$0xff]  ;;  %v14018_v4 = vld [vmem:[#allocation195_spill] sm:$0xff] }
 0x869   :  { %6374 = vmatprep.subr.bf16.mxu0 %v13998_v63  ;;  %6415 = vmatprep.subr.bf16.mxu1 %v13999_v13  ;;  %v14020_v63 = vld [vmem:[#allocation197_spill] sm:$0xff]  ;;  %v14021_v13 = vld [vmem:[#allocation112_spill] sm:$0xff] }
 0x86c   :  { %6375 = vmatpush2.bf16.msra.mxu0 %v14000_v11  ;;  %6416 = vmatpush2.bf16.msra.mxu1 %v14001_v27  ;;  %v14022_v11 = vld [vmem:[#allocation199_spill] sm:$0xff]  ;;  %v6156_v27 = vrot.slane %v11945_v19, 6  ;;  %v14030_v19 = vld [vmem:[#allocation52_spill] sm:$0xff] }
 0x86d   :  { %6376 = vmatprep.subr.bf16.mxu0 %v14002_v34  ;;  %6417 = vmatprep.subr.bf16.mxu1 %v14003_v1  ;;  %v14023_v34 = vld [vmem:[#allocation114_spill] sm:$0xff]  ;;  %v14024_v1 = vld [vmem:[#allocation201_spill] sm:$0xff] }
 0x870   :  { %6377 = vmatpush2.bf16.msra.mxu0 %v14004_v35  ;;  %6418 = vmatpush2.bf16.msra.mxu1 %v14005_v46  ;;  %v6154_v35 = vrot.slane %v11943_v29, 6  ;;  %v14025_v46 = vld [vmem:[#allocation116_spill] sm:$0xff]  ;;  %v14033_v29 = vld [vmem:[#allocation225_spill] sm:$0xff] }
 0x871   :  { %6378 = vmatprep.subr.bf16.mxu0 %v14006_v6  ;;  %6419 = vmatprep.subr.bf16.mxu1 %v14007_v51  ;;  %v14026_v6 = vld [vmem:[#allocation203_spill] sm:$0xff] }
 0x872   :  { %v14027_v51 = vld [vmem:[#allocation187_spill] sm:$0xff] }
 0x874   :  { %6379 = vmatpush2.bf16.msra.mxu0 %v14008_v17  ;;  %6420 = vmatpush2.bf16.msra.mxu1 %v13775_v30  ;;  %v14019_v30 = vld [vmem:[#allocation110_spill] sm:$0xff]  ;;  %v6172_v17 = vadd.f32 %v6156_v27, %v14027_v51 }
 0x875   :  { %6380 = vmatprep.subr.bf16.mxu0 %v14009_v12  ;;  %6421 = vmatprep.subr.bf16.mxu1 %v14010_v42  ;;  %v6155_v12 = vrot.slane %v11949_v5, 6  ;;  %v14028_v42 = vld [vmem:[#allocation118_spill] sm:$0xff] }
 0x878   :  { %6381 = vmatpush2.bf16.msra.mxu0 %v14011_v47  ;;  %6422 = vmatpush2.bf16.msra.mxu1 %v14012_v38  ;;  %v14029_v47 = vld [vmem:[#allocation205_spill] sm:$0xff]  ;;  %v6170_v38 = vadd.f32 %v6154_v35, %v14030_v19  ;;  %v14041_v35 = vld [vmem:[#allocation128_spill] sm:$0xff] }
 0x879   :  { %6382 = vmatprep.subr.bf16.mxu0 %v14013_v37  ;;  %6423 = vmatprep.subr.bf16.mxu1 %v14014_v14  ;;  %v14031_v37 = vld [vmem:[#allocation120_spill] sm:$0xff]  ;;  %v14032_v14 = vld [vmem:[#allocation207_spill] sm:$0xff] }
 0x87a   :  { %v6220_v5 = vmul.f32 0.5, %v6170_v38  ;;  %v14046_v38 = vld [vmem:[#allocation219_spill] sm:$0xff] }
 0x87c   :  { %6383 = vmatpush2.bf16.msra.mxu0 %v14015_v10  ;;  %6424 = vmatpush2.bf16.msra.mxu1 %v14016_v0  ;;  %v6228_v0 = vmul.f32 0.5, %v6172_v17  ;;  %v14043_v17 = vld [vmem:[#allocation130_spill] sm:$0xff] }
 0x87d   :  { %6474 = vmatprep.subr.bf16.mxu0 %v14017_v23  ;;  %6515 = vmatprep.subr.bf16.mxu1 %v14018_v4  ;;  %v14034_v23 = vld [vmem:[#allocation138_spill] sm:$0xff] }
 0x87e   :  { %v6171_v4 = vadd.f32 %v6155_v12, %v14034_v23  ;;  %9143 = vtanh.f32 %v6228_v0  ;;  %v14044_v12 = vld [vmem:[#allocation217_spill] sm:$0xff] }
 0x87f   :  { %6385 = vmatmul.mubr.bf16.vlgmr.msra.gmra.mxu0 %v11917_v58  ;;  %6426 = vmatmul.mubr.bf16.vlgmr.msra.gmra.mxu1 %v11917_v58  ;;  %v6157_v58 = vrot.slane %v11951_v15, 6  ;;  %v14035_v15 = vld [vmem:[#allocation122_spill] sm:$0xff]  ;;  %9145 = vtanh.f32 %v6220_v5 }
 0x880   :  { %6475 = vmatpush1.bf16.msra.mxu0 %v14019_v30  ;;  %6516 = vmatpush1.bf16.msra.mxu1 %v14020_v63  ;;  %v14036_v30 = vld [vmem:[#allocation209_spill] sm:$0xff]  ;;  %v14037_v63 = vld [vmem:[#allocation124_spill] sm:$0xff]  ;;  %v6221_v27 = vmul.f32 0.5, %v6171_v4  ;;  %v14047_v5 = vld [vmem:[#allocation182_spill] sm:$0xff] }
 0x881   :  { %6476 = vmatprep.subr.bf16.mxu0 %v14021_v13  ;;  %6517 = vmatprep.subr.bf16.mxu1 %v14022_v11  ;;  %v6173_v10 = vadd.f32 %v6157_v58, %v14033_v29  ;;  %v14038_v13 = vld [vmem:[#allocation211_spill] sm:$0xff] }
 0x883   :  { %v6229_v11 = vmul.f32 0.5, %v6173_v10 }
 0x884   :  { %6477 = vmatpush1.bf16.msra.mxu0 %v14023_v34  ;;  %6518 = vmatpush1.bf16.msra.mxu1 %v14024_v1  ;;  %v14039_v34 = vld [vmem:[#allocation126_spill] sm:$0xff]  ;;  %v14040_v1 = vld [vmem:[#allocation213_spill] sm:$0xff] }
 0x885   :  { %6478 = vmatprep.subr.bf16.mxu0 %v14025_v46  ;;  %6519 = vmatprep.subr.bf16.mxu1 %v14026_v6  ;;  %v14042_v46 = vld [vmem:[#allocation215_spill] sm:$0xff]  ;;  %9147 = vtanh.f32 %v6229_v11 }
 0x886   :  { %9149 = vtanh.f32 %v6221_v27  ;;  %v14049_v11 = vld [vmem:[#allocation223_spill] sm:$0xff] }
 0x888   :  { %6479 = vmatpush1.bf16.msra.mxu0 %v14028_v42  ;;  %6520 = vmatpush1.bf16.msra.mxu1 %v14029_v47  ;;  %v14045_v47 = vld [vmem:[#allocation132_spill] sm:$0xff] }
 0x889   :  { %6480 = vmatprep.subr.bf16.mxu0 %v14031_v37  ;;  %6521 = vmatprep.subr.bf16.mxu1 %v14032_v14 }
 0x88c   :  { %6481 = vmatpush1.bf16.msra.mxu0 %v14035_v15  ;;  %6522 = vmatpush1.bf16.msra.mxu1 %v14036_v30 }
 0x88d   :  { %6482 = vmatprep.subr.bf16.mxu0 %v14037_v63  ;;  %6523 = vmatprep.subr.bf16.mxu1 %v14038_v13  ;;  %v14048_v13 = vld [vmem:[#allocation136_spill] sm:$0xff] }
 0x890   :  { %6483 = vmatpush1.bf16.msra.mxu0 %v14039_v34  ;;  %6524 = vmatpush1.bf16.msra.mxu1 %v14040_v1 }
 0x891   :  { %6484 = vmatprep.subr.bf16.mxu0 %v14041_v35  ;;  %6525 = vmatprep.subr.bf16.mxu1 %v14042_v46  ;;  %v14050_v35 = vld [vmem:[#allocation227_spill] sm:$0xff] }
 0x894   :  { %6485 = vmatpush1.bf16.msra.mxu0 %v14043_v17  ;;  %6526 = vmatpush1.bf16.msra.mxu1 %v14044_v12  ;;  %v14052_v17 = vld [vmem:[#allocation226_spill] sm:$0xff] }
 0x895   :  { %v6098_v6 = vpop.f32.mrf.mxu0  ;;  %v6139_v58 = vpop.f32.mrf.mxu1  ;;  %6486 = vmatprep.subr.bf16.mxu0 %v14045_v47  ;;  %6527 = vmatprep.subr.bf16.mxu1 %v14046_v38 }
 0x896   :  { %v6158_v42 = vrot.slane %v6098_v6, 6  ;;  %v6160_v0 = vrot.slane %v6139_v58, 6  ;;  %v9144_v6 = vpop.eup %9143  ;;  %v14051_v58 = vld [vmem:[#allocation142_spill] sm:$0xff] }
 0x897   :  { %v6100_v37 = vpop.f32.mrf.mxu0  ;;  %v6141_v14 = vpop.f32.mrf.mxu1  ;;  %v6232_v38 = vadd.f32 1.0, %v9144_v6  ;;  %v14061_v6 = vld [vmem:[#allocation246_spill] sm:$0xff] }
 0x898   :  { %v6174_v10 = vadd.f32 %v6158_v42, %v13810_v62  ;;  %v6159_v4 = vrot.slane %v6100_v37, 6  ;;  %6487 = vmatpush1.bf16.msra.mxu0 %v13811_v40  ;;  %6528 = vmatpush1.bf16.msra.mxu1 %v13812_v54  ;;  %v6161_v27 = vrot.slane %v6141_v14, 6  ;;  %v6176_v46 = vadd.f32 %v6160_v0, %v14050_v35  ;;  %v14053_v40 = vld [vmem:[#allocation144_spill] sm:$0xff]  ;;  %v14054_v54 = vld [vmem:[#allocation229_spill] sm:$0xff]  ;;  %v9146_v12 = vpop.eup %9145 }
 0x899   :  { %v6102_v15 = vpop.f32.mrf.mxu0  ;;  %v6143_v30 = vpop.f32.mrf.mxu1  ;;  %6488 = vmatprep.subr.bf16.mxu0 %v14048_v13  ;;  %6529 = vmatprep.subr.bf16.mxu1 %v14049_v11  ;;  %v14055_v0 = vld [vmem:[#allocation233_spill] sm:$0xff] }
 0x89a   :  { %9151 = vtanh.f32 %v6174_v10  ;;  %v6175_v63 = vadd.f32 %v6159_v4, %v14047_v5  ;;  %v6177_v42 = vadd.f32 %v6161_v27, %v11355_v8  ;;  %v9148_v47 = vpop.eup %9147  ;;  %v6238_v37 = vmul.f32 0.5, %v6176_v46 }
 0x89b   :  { %v6103_v34 = vpop.f32.mrf.mxu0  ;;  %v6144_v1 = vpop.f32.mrf.mxu1  ;;  %v6224_v10 = vadd.f32 1.0, %v9146_v12  ;;  %v6233_v4 = vadd.f32 1.0, %v9148_v47  ;;  %v6234_v30 = vmul.f32 0.5, %v6232_v38  ;;  %v14067_v12 = vld [vmem:[#allocation249_spill] sm:$0xff]  ;;  %v14069_v47 = vld [vmem:[#allocation250_spill] sm:$0xff] }
 0x89c   :  { %9153 = vtanh.f32 %v6175_v63  ;;  %6489 = vmatpush1.bf16.msra.mxu0 %v14051_v58  ;;  %6530 = vmatpush1.bf16.msra.mxu1 %v14052_v17  ;;  %v9150_v14 = vpop.eup %9149  ;;  %v6239_v15 = vmul.f32 0.5, %v6177_v42  ;;  %v6249_v1 = vrot.slane %v11712_v57, 2  ;;  %v14063_v58 = vld [vmem:[#allocation247_spill] sm:$0xff]  ;;  %v14064_v17 = vld [vmem:[#allocation180_spill] sm:$0xff]  ;;  %v14070_v38 = vld [vmem:[#allocation190_spill] sm:$0xff] }
 0x89d   :  { %6490 = vmatprep.subr.bf16.mxu0 %v14053_v40  ;;  %6531 = vmatprep.subr.bf16.mxu1 %v14054_v54  ;;  %9155 = vtanh.f32 %v6238_v37  ;;  %v6225_v63 = vadd.f32 1.0, %v9150_v14  ;;  %v6226_v13 = vmul.f32 0.5, %v6224_v10  ;;  %v14065_v40 = vld [vmem:[#allocation248_spill] sm:$0xff]  ;;  %v14066_v54 = vld [vmem:[#allocation185_spill] sm:$0xff]  ;;  %v14071_v37 = vld [vmem:[#allocation251_spill] sm:$0xff] }
 0x89e   :  { %9157 = vtanh.f32 %v6239_v15  ;;  %v14068_v42 = vld [vmem:[#allocation188_spill] sm:$0xff] }
 0x89f   :  { %v6227_v34 = vmul.f32 0.5, %v6225_v63  ;;  %v14072_v14 = vld [vmem:[#allocation192_spill] sm:$0xff]  ;;  %v14078_v63 = vld [vmem:[#allocation198_spill] sm:$0xff] }
 0x8a0   :  { %6491 = vmatpush2.bf16.msra.mxu0 %v13820_v26  ;;  %6532 = vmatpush2.bf16.msra.mxu1 %v13821_v7  ;;  %v6248_v26 = vrot.slane %v11707_v28, 2  ;;  %v14073_v10 = vld [vmem:[#allocation252_spill] sm:$0xff] }
 0x8a1   :  { %6492 = vmatprep.subr.bf16.mxu0 %v13822_v25  ;;  %6533 = vmatprep.subr.bf16.mxu1 %v14055_v0  ;;  %v6235_v25 = vmul.f32 0.5, %v6233_v4  ;;  %v14074_v0 = vld [vmem:[#allocation194_spill] sm:$0xff]  ;;  %v14075_v4 = vld [vmem:[#allocation253_spill] sm:$0xff]  ;;  %v14076_v15 = vld [vmem:[#allocation196_spill] sm:$0xff] }
 0x8a2   :  { %v6252_v11 = vmul.f32 %v6248_v26, %v6234_v30  ;;  %v14077_v30 = vld [vmem:[#allocation254_spill] sm:$0xff]  ;;  %v14080_v26 = vld [vmem:[#allocation200_spill] sm:$0xff] }
 0x8a4   :  { %6493 = vmatpush2.bf16.msra.mxu0 %v13593_v22  ;;  %6534 = vmatpush2.bf16.msra.mxu1 %v10869_v50 }
 0x8a5   :  { %6494 = vmatprep.subr.bf16.mxu0 %v13594_v59  ;;  %6535 = vmatprep.subr.bf16.mxu1 %v10875_v3  ;;  %v6253_v59 = vmul.f32 %v6249_v1, %v6235_v25  ;;  %v14082_v25 = vld [vmem:[#allocation202_spill] sm:$0xff] }
 0x8a6   :  { %v14086_v1 = vld [vmem:[#allocation206_spill] sm:$0xff] }
 0x8a7   :  { %v9152_v7 = vpop.eup %9151 }
 0x8a8   :  { %v6254_v27 = vmul.f32 %v9152_v7, %v6226_v13  ;;  %6495 = vmatpush2.bf16.msra.mxu0 %v13595_v52  ;;  %6536 = vmatpush2.bf16.msra.mxu1 %v10881_v48  ;;  %v14079_v13 = vld [vmem:[#allocation255_spill] sm:$0xff]  ;;  %v14081_v7 = vld [vmem:[#allocation256_spill] sm:$0xff] }
 0x8a9   :  { %v9154_v50 = vpop.eup %9153  ;;  %6496 = vmatprep.subr.bf16.mxu0 %v13596_v56  ;;  %6537 = vmatprep.subr.bf16.mxu1 %v10887_v2  ;;  %v14056_v2 = vld [vmem:[#allocation164_spill] sm:$0xff] }
 0x8aa   :  { %v12051_v22 = vadd.f32 %v6254_v27, %v6252_v11  ;;  %v6255_v3 = vmul.f32 %v9154_v50, %v6227_v34  ;;  %v9156_v48 = vpop.eup %9155  ;;  %v14083_v11 = vld [vmem:[#allocation257_spill] sm:$0xff]  ;;  %v14084_v27 = vld [vmem:[#allocation204_spill] sm:$0xff]  ;;  %v14085_v34 = vld [vmem:[#allocation258_spill] sm:$0xff] }
 0x8ab   :  { %v9158_v52 = vpop.eup %9157  ;;  %v6242_v56 = vadd.f32 1.0, %v9156_v48  ;;  %v14087_v50 = vld [vmem:[#allocation259_spill] sm:$0xff]  ;;  %v14090_v48 = vld [vmem:[#allocation210_spill] sm:$0xff] }
 0x8ac   :  { %9159 = vtanh.f32 %v12051_v22  ;;  %v12056_v28 = vadd.f32 %v6255_v3, %v6253_v59  ;;  %6497 = vmatpush2.bf16.msra.mxu0 %v13597_v16  ;;  %6538 = vmatpush2.bf16.msra.mxu1 %v10893_v44  ;;  %v14057_v16 = vld [vmem:[#allocation166_spill] sm:$0xff]  ;;  %v14058_v44 = vld [vmem:[#allocation243_spill] sm:$0xff]  ;;  %v14088_v59 = vld [vmem:[#allocation208_spill] sm:$0xff] }
 0x8ad   :  { %6498 = vmatprep.subr.bf16.mxu0 %v13598_v43  ;;  %6539 = vmatprep.subr.bf16.mxu1 %v13823_v41  ;;  %v6243_v43 = vadd.f32 1.0, %v9158_v52  ;;  %v6244_v57 = vmul.f32 0.5, %v6242_v56  ;;  %v14089_v3 = vld [vmem:[#allocation260_spill] sm:$0xff]  ;;  %v14093_v56 = vld [vmem:[#allocation262_spill] sm:$0xff] }
 0x8ae   :  { %9161 = vtanh.f32 %v12056_v28  ;;  %v14092_v52 = vld [vmem:[#allocation212_spill] sm:$0xff] }
 0x8b0   :  { %6499 = vmatpush2.bf16.msra.mxu0 %v13824_v45  ;;  %6540 = vmatpush2.bf16.msra.mxu1 %v13825_v31  ;;  %v6245_v31 = vmul.f32 0.5, %v6243_v43  ;;  %v14096_v43 = vld [vmem:[#allocation216_spill] sm:$0xff] }
 0x8b1   :  { %6500 = vmatprep.subr.bf16.mxu0 %v14056_v2  ;;  %6541 = vmatprep.subr.bf16.mxu1 %v13827_v61  ;;  %v14091_v2 = vld [vmem:[#allocation261_spill] sm:$0xff] }
 0x8b4   :  { %6501 = vmatpush2.bf16.msra.mxu0 %v14057_v16  ;;  %6542 = vmatpush2.bf16.msra.mxu1 %v14058_v44  ;;  %v14094_v16 = vld [vmem:[#allocation214_spill] sm:$0xff]  ;;  %v14095_v44 = vld [vmem:[#allocation263_spill] sm:$0xff] }
 0x8b5   :  { %6502 = vmatprep.subr.bf16.mxu0 %v13830_v9  ;;  %6543 = vmatprep.subr.bf16.mxu1 %v13831_v39  ;;  %v14059_v9 = vld [vmem:[#allocation245_spill] sm:$0xff]  ;;  %v14060_v39 = vld [vmem:[#allocation176_spill] sm:$0xff] }
 0x8b8   :  { %6503 = vmatpush2.bf16.msra.mxu0 %v13605_v60  ;;  %6544 = vmatpush2.bf16.msra.mxu1 %v10924_v55 }
 0x8b9   :  { %v9160_v41 = vpop.eup %9159  ;;  %6504 = vmatprep.subr.bf16.mxu0 %v13606_v24  ;;  %6545 = vmatprep.subr.bf16.mxu1 %v10927_v21 }
 0x8ba   :  { %v12073_v45 = vmul.f32 %v9160_v41, %v6244_v57  ;;  %v14097_v57 = vld [vmem:[#allocation264_spill] sm:$0xff]  ;;  %v14098_v41 = vld [vmem:[#allocation218_spill] sm:$0xff] }
 0x8bb   :  { %v9162_v61 = vpop.eup %9161 }
 0x8bc   :  { %v12077_v46 = vmul.f32 %v9162_v61, %v6245_v31  ;;  %6505 = vmatpush2.bf16.msra.mxu0 %v13609_v49  ;;  %6546 = vmatpush2.bf16.msra.mxu1 %v14059_v9  ;;  %v6466_v55 = vpack.c.bf16 %v12073_v45, %v12073_v45  ;;  %v14062_v49 = vld [vmem:[#allocation178_spill] sm:$0xff]  ;;  %v14099_v31 = vld [vmem:[#allocation265_spill] sm:$0xff]  ;;  %v14100_v61 = vld [vmem:[#allocation220_spill] sm:$0xff] }
 0x8bd   :  { %6556 = vmatprep.subr.bf16.mxu0 %v14060_v39  ;;  %6597 = vmatprep.subr.bf16.mxu1 %v14061_v6  ;;  %v14101_v9 = vld [vmem:[#allocation267_spill] sm:$0xff]  ;;  %v14102_v39 = vld [vmem:[#allocation222_spill] sm:$0xff]  ;;  %v14103_v6 = vld [vmem:[#allocation269_spill] sm:$0xff] }
 0x8be   :  { %v6467_v60 = vpack.c.bf16 %v12077_v46, %v12077_v46  ;;  %v12087_v21 = vrot.slane %v6466_v55, 1  ;;  %v14104_v55 = vld [vmem:[#allocation224_spill] sm:$0xff] }
 0x8c0   :  { %v6471_v24 = vrot.slane %v6467_v60, 1  ;;  %v14105_v60 = vld [vmem:[#allocation270_spill] sm:$0xff] }
 0x8c2   :  { %6506 = vmatprep.mubr.bf16.mxu0 %v6471_v24  ;;  %6547 = vmatprep.mubr.bf16.mxu1 %v6471_v24 }
 0x8c3   :  { %6507 = vmatmul.mubr.bf16.vlgmr.msra.gmra.mxu0 %v12087_v21  ;;  %6548 = vmatmul.mubr.bf16.vlgmr.msra.gmra.mxu1 %v12087_v21 }
 0x8c4   :  { %6557 = vmatpush1.bf16.msra.mxu0 %v14062_v49  ;;  %6598 = vmatpush1.bf16.msra.mxu1 %v14063_v58  ;;  %v14107_v49 = vld [vmem:[#allocation271_spill] sm:$0xff]  ;;  %v14108_v58 = vld [vmem:[#allocation230_spill] sm:$0xff] }
 0x8c5   :  { %6588 = vmatprep.mubr.bf16.mxu0 %v6471_v24  ;;  %6629 = vmatprep.mubr.bf16.mxu1 %v6471_v24  ;;  %v14106_v24 = vld [vmem:[#allocation228_spill] sm:$0xff] }
 0x8c6   :  { %6558 = vmatprep.subr.bf16.mxu0 %v14064_v17  ;;  %6599 = vmatprep.subr.bf16.mxu1 %v14065_v40  ;;  %v14109_v17 = vld [vmem:[#allocation272_spill] sm:$0xff] }
 0x8c7   :  { %v14110_v40 = vld [vmem:[#allocation232_spill] sm:$0xff] }
 0x8c8   :  { %6559 = vmatpush1.bf16.msra.mxu0 %v14066_v54  ;;  %6600 = vmatpush1.bf16.msra.mxu1 %v14067_v12  ;;  %v14111_v54 = vld [vmem:[#allocation273_spill] sm:$0xff]  ;;  %v14112_v12 = vld [vmem:[#allocation234_spill] sm:$0xff] }
 0x8c9   :  { %6560 = vmatprep.subr.bf16.mxu0 %v14068_v42  ;;  %6601 = vmatprep.subr.bf16.mxu1 %v14069_v47  ;;  %v14113_v42 = vld [vmem:[#allocation274_spill] sm:$0xff]  ;;  %v14114_v47 = vld [vmem:[#allocation235_spill] sm:$0xff] }
 0x8cc   :  { %6561 = vmatpush1.bf16.msra.mxu0 %v14070_v38  ;;  %6602 = vmatpush1.bf16.msra.mxu1 %v14071_v37  ;;  %v14115_v38 = vld [vmem:[#allocation276_spill] sm:$0xff] }
 0x8cd   :  { %6562 = vmatprep.subr.bf16.mxu0 %v14072_v14  ;;  %6603 = vmatprep.subr.bf16.mxu1 %v14073_v10  ;;  %v14116_v37 = vld [vmem:[#allocation236_spill] sm:$0xff]  ;;  %v14117_v14 = vld [vmem:[#allocation278_spill] sm:$0xff]  ;;  %v14118_v10 = vld [vmem:[#allocation237_spill] sm:$0xff] }
 0x8d0   :  { %6563 = vmatpush1.bf16.msra.mxu0 %v14074_v0  ;;  %6604 = vmatpush1.bf16.msra.mxu1 %v14075_v4  ;;  %v14119_v0 = vld [vmem:[#allocation279_spill] sm:$0xff]  ;;  %v14120_v4 = vld [vmem:[#allocation238_spill] sm:$0xff] }
 0x8d1   :  { %6564 = vmatprep.subr.bf16.mxu0 %v14076_v15  ;;  %6605 = vmatprep.subr.bf16.mxu1 %v14077_v30  ;;  %v14121_v15 = vld [vmem:[#allocation280_spill] sm:$0xff] }
 0x8d2   :  { %v8878_v30 = vld [vmem:[%s12561_s15 + $0x74] ss:$8 sps:$4 sm:$0xff]  }
 0x8d4   :  { %6565 = vmatpush1.bf16.msra.mxu0 %v14078_v63  ;;  %6606 = vmatpush1.bf16.msra.mxu1 %v14079_v13 }
 0x8d5   :  { %6566 = vmatprep.subr.bf16.mxu0 %v14080_v26  ;;  %6607 = vmatprep.subr.bf16.mxu1 %v14081_v7  ;;  %v14122_v26 = vld [vmem:[#allocation239_spill] sm:$0xff]  ;;  %v14123_v7 = vld [vmem:[#allocation281_spill] sm:$0xff] }
 0x8d8   :  { %6567 = vmatpush1.bf16.msra.mxu0 %v14082_v25  ;;  %6608 = vmatpush1.bf16.msra.mxu1 %v14083_v11  ;;  %v8876_v25 = vld [vmem:[%s12561_s15 + $0x70] ss:$8 sps:$4 sm:$0xff]  }
 0x8d9   :  { %6568 = vmatprep.subr.bf16.mxu0 %v14084_v27  ;;  %6609 = vmatprep.subr.bf16.mxu1 %v14085_v34  ;;  %v8881_v34 = vld [vmem:[%s12561_s15 + $0x64] ss:$8 sps:$4 sm:$0xff]  }
 0x8dc   :  { %6569 = vmatpush1.bf16.msra.mxu0 %v14086_v1  ;;  %6610 = vmatpush1.bf16.msra.mxu1 %v14087_v50 }
 0x8dd   :  { %6570 = vmatprep.subr.bf16.mxu0 %v14088_v59  ;;  %6611 = vmatprep.subr.bf16.mxu1 %v14089_v3  ;;  %v8879_v59 = vld [vmem:[%s12561_s15 + $0x60] ss:$8 sps:$4 sm:$0xff]  }
 0x8e0   :  { %6571 = vmatpush1.bf16.msra.mxu0 %v14090_v48  ;;  %6612 = vmatpush1.bf16.msra.mxu1 %v14091_v2  ;;  %v8884_v2 = vld [vmem:[%s12561_s15 + $0x54] ss:$8 sps:$4 sm:$0xff]  }
 0x8e1   :  { %6572 = vmatprep.subr.bf16.mxu0 %v14092_v52  ;;  %6613 = vmatprep.subr.bf16.mxu1 %v14093_v56  ;;  %v8882_v52 = vld [vmem:[%s12561_s15 + $0x50] ss:$8 sps:$4 sm:$0xff]   ;;  %v8885_v56 = vld [vmem:[%s12561_s15 + $0x40] ss:$8 sps:$4 sm:$0xff]  }
 0x8e4   :  { %6573 = vmatpush2.bf16.msra.mxu0 %v14094_v16  ;;  %6614 = vmatpush2.bf16.msra.mxu1 %v14095_v44  ;;  %v8890_v16 = vld [vmem:[%s12561_s15 + $0x34] ss:$8 sps:$4 sm:$0xff]   ;;  %v8888_v44 = vld [vmem:[%s12561_s15 + $0x30] ss:$8 sps:$4 sm:$0xff]  }
 0x8e5   :  { %6574 = vmatprep.subr.bf16.mxu0 %v14096_v43  ;;  %6615 = vmatprep.subr.bf16.mxu1 %v14097_v57  ;;  %v8893_v43 = vld [vmem:[%s12561_s15 + $0x24] ss:$8 sps:$4 sm:$0xff]   ;;  %v8891_v57 = vld [vmem:[%s12561_s15 + $0x20] ss:$8 sps:$4 sm:$0xff]  }
 0x8e8   :  { %6575 = vmatpush2.bf16.msra.mxu0 %v14098_v41  ;;  %6616 = vmatpush2.bf16.msra.mxu1 %v14099_v31  ;;  %v8896_v41 = vld [vmem:[%s12561_s15 + $0x14] ss:$8 sps:$4 sm:$0xff]   ;;  %v8894_v31 = vld [vmem:[%s12561_s15 + $0x10] ss:$8 sps:$4 sm:$0xff]  }
 0x8e9   :  { %6576 = vmatprep.subr.bf16.mxu0 %v14100_v61  ;;  %6617 = vmatprep.subr.bf16.mxu1 %v14101_v9  ;;  %v8899_v61 = vld [vmem:[%s12561_s15 + $0x4] ss:$8 sps:$4 sm:$0xff]   ;;  %v8897_v9 = vld [vmem:[%s12561_s15] ss:$8 sps:$4 sm:$0xff]  }
 0x8ec   :  { %6577 = vmatpush2.bf16.msra.mxu0 %v14102_v39  ;;  %6618 = vmatpush2.bf16.msra.mxu1 %v14103_v6  ;;  %v8902_v39 = vld [vmem:[%s12561_s15 + $0xf4] ss:$8 sps:$4 sm:$0xff]   ;;  %v8924_v6 = vld [vmem:[%s12562_s16 + $0x70] ss:$8 sps:$4 sm:$0xff]  }
 0x8ed   :  { %6578 = vmatprep.subr.bf16.mxu0 %v14104_v55  ;;  %6619 = vmatprep.subr.bf16.mxu1 %v14105_v60  ;;  %v8926_v55 = vld [vmem:[%s12562_s16 + $0x74] ss:$8 sps:$4 sm:$0xff]   ;;  %v8929_v60 = vld [vmem:[%s12562_s16 + $0x64] ss:$8 sps:$4 sm:$0xff]  }
 0x8f0   :  { %6579 = vmatpush2.bf16.msra.mxu0 %v14106_v24  ;;  %6620 = vmatpush2.bf16.msra.mxu1 %v14107_v49  ;;  %v8900_v24 = vld [vmem:[%s12561_s15 + $0xf0] ss:$8 sps:$4 sm:$0xff]   ;;  %v8927_v49 = vld [vmem:[%s12562_s16 + $0x60] ss:$8 sps:$4 sm:$0xff]  }
 0x8f1   :  { %6580 = vmatprep.subr.bf16.mxu0 %v14108_v58  ;;  %6621 = vmatprep.subr.bf16.mxu1 %v14109_v17  ;;  %v8905_v58 = vld [vmem:[%s12561_s15 + $0xe4] ss:$8 sps:$4 sm:$0xff]   ;;  %v8932_v17 = vld [vmem:[%s12562_s16 + $0x54] ss:$8 sps:$4 sm:$0xff]  }
 0x8f4   :  { %6581 = vmatpush2.bf16.msra.mxu0 %v14110_v40  ;;  %6622 = vmatpush2.bf16.msra.mxu1 %v14111_v54  ;;  %v8903_v40 = vld [vmem:[%s12561_s15 + $0xe0] ss:$8 sps:$4 sm:$0xff]   ;;  %v8930_v54 = vld [vmem:[%s12562_s16 + $0x50] ss:$8 sps:$4 sm:$0xff]  }
 0x8f5   :  { %6582 = vmatprep.subr.bf16.mxu0 %v14112_v12  ;;  %6623 = vmatprep.subr.bf16.mxu1 %v14113_v42  ;;  %v8908_v12 = vld [vmem:[%s12561_s15 + $0xd4] ss:$8 sps:$4 sm:$0xff]   ;;  %v8935_v42 = vld [vmem:[%s12562_s16 + $0x44] ss:$8 sps:$4 sm:$0xff]  }
 0x8f8   :  { %6583 = vmatpush2.bf16.msra.mxu0 %v14114_v47  ;;  %6624 = vmatpush2.bf16.msra.mxu1 %v14115_v38  ;;  %v8906_v47 = vld [vmem:[%s12561_s15 + $0xd0] ss:$8 sps:$4 sm:$0xff]   ;;  %v8933_v38 = vld [vmem:[%s12562_s16 + $0x40] ss:$8 sps:$4 sm:$0xff]  }
 0x8f9   :  { %6584 = vmatprep.subr.bf16.mxu0 %v14116_v37  ;;  %6625 = vmatprep.subr.bf16.mxu1 %v14117_v14  ;;  %v8911_v37 = vld [vmem:[%s12561_s15 + $0xc4] ss:$8 sps:$4 sm:$0xff]   ;;  %v8938_v14 = vld [vmem:[%s12562_s16 + $0x34] ss:$8 sps:$4 sm:$0xff]  }
 0x8fc   :  { %6585 = vmatpush2.bf16.msra.mxu0 %v14118_v10  ;;  %6626 = vmatpush2.bf16.msra.mxu1 %v14119_v0  ;;  %v8909_v10 = vld [vmem:[%s12561_s15 + $0xc0] ss:$8 sps:$4 sm:$0xff]   ;;  %v8936_v0 = vld [vmem:[%s12562_s16 + $0x30] ss:$8 sps:$4 sm:$0xff]  }
 0x8fd   :  { %6586 = vmatprep.subr.bf16.mxu0 %v14120_v4  ;;  %6627 = vmatprep.subr.bf16.mxu1 %v14121_v15  ;;  %v8914_v4 = vld [vmem:[%s12561_s15 + $0xb4] ss:$8 sps:$4 sm:$0xff]  }
 0x8ff   :  { %v12154_v63 = vpop.f32.mrf.mxu0  ;;  %v12156_v13 = vpop.f32.mrf.mxu1 }
 0x900   :  { %6587 = vmatpush2.bf16.msra.mxu0 %v14122_v26  ;;  %6628 = vmatpush2.bf16.msra.mxu1 %v14123_v7  ;;  %v6444_v15 = vrot.slane %v12156_v13, 2  ;;  %v8912_v26 = vld [vmem:[%s12561_s15 + $0xb0] ss:$8 sps:$4 sm:$0xff]  }
 0x901   :  { %v12163_v11 = vpop.f32.mrf.mxu0  ;;  %v12165_v27 = vpop.f32.mrf.mxu1  ;;  %7172 = vmatprep.subr.bf16.mxu1 %v8878_v30  ;;  %6971 = vmatprep.subr.bf16.mxu0 %v8926_v55  ;;  %v6442_v30 = vrot.slane %v12154_v63, 2  ;;  %v14125_v13 = vld [vmem:[#allocation266_spill] sm:$0xff] }
 0x902   :  { %v6445_v7 = vrot.slane %v12165_v27, 2  ;;  %v8915_v63 = vld [vmem:[%s12561_s15 + $0xa0] ss:$8 sps:$4 sm:$0xff]   ;;  %v8920_v27 = vld [vmem:[%s12561_s15 + $0x94] ss:$8 sps:$4 sm:$0xff]  }
 0x903   :  { %6589 = vmatmul.mubr.bf16.vlgmr.msra.gmra.mxu0 %v12087_v21  ;;  %6630 = vmatmul.mubr.bf16.vlgmr.msra.gmra.mxu1 %v12087_v21  ;;  %v6308_v1 = vpop.f32.mrf.mxu0  ;;  %v6349_v50 = vpop.f32.mrf.mxu1  ;;  %v8887_v21 = vld [vmem:[%s12561_s15 + $0x44] ss:$8 sps:$4 sm:$0xff]  }
 0x904   :  { %7173 = vmatpush1.bf16.msra.mxu1 %v8876_v25  ;;  %6972 = vmatpush1.bf16.msra.mxu0 %v8924_v6  ;;  %v8917_v25 = vld [vmem:[%s12561_s15 + $0xa4] ss:$8 sps:$4 sm:$0xff]   ;;  %v6443_v50 = vrot.slane %v12163_v11, 2  ;;  %v8918_v11 = vld [vmem:[%s12561_s15 + $0x90] ss:$8 sps:$4 sm:$0xff]  }
 0x905   :  { %v6309_v3 = vpop.f32.mrf.mxu0  ;;  %v6350_v48 = vpop.f32.mrf.mxu1  ;;  %7174 = vmatprep.subr.bf16.mxu1 %v8881_v34  ;;  %6973 = vmatprep.subr.bf16.mxu0 %v8929_v60  ;;  %v14124_v34 = vld [vmem:[#allocation18_spill] sm:$0xff] }
 0x906   :  { %v6460_v1 = vadd.f32 %v6444_v15, %v14124_v34  ;;  %v14126_v3 = vld [vmem:[#allocation137_spill] sm:$0xff] }
 0x907   :  { %v6461_v48 = vadd.f32 %v6445_v7, %v14126_v3  ;;  %v8947_v7 = vld [vmem:[%s12562_s16 + $0x4] ss:$8 sps:$4 sm:$0xff]  }
 0x908   :  { %7175 = vmatpush1.bf16.msra.mxu1 %v8879_v59  ;;  %6974 = vmatpush1.bf16.msra.mxu0 %v8927_v49  ;;  %v6458_v59 = vadd.f32 %v6442_v30, %v14125_v13 }
 0x909   :  { %7176 = vmatprep.subr.bf16.mxu1 %v8884_v2  ;;  %6975 = vmatprep.subr.bf16.mxu0 %v8932_v17  ;;  %v6654_v2 = vmul.f32 0.5, %v6460_v1  ;;  %v14128_v17 = vld [vmem:[#allocation277_spill] sm:$0xff] }
 0x90a   :  { %v8945_v1 = vld [vmem:[%s12562_s16] ss:$8 sps:$4 sm:$0xff]  }
 0x90b   :  { %9163 = vtanh.f32 %v6654_v2 }
 0x90c   :  { %7177 = vmatpush1.bf16.msra.mxu1 %v8882_v52  ;;  %6976 = vmatpush1.bf16.msra.mxu0 %v8930_v54  ;;  %v14127_v52 = vld [vmem:[#allocation268_spill] sm:$0xff] }
 0x90d   :  { %7178 = vmatprep.subr.bf16.mxu1 %v8887_v21  ;;  %6977 = vmatprep.subr.bf16.mxu0 %v8935_v42  ;;  %v6459_v21 = vadd.f32 %v6443_v50, %v14127_v52  ;;  %v8939_v54 = vld [vmem:[%s12562_s16 + $0x20] ss:$8 sps:$4 sm:$0xff]  }
 0x910   :  { %7179 = vmatpush1.bf16.msra.mxu1 %v8885_v56  ;;  %6978 = vmatpush1.bf16.msra.mxu0 %v8933_v38  ;;  %v6646_v56 = vmul.f32 0.5, %v6458_v59 }
 0x911   :  { %7180 = vmatprep.subr.bf16.mxu1 %v8890_v16  ;;  %6979 = vmatprep.subr.bf16.mxu0 %v8938_v14  ;;  %v6655_v16 = vmul.f32 0.5, %v6461_v48  ;;  %v8944_v14 = vld [vmem:[%s12562_s16 + $0x14] ss:$8 sps:$4 sm:$0xff]   ;;  %v6674_v48 = vrot.slane %v11899_v32, 6 }
 0x912   :  { %9165 = vtanh.f32 %v6646_v56 }
 0x913   :  { %9167 = vtanh.f32 %v6655_v16  ;;  %v6675_v16 = vrot.slane %v11902_v53, 6  ;;  %v8956_v53 = vld [vmem:[%s12562_s16 + $0xd4] ss:$8 sps:$4 sm:$0xff]  }
 0x914   :  { %7181 = vmatpush1.bf16.msra.mxu1 %v8888_v44  ;;  %6980 = vmatpush1.bf16.msra.mxu0 %v8936_v0  ;;  %v8923_v44 = vld [vmem:[%s12561_s15 + $0x84] ss:$8 sps:$4 sm:$0xff]  }
 0x915   :  { %7182 = vmatprep.subr.bf16.mxu1 %v8893_v43  ;;  %v6647_v43 = vmul.f32 0.5, %v6459_v21 }
 0x917   :  { %9169 = vtanh.f32 %v6647_v43 }
 0x918   :  { %7183 = vmatpush1.bf16.msra.mxu1 %v8891_v57  ;;  %v8921_v57 = vld [vmem:[%s12561_s15 + $0x80] ss:$8 sps:$4 sm:$0xff]  }
 0x919   :  { %7184 = vmatprep.subr.bf16.mxu1 %v8896_v41 }
 0x91c   :  { %7185 = vmatpush1.bf16.msra.mxu1 %v8894_v31 }
 0x91d   :  { %7186 = vmatprep.subr.bf16.mxu1 %v8899_v61 }
 0x920   :  { %7187 = vmatpush1.bf16.msra.mxu1 %v8897_v9 }
 0x921   :  { %7188 = vmatprep.subr.bf16.mxu1 %v8902_v39 }
 0x924   :  { %7189 = vmatpush2.bf16.msra.mxu1 %v8900_v24 }
 0x925   :  { %7190 = vmatprep.subr.bf16.mxu1 %v8905_v58  ;;  %v8941_v58 = vld [vmem:[%s12562_s16 + $0x24] ss:$8 sps:$4 sm:$0xff]  }
 0x926   :  { %6981 = vmatprep.subr.bf16.mxu0 %v8941_v58  ;;  %v8960_v58 = vld [vmem:[%s12562_s16 + $0xb0] ss:$8 sps:$4 sm:$0xff]  }
 0x927   :  { %6982 = vmatpush1.bf16.msra.mxu0 %v8939_v54 }
 0x928   :  { %7191 = vmatpush2.bf16.msra.mxu1 %v8903_v40  ;;  %6983 = vmatprep.subr.bf16.mxu0 %v8944_v14 }
 0x929   :  { %7192 = vmatprep.subr.bf16.mxu1 %v8908_v12 }
 0x92c   :  { %7193 = vmatpush2.bf16.msra.mxu1 %v8906_v47 }
 0x92d   :  { %7194 = vmatprep.subr.bf16.mxu1 %v8911_v37  ;;  %v9164_v37 = vpop.eup %9163 }
 0x92e   :  { %v9166_v0 = vpop.eup %9165  ;;  %v6658_v30 = vadd.f32 1.0, %v9164_v37 }
 0x92f   :  { %v9168_v15 = vpop.eup %9167  ;;  %v6650_v34 = vadd.f32 1.0, %v9166_v0  ;;  %v8966_v0 = vld [vmem:[%s12562_s16 + $0x90] ss:$8 sps:$4 sm:$0xff]  }
 0x930   :  { %7195 = vmatpush2.bf16.msra.mxu1 %v8909_v10  ;;  %v8942_v10 = vld [vmem:[%s12562_s16 + $0x10] ss:$8 sps:$4 sm:$0xff]   ;;  %v6659_v50 = vadd.f32 1.0, %v9168_v15  ;;  %v6660_v59 = vmul.f32 0.5, %v6658_v30  ;;  %v8971_v15 = vld [vmem:[%s12562_s16 + $0x84] ss:$8 sps:$4 sm:$0xff]  }
 0x931   :  { %7196 = vmatprep.subr.bf16.mxu1 %v8914_v4  ;;  %6984 = vmatpush1.bf16.msra.mxu0 %v8942_v10  ;;  %v6652_v3 = vmul.f32 0.5, %v6650_v34  ;;  %v8968_v10 = vld [vmem:[%s12562_s16 + $0x94] ss:$8 sps:$4 sm:$0xff]  }
 0x932   :  { %6985 = vmatprep.subr.bf16.mxu0 %v8947_v7  ;;  %v6661_v52 = vmul.f32 0.5, %v6659_v50  ;;  %v6678_v21 = vmul.f32 %v6674_v48, %v6660_v59 }
 0x934   :  { %7197 = vmatpush2.bf16.msra.mxu1 %v8912_v26 }
 0x935   :  { %7198 = vmatprep.subr.bf16.mxu1 %v8917_v25  ;;  %v9170_v25 = vpop.eup %9169  ;;  %6986 = vmatpush1.bf16.msra.mxu0 %v8945_v1 }
 0x938   :  { %7199 = vmatpush2.bf16.msra.mxu1 %v8915_v63  ;;  %v8950_v63 = vld [vmem:[%s12562_s16 + $0xf4] ss:$8 sps:$4 sm:$0xff]  }
 0x939   :  { %7200 = vmatprep.subr.bf16.mxu1 %v8920_v27  ;;  %v8948_v27 = vld [vmem:[%s12562_s16 + $0xf0] ss:$8 sps:$4 sm:$0xff]   ;;  %6987 = vmatprep.subr.bf16.mxu0 %v8950_v63 }
 0x93a   :  { %6988 = vmatpush2.bf16.msra.mxu0 %v8948_v27 }
 0x93c   :  { %7201 = vmatpush2.bf16.msra.mxu1 %v8918_v11 }
 0x93d   :  { %7202 = vmatprep.subr.bf16.mxu1 %v8923_v44  ;;  %v8953_v44 = vld [vmem:[%s12562_s16 + $0xe4] ss:$8 sps:$4 sm:$0xff]  }
 0x93e   :  { %6989 = vmatprep.subr.bf16.mxu0 %v8953_v44 }
 0x93f   :  { %v6386_v41 = vpop.f32.mrf.mxu0  ;;  %v6427_v31 = vpop.f32.mrf.mxu1 }
 0x940   :  { %v6446_v61 = vrot.slane %v6386_v41, 2  ;;  %7203 = vmatpush2.bf16.msra.mxu1 %v8921_v57  ;;  %v6448_v55 = vrot.slane %v6427_v31, 2  ;;  %v8951_v57 = vld [vmem:[%s12562_s16 + $0xe0] ss:$8 sps:$4 sm:$0xff]   ;;  %v6679_v41 = vmul.f32 %v6675_v16, %v6661_v52 }
 0x941   :  { %v6388_v9 = vpop.f32.mrf.mxu0  ;;  %v6429_v39 = vpop.f32.mrf.mxu1  ;;  %6990 = vmatpush2.bf16.msra.mxu0 %v8951_v57 }
 0x942   :  { %v6462_v6 = vadd.f32 %v6446_v61, %v13722_v36  ;;  %v6447_v60 = vrot.slane %v6388_v9, 2  ;;  %v6449_v12 = vrot.slane %v6429_v39, 2  ;;  %v14129_v36 = vld [vmem:[#allocation140_spill] sm:$0xff]  ;;  %6991 = vmatprep.subr.bf16.mxu0 %v8956_v53 }
 0x943   :  { %v6390_v24 = vpop.f32.mrf.mxu0  ;;  %v6431_v49 = vpop.f32.mrf.mxu1  ;;  %v6464_v38 = vadd.f32 %v6448_v55, %v14129_v36  ;;  %v8954_v9 = vld [vmem:[%s12562_s16 + $0xd0] ss:$8 sps:$4 sm:$0xff]   ;;  %v8957_v55 = vld [vmem:[%s12562_s16 + $0xc0] ss:$8 sps:$4 sm:$0xff]  }
 0x944   :  { %9171 = vtanh.f32 %v6462_v6  ;;  %v6463_v40 = vadd.f32 %v6447_v60, %v14128_v17  ;;  %v6465_v4 = vadd.f32 %v6449_v12, %v13958_v20  ;;  %v6651_v20 = vadd.f32 1.0, %v9170_v25  ;;  %v8959_v6 = vld [vmem:[%s12562_s16 + $0xc4] ss:$8 sps:$4 sm:$0xff]   ;;  %v8962_v49 = vld [vmem:[%s12562_s16 + $0xb4] ss:$8 sps:$4 sm:$0xff]  }
 0x945   :  { %v6391_v42 = vpop.f32.mrf.mxu0  ;;  %v6432_v47 = vpop.f32.mrf.mxu1  ;;  %v6664_v26 = vmul.f32 0.5, %v6464_v38  ;;  %6992 = vmatpush2.bf16.msra.mxu0 %v8954_v9  ;;  %v8965_v12 = vld [vmem:[%s12562_s16 + $0xa4] ss:$8 sps:$4 sm:$0xff]  }
 0x946   :  { %9173 = vtanh.f32 %v6463_v40  ;;  %v6665_v13 = vmul.f32 0.5, %v6465_v4  ;;  %v6653_v11 = vmul.f32 0.5, %v6651_v20  ;;  %6993 = vmatprep.subr.bf16.mxu0 %v8959_v6  ;;  %v8963_v47 = vld [vmem:[%s12562_s16 + $0xa0] ss:$8 sps:$4 sm:$0xff]  }
 0x947   :  { %9175 = vtanh.f32 %v6664_v26 }
 0x948   :  { %9177 = vtanh.f32 %v6665_v13 }
 0x949   :  { %6994 = vmatpush2.bf16.msra.mxu0 %v8957_v55 }
 0x94a   :  { %6995 = vmatprep.subr.bf16.mxu0 %v8962_v49 }
 0x94d   :  { %6996 = vmatpush2.bf16.msra.mxu0 %v8960_v58 }
 0x94e   :  { %6997 = vmatprep.subr.bf16.mxu0 %v8965_v12 }
 0x951   :  { %v9172_v2 = vpop.eup %9171  ;;  %6998 = vmatpush2.bf16.msra.mxu0 %v8963_v47 }
 0x952   :  { %v6680_v56 = vmul.f32 %v9172_v2, %v6652_v3  ;;  %6999 = vmatprep.subr.bf16.mxu0 %v8968_v10 }
 0x953   :  { %v9174_v43 = vpop.eup %9173 }
 0x954   :  { %v6682_v32 = vadd.f32 %v6680_v56, %v6678_v21  ;;  %v6681_v31 = vmul.f32 %v9174_v43, %v6653_v11  ;;  %v9176_v39 = vpop.eup %9175 }
 0x955   :  { %v9178_v60 = vpop.eup %9177  ;;  %v6668_v24 = vadd.f32 1.0, %v9176_v39  ;;  %7000 = vmatpush2.bf16.msra.mxu0 %v8966_v0 }
 0x956   :  { %9179 = vtanh.f32 %v6682_v32  ;;  %v6683_v61 = vadd.f32 %v6681_v31, %v6679_v41  ;;  %v6669_v17 = vadd.f32 1.0, %v9178_v60  ;;  %7001 = vmatprep.subr.bf16.mxu0 %v8971_v15 }
 0x957   :  { %v6670_v40 = vmul.f32 0.5, %v6668_v24 }
 0x958   :  { %9181 = vtanh.f32 %v6683_v61  ;;  %v6671_v36 = vmul.f32 0.5, %v6669_v17 }
 0x963   :  { %v9180_v54 = vpop.eup %9179 }
 0x964   :  { %v6686_v42 = vmul.f32 %v9180_v54, %v6670_v40 }
 0x965   :  { %v9182_v38 = vpop.eup %9181 }
 0x966   :  { %v6735_v37 = vsel %vm849_vm6, %v11909_v18, %v6686_v42  ;;  %v6687_v14 = vmul.f32 %v9182_v38, %v6671_v36  ;;  %v8969_v18 = vld [vmem:[%s12562_s16 + $0x80] ss:$8 sps:$4 sm:$0xff]  }
 0x967   :  { %v6743_v26 = vpack.c.bf16 %v6735_v37, %v6735_v37  ;;  %7002 = vmatpush2.bf16.msra.mxu0 %v8969_v18 }
 0x968   :  { %v6736_v4 = vsel %vm849_vm6, %v11915_v33, %v6687_v14  ;;  %v8972_v33 = vld [vmem:[%s12563_s17 + $0x4] ss:$8 sps:$4 sm:$0x1f]  }
 0x969   :  { %v6744_v30 = vpack.c.bf16 %v6736_v4, %v6736_v4  ;;  %8482 = vmatprep.subr.msk.bf16.mxu0 %vm334_vm2, %v8972_v33 }
 0x96b   :  { %7204 = vmatprep.mubr.bf16.mxu1 %v6744_v30 }
 0x96c   :  { %7205 = vmatmul.mubr.bf16.vlgmr.msra.gmra.mxu1 %v6743_v26 }
 0x983   :  { %v6508_v7 = vpop.f32.mrf.mxu0  ;;  %v6549_v25 = vpop.f32.mrf.mxu1 }
 0x984   :  { %v6640_v63 = vadd.f32 %v6549_v25, %v14027_v51  ;;  %v6638_v3 = vadd.f32 %v6508_v7, %v14030_v19  ;;  %v14130_v25 = vld [vmem:[#allocation154_spill] sm:$0xff] }
 0x985   :  { %v6510_v34 = vpop.f32.mrf.mxu0  ;;  %v6551_v1 = vpop.f32.mrf.mxu1 }
 0x986   :  { %v6641_v48 = vadd.f32 %v6551_v1, %v14033_v29  ;;  %v6696_v27 = vmul.f32 0.5, %v6640_v63  ;;  %v6639_v2 = vadd.f32 %v6510_v34, %v14034_v23  ;;  %v6688_v52 = vmul.f32 0.5, %v6638_v3  ;;  %v14133_v3 = vld [vmem:[#allocation152_spill] sm:$0xff] }
 0x987   :  { %v6512_v50 = vpop.f32.mrf.mxu0  ;;  %v6553_v13 = vpop.f32.mrf.mxu1 }
 0x988   :  { %v6697_v21 = vmul.f32 0.5, %v6641_v48  ;;  %9183 = vtanh.f32 %v6696_v27  ;;  %v6689_v56 = vmul.f32 0.5, %v6639_v2  ;;  %v8974_v50 = vld [vmem:[%s12563_s17] ss:$8 sps:$4 sm:$0x1f]  }
 0x989   :  { %v6513_v59 = vpop.f32.mrf.mxu0  ;;  %v6554_v20 = vpop.f32.mrf.mxu1  ;;  %9185 = vtanh.f32 %v6688_v52  ;;  %v14131_v13 = vld [vmem:[#allocation156_spill] sm:$0xff]  ;;  %v7224_v2 = vsel %vm334_vm2, %v8974_v50, 0  ;;  %v14134_v52 = vmov 0  }
 0x98a   :  { %9187 = vtanh.f32 %v6697_v21  ;;  %v14132_v20 = vld [vmem:[#allocation150_spill] sm:$0xff] }
 0x98b   :  { %9189 = vtanh.f32 %v6689_v56  ;;  %v8975_v21 = vld [vmem:[%s12565_s19 + $0x70] ss:$8 sps:$4 sm:$0xff]   ;;  %v8980_v56 = vld [vmem:[%s12565_s19 + $0x64] ss:$8 sps:$4 sm:$0xff]  }
 0x995   :  { %v9184_v57 = vpop.eup %9183 }
 0x996   :  { %v9186_v61 = vpop.eup %9185  ;;  %v6700_v39 = vadd.f32 1.0, %v9184_v57 }
 0x997   :  { %v9188_v9 = vpop.eup %9187  ;;  %v6692_v55 = vadd.f32 1.0, %v9186_v61 }
 0x998   :  { %v6701_v60 = vadd.f32 1.0, %v9188_v9  ;;  %v6702_v49 = vmul.f32 0.5, %v6700_v39  ;;  %v8995_v9 = vld [vmem:[%s12565_s19 + $0x14] ss:$8 sps:$4 sm:$0xff]   ;;  %v8993_v39 = vld [vmem:[%s12565_s19 + $0x10] ss:$8 sps:$4 sm:$0xff]  }
 0x999   :  { %v6694_v58 = vmul.f32 0.5, %v6692_v55  ;;  %v7308_v55 = vld [vmem:[%s12565_s19 + $0x90] sm:$0x77] }
 0x99a   :  { %v6703_v40 = vmul.f32 0.5, %v6701_v60  ;;  %v8503_v60 = vcombine.high %v7308_v55, %v7308_v55 }
 0x9c3   :  { %v6590_v11 = vpop.f32.mrf.mxu0  ;;  %v6631_v16 = vpop.f32.mrf.mxu1 }
 0x9c4   :  { %v6642_v44 = vadd.f32 %v6590_v11, %v13810_v62  ;;  %v6644_v23 = vadd.f32 %v6631_v16, %v14050_v35  ;;  %v9190_v62 = vpop.eup %9189  ;;  %v6716_v35 = vrot.slane %v12051_v22, 2  ;;  %v14135_v11 = vld [vmem:[#allocation15_spill] sm:$0xff]  ;;  %v8978_v16 = vld [vmem:[%s12565_s19 + $0x60] ss:$8 sps:$4 sm:$0xff]  }
 0x9c5   :  { %v6592_v43 = vpop.f32.mrf.mxu0  ;;  %v6633_v51 = vpop.f32.mrf.mxu1 }
 0x9c6   :  { %9191 = vtanh.f32 %v6642_v44  ;;  %v6643_v19 = vadd.f32 %v6592_v43, %v14047_v5  ;;  %v6645_v53 = vadd.f32 %v6633_v51, %v11355_v8  ;;  %v6706_v6 = vmul.f32 0.5, %v6644_v23  ;;  %v8983_v44 = vld [vmem:[%s12565_s19 + $0x54] ss:$8 sps:$4 sm:$0xff]   ;;  %v8981_v43 = vld [vmem:[%s12565_s19 + $0x50] ss:$8 sps:$4 sm:$0xff]  }
 0x9c7   :  { %v6594_v29 = vpop.f32.mrf.mxu0  ;;  %v6635_v32 = vpop.f32.mrf.mxu1  ;;  %v6693_v5 = vadd.f32 1.0, %v9190_v62  ;;  %v6720_v54 = vmul.f32 %v6716_v35, %v6702_v49  ;;  %v6717_v8 = vrot.slane %v12056_v28, 2  ;;  %v8986_v51 = vld [vmem:[%s12565_s19 + $0x44] ss:$8 sps:$4 sm:$0xff]   ;;  %v8996_v62 = vld [vmem:[%s12565_s19] ss:$8 sps:$4 sm:$0xff]  }
 0x9c8   :  { %9193 = vtanh.f32 %v6643_v19  ;;  %v6707_v24 = vmul.f32 0.5, %v6645_v53  ;;  %v8984_v19 = vld [vmem:[%s12565_s19 + $0x40] ss:$8 sps:$4 sm:$0xff]   ;;  %v8989_v29 = vld [vmem:[%s12565_s19 + $0x34] ss:$8 sps:$4 sm:$0xff]  }
 0x9c9   :  { %v6595_v41 = vpop.f32.mrf.mxu0  ;;  %v6636_v31 = vpop.f32.mrf.mxu1  ;;  %9195 = vtanh.f32 %v6706_v6  ;;  %v6695_v42 = vmul.f32 0.5, %v6693_v5  ;;  %v6721_v38 = vmul.f32 %v6717_v8, %v6703_v40  ;;  %v8987_v32 = vld [vmem:[%s12565_s19 + $0x30] ss:$8 sps:$4 sm:$0xff]   ;;  %v8998_v6 = vld [vmem:[%s12565_s19 + $0x4] ss:$8 sps:$4 sm:$0xff]  }
 0x9ca   :  { %9197 = vtanh.f32 %v6707_v24  ;;  %v8992_v41 = vld [vmem:[%s12565_s19 + $0x24] ss:$8 sps:$4 sm:$0xff]   ;;  %v8990_v31 = vld [vmem:[%s12565_s19 + $0x20] ss:$8 sps:$4 sm:$0xff]   ;;  %v8502_v24 = vcombine.low %v7308_v55, %v7308_v55 }
 0x9cb   :  { %v9003_v5 = vld [vmem:[%s12565_s19 + $0x84] ss:$8 sps:$4 sm:$0xff]   ;;  %v9009_v40 = vld [vmem:[#allocation10 + $0x64] ss:$8 sps:$4 sm:$0xff]  }
 0x9cc   :  { %v7420_v49 = vsel %vm224_vm1, %v8502_v24, 0  ;;  %v9004_v35 = vld [vmem:[#allocation10 + $0x70] ss:$8 sps:$4 sm:$0xff]   ;;  %v9015_v8 = vld [vmem:[#allocation10 + $0x44] ss:$8 sps:$4 sm:$0xff]  }
 0x9d3   :  { %v9192_v17 = vpop.eup %9191 }
 0x9d4   :  { %v6722_v12 = vmul.f32 %v9192_v17, %v6694_v58  ;;  %v9001_v58 = vld [vmem:[%s12565_s19 + $0x80] ss:$8 sps:$4 sm:$0xff]  }
 0x9d5   :  { %v9194_v47 = vpop.eup %9193  ;;  %v9006_v17 = vld [vmem:[#allocation10 + $0x74] ss:$8 sps:$4 sm:$0xff]  }
 0x9d6   :  { %v6724_v36 = vadd.f32 %v6722_v12, %v6720_v54  ;;  %v6723_v37 = vmul.f32 %v9194_v47, %v6695_v42  ;;  %v9196_v10 = vpop.eup %9195  ;;  %7605 = vmatprep.subr.bf16.mxu1 %v9006_v17  ;;  %v9007_v54 = vld [vmem:[#allocation10 + $0x60] ss:$8 sps:$4 sm:$0xff]   ;;  %v9012_v12 = vld [vmem:[#allocation10 + $0x54] ss:$8 sps:$4 sm:$0xff]   ;;  %v9010_v42 = vld [vmem:[#allocation10 + $0x50] ss:$8 sps:$4 sm:$0xff]  }
 0x9d7   :  { %v9198_v0 = vpop.eup %9197  ;;  %v6710_v4 = vadd.f32 1.0, %v9196_v10  ;;  %7606 = vmatpush1.bf16.msra.mxu1 %v9004_v35  ;;  %v9013_v47 = vld [vmem:[#allocation10 + $0x40] ss:$8 sps:$4 sm:$0xff]   ;;  %v9024_v10 = vld [vmem:[#allocation10 + $0x14] ss:$8 sps:$4 sm:$0xff]  }
 0x9d8   :  { %9199 = vtanh.f32 %v6724_v36  ;;  %v6725_v14 = vadd.f32 %v6723_v37, %v6721_v38  ;;  %v6711_v15 = vadd.f32 1.0, %v9198_v0  ;;  %7607 = vmatprep.subr.bf16.mxu1 %v9009_v40  ;;  %v9018_v36 = vld [vmem:[#allocation10 + $0x34] ss:$8 sps:$4 sm:$0xff]   ;;  %v9016_v38 = vld [vmem:[#allocation10 + $0x30] ss:$8 sps:$4 sm:$0xff]  }
 0x9d9   :  { %v6712_v22 = vmul.f32 0.5, %v6710_v4  ;;  %v9021_v37 = vld [vmem:[#allocation10 + $0x24] ss:$8 sps:$4 sm:$0xff]   ;;  %v9022_v0 = vld [vmem:[#allocation10 + $0x10] ss:$8 sps:$4 sm:$0xff]  }
 0x9da   :  { %9201 = vtanh.f32 %v6725_v14  ;;  %v6713_v26 = vmul.f32 0.5, %v6711_v15  ;;  %v9019_v14 = vld [vmem:[#allocation10 + $0x20] ss:$8 sps:$4 sm:$0xff]   ;;  %v9027_v4 = vld [vmem:[#allocation10 + $0x4] ss:$8 sps:$4 sm:$0xff]  }
 0x9db   :  { %7608 = vmatpush1.bf16.msra.mxu1 %v9007_v54  ;;  %v9025_v15 = vld [vmem:[#allocation10] ss:$8 sps:$4 sm:$0xff]   ;;  %v9041_v54 = vld [vmem:[%s12569_s23 + $0x48] ss:$0 sps:$4 sm:$0x77]  }
 0x9dc   :  { %7609 = vmatprep.subr.bf16.mxu1 %v9012_v12  ;;  %v7737_v12 = vsel %vm224_vm1, %v9041_v54, 0 }
 0x9df   :  { %7610 = vmatpush1.bf16.msra.mxu1 %v9010_v42  ;;  %v9042_v42 = vld [vmem:[%s12569_s23 + $0x40] sm:$0xff]  }
 0x9e0   :  { %7611 = vmatprep.subr.bf16.mxu1 %v9015_v8  ;;  %v7489_v8 = vld [vmem:[%s12568_s22] sm:$0x3] }
 0x9e3   :  { %7612 = vmatpush1.bf16.msra.mxu1 %v9013_v47 }
 0x9e4   :  { %7613 = vmatprep.subr.bf16.mxu1 %v9018_v36 }
 0x9e5   :  { %v9200_v30 = vpop.eup %9199 }
 0x9e6   :  { %v6728_v18 = vmul.f32 %v9200_v30, %v6712_v22 }
 0x9e7   :  { %v9202_v33 = vpop.eup %9201  ;;  %7614 = vmatpush1.bf16.msra.mxu1 %v9016_v38 }
 0x9e8   :  { %v6737_v7 = vsel %vm223_vm0, %v6728_v18, %v12073_v45  ;;  %v6729_v28 = vmul.f32 %v9202_v33, %v6713_v26  ;;  %7615 = vmatprep.subr.bf16.mxu1 %v9021_v37  ;;  %v7272_v26 = vld [vmem:[%s12564_s18] sm:$0x3] }
 0x9e9   :  { %v6739_v34 = vsel %vm6732_vm9, %v6737_v7, %v14130_v25 }
 0x9ea   :  { %v6738_v1 = vsel %vm223_vm0, %v6729_v28, %v12077_v46  ;;  %v6741_v63 = vsel %vm849_vm6, %v6739_v34, %v14132_v20  ;;  %v8977_v46 = vld [vmem:[%s12565_s19 + $0x74] ss:$8 sps:$4 sm:$0xff]  }
 0x9eb   :  { %v6740_v59 = vsel %vm6732_vm9, %v6738_v1, %v14131_v13  ;;  %v6777_v27 = vpack.c.bf16 %v6741_v63, %v6741_v63  ;;  %7616 = vmatpush1.bf16.msra.mxu1 %v9019_v14  ;;  %v14136_v28 = vld [vmem:[#allocation16_spill] sm:$0xff]  ;;  %v14137_v13 = vld [vmem:[#allocation17_spill] sm:$0xff] }
 0x9ec   :  { %v6742_v45 = vsel %vm849_vm6, %v6740_v59, %v14133_v3  ;;  %7617 = vmatprep.subr.bf16.mxu1 %v9024_v10  ;;  %v7277_v25 = vrot.slane %v7272_v26, %v14136_v28  ;;  %v7281_v59 = vrot.slane %v7272_v26, %v14137_v13  ;;  %v7494_v47 = vrot.slane %v7489_v8, %v14136_v28 }
 0x9ed   :  { %v6778_v48 = vpack.c.bf16 %v6742_v45, %v6742_v45  ;;  %v7498_v36 = vrot.slane %v7489_v8, %v14137_v13 }
 0x9ef   :  { %7003 = vmatprep.mubr.bf16.mxu0 %v6778_v48  ;;  %7618 = vmatpush1.bf16.msra.mxu1 %v9022_v0 }
 0x9f0   :  { %7004 = vmatmul.mubr.bf16.vlgmr.msra.gmra.mxu0 %v6777_v27  ;;  %7619 = vmatprep.subr.bf16.mxu1 %v9027_v4 }
 0x9f1   :  { %7244 = vmatpush1.bf16.msra.mxu0 %v7224_v2  ;;  %7261 = vmatprep.mubr.bf16.mxu0 %v14134_v52 }
 0x9f2   :  { %7425 = vmatprep.subr.bf16.mxu0 %v8977_v46 }
 0x9f3   :  { %7620 = vmatpush1.bf16.msra.mxu1 %v9025_v15 }
 0x9f8   :  { %8483 = vmatmul.mubr.msk.bf16.vlgmr.msra.gmra.mxu0 %vm330_vm4, %v14135_v11  ;;  %v7488_v11 = vld [vmem:[#allocation10 + $0x90] sm:$0x77] }
 0x9f9   :  { %7426 = vmatpush1.bf16.msra.mxu0 %v8975_v21 }
 0x9fa   :  { %7427 = vmatprep.subr.bf16.mxu0 %v8980_v56 }
 0x9fd   :  { %7428 = vmatpush1.bf16.msra.mxu0 %v8978_v16  ;;  %v8525_v16 = vcombine.high %v7488_v11, %v7488_v11 }
 0x9fe   :  { %7429 = vmatprep.subr.bf16.mxu0 %v8983_v44  ;;  %v8524_v44 = vcombine.low %v7488_v11, %v7488_v11 }
 0x9ff   :  { %8526 = vmatprep.subr.msk.bf16.mxu1 %vm224_vm1, %v8525_v16 }
 0xa01   :  { %7430 = vmatpush1.bf16.msra.mxu0 %v8981_v43  ;;  %v7600_v43 = vsel %vm224_vm1, %v8524_v44, 0 }
 0xa02   :  { %7431 = vmatprep.subr.bf16.mxu0 %v8986_v51  ;;  %7634 = vmatpush2.bf16.msra.mxu1 %v7600_v43  ;;  %v9032_v51 = vld [vmem:[#allocation10 + $0x84] ss:$8 sps:$4 sm:$0xff]  }
 0xa03   :  { %7635 = vmatprep.subr.bf16.mxu1 %v9032_v51 }
 0xa05   :  { %7432 = vmatpush1.bf16.msra.mxu0 %v8984_v19  ;;  %v9030_v19 = vld [vmem:[#allocation10 + $0x80] ss:$8 sps:$4 sm:$0xff]  }
 0xa06   :  { %7433 = vmatprep.subr.bf16.mxu0 %v8989_v29  ;;  %7636 = vmatpush2.bf16.msra.mxu1 %v9030_v19  ;;  %v9033_v29 = vld [vmem:[%s12569_s23 + $0x38] sm:$0xff]  }
 0xa09   :  { %7434 = vmatpush1.bf16.msra.mxu0 %v8987_v32  ;;  %v9034_v32 = vld [vmem:[%s12569_s23 + $0x30] sm:$0xff]  }
 0xa0a   :  { %7435 = vmatprep.subr.bf16.mxu0 %v8992_v41  ;;  %v9037_v41 = vld [vmem:[%s12569_s23 + $0x18] sm:$0xff]  }
 0xa0d   :  { %7436 = vmatpush1.bf16.msra.mxu0 %v8990_v31  ;;  %v9038_v31 = vld [vmem:[%s12569_s23 + $0x10] sm:$0xff]  }
 0xa0e   :  { %7437 = vmatprep.subr.bf16.mxu0 %v8995_v9  ;;  %v7309_v9 = vld [vmem:[%s12566_s20] sm:$0x3] }
 0xa11   :  { %7438 = vmatpush1.bf16.msra.mxu0 %v8993_v39  ;;  %v7314_v39 = vrot.slane %v7309_v9, %v14136_v28 }
 0xa12   :  { %7439 = vmatprep.subr.bf16.mxu0 %v8998_v6  ;;  %v7318_v6 = vrot.slane %v7309_v9, %v14137_v13 }
 0xa15   :  { %7440 = vmatpush1.bf16.msra.mxu0 %v8996_v62 }
 0xa16   :  { %8504 = vmatprep.subr.msk.bf16.mxu0 %vm224_vm1, %v8503_v60 }
 0xa19   :  { %7454 = vmatpush2.bf16.msra.mxu0 %v7420_v49 }
 0xa1a   :  { %7455 = vmatprep.subr.bf16.mxu0 %v9003_v5 }
 0xa1d   :  { %7456 = vmatpush2.bf16.msra.mxu0 %v9001_v58 }
 0xa1e   :  { %7739 = vmatprep.subr.bf16.mxu0 %v14134_v52 }
 0xa2c   :  { %v12436_v23 = vpop.f32.mrf.mxu1 }
 0xa2e   :  { %v12438_v57 = vpop.f32.mrf.mxu1 }
 0xa30   :  { %v7210_v61 = vpop.f32.mrf.mxu1 }
 0xa31   :  { %v9039_v61 = vld [vmem:[%s12569_s23 + $0x8] sm:$0xff]  }
 0xa32   :  { %v7211_v53 = vpop.f32.mrf.mxu1 }
 0xa33   :  { %v9040_v53 = vld [vmem:[%s12569_s23] sm:$0xff]  }
 0xab0   :  { %v7005_v22 = vpop.f32.mrf.mxu0 }
 0xab1   :  { %v7207_v7 = vadd.f32 %v12436_v23, %v7005_v22  ;;  %v9035_v23 = vld [vmem:[%s12569_s23 + $0x28] sm:$0xff]  }
 0xab2   :  { %v7007_v30 = vpop.f32.mrf.mxu0 }
 0xab3   :  { %v7209_v1 = vadd.f32 %v12438_v57, %v7007_v30  ;;  %v9036_v57 = vld [vmem:[%s12569_s23 + $0x20] sm:$0xff]  }
 0xab4   :  { %v7009_v18 = vpop.f32.mrf.mxu0 }
 0xab5   :  { %v8528_v18 = vld [vmem:[#allocation2] ss:$0 sm:$0xff] }
 0xab6   :  { %v7010_v33 = vpop.f32.mrf.mxu0 }
 0xab8   :  { %v7263_v34 = vpop.f32.mrf.mxu0 }
 0xab9   :  { %v7270_v50 = vadd.f32 %v7263_v34, %v7207_v7 }
 0xaba   :  { %v7265_v20 = vpop.f32.mrf.mxu0 }
 0xabb   :  { %v7284_v63 = vadd.f32 %v7277_v25, %v7270_v50  ;;  %v7271_v3 = vadd.f32 %v7265_v20, %v7209_v1  ;;  %v14138_v25 = vld [vmem:[#allocation14_spill] sm:$0xff] }
 0xabc   :  { %v7267_v45 = vpop.f32.mrf.mxu0 }
 0xabd   :  { %v7285_v48 = vadd.f32 %v7281_v59, %v7271_v3  ;;  %v7286_v27 = vmax.f32 %v7284_v63, 0.0 }
 0xabe   :  { %v7268_v2 = vpop.f32.mrf.mxu0 }
 0xabf   :  { %v7287_v46 = vmax.f32 %v7285_v48, 0.0  ;;  %v7288_v56 = vpack.c.bf16 %v7286_v27, %v7286_v27 }
 0xac1   :  { %v7289_v21 = vpack.c.bf16 %v7287_v46, %v7287_v46 }
 0xac3   :  { %8505 = vmatprep.mubr.msk.bf16.mxu0 %vm2928_vm8, %v7289_v21 }
 0xac4   :  { %7458 = vmatmul.mubr.bf16.vlgmr.msra.gmra.mxu0 %v7288_v56 }
 0xac5   :  { %7740 = vmatpush1.bf16.msra.mxu0 %v9033_v29 }
 0xac6   :  { %7741 = vmatprep.subr.bf16.mxu0 %v14134_v52 }
 0xac9   :  { %7742 = vmatpush1.bf16.msra.mxu0 %v9034_v32 }
 0xaca   :  { %7743 = vmatprep.subr.bf16.mxu0 %v14134_v52 }
 0xacd   :  { %7744 = vmatpush1.bf16.msra.mxu0 %v9035_v23 }
 0xace   :  { %7745 = vmatprep.subr.bf16.mxu0 %v14134_v52 }
 0xad1   :  { %7746 = vmatpush1.bf16.msra.mxu0 %v9036_v57 }
 0xad2   :  { %7747 = vmatprep.subr.bf16.mxu0 %v14134_v52 }
 0xad5   :  { %7748 = vmatpush1.bf16.msra.mxu0 %v9037_v41 }
 0xad6   :  { %7749 = vmatprep.subr.bf16.mxu0 %v14134_v52 }
 0xad9   :  { %7750 = vmatpush1.bf16.msra.mxu0 %v9038_v31 }
 0xada   :  { %7751 = vmatprep.subr.bf16.mxu0 %v14134_v52 }
 0xadd   :  { %7752 = vmatpush1.bf16.msra.mxu0 %v9039_v61 }
 0xade   :  { %7753 = vmatprep.subr.bf16.mxu0 %v14134_v52 }
 0xae1   :  { %7754 = vmatpush1.bf16.msra.mxu0 %v9040_v53 }
 0xae2   :  { %7767 = vmatprep.subr.bf16.mxu0 %v14134_v52 }
 0xae5   :  { %7768 = vmatpush2.bf16.msra.mxu0 %v7737_v12 }
 0xae6   :  { %7769 = vmatprep.subr.bf16.mxu0 %v14134_v52 }
 0xae9   :  { %7770 = vmatpush2.bf16.msra.mxu0 %v9042_v42 }
 0xb84   :  { %v7459_v62 = vpop.f32.mrf.mxu0 }
 0xb85   :  { %v7460_v55 = vadd.f32 %v7459_v62, %v7314_v39 }
 0xb86   :  { %v7461_v60 = vpop.f32.mrf.mxu0 }
 0xb87   :  { %v7462_v24 = vadd.f32 %v7461_v60, %v7318_v6  ;;  %v7466_v49 = vmax.f32 %v7460_v55, 0.0 }
 0xb88   :  { %v7463_v5 = vpop.f32.mrf.mxu0 }
 0xb89   :  { %v7467_v58 = vmax.f32 %v7462_v24, 0.0  ;;  %v7468_v40 = vpack.c.bf16 %v7466_v49, %v7466_v49 }
 0xb8a   :  { %v7464_v35 = vpop.f32.mrf.mxu0 }
 0xb8b   :  { %v7469_v17 = vpack.c.bf16 %v7467_v58, %v7467_v58 }
 0xb8d   :  { %8527 = vmatprep.mubr.msk.bf16.mxu1 %vm2928_vm8, %v7469_v17 }
 0xb8e   :  { %7638 = vmatmul.mubr.bf16.vlgmr.msra.gmra.mxu1 %v7468_v40 }
 0xc4e   :  { %v7639_v38 = vpop.f32.mrf.mxu1 }
 0xc4f   :  { %v7640_v37 = vadd.f32 %v7639_v38, %v7494_v47 }
 0xc50   :  { %v7641_v14 = vpop.f32.mrf.mxu1 }
 0xc51   :  { %v7642_v10 = vadd.f32 %v7641_v14, %v7498_v36  ;;  %v7646_v0 = vmax.f32 %v7640_v37, 0.0 }
 0xc52   :  { %v7643_v4 = vpop.f32.mrf.mxu1 }
 0xc53   :  { %v7647_v52 = vmax.f32 %v7642_v10, 0.0  ;;  %v7648_v30 = vpack.c.bf16 %v7646_v0, %v7646_v0 }
 0xc54   :  { %v7644_v15 = vpop.f32.mrf.mxu1 }
 0xc55   :  { %v7649_v22 = vpack.c.bf16 %v7647_v52, %v7647_v52 }
 0xc57   :  { %8539 = vmatprep.mubr.msk.bf16.mxu0 %vm2928_vm8, %v7649_v22 }
 0xc58   :  { %7772 = vmatmul.mubr.bf16.vlgmr.msra.gmra.mxu0 %v7648_v30 }
 0xd18   :  { %v7773_v26 = vpop.f32.mrf.mxu0 }
 0xd19   :  { %v7774_v33 = vadd.f32 %v8528_v18, %v7773_v26 }
 0xd1a   :  { %v7775_v7 = vpop.f32.mrf.mxu0 }
 0xd1b   :  { %v7780_v28 = vcombine.high %v7774_v33, %v7774_v33  ;;  %v7787_v34 = vrot.slane %v7774_v33, %v14138_v25 }
 0xd1c   :  { %v7776_v1 = vpop.f32.mrf.mxu0 }
 0xd1d   :  { %v7794_v50 = vrot.slane %v7780_v28, %v14138_v25  ;;  %v7795_v13 = vcombine.high %v7787_v34, %v7787_v34  ;;  %7802 = vst.msk [vmem:[%s14139_s2] sm:$0x3] %vm7801_vm10, %v7787_v34 }
 0xd1e   :  { %v7777_v59 = vpop.f32.mrf.mxu0 }
 0xd1f   :  { %v7796_v20 = vcombine.high %v7794_v50, %v7794_v50  ;;  %7803 = vst.msk [vmem:[%s14139_s2 + $0x2] sm:$0x3] %vm7801_vm10, %v7795_v13  ;;  %7804 = vst.msk [vmem:[%s14139_s2 + $0x4] sm:$0x3] %vm7801_vm10, %v7794_v50 }
 0xd21   :  { %7805 = vst.msk [vmem:[%s14139_s2 + $0x6] sm:$0x3] %vm7801_vm10, %v7796_v20 }
 0xd22   :  { %7810 = vsyncpa [#allocation4], 1 }
 0xd23   :  { %7811 = vsyncpa [#allocation6], 1 }
 0xd24   :  { %7812 = vsyncpa [#allocation9], 1 }

</bundles_post_ra>
